<compile_context>
chip_gen: v5e
topology: v5e:2x2
jax: 0.10.0
libtpu: 0.0.40
codegen_flags: <defaults>
</compile_context>

<pallas_src>
import jax
import jax.numpy as jnp
from jax import lax
from jax.experimental import pallas as pl
from jax.experimental.pallas import tpu as pltpu


# ----------------------------- in-kernel math ------------------------------ #

_SQRT_HALF = 0.7071067811865476


def _erf(x):
    # Abramowitz & Stegun 7.1.26 polynomial (|err| <= 1.5e-7).  Uses only
    # mul/add/exp/where so it is guaranteed to lower in Mosaic.
    p = 0.3275911
    a1, a2, a3, a4, a5 = (0.254829592, -0.284496736, 1.421413741,
                          -1.453152027, 1.061405429)
    sgn = jnp.where(x >= 0.0, 1.0, -1.0)
    ax = jnp.abs(x)
    t = 1.0 / (1.0 + p * ax)
    poly = ((((a5 * t + a4) * t + a3) * t + a2) * t + a1) * t
    return sgn * (1.0 - poly * jnp.exp(-ax * ax))


def _gelu(x):
    # exact (erf-based) GELU, matching torch.nn.GELU() default
    return 0.5 * x * (1.0 + _erf(x * _SQRT_HALF))


def _layernorm_cf(x_f32, w, b, eps=1e-6):
    # PyTorch "channels_first" LayerNorm == per-pixel LN over channels (last axis
    # in NHWC) with biased variance; stats in f32, rsqrt on the EUP.
    u = jnp.mean(x_f32, axis=-1, keepdims=True)
    d = x_f32 - u
    s = jnp.mean(d * d, axis=-1, keepdims=True)
    return d * lax.rsqrt(s + eps) * w + b


def _dw3x3_rows(x, w, b):
    """Depthwise 3x3: zero-padded in W, *valid* in rows.

    x: (R, W, ch) (bf16), w: (3, 3, ch), b: (1, ch).
    Returns f32 (R-2, W, ch) = conv output at input rows 1..R-2.
    The caller supplies the row halo, so no padded row copy is materialised.
    """
    R, W, ch = x.shape
    zc = jnp.zeros((R, 1, ch), x.dtype)
    xp = jnp.concatenate([zc, x, zc], axis=1)             # (R, W+2, ch)
    rout = R - 2
    acc = jnp.zeros((rout, W, ch), jnp.float32)
    for i in range(3):
        for j in range(3):
            acc = acc + w[i:i + 1, j:j + 1, :] * xp[i:i + rout, j:j + W, :]
    return acc + b


# --------------------------------- kernel ---------------------------------- #

def _make_kernel(*, aligned, H, W, C, c, Gc, Cout, TH, n_tiles):
    R = TH + 4          # slab rows (output rows + 2-row halo on each side)
    Nm = (TH + 2) * W   # rows needed after the first depthwise conv

    def kernel(x_hbm, g_hbm, vC_ref, vc_ref, wd_pw_ref, wd_dw_ref, *rest):
        if aligned:
            wl_dw_ref, wl_pw_ref, bl_pw_ref, o_ref, xs, gs, sem = rest
            s_ref = None
        else:
            s_ref, wl_dw_ref, wl_pw_ref, bl_pw_ref, o_ref, xs, gs, sem = rest

        b = pl.program_id(0)
        ti = pl.program_id(1)
        r0 = ti * TH
        first = ti == 0
        not_first = ti > 0
        last = ti == n_tiles - 1
        not_last = ti < n_tiles - 1

        # ---- halo-slab DMAs: rows [r0-2, r0+TH+2) of x and of the gate ------
        cx = pltpu.make_async_copy(x_hbm.at[b, pl.ds(r0, TH)],
                                   xs.at[pl.ds(2, TH)], sem.at[0])
        cg = pltpu.make_async_copy(g_hbm.at[pl.ds(r0, TH)],
                                   gs.at[pl.ds(2, TH)], sem.at[1])
        cx.start()
        cg.start()

        @pl.when(not_first)
        def _():
            pltpu.make_async_copy(x_hbm.at[b, pl.ds(r0 - 2, 2)],
                                  xs.at[pl.ds(0, 2)], sem.at[2]).start()
            pltpu.make_async_copy(g_hbm.at[pl.ds(r0 - 2, 2)],
                                  gs.at[pl.ds(0, 2)], sem.at[3]).start()

        @pl.when(first)
        def _():
            xs[0:2, :, :] = jnp.zeros((2, W, C), jnp.bfloat16)
            gs[0:2, :, :] = jnp.zeros((2, W, Gc), jnp.bfloat16)

        @pl.when(not_last)
        def _():
            pltpu.make_async_copy(x_hbm.at[b, pl.ds(r0 + TH, 2)],
                                  xs.at[pl.ds(TH + 2, 2)], sem.at[4]).start()
            pltpu.make_async_copy(g_hbm.at[pl.ds(r0 + TH, 2)],
                                  gs.at[pl.ds(TH + 2, 2)], sem.at[5]).start()

        @pl.when(last)
        def _():
            xs[TH + 2:TH + 4, :, :] = jnp.zeros((2, W, C), jnp.bfloat16)
            gs[TH + 2:TH + 4, :, :] = jnp.zeros((2, W, Gc), jnp.bfloat16)

        cx.wait()
        cg.wait()

        @pl.when(not_first)
        def _():
            pltpu.make_async_copy(x_hbm.at[b, pl.ds(r0 - 2, 2)],
                                  xs.at[pl.ds(0, 2)], sem.at[2]).wait()
            pltpu.make_async_copy(g_hbm.at[pl.ds(r0 - 2, 2)],
                                  gs.at[pl.ds(0, 2)], sem.at[3]).wait()

        @pl.when(not_last)
        def _():
            pltpu.make_async_copy(x_hbm.at[b, pl.ds(r0 + TH, 2)],
                                  xs.at[pl.ds(TH + 2, 2)], sem.at[4]).wait()
            pltpu.make_async_copy(g_hbm.at[pl.ds(r0 + TH, 2)],
                                  gs.at[pl.ds(TH + 2, 2)], sem.at[5]).wait()

        # ---- packed per-channel parameters -----------------------------------
        vC = vC_ref[...]
        n1w, n1b = vC[0:1, :], vC[1:2, :]
        n2w, n2b = vC[2:3, :], vC[3:4, :]
        bl_dw = vC[4:5, :]
        vc = vc_ref[...]
        bd_pw, bd_dw = vc[0:1, :], vc[1:2, :]

        # Row-validity masks (halo rows may fall outside the image); expressed on
        # the flattened (rows*W) index so no 3-D iota / int division is needed.
        flat_full = lax.broadcasted_iota(jnp.int32, (R * W, 1), 0)
        ok_full = jnp.logical_and(flat_full >= (2 - r0) * W,
                                  flat_full < (H + 2 - r0) * W)
        flat_mid = lax.broadcasted_iota(jnp.int32, (Nm, 1), 0)
        ok_mid = jnp.logical_and(flat_mid >= (1 - r0) * W,
                                 flat_mid < (H + 1 - r0) * W)

        # ---- norm1 ------------------------------------------------------------
        y = _layernorm_cf(xs[...].astype(jnp.float32), n1w, n1b)   # (R, W, C) f32
        y_b = y.astype(jnp.bfloat16)

        # ---- branch 4: 1x1 -> GELU -> depthwise 3x3 ----------------------------
        if aligned:
            y4 = y_b[:, :, 3 * c:].reshape(R * W, c)      # lane-aligned slice
        else:
            y4 = y_b.reshape(R * W, C)                    # zero-embedded weight reads x4 lanes
        t4 = jnp.dot(y4, wd_pw_ref[...],
                     preferred_element_type=jnp.float32) + bd_pw
        # rows outside the image must be zero before the zero-padded conv
        t4 = jnp.where(ok_full, _gelu(t4), 0.0).astype(jnp.bfloat16)
        x4 = _dw3x3_rows(t4.reshape(R, W, c), wd_dw_ref[...], bd_dw)  # (TH+2, W, c) f32

        # ---- branches 1-3 (precomputed gate) + merge, slab rows 1..TH+2 --------
        yg = (y_b[1:TH + 3, :, :Gc] * gs[1:TH + 3]).astype(jnp.float32)
        if aligned:
            z = jnp.concatenate([yg, x4], axis=-1)                   # (TH+2, W, C)
        else:
            z = yg + jnp.dot(x4.astype(jnp.bfloat16).reshape(Nm, c),
                             s_ref[...],
                             preferred_element_type=jnp.float32).reshape(TH + 2, W, C)

        # ---- norm2 + ldw: dw3x3 -> GELU -> 1x1 to dim_out ----------------------
        z = _layernorm_cf(z, n2w, n2b).reshape(Nm, C)
        z = jnp.where(ok_mid, z, 0.0).astype(jnp.bfloat16).reshape(TH + 2, W, C)
        z = _gelu(_dw3x3_rows(z, wl_dw_ref[...], bl_dw))             # (TH, W, C) f32
        out = jnp.dot(z.astype(jnp.bfloat16).reshape(TH * W, C), wl_pw_ref[...],
                      preferred_element_type=jnp.float32) + bl_pw_ref[...]
        o_ref[0] = out.reshape(TH, W, Cout).astype(o_ref.dtype)

    return kernel


# --------------------- wrapper-side (batch-independent) --------------------- #

def _interp1d_align_corners(vals, n_out):
    # 1-D linear interpolation with align_corners=True (matches the reference's
    # F.interpolate(..., mode='bilinear', align_corners=True) on degenerate dims).
    n_in = vals.shape[0]
    if n_out == 1:
        return vals[:1]
    if n_in == 1:
        return jnp.broadcast_to(vals, (n_out,))
    pos = jnp.arange(n_out, dtype=jnp.float32) * (n_in - 1) / (n_out - 1)
    lo = jnp.floor(pos).astype(jnp.int32)
    hi = jnp.minimum(lo + 1, n_in - 1)
    frac = pos - lo.astype(jnp.float32)
    return vals[lo] * (1.0 - frac) + vals[hi] * frac


def _dw3x3_host(x, w, b):
    # plain-JAX depthwise 3x3 (zero pad 1) for the tiny gate precompute only.
    H, W, ch = x.shape
    xp = jnp.pad(x, ((1, 1), (1, 1), (0, 0)))
    acc = jnp.zeros((H, W, ch), jnp.float32)
    for i in range(3):
        for j in range(3):
            acc = acc + w[i, j] * xp[i:i + H, j:j + W, :]
    return acc + b


def _dw1d_host(x, w, b):
    # plain-JAX depthwise 1D conv (kernel 3, zero pad 1). x:(L,ch) w:(3,ch)
    L, ch = x.shape
    xp = jnp.pad(x, ((1, 1), (0, 0)))
    acc = jnp.zeros((L, ch), jnp.float32)
    for k in range(3):
        acc = acc + w[k] * xp[k:k + L, :]
    return acc + b


def _precompute_gate(p, H, W, C, aligned):
    """Batch-independent gates of branches 1-3, packed into one gate tensor."""
    c = C // 4
    gelu = lambda v: jax.nn.gelu(v, approximate=False)

    # branch 1: conv_c(F.interpolate(params_c -> (H, W)))  (1x1 source => constant)
    gc_in = jnp.broadcast_to(p["params_c"][None, None, :], (H, W, c))
    g1 = _dw3x3_host(gc_in, jnp.transpose(p["conv_c_dw_w"][:, 0], (1, 2, 0)),
                     p["conv_c_dw_b"])
    g1 = gelu(g1).reshape(H * W, c) @ p["conv_c_pw_w"][:, :, 0, 0].T + p["conv_c_pw_b"]
    g1 = g1.reshape(H, W, c)

    # branch 2: conv_x over H of params_x interpolated to the channel axis
    gx_in = jnp.broadcast_to(_interp1d_align_corners(p["params_x"], c)[None, :], (H, c))
    gx = _dw1d_host(gx_in, p["conv_x_dw_w"][:, 0].T, p["conv_x_dw_b"])
    gx = gelu(gx) @ p["conv_x_pw_w"][:, :, 0].T + p["conv_x_pw_b"]        # (H, c)

    # branch 3: conv_y over W of params_y interpolated to W
    gy_in = jnp.broadcast_to(_interp1d_align_corners(p["params_y"], W)[:, None], (W, c))
    gy = _dw1d_host(gy_in, p["conv_y_dw_w"][:, 0].T, p["conv_y_dw_b"])
    gy = gelu(gy) @ p["conv_y_pw_w"][:, :, 0].T + p["conv_y_pw_b"]        # (W, c)

    parts = [g1,
             jnp.broadcast_to(gx[:, None, :], (H, W, c)),
             jnp.broadcast_to(gy[None, :, :], (H, W, c))]
    if not aligned:
        # branch-4 lanes carried as zeros (filled in-kernel via selection matmul)
        parts.append(jnp.zeros((H, W, c), jnp.float32))
    return jnp.concatenate(parts, axis=-1).astype(jnp.float32)


def _pick_row_tile(H, W, C, Cout, row_tile=None):
    if row_tile is None:
        # rough f32-equivalent working-set bytes per slab row
        per_row = W * (10 * C + Cout) * 4
        row_tile = max(int((24 * 1024 * 1024) // max(per_row, 1)), 8)
    th = int(min(max(row_tile, 1), H))
    while th > 1 and H % th != 0:
        th -= 1
    if th < 2:          # halo logic needs TH >= 2 (or a single full-height tile)
        th = H
    return th


def _vmem_limit_bytes():
    cap = 64 * 1024 * 1024
    try:
        info = pltpu.get_tpu_info()
        cap = int(getattr(info, "vmem_capacity_bytes", cap))
    except Exception:
        pass
    # ~80% of physical, capped at 110 MiB on 128-MiB parts, floor at the default.
    return int(max(min(cap * 0.8, 110 * 1024 * 1024), 32 * 1024 * 1024))


def init_params(key, dim_in, dim_out, px=8, py=8):
    c = dim_in // 4
    ks = jax.random.split(key, 20)

    def w(k, shape, scale=0.1):
        return (scale * jax.random.normal(k, shape)).astype(jnp.float32)

    return dict(
        norm1_w=jnp.ones((dim_in,), jnp.float32),
        norm1_b=jnp.zeros((dim_in,), jnp.float32),
        norm2_w=jnp.ones((dim_in,), jnp.float32),
        norm2_b=jnp.zeros((dim_in,), jnp.float32),
        params_c=jnp.ones((c,), jnp.float32),
        params_x=jnp.ones((px,), jnp.float32),
        params_y=jnp.ones((py,), jnp.float32),
        conv_c_dw_w=w(ks[0], (c, 1, 3, 3)),  conv_c_dw_b=w(ks[1], (c,)),
        conv_c_pw_w=w(ks[2], (c, c, 1, 1)),  conv_c_pw_b=w(ks[3], (c,)),
        conv_x_dw_w=w(ks[4], (c, 1, 3)),     conv_x_dw_b=w(ks[5], (c,)),
        conv_x_pw_w=w(ks[6], (c, c, 1)),     conv_x_pw_b=w(ks[7], (c,)),
        conv_y_dw_w=w(ks[8], (c, 1, 3)),     conv_y_dw_b=w(ks[9], (c,)),
        conv_y_pw_w=w(ks[10], (c, c, 1)),    conv_y_pw_b=w(ks[11], (c,)),
        dw_pw_w=w(ks[12], (c, c, 1, 1)),     dw_pw_b=w(ks[13], (c,)),
        dw_dw_w=w(ks[14], (c, 1, 3, 3)),     dw_dw_b=w(ks[15], (c,)),
        ldw_dw_w=w(ks[16], (dim_in, 1, 3, 3)), ldw_dw_b=w(ks[17], (dim_in,)),
        ldw_pw_w=w(ks[18], (dim_out, dim_in, 1, 1)), ldw_pw_b=w(ks[19], (dim_out,)),
    )


def gmfr2_forward(x_nchw, p, row_tile=None):
    B, C, H, W = x_nchw.shape
    c = C // 4
    Cout = p["ldw_pw_w"].shape[0]
    aligned = (c % 128 == 0)      # lane-aligned channel split -> fast branch-4 path

    TH = _pick_row_tile(H, W, C, Cout, row_tile)
    n_tiles = H // TH

    # NHWC activations / gates in bf16 (halves HBM traffic; f32 accumulation inside).
    # TODO(synk): keeping the NCHW module interface costs two wrapper transposes;
    #             an NHWC end-to-end pipeline would drop them.
    x = jnp.transpose(x_nchw, (0, 2, 3, 1)).astype(jnp.bfloat16)        # (B,H,W,C)
    G = _precompute_gate(p, H, W, C, aligned).astype(jnp.bfloat16)      # (H,W,3c|C)
    Gc = G.shape[-1]

    # Packed per-channel vectors (cuts tiny VMEM inputs / DMA descriptors).
    vecs_C = jnp.stack([p["norm1_w"], p["norm1_b"], p["norm2_w"], p["norm2_b"],
                        p["ldw_dw_b"]], axis=0).astype(jnp.float32)      # (5, C)
    vecs_c = jnp.stack([p["dw_pw_b"], p["dw_dw_b"]],
                       axis=0).astype(jnp.float32)                       # (2, c)

    Wd_pw = p["dw_pw_w"][:, :, 0, 0].T                                   # (c_in, c_out)
    wd_dw = jnp.transpose(p["dw_dw_w"][:, 0], (1, 2, 0)).astype(jnp.bfloat16)   # (3,3,c)
    wl_dw = jnp.transpose(p["ldw_dw_w"][:, 0], (1, 2, 0)).astype(jnp.bfloat16)  # (3,3,C)
    wl_pw = p["ldw_pw_w"][:, :, 0, 0].T.astype(jnp.bfloat16)             # (C, Cout)
    bl_pw = p["ldw_pw_b"].reshape(1, Cout).astype(jnp.float32)

    if aligned:
        inputs = [x, G, vecs_C, vecs_c, Wd_pw.astype(jnp.bfloat16), wd_dw,
                  wl_dw, wl_pw, bl_pw]
    else:
        # Branch-4 1x1 weight zero-embedded over full width (reads x4 lanes only)
        # and selection matrix placing the result back at [3c, 4c).
        wd_emb = jnp.zeros((C, c), jnp.float32).at[3 * c:, :].set(Wd_pw)
        S = jnp.zeros((c, C), jnp.float32).at[:, 3 * c:].set(
            jnp.eye(c, dtype=jnp.float32))
        inputs = [x, G, vecs_C, vecs_c, wd_emb.astype(jnp.bfloat16), wd_dw,
                  S.astype(jnp.bfloat16), wl_dw, wl_pw, bl_pw]

    def _const_spec(a):
        nd = a.ndim
        return pl.BlockSpec(a.shape, lambda b, t, _nd=nd: (0,) * _nd)

    in_specs = [pl.BlockSpec(memory_space=pl.ANY),      # x  (manual halo DMA)
                pl.BlockSpec(memory_space=pl.ANY)]      # G  (manual halo DMA)
    in_specs += [_const_spec(a) for a in inputs[2:]]

    kernel = _make_kernel(aligned=aligned, H=H, W=W, C=C, c=c, Gc=Gc,
                          Cout=Cout, TH=TH, n_tiles=n_tiles)

    out_nhwc = pl.pallas_call(
        kernel,
        out_shape=jax.ShapeDtypeStruct((B, H, W, Cout), jnp.float32),
        grid=(B, n_tiles),
        in_specs=in_specs,
        out_specs=pl.BlockSpec((1, TH, W, Cout), lambda b, t: (b, t, 0, 0)),
        scratch_shapes=[pltpu.VMEM((TH + 4, W, C), jnp.bfloat16),
                        pltpu.VMEM((TH + 4, W, Gc), jnp.bfloat16),
                        pltpu.SemaphoreType.DMA((6,))],
        compiler_params=pltpu.CompilerParams(
            dimension_semantics=("parallel", "parallel"),
            vmem_limit_bytes=_vmem_limit_bytes()),
    )(*inputs)

    return jnp.transpose(out_nhwc, (0, 3, 1, 2))                          # back to NCHW


if __name__ == "__main__":
    key = jax.random.PRNGKey(0)
    kx, kp = jax.random.split(key)

    B, dim_in, dim_out, H, W = 2, 16, 16, 16, 16                          # c_dim_in = 4
    x = jax.random.normal(kx, (B, dim_in, H, W), dtype=jnp.float32)       # NCHW like torch
    params = init_params(kp, dim_in, dim_out)

    # row_tile=8 -> 2 row-tiles per image: exercises the halo-DMA / masking path.
    out = gmfr2_forward(x, params, row_tile=8)
    out = jax.block_until_ready(out)
    assert out.shape == (B, dim_out, H, W)
    assert bool(jnp.all(jnp.isfinite(out)))
    print("KERNEL_OK")
</pallas_src>

<mosaic_0001>
module attributes {stable_mosaic.version = 11 : i64} {
  func.func @kernel(%arg0: i32, %arg1: i32, %arg2: memref<2x16x16x16xbf16, #tpu.memory_space<any>>, %arg3: memref<16x16x16xbf16, #tpu.memory_space<any>>, %arg4: memref<5x16xf32, #tpu.memory_space<vmem>>, %arg5: memref<2x4xf32, #tpu.memory_space<vmem>>, %arg6: memref<16x4xbf16, #tpu.memory_space<vmem>>, %arg7: memref<3x3x4xbf16, #tpu.memory_space<vmem>>, %arg8: memref<4x16xbf16, #tpu.memory_space<vmem>>, %arg9: memref<3x3x16xbf16, #tpu.memory_space<vmem>>, %arg10: memref<16x16xbf16, #tpu.memory_space<vmem>>, %arg11: memref<1x16xf32, #tpu.memory_space<vmem>>, %arg12: memref<1x8x16x16xf32, #tpu.memory_space<vmem>>, %arg13: memref<12x16x16xbf16, #tpu.memory_space<vmem>>, %arg14: memref<12x16x16xbf16, #tpu.memory_space<vmem>>, %arg15: memref<6x!tpu.dma_semaphore, #tpu.memory_space<semaphore_mem>>) attributes {dimension_semantics = [#tpu.dimension_semantics<parallel>, #tpu.dimension_semantics<parallel>], iteration_bounds = array<i64: 2, 2>, scalar_prefetch = 0 : i64, scratch_operands = 3 : i64, tpu.core_type = #tpu.core_type<tc>, window_params = [{}, {}, {pipeline_mode = #tpu.pipeline_mode<synchronous>, transform_indices = @transform_2, window_bounds = array<i64: 5, 16>}, {pipeline_mode = #tpu.pipeline_mode<synchronous>, transform_indices = @transform_3, window_bounds = array<i64: 2, 4>}, {pipeline_mode = #tpu.pipeline_mode<synchronous>, transform_indices = @transform_4, window_bounds = array<i64: 16, 4>}, {pipeline_mode = #tpu.pipeline_mode<synchronous>, transform_indices = @transform_5, window_bounds = array<i64: 3, 3, 4>}, {pipeline_mode = #tpu.pipeline_mode<synchronous>, transform_indices = @transform_6, window_bounds = array<i64: 4, 16>}, {pipeline_mode = #tpu.pipeline_mode<synchronous>, transform_indices = @transform_7, window_bounds = array<i64: 3, 3, 16>}, {pipeline_mode = #tpu.pipeline_mode<synchronous>, transform_indices = @transform_8, window_bounds = array<i64: 16, 16>}, {pipeline_mode = #tpu.pipeline_mode<synchronous>, transform_indices = @transform_9, window_bounds = array<i64: 1, 16>}, {transform_indices = @transform_10, window_bounds = array<i64: 1, 8, 16, 16>}]} {
    %c8_i32 = arith.constant 8 : i32
    %0 = arith.muli %arg1, %c8_i32 : i32
    %c0_i32 = arith.constant 0 : i32
    %1 = arith.cmpi eq, %arg1, %c0_i32 : i32
    %c0_i32_0 = arith.constant 0 : i32
    %2 = arith.cmpi sgt, %arg1, %c0_i32_0 : i32
    %c1_i32 = arith.constant 1 : i32
    %3 = arith.cmpi eq, %arg1, %c1_i32 : i32
    %c1_i32_1 = arith.constant 1 : i32
    %4 = arith.cmpi slt, %arg1, %c1_i32_1 : i32
    %c0_i32_2 = arith.constant 0 : i32
    %c0_i32_3 = arith.constant 0 : i32
    %c0_i32_4 = arith.constant 0 : i32
    %5 = tpu.memref_slice %arg2[%arg0, %0, %c0_i32_3, %c0_i32_4] : memref<2x16x16x16xbf16, #tpu.memory_space<any>> -> memref<1x8x16x16xbf16, #tpu.memory_space<any>>
    %6 = tpu.memref_squeeze %5 : memref<1x8x16x16xbf16, #tpu.memory_space<any>> -> memref<8x16x16xbf16, #tpu.memory_space<any>>
    %c2_i32 = arith.constant 2 : i32
    %c0_i32_5 = arith.constant 0 : i32
    %c0_i32_6 = arith.constant 0 : i32
    %7 = tpu.memref_slice %arg13[%c2_i32, %c0_i32_5, %c0_i32_6] : memref<12x16x16xbf16, #tpu.memory_space<vmem>> -> memref<8x16x16xbf16, #tpu.memory_space<vmem>>
    %8 = tpu.memref_slice %arg15[%c0_i32_2] : memref<6x!tpu.dma_semaphore, #tpu.memory_space<semaphore_mem>> -> memref<1x!tpu.dma_semaphore, #tpu.memory_space<semaphore_mem>>
    %9 = tpu.memref_squeeze %8 : memref<1x!tpu.dma_semaphore, #tpu.memory_space<semaphore_mem>> -> memref<!tpu.dma_semaphore, #tpu.memory_space<semaphore_mem>>
    tpu.enqueue_dma source(%6 : memref<8x16x16xbf16, #tpu.memory_space<any>>) target(%7 : memref<8x16x16xbf16, #tpu.memory_space<vmem>>) target_semaphore(%9 : memref<!tpu.dma_semaphore, #tpu.memory_space<semaphore_mem>>)
    %c1_i32_7 = arith.constant 1 : i32
    %c0_i32_8 = arith.constant 0 : i32
    %c0_i32_9 = arith.constant 0 : i32
    %10 = tpu.memref_slice %arg3[%0, %c0_i32_8, %c0_i32_9] : memref<16x16x16xbf16, #tpu.memory_space<any>> -> memref<8x16x16xbf16, #tpu.memory_space<any>>
    %c2_i32_10 = arith.constant 2 : i32
    %c0_i32_11 = arith.constant 0 : i32
    %c0_i32_12 = arith.constant 0 : i32
    %11 = tpu.memref_slice %arg14[%c2_i32_10, %c0_i32_11, %c0_i32_12] : memref<12x16x16xbf16, #tpu.memory_space<vmem>> -> memref<8x16x16xbf16, #tpu.memory_space<vmem>>
    %12 = tpu.memref_slice %arg15[%c1_i32_7] : memref<6x!tpu.dma_semaphore, #tpu.memory_space<semaphore_mem>> -> memref<1x!tpu.dma_semaphore, #tpu.memory_space<semaphore_mem>>
    %13 = tpu.memref_squeeze %12 : memref<1x!tpu.dma_semaphore, #tpu.memory_space<semaphore_mem>> -> memref<!tpu.dma_semaphore, #tpu.memory_space<semaphore_mem>>
    tpu.enqueue_dma source(%10 : memref<8x16x16xbf16, #tpu.memory_space<any>>) target(%11 : memref<8x16x16xbf16, #tpu.memory_space<vmem>>) target_semaphore(%13 : memref<!tpu.dma_semaphore, #tpu.memory_space<semaphore_mem>>)
    %14 = arith.extui %2 : i1 to i32
    %c0_i32_13 = arith.constant 0 : i32
    %15 = arith.cmpi ne, %14, %c0_i32_13 : i32
    scf.if %15 {
      %c2_i32_112 = arith.constant 2 : i32
      %354 = arith.subi %0, %c2_i32_112 : i32
      %c2_i32_113 = arith.constant 2 : i32
      %c0_i32_114 = arith.constant 0 : i32
      %c0_i32_115 = arith.constant 0 : i32
      %355 = tpu.memref_slice %arg2[%arg0, %354, %c0_i32_114, %c0_i32_115] : memref<2x16x16x16xbf16, #tpu.memory_space<any>> -> memref<1x2x16x16xbf16, #tpu.memory_space<any>>
      %356 = tpu.memref_squeeze %355 : memref<1x2x16x16xbf16, #tpu.memory_space<any>> -> memref<2x16x16xbf16, #tpu.memory_space<any>>
      %c0_i32_116 = arith.constant 0 : i32
      %c0_i32_117 = arith.constant 0 : i32
      %c0_i32_118 = arith.constant 0 : i32
      %357 = tpu.memref_slice %arg13[%c0_i32_116, %c0_i32_117, %c0_i32_118] : memref<12x16x16xbf16, #tpu.memory_space<vmem>> -> memref<2x16x16xbf16, #tpu.memory_space<vmem>>
      %358 = tpu.memref_slice %arg15[%c2_i32_113] : memref<6x!tpu.dma_semaphore, #tpu.memory_space<semaphore_mem>> -> memref<1x!tpu.dma_semaphore, #tpu.memory_space<semaphore_mem>>
      %359 = tpu.memref_squeeze %358 : memref<1x!tpu.dma_semaphore, #tpu.memory_space<semaphore_mem>> -> memref<!tpu.dma_semaphore, #tpu.memory_space<semaphore_mem>>
      tpu.enqueue_dma source(%356 : memref<2x16x16xbf16, #tpu.memory_space<any>>) target(%357 : memref<2x16x16xbf16, #tpu.memory_space<vmem>>) target_semaphore(%359 : memref<!tpu.dma_semaphore, #tpu.memory_space<semaphore_mem>>)
      %c2_i32_119 = arith.constant 2 : i32
      %360 = arith.subi %0, %c2_i32_119 : i32
      %c3_i32 = arith.constant 3 : i32
      %c0_i32_120 = arith.constant 0 : i32
      %c0_i32_121 = arith.constant 0 : i32
      %361 = tpu.memref_slice %arg3[%360, %c0_i32_120, %c0_i32_121] : memref<16x16x16xbf16, #tpu.memory_space<any>> -> memref<2x16x16xbf16, #tpu.memory_space<any>>
      %c0_i32_122 = arith.constant 0 : i32
      %c0_i32_123 = arith.constant 0 : i32
      %c0_i32_124 = arith.constant 0 : i32
      %362 = tpu.memref_slice %arg14[%c0_i32_122, %c0_i32_123, %c0_i32_124] : memref<12x16x16xbf16, #tpu.memory_space<vmem>> -> memref<2x16x16xbf16, #tpu.memory_space<vmem>>
      %363 = tpu.memref_slice %arg15[%c3_i32] : memref<6x!tpu.dma_semaphore, #tpu.memory_space<semaphore_mem>> -> memref<1x!tpu.dma_semaphore, #tpu.memory_space<semaphore_mem>>
      %364 = tpu.memref_squeeze %363 : memref<1x!tpu.dma_semaphore, #tpu.memory_space<semaphore_mem>> -> memref<!tpu.dma_semaphore, #tpu.memory_space<semaphore_mem>>
      tpu.enqueue_dma source(%361 : memref<2x16x16xbf16, #tpu.memory_space<any>>) target(%362 : memref<2x16x16xbf16, #tpu.memory_space<vmem>>) target_semaphore(%364 : memref<!tpu.dma_semaphore, #tpu.memory_space<semaphore_mem>>)
    } else {
    }
    %16 = arith.extui %1 : i1 to i32
    %c0_i32_14 = arith.constant 0 : i32
    %17 = arith.cmpi ne, %16, %c0_i32_14 : i32
    scf.if %17 {
      %cst_112 = arith.constant 0.000000e+00 : bf16
      %354 = vector.broadcast %cst_112 : bf16 to vector<2x16x16xbf16>
      %c0_113 = arith.constant 0 : index
      %c0_114 = arith.constant 0 : index
      %c0_115 = arith.constant 0 : index
      %355 = vector.load %arg13[%c0_113, %c0_114, %c0_115] : memref<12x16x16xbf16, #tpu.memory_space<vmem>>, vector<2x16x16xbf16>
      tpu.vector_store %arg13[%c0_113, %c0_114, %c0_115], %354 {strides = array<i32>} : memref<12x16x16xbf16, #tpu.memory_space<vmem>>, vector<2x16x16xbf16>,
      %cst_116 = arith.constant 0.000000e+00 : bf16
      %356 = vector.broadcast %cst_116 : bf16 to vector<2x16x16xbf16>
      %c0_117 = arith.constant 0 : index
      %c0_118 = arith.constant 0 : index
      %c0_119 = arith.constant 0 : index
      %357 = vector.load %arg14[%c0_117, %c0_118, %c0_119] : memref<12x16x16xbf16, #tpu.memory_space<vmem>>, vector<2x16x16xbf16>
      tpu.vector_store %arg14[%c0_117, %c0_118, %c0_119], %356 {strides = array<i32>} : memref<12x16x16xbf16, #tpu.memory_space<vmem>>, vector<2x16x16xbf16>,
    } else {
    }
    %18 = arith.extui %4 : i1 to i32
    %c0_i32_15 = arith.constant 0 : i32
    %19 = arith.cmpi ne, %18, %c0_i32_15 : i32
    scf.if %19 {
      %c8_i32_112 = arith.constant 8 : i32
      %354 = arith.addi %0, %c8_i32_112 : i32
      %c4_i32 = arith.constant 4 : i32
      %c0_i32_113 = arith.constant 0 : i32
      %c0_i32_114 = arith.constant 0 : i32
      %355 = tpu.memref_slice %arg2[%arg0, %354, %c0_i32_113, %c0_i32_114] : memref<2x16x16x16xbf16, #tpu.memory_space<any>> -> memref<1x2x16x16xbf16, #tpu.memory_space<any>>
      %356 = tpu.memref_squeeze %355 : memref<1x2x16x16xbf16, #tpu.memory_space<any>> -> memref<2x16x16xbf16, #tpu.memory_space<any>>
      %c10_i32 = arith.constant 10 : i32
      %c0_i32_115 = arith.constant 0 : i32
      %c0_i32_116 = arith.constant 0 : i32
      %357 = tpu.memref_slice %arg13[%c10_i32, %c0_i32_115, %c0_i32_116] : memref<12x16x16xbf16, #tpu.memory_space<vmem>> -> memref<2x16x16xbf16, #tpu.memory_space<vmem>>
      %358 = tpu.memref_slice %arg15[%c4_i32] : memref<6x!tpu.dma_semaphore, #tpu.memory_space<semaphore_mem>> -> memref<1x!tpu.dma_semaphore, #tpu.memory_space<semaphore_mem>>
      %359 = tpu.memref_squeeze %358 : memref<1x!tpu.dma_semaphore, #tpu.memory_space<semaphore_mem>> -> memref<!tpu.dma_semaphore, #tpu.memory_space<semaphore_mem>>
      tpu.enqueue_dma source(%356 : memref<2x16x16xbf16, #tpu.memory_space<any>>) target(%357 : memref<2x16x16xbf16, #tpu.memory_space<vmem>>) target_semaphore(%359 : memref<!tpu.dma_semaphore, #tpu.memory_space<semaphore_mem>>)
      %c8_i32_117 = arith.constant 8 : i32
      %360 = arith.addi %0, %c8_i32_117 : i32
      %c5_i32 = arith.constant 5 : i32
      %c0_i32_118 = arith.constant 0 : i32
      %c0_i32_119 = arith.constant 0 : i32
      %361 = tpu.memref_slice %arg3[%360, %c0_i32_118, %c0_i32_119] : memref<16x16x16xbf16, #tpu.memory_space<any>> -> memref<2x16x16xbf16, #tpu.memory_space<any>>
      %c10_i32_120 = arith.constant 10 : i32
      %c0_i32_121 = arith.constant 0 : i32
      %c0_i32_122 = arith.constant 0 : i32
      %362 = tpu.memref_slice %arg14[%c10_i32_120, %c0_i32_121, %c0_i32_122] : memref<12x16x16xbf16, #tpu.memory_space<vmem>> -> memref<2x16x16xbf16, #tpu.memory_space<vmem>>
      %363 = tpu.memref_slice %arg15[%c5_i32] : memref<6x!tpu.dma_semaphore, #tpu.memory_space<semaphore_mem>> -> memref<1x!tpu.dma_semaphore, #tpu.memory_space<semaphore_mem>>
      %364 = tpu.memref_squeeze %363 : memref<1x!tpu.dma_semaphore, #tpu.memory_space<semaphore_mem>> -> memref<!tpu.dma_semaphore, #tpu.memory_space<semaphore_mem>>
      tpu.enqueue_dma source(%361 : memref<2x16x16xbf16, #tpu.memory_space<any>>) target(%362 : memref<2x16x16xbf16, #tpu.memory_space<vmem>>) target_semaphore(%364 : memref<!tpu.dma_semaphore, #tpu.memory_space<semaphore_mem>>)
    } else {
    }
    %20 = arith.extui %3 : i1 to i32
    %c0_i32_16 = arith.constant 0 : i32
    %21 = arith.cmpi ne, %20, %c0_i32_16 : i32
    scf.if %21 {
      %cst_112 = arith.constant 0.000000e+00 : bf16
      %354 = vector.broadcast %cst_112 : bf16 to vector<2x16x16xbf16>
      %c10 = arith.constant 10 : index
      %c0_113 = arith.constant 0 : index
      %c0_114 = arith.constant 0 : index
      %355 = vector.load %arg13[%c10, %c0_113, %c0_114] : memref<12x16x16xbf16, #tpu.memory_space<vmem>>, vector<2x16x16xbf16>
      tpu.vector_store %arg13[%c10, %c0_113, %c0_114], %354 {strides = array<i32>} : memref<12x16x16xbf16, #tpu.memory_space<vmem>>, vector<2x16x16xbf16>,
      %cst_115 = arith.constant 0.000000e+00 : bf16
      %356 = vector.broadcast %cst_115 : bf16 to vector<2x16x16xbf16>
      %c10_116 = arith.constant 10 : index
      %c0_117 = arith.constant 0 : index
      %c0_118 = arith.constant 0 : index
      %357 = vector.load %arg14[%c10_116, %c0_117, %c0_118] : memref<12x16x16xbf16, #tpu.memory_space<vmem>>, vector<2x16x16xbf16>
      tpu.vector_store %arg14[%c10_116, %c0_117, %c0_118], %356 {strides = array<i32>} : memref<12x16x16xbf16, #tpu.memory_space<vmem>>, vector<2x16x16xbf16>,
    } else {
    }
    %c0_i32_17 = arith.constant 0 : i32
    %c0_i32_18 = arith.constant 0 : i32
    %c0_i32_19 = arith.constant 0 : i32
    %22 = tpu.memref_slice %arg2[%arg0, %0, %c0_i32_18, %c0_i32_19] : memref<2x16x16x16xbf16, #tpu.memory_space<any>> -> memref<1x8x16x16xbf16, #tpu.memory_space<any>>
    %23 = tpu.memref_squeeze %22 : memref<1x8x16x16xbf16, #tpu.memory_space<any>> -> memref<8x16x16xbf16, #tpu.memory_space<any>>
    %c2_i32_20 = arith.constant 2 : i32
    %c0_i32_21 = arith.constant 0 : i32
    %c0_i32_22 = arith.constant 0 : i32
    %24 = tpu.memref_slice %arg13[%c2_i32_20, %c0_i32_21, %c0_i32_22] : memref<12x16x16xbf16, #tpu.memory_space<vmem>> -> memref<8x16x16xbf16, #tpu.memory_space<vmem>>
    %25 = tpu.memref_slice %arg15[%c0_i32_17] : memref<6x!tpu.dma_semaphore, #tpu.memory_space<semaphore_mem>> -> memref<1x!tpu.dma_semaphore, #tpu.memory_space<semaphore_mem>>
    %26 = tpu.memref_squeeze %25 : memref<1x!tpu.dma_semaphore, #tpu.memory_space<semaphore_mem>> -> memref<!tpu.dma_semaphore, #tpu.memory_space<semaphore_mem>>
    tpu.wait_dma2 semaphore(%26 : memref<!tpu.dma_semaphore, #tpu.memory_space<semaphore_mem>>) src(%23 : memref<8x16x16xbf16, #tpu.memory_space<any>>) dst(%24 : memref<8x16x16xbf16, #tpu.memory_space<vmem>>)
    %c1_i32_23 = arith.constant 1 : i32
    %c0_i32_24 = arith.constant 0 : i32
    %c0_i32_25 = arith.constant 0 : i32
    %27 = tpu.memref_slice %arg3[%0, %c0_i32_24, %c0_i32_25] : memref<16x16x16xbf16, #tpu.memory_space<any>> -> memref<8x16x16xbf16, #tpu.memory_space<any>>
    %c2_i32_26 = arith.constant 2 : i32
    %c0_i32_27 = arith.constant 0 : i32
    %c0_i32_28 = arith.constant 0 : i32
    %28 = tpu.memref_slice %arg14[%c2_i32_26, %c0_i32_27, %c0_i32_28] : memref<12x16x16xbf16, #tpu.memory_space<vmem>> -> memref<8x16x16xbf16, #tpu.memory_space<vmem>>
    %29 = tpu.memref_slice %arg15[%c1_i32_23] : memref<6x!tpu.dma_semaphore, #tpu.memory_space<semaphore_mem>> -> memref<1x!tpu.dma_semaphore, #tpu.memory_space<semaphore_mem>>
    %30 = tpu.memref_squeeze %29 : memref<1x!tpu.dma_semaphore, #tpu.memory_space<semaphore_mem>> -> memref<!tpu.dma_semaphore, #tpu.memory_space<semaphore_mem>>
    tpu.wait_dma2 semaphore(%30 : memref<!tpu.dma_semaphore, #tpu.memory_space<semaphore_mem>>) src(%27 : memref<8x16x16xbf16, #tpu.memory_space<any>>) dst(%28 : memref<8x16x16xbf16, #tpu.memory_space<vmem>>)
    %31 = arith.extui %2 : i1 to i32
    %c0_i32_29 = arith.constant 0 : i32
    %32 = arith.cmpi ne, %31, %c0_i32_29 : i32
    scf.if %32 {
      %c2_i32_112 = arith.constant 2 : i32
      %354 = arith.subi %0, %c2_i32_112 : i32
      %c2_i32_113 = arith.constant 2 : i32
      %c0_i32_114 = arith.constant 0 : i32
      %c0_i32_115 = arith.constant 0 : i32
      %355 = tpu.memref_slice %arg2[%arg0, %354, %c0_i32_114, %c0_i32_115] : memref<2x16x16x16xbf16, #tpu.memory_space<any>> -> memref<1x2x16x16xbf16, #tpu.memory_space<any>>
      %356 = tpu.memref_squeeze %355 : memref<1x2x16x16xbf16, #tpu.memory_space<any>> -> memref<2x16x16xbf16, #tpu.memory_space<any>>
      %c0_i32_116 = arith.constant 0 : i32
      %c0_i32_117 = arith.constant 0 : i32
      %c0_i32_118 = arith.constant 0 : i32
      %357 = tpu.memref_slice %arg13[%c0_i32_116, %c0_i32_117, %c0_i32_118] : memref<12x16x16xbf16, #tpu.memory_space<vmem>> -> memref<2x16x16xbf16, #tpu.memory_space<vmem>>
      %358 = tpu.memref_slice %arg15[%c2_i32_113] : memref<6x!tpu.dma_semaphore, #tpu.memory_space<semaphore_mem>> -> memref<1x!tpu.dma_semaphore, #tpu.memory_space<semaphore_mem>>
      %359 = tpu.memref_squeeze %358 : memref<1x!tpu.dma_semaphore, #tpu.memory_space<semaphore_mem>> -> memref<!tpu.dma_semaphore, #tpu.memory_space<semaphore_mem>>
      tpu.wait_dma2 semaphore(%359 : memref<!tpu.dma_semaphore, #tpu.memory_space<semaphore_mem>>) src(%356 : memref<2x16x16xbf16, #tpu.memory_space<any>>) dst(%357 : memref<2x16x16xbf16, #tpu.memory_space<vmem>>)
      %c2_i32_119 = arith.constant 2 : i32
      %360 = arith.subi %0, %c2_i32_119 : i32
      %c3_i32 = arith.constant 3 : i32
      %c0_i32_120 = arith.constant 0 : i32
      %c0_i32_121 = arith.constant 0 : i32
      %361 = tpu.memref_slice %arg3[%360, %c0_i32_120, %c0_i32_121] : memref<16x16x16xbf16, #tpu.memory_space<any>> -> memref<2x16x16xbf16, #tpu.memory_space<any>>
      %c0_i32_122 = arith.constant 0 : i32
      %c0_i32_123 = arith.constant 0 : i32
      %c0_i32_124 = arith.constant 0 : i32
      %362 = tpu.memref_slice %arg14[%c0_i32_122, %c0_i32_123, %c0_i32_124] : memref<12x16x16xbf16, #tpu.memory_space<vmem>> -> memref<2x16x16xbf16, #tpu.memory_space<vmem>>
      %363 = tpu.memref_slice %arg15[%c3_i32] : memref<6x!tpu.dma_semaphore, #tpu.memory_space<semaphore_mem>> -> memref<1x!tpu.dma_semaphore, #tpu.memory_space<semaphore_mem>>
      %364 = tpu.memref_squeeze %363 : memref<1x!tpu.dma_semaphore, #tpu.memory_space<semaphore_mem>> -> memref<!tpu.dma_semaphore, #tpu.memory_space<semaphore_mem>>
      tpu.wait_dma2 semaphore(%364 : memref<!tpu.dma_semaphore, #tpu.memory_space<semaphore_mem>>) src(%361 : memref<2x16x16xbf16, #tpu.memory_space<any>>) dst(%362 : memref<2x16x16xbf16, #tpu.memory_space<vmem>>)
    } else {
    }
    %33 = arith.extui %4 : i1 to i32
    %c0_i32_30 = arith.constant 0 : i32
    %34 = arith.cmpi ne, %33, %c0_i32_30 : i32
    scf.if %34 {
      %c8_i32_112 = arith.constant 8 : i32
      %354 = arith.addi %0, %c8_i32_112 : i32
      %c4_i32 = arith.constant 4 : i32
      %c0_i32_113 = arith.constant 0 : i32
      %c0_i32_114 = arith.constant 0 : i32
      %355 = tpu.memref_slice %arg2[%arg0, %354, %c0_i32_113, %c0_i32_114] : memref<2x16x16x16xbf16, #tpu.memory_space<any>> -> memref<1x2x16x16xbf16, #tpu.memory_space<any>>
      %356 = tpu.memref_squeeze %355 : memref<1x2x16x16xbf16, #tpu.memory_space<any>> -> memref<2x16x16xbf16, #tpu.memory_space<any>>
      %c10_i32 = arith.constant 10 : i32
      %c0_i32_115 = arith.constant 0 : i32
      %c0_i32_116 = arith.constant 0 : i32
      %357 = tpu.memref_slice %arg13[%c10_i32, %c0_i32_115, %c0_i32_116] : memref<12x16x16xbf16, #tpu.memory_space<vmem>> -> memref<2x16x16xbf16, #tpu.memory_space<vmem>>
      %358 = tpu.memref_slice %arg15[%c4_i32] : memref<6x!tpu.dma_semaphore, #tpu.memory_space<semaphore_mem>> -> memref<1x!tpu.dma_semaphore, #tpu.memory_space<semaphore_mem>>
      %359 = tpu.memref_squeeze %358 : memref<1x!tpu.dma_semaphore, #tpu.memory_space<semaphore_mem>> -> memref<!tpu.dma_semaphore, #tpu.memory_space<semaphore_mem>>
      tpu.wait_dma2 semaphore(%359 : memref<!tpu.dma_semaphore, #tpu.memory_space<semaphore_mem>>) src(%356 : memref<2x16x16xbf16, #tpu.memory_space<any>>) dst(%357 : memref<2x16x16xbf16, #tpu.memory_space<vmem>>)
      %c8_i32_117 = arith.constant 8 : i32
      %360 = arith.addi %0, %c8_i32_117 : i32
      %c5_i32 = arith.constant 5 : i32
      %c0_i32_118 = arith.constant 0 : i32
      %c0_i32_119 = arith.constant 0 : i32
      %361 = tpu.memref_slice %arg3[%360, %c0_i32_118, %c0_i32_119] : memref<16x16x16xbf16, #tpu.memory_space<any>> -> memref<2x16x16xbf16, #tpu.memory_space<any>>
      %c10_i32_120 = arith.constant 10 : i32
      %c0_i32_121 = arith.constant 0 : i32
      %c0_i32_122 = arith.constant 0 : i32
      %362 = tpu.memref_slice %arg14[%c10_i32_120, %c0_i32_121, %c0_i32_122] : memref<12x16x16xbf16, #tpu.memory_space<vmem>> -> memref<2x16x16xbf16, #tpu.memory_space<vmem>>
      %363 = tpu.memref_slice %arg15[%c5_i32] : memref<6x!tpu.dma_semaphore, #tpu.memory_space<semaphore_mem>> -> memref<1x!tpu.dma_semaphore, #tpu.memory_space<semaphore_mem>>
      %364 = tpu.memref_squeeze %363 : memref<1x!tpu.dma_semaphore, #tpu.memory_space<semaphore_mem>> -> memref<!tpu.dma_semaphore, #tpu.memory_space<semaphore_mem>>
      tpu.wait_dma2 semaphore(%364 : memref<!tpu.dma_semaphore, #tpu.memory_space<semaphore_mem>>) src(%361 : memref<2x16x16xbf16, #tpu.memory_space<any>>) dst(%362 : memref<2x16x16xbf16, #tpu.memory_space<vmem>>)
    } else {
    }
    %c0 = arith.constant 0 : index
    %c0_31 = arith.constant 0 : index
    %35 = vector.load %arg4[%c0, %c0_31] : memref<5x16xf32, #tpu.memory_space<vmem>>, vector<5x16xf32>
    %36 = vector.extract_strided_slice %35 {offsets = [0, 0], sizes = [1, 16], strides = [1, 1]} : vector<5x16xf32> to vector<1x16xf32>
    %37 = vector.extract_strided_slice %35 {offsets = [1, 0], sizes = [1, 16], strides = [1, 1]} : vector<5x16xf32> to vector<1x16xf32>
    %38 = vector.extract_strided_slice %35 {offsets = [2, 0], sizes = [1, 16], strides = [1, 1]} : vector<5x16xf32> to vector<1x16xf32>
    %39 = vector.extract_strided_slice %35 {offsets = [3, 0], sizes = [1, 16], strides = [1, 1]} : vector<5x16xf32> to vector<1x16xf32>
    %40 = vector.extract_strided_slice %35 {offsets = [4, 0], sizes = [1, 16], strides = [1, 1]} : vector<5x16xf32> to vector<1x16xf32>
    %c0_32 = arith.constant 0 : index
    %c0_33 = arith.constant 0 : index
    %41 = vector.load %arg5[%c0_32, %c0_33] : memref<2x4xf32, #tpu.memory_space<vmem>>, vector<2x4xf32>
    %42 = vector.extract_strided_slice %41 {offsets = [0, 0], sizes = [1, 4], strides = [1, 1]} : vector<2x4xf32> to vector<1x4xf32>
    %43 = vector.extract_strided_slice %41 {offsets = [1, 0], sizes = [1, 4], strides = [1, 1]} : vector<2x4xf32> to vector<1x4xf32>
    %44 = tpu.iota {dimensions = array<i32: 0>} : vector<192x1xi32>
    %c2_i32_34 = arith.constant 2 : i32
    %45 = arith.subi %c2_i32_34, %0 : i32
    %c16_i32 = arith.constant 16 : i32
    %46 = arith.muli %45, %c16_i32 : i32
    %47 = vector.broadcast %46 : i32 to vector<192x1xi32>
    %48 = arith.cmpi sge, %44, %47 : vector<192x1xi32>
    %c18_i32 = arith.constant 18 : i32
    %49 = arith.subi %c18_i32, %0 : i32
    %c16_i32_35 = arith.constant 16 : i32
    %50 = arith.muli %49, %c16_i32_35 : i32
    %51 = vector.broadcast %50 : i32 to vector<192x1xi32>
    %52 = arith.cmpi slt, %44, %51 : vector<192x1xi32>
    %53 = arith.andi %48, %52 : vector<192x1xi1>
    %54 = tpu.iota {dimensions = array<i32: 0>} : vector<160x1xi32>
    %c1_i32_36 = arith.constant 1 : i32
    %55 = arith.subi %c1_i32_36, %0 : i32
    %c16_i32_37 = arith.constant 16 : i32
    %56 = arith.muli %55, %c16_i32_37 : i32
    %57 = vector.broadcast %56 : i32 to vector<160x1xi32>
    %58 = arith.cmpi sge, %54, %57 : vector<160x1xi32>
    %c17_i32 = arith.constant 17 : i32
    %59 = arith.subi %c17_i32, %0 : i32
    %c16_i32_38 = arith.constant 16 : i32
    %60 = arith.muli %59, %c16_i32_38 : i32
    %61 = vector.broadcast %60 : i32 to vector<160x1xi32>
    %62 = arith.cmpi slt, %54, %61 : vector<160x1xi32>
    %63 = arith.andi %58, %62 : vector<160x1xi1>
    %c0_39 = arith.constant 0 : index
    %c0_40 = arith.constant 0 : index
    %c0_41 = arith.constant 0 : index
    %64 = vector.load %arg13[%c0_39, %c0_40, %c0_41] : memref<12x16x16xbf16, #tpu.memory_space<vmem>>, vector<12x16x16xbf16>
    %65 = arith.extf %64 : vector<12x16x16xbf16> to vector<12x16x16xf32>
    %cst = arith.constant dense<0.000000e+00> : vector<12x16xf32>
    %66 = vector.multi_reduction <add>, %65, %cst [2] : vector<12x16x16xf32> to vector<12x16xf32>
    %67 = vector.shape_cast %66 : vector<12x16xf32> to vector<12x16x1xf32>
    %cst_42 = arith.constant 1.600000e+01 : f32
    %68 = vector.broadcast %cst_42 : f32 to vector<12x16x1xf32>
    %69 = arith.divf %67, %68 : vector<12x16x1xf32>
    %70 = vector.broadcast %69 : vector<12x16x1xf32> to vector<12x16x16xf32>
    %71 = arith.subf %65, %70 : vector<12x16x16xf32>
    %72 = arith.mulf %71, %71 : vector<12x16x16xf32>
    %cst_43 = arith.constant dense<0.000000e+00> : vector<12x16xf32>
    %73 = vector.multi_reduction <add>, %72, %cst_43 [2] : vector<12x16x16xf32> to vector<12x16xf32>
    %74 = vector.shape_cast %73 : vector<12x16xf32> to vector<12x16x1xf32>
    %cst_44 = arith.constant 1.600000e+01 : f32
    %75 = vector.broadcast %cst_44 : f32 to vector<12x16x1xf32>
    %76 = arith.divf %74, %75 : vector<12x16x1xf32>
    %cst_45 = arith.constant 9.99999997E-7 : f32
    %77 = vector.broadcast %cst_45 : f32 to vector<12x16x1xf32>
    %78 = arith.addf %76, %77 : vector<12x16x1xf32>
    %79 = math.rsqrt %78 : vector<12x16x1xf32>
    %80 = vector.broadcast %79 : vector<12x16x1xf32> to vector<12x16x16xf32>
    %81 = arith.mulf %71, %80 : vector<12x16x16xf32>
    %82 = vector.shape_cast %36 : vector<1x16xf32> to vector<1x1x16xf32>
    %83 = vector.broadcast %82 : vector<1x1x16xf32> to vector<12x16x16xf32>
    %84 = arith.mulf %81, %83 : vector<12x16x16xf32>
    %85 = vector.shape_cast %37 : vector<1x16xf32> to vector<1x1x16xf32>
    %86 = vector.broadcast %85 : vector<1x1x16xf32> to vector<12x16x16xf32>
    %87 = arith.addf %84, %86 : vector<12x16x16xf32>
    %88 = arith.truncf %87 : vector<12x16x16xf32> to vector<12x16x16xbf16>
    %89 = vector.shape_cast %88 : vector<12x16x16xbf16> to vector<192x16xbf16>
    %c0_46 = arith.constant 0 : index
    %c0_47 = arith.constant 0 : index
    %90 = vector.load %arg6[%c0_46, %c0_47] : memref<16x4xbf16, #tpu.memory_space<vmem>>, vector<16x4xbf16>
    %cst_48 = arith.constant dense<0.000000e+00> : vector<192x4xf32>
    %91 = tpu.matmul %89, %90, %cst_48 {dimension_numbers = #tpu.dot_dimension_numbers<[1], [0], [0], [1], [0, 0, 1, 1], [], []>} : vector<192x16xbf16>, vector<16x4xbf16>, vector<192x4xf32> -> vector<192x4xf32>
    %92 = vector.broadcast %42 : vector<1x4xf32> to vector<192x4xf32>
    %93 = arith.addf %91, %92 : vector<192x4xf32>
    %cst_49 = arith.constant 5.000000e-01 : f32
    %94 = vector.broadcast %cst_49 : f32 to vector<192x4xf32>
    %95 = arith.mulf %94, %93 : vector<192x4xf32>
    %cst_50 = arith.constant 0.707106769 : f32
    %96 = vector.broadcast %cst_50 : f32 to vector<192x4xf32>
    %97 = arith.mulf %93, %96 : vector<192x4xf32>
    %cst_51 = arith.constant 0.000000e+00 : f32
    %98 = vector.broadcast %cst_51 : f32 to vector<192x4xf32>
    %99 = arith.cmpf oge, %97, %98 : vector<192x4xf32>
    %cst_52 = arith.constant 1.000000e+00 : f32
    %cst_53 = arith.constant -1.000000e+00 : f32
    %100 = vector.broadcast %cst_52 : f32 to vector<192x4xf32>
    %101 = vector.broadcast %cst_53 : f32 to vector<192x4xf32>
    %102 = arith.select %99, %100, %101 : vector<192x4xi1>, vector<192x4xf32>
    %103 = math.absf %97 : vector<192x4xf32>
    %cst_54 = arith.constant 0.327591091 : f32
    %104 = vector.broadcast %cst_54 : f32 to vector<192x4xf32>
    %105 = arith.mulf %104, %103 : vector<192x4xf32>
    %cst_55 = arith.constant 1.000000e+00 : f32
    %106 = vector.broadcast %cst_55 : f32 to vector<192x4xf32>
    %107 = arith.addf %106, %105 : vector<192x4xf32>
    %cst_56 = arith.constant 1.000000e+00 : f32
    %108 = vector.broadcast %cst_56 : f32 to vector<192x4xf32>
    %109 = arith.divf %108, %107 : vector<192x4xf32>
    %cst_57 = arith.constant 1.06140542 : f32
    %110 = vector.broadcast %cst_57 : f32 to vector<192x4xf32>
    %111 = arith.mulf %110, %109 : vector<192x4xf32>
    %cst_58 = arith.constant -1.45315206 : f32
    %112 = vector.broadcast %cst_58 : f32 to vector<192x4xf32>
    %113 = arith.addf %111, %112 : vector<192x4xf32>
    %114 = arith.mulf %113, %109 : vector<192x4xf32>
    %cst_59 = arith.constant 1.42141378 : f32
    %115 = vector.broadcast %cst_59 : f32 to vector<192x4xf32>
    %116 = arith.addf %114, %115 : vector<192x4xf32>
    %117 = arith.mulf %116, %109 : vector<192x4xf32>
    %cst_60 = arith.constant -0.284496725 : f32
    %118 = vector.broadcast %cst_60 : f32 to vector<192x4xf32>
    %119 = arith.addf %117, %118 : vector<192x4xf32>
    %120 = arith.mulf %119, %109 : vector<192x4xf32>
    %cst_61 = arith.constant 0.254829586 : f32
    %121 = vector.broadcast %cst_61 : f32 to vector<192x4xf32>
    %122 = arith.addf %120, %121 : vector<192x4xf32>
    %123 = arith.mulf %122, %109 : vector<192x4xf32>
    %cst_62 = arith.constant 0.000000e+00 : f32
    %124 = vector.broadcast %cst_62 : f32 to vector<192x4xf32>
    %125 = arith.subf %124, %103 : vector<192x4xf32>
    %126 = arith.mulf %125, %103 : vector<192x4xf32>
    %127 = math.exp %126 : vector<192x4xf32>
    %128 = arith.mulf %123, %127 : vector<192x4xf32>
    %cst_63 = arith.constant 1.000000e+00 : f32
    %129 = vector.broadcast %cst_63 : f32 to vector<192x4xf32>
    %130 = arith.subf %129, %128 : vector<192x4xf32>
    %131 = arith.mulf %102, %130 : vector<192x4xf32>
    %cst_64 = arith.constant 1.000000e+00 : f32
    %132 = vector.broadcast %cst_64 : f32 to vector<192x4xf32>
    %133 = arith.addf %132, %131 : vector<192x4xf32>
    %134 = arith.mulf %95, %133 : vector<192x4xf32>
    %cst_65 = arith.constant 0.000000e+00 : f32
    %135 = vector.shape_cast %53 : vector<192x1xi1> to vector<192x1xi1>
    %136 = vector.broadcast %135 : vector<192x1xi1> to vector<192x4xi1>
    %137 = vector.broadcast %cst_65 : f32 to vector<192x4xf32>
    %138 = arith.select %136, %134, %137 : vector<192x4xi1>, vector<192x4xf32>
    %139 = arith.truncf %138 : vector<192x4xf32> to vector<192x4xbf16>
    %140 = vector.shape_cast %139 : vector<192x4xbf16> to vector<12x16x4xbf16>
    %c0_66 = arith.constant 0 : index
    %c0_67 = arith.constant 0 : index
    %c0_68 = arith.constant 0 : index
    %141 = vector.load %arg7[%c0_66, %c0_67, %c0_68] : memref<3x3x4xbf16, #tpu.memory_space<vmem>>, vector<3x3x4xbf16>
    %cst_69 = arith.constant 0.000000e+00 : bf16
    %142 = vector.broadcast %cst_69 : bf16 to vector<12x1x4xbf16>
    %143 = tpu.concatenate %142, %140, %142 in 1 : vector<12x1x4xbf16>, vector<12x16x4xbf16>, vector<12x1x4xbf16> -> vector<12x18x4xbf16>
    %cst_70 = arith.constant 0.000000e+00 : f32
    %144 = vector.broadcast %cst_70 : f32 to vector<10x16x4xf32>
    %145 = vector.extract_strided_slice %141 {offsets = [0, 0, 0], sizes = [1, 1, 4], strides = [1, 1, 1]} : vector<3x3x4xbf16> to vector<1x1x4xbf16>
    %146 = vector.extract_strided_slice %143 {offsets = [0, 0, 0], sizes = [10, 16, 4], strides = [1, 1, 1]} : vector<12x18x4xbf16> to vector<10x16x4xbf16>
    %147 = vector.broadcast %145 : vector<1x1x4xbf16> to vector<10x16x4xbf16>
    %148 = arith.mulf %147, %146 : vector<10x16x4xbf16>
    %149 = arith.extf %148 : vector<10x16x4xbf16> to vector<10x16x4xf32>
    %150 = arith.addf %144, %149 : vector<10x16x4xf32>
    %151 = vector.extract_strided_slice %141 {offsets = [0, 1, 0], sizes = [1, 1, 4], strides = [1, 1, 1]} : vector<3x3x4xbf16> to vector<1x1x4xbf16>
    %152 = vector.extract_strided_slice %143 {offsets = [0, 1, 0], sizes = [10, 16, 4], strides = [1, 1, 1]} : vector<12x18x4xbf16> to vector<10x16x4xbf16>
    %153 = vector.broadcast %151 : vector<1x1x4xbf16> to vector<10x16x4xbf16>
    %154 = arith.mulf %153, %152 : vector<10x16x4xbf16>
    %155 = arith.extf %154 : vector<10x16x4xbf16> to vector<10x16x4xf32>
    %156 = arith.addf %150, %155 : vector<10x16x4xf32>
    %157 = vector.extract_strided_slice %141 {offsets = [0, 2, 0], sizes = [1, 1, 4], strides = [1, 1, 1]} : vector<3x3x4xbf16> to vector<1x1x4xbf16>
    %158 = vector.extract_strided_slice %143 {offsets = [0, 2, 0], sizes = [10, 16, 4], strides = [1, 1, 1]} : vector<12x18x4xbf16> to vector<10x16x4xbf16>
    %159 = vector.broadcast %157 : vector<1x1x4xbf16> to vector<10x16x4xbf16>
    %160 = arith.mulf %159, %158 : vector<10x16x4xbf16>
    %161 = arith.extf %160 : vector<10x16x4xbf16> to vector<10x16x4xf32>
    %162 = arith.addf %156, %161 : vector<10x16x4xf32>
    %163 = vector.extract_strided_slice %141 {offsets = [1, 0, 0], sizes = [1, 1, 4], strides = [1, 1, 1]} : vector<3x3x4xbf16> to vector<1x1x4xbf16>
    %164 = vector.extract_strided_slice %143 {offsets = [1, 0, 0], sizes = [10, 16, 4], strides = [1, 1, 1]} : vector<12x18x4xbf16> to vector<10x16x4xbf16>
    %165 = vector.broadcast %163 : vector<1x1x4xbf16> to vector<10x16x4xbf16>
    %166 = arith.mulf %165, %164 : vector<10x16x4xbf16>
    %167 = arith.extf %166 : vector<10x16x4xbf16> to vector<10x16x4xf32>
    %168 = arith.addf %162, %167 : vector<10x16x4xf32>
    %169 = vector.extract_strided_slice %141 {offsets = [1, 1, 0], sizes = [1, 1, 4], strides = [1, 1, 1]} : vector<3x3x4xbf16> to vector<1x1x4xbf16>
    %170 = vector.extract_strided_slice %143 {offsets = [1, 1, 0], sizes = [10, 16, 4], strides = [1, 1, 1]} : vector<12x18x4xbf16> to vector<10x16x4xbf16>
    %171 = vector.broadcast %169 : vector<1x1x4xbf16> to vector<10x16x4xbf16>
    %172 = arith.mulf %171, %170 : vector<10x16x4xbf16>
    %173 = arith.extf %172 : vector<10x16x4xbf16> to vector<10x16x4xf32>
    %174 = arith.addf %168, %173 : vector<10x16x4xf32>
    %175 = vector.extract_strided_slice %141 {offsets = [1, 2, 0], sizes = [1, 1, 4], strides = [1, 1, 1]} : vector<3x3x4xbf16> to vector<1x1x4xbf16>
    %176 = vector.extract_strided_slice %143 {offsets = [1, 2, 0], sizes = [10, 16, 4], strides = [1, 1, 1]} : vector<12x18x4xbf16> to vector<10x16x4xbf16>
    %177 = vector.broadcast %175 : vector<1x1x4xbf16> to vector<10x16x4xbf16>
    %178 = arith.mulf %177, %176 : vector<10x16x4xbf16>
    %179 = arith.extf %178 : vector<10x16x4xbf16> to vector<10x16x4xf32>
    %180 = arith.addf %174, %179 : vector<10x16x4xf32>
    %181 = vector.extract_strided_slice %141 {offsets = [2, 0, 0], sizes = [1, 1, 4], strides = [1, 1, 1]} : vector<3x3x4xbf16> to vector<1x1x4xbf16>
    %182 = vector.extract_strided_slice %143 {offsets = [2, 0, 0], sizes = [10, 16, 4], strides = [1, 1, 1]} : vector<12x18x4xbf16> to vector<10x16x4xbf16>
    %183 = vector.broadcast %181 : vector<1x1x4xbf16> to vector<10x16x4xbf16>
    %184 = arith.mulf %183, %182 : vector<10x16x4xbf16>
    %185 = arith.extf %184 : vector<10x16x4xbf16> to vector<10x16x4xf32>
    %186 = arith.addf %180, %185 : vector<10x16x4xf32>
    %187 = vector.extract_strided_slice %141 {offsets = [2, 1, 0], sizes = [1, 1, 4], strides = [1, 1, 1]} : vector<3x3x4xbf16> to vector<1x1x4xbf16>
    %188 = vector.extract_strided_slice %143 {offsets = [2, 1, 0], sizes = [10, 16, 4], strides = [1, 1, 1]} : vector<12x18x4xbf16> to vector<10x16x4xbf16>
    %189 = vector.broadcast %187 : vector<1x1x4xbf16> to vector<10x16x4xbf16>
    %190 = arith.mulf %189, %188 : vector<10x16x4xbf16>
    %191 = arith.extf %190 : vector<10x16x4xbf16> to vector<10x16x4xf32>
    %192 = arith.addf %186, %191 : vector<10x16x4xf32>
    %193 = vector.extract_strided_slice %141 {offsets = [2, 2, 0], sizes = [1, 1, 4], strides = [1, 1, 1]} : vector<3x3x4xbf16> to vector<1x1x4xbf16>
    %194 = vector.extract_strided_slice %143 {offsets = [2, 2, 0], sizes = [10, 16, 4], strides = [1, 1, 1]} : vector<12x18x4xbf16> to vector<10x16x4xbf16>
    %195 = vector.broadcast %193 : vector<1x1x4xbf16> to vector<10x16x4xbf16>
    %196 = arith.mulf %195, %194 : vector<10x16x4xbf16>
    %197 = arith.extf %196 : vector<10x16x4xbf16> to vector<10x16x4xf32>
    %198 = arith.addf %192, %197 : vector<10x16x4xf32>
    %199 = vector.shape_cast %43 : vector<1x4xf32> to vector<1x1x4xf32>
    %200 = vector.broadcast %199 : vector<1x1x4xf32> to vector<10x16x4xf32>
    %201 = arith.addf %198, %200 : vector<10x16x4xf32>
    %202 = vector.extract_strided_slice %88 {offsets = [1, 0, 0], sizes = [10, 16, 16], strides = [1, 1, 1]} : vector<12x16x16xbf16> to vector<10x16x16xbf16>
    %c1 = arith.constant 1 : index
    %c0_71 = arith.constant 0 : index
    %c0_72 = arith.constant 0 : index
    %203 = vector.load %arg14[%c1, %c0_71, %c0_72] : memref<12x16x16xbf16, #tpu.memory_space<vmem>>, vector<10x16x16xbf16>
    %204 = arith.mulf %202, %203 : vector<10x16x16xbf16>
    %205 = arith.extf %204 : vector<10x16x16xbf16> to vector<10x16x16xf32>
    %206 = arith.truncf %201 : vector<10x16x4xf32> to vector<10x16x4xbf16>
    %207 = vector.shape_cast %206 : vector<10x16x4xbf16> to vector<160x4xbf16>
    %c0_73 = arith.constant 0 : index
    %c0_74 = arith.constant 0 : index
    %208 = vector.load %arg8[%c0_73, %c0_74] : memref<4x16xbf16, #tpu.memory_space<vmem>>, vector<4x16xbf16>
    %cst_75 = arith.constant dense<0.000000e+00> : vector<160x16xf32>
    %209 = tpu.matmul %207, %208, %cst_75 {dimension_numbers = #tpu.dot_dimension_numbers<[1], [0], [0], [1], [0, 0, 1, 1], [], []>} : vector<160x4xbf16>, vector<4x16xbf16>, vector<160x16xf32> -> vector<160x16xf32>
    %210 = vector.shape_cast %209 : vector<160x16xf32> to vector<10x16x16xf32>
    %211 = arith.addf %205, %210 : vector<10x16x16xf32>
    %cst_76 = arith.constant dense<0.000000e+00> : vector<10x16xf32>
    %212 = vector.multi_reduction <add>, %211, %cst_76 [2] : vector<10x16x16xf32> to vector<10x16xf32>
    %213 = vector.shape_cast %212 : vector<10x16xf32> to vector<10x16x1xf32>
    %cst_77 = arith.constant 1.600000e+01 : f32
    %214 = vector.broadcast %cst_77 : f32 to vector<10x16x1xf32>
    %215 = arith.divf %213, %214 : vector<10x16x1xf32>
    %216 = vector.broadcast %215 : vector<10x16x1xf32> to vector<10x16x16xf32>
    %217 = arith.subf %211, %216 : vector<10x16x16xf32>
    %218 = arith.mulf %217, %217 : vector<10x16x16xf32>
    %cst_78 = arith.constant dense<0.000000e+00> : vector<10x16xf32>
    %219 = vector.multi_reduction <add>, %218, %cst_78 [2] : vector<10x16x16xf32> to vector<10x16xf32>
    %220 = vector.shape_cast %219 : vector<10x16xf32> to vector<10x16x1xf32>
    %cst_79 = arith.constant 1.600000e+01 : f32
    %221 = vector.broadcast %cst_79 : f32 to vector<10x16x1xf32>
    %222 = arith.divf %220, %221 : vector<10x16x1xf32>
    %cst_80 = arith.constant 9.99999997E-7 : f32
    %223 = vector.broadcast %cst_80 : f32 to vector<10x16x1xf32>
    %224 = arith.addf %222, %223 : vector<10x16x1xf32>
    %225 = math.rsqrt %224 : vector<10x16x1xf32>
    %226 = vector.broadcast %225 : vector<10x16x1xf32> to vector<10x16x16xf32>
    %227 = arith.mulf %217, %226 : vector<10x16x16xf32>
    %228 = vector.shape_cast %38 : vector<1x16xf32> to vector<1x1x16xf32>
    %229 = vector.broadcast %228 : vector<1x1x16xf32> to vector<10x16x16xf32>
    %230 = arith.mulf %227, %229 : vector<10x16x16xf32>
    %231 = vector.shape_cast %39 : vector<1x16xf32> to vector<1x1x16xf32>
    %232 = vector.broadcast %231 : vector<1x1x16xf32> to vector<10x16x16xf32>
    %233 = arith.addf %230, %232 : vector<10x16x16xf32>
    %234 = vector.shape_cast %233 : vector<10x16x16xf32> to vector<160x16xf32>
    %cst_81 = arith.constant 0.000000e+00 : f32
    %235 = vector.shape_cast %63 : vector<160x1xi1> to vector<160x1xi1>
    %236 = vector.broadcast %235 : vector<160x1xi1> to vector<160x16xi1>
    %237 = vector.broadcast %cst_81 : f32 to vector<160x16xf32>
    %238 = arith.select %236, %234, %237 : vector<160x16xi1>, vector<160x16xf32>
    %239 = arith.truncf %238 : vector<160x16xf32> to vector<160x16xbf16>
    %240 = vector.shape_cast %239 : vector<160x16xbf16> to vector<10x16x16xbf16>
    %c0_82 = arith.constant 0 : index
    %c0_83 = arith.constant 0 : index
    %c0_84 = arith.constant 0 : index
    %241 = vector.load %arg9[%c0_82, %c0_83, %c0_84] : memref<3x3x16xbf16, #tpu.memory_space<vmem>>, vector<3x3x16xbf16>
    %cst_85 = arith.constant 0.000000e+00 : bf16
    %242 = vector.broadcast %cst_85 : bf16 to vector<10x1x16xbf16>
    %243 = tpu.concatenate %242, %240, %242 in 1 : vector<10x1x16xbf16>, vector<10x16x16xbf16>, vector<10x1x16xbf16> -> vector<10x18x16xbf16>
    %cst_86 = arith.constant 0.000000e+00 : f32
    %244 = vector.broadcast %cst_86 : f32 to vector<8x16x16xf32>
    %245 = vector.extract_strided_slice %241 {offsets = [0, 0, 0], sizes = [1, 1, 16], strides = [1, 1, 1]} : vector<3x3x16xbf16> to vector<1x1x16xbf16>
    %246 = vector.extract_strided_slice %243 {offsets = [0, 0, 0], sizes = [8, 16, 16], strides = [1, 1, 1]} : vector<10x18x16xbf16> to vector<8x16x16xbf16>
    %247 = vector.broadcast %245 : vector<1x1x16xbf16> to vector<8x16x16xbf16>
    %248 = arith.mulf %247, %246 : vector<8x16x16xbf16>
    %249 = arith.extf %248 : vector<8x16x16xbf16> to vector<8x16x16xf32>
    %250 = arith.addf %244, %249 : vector<8x16x16xf32>
    %251 = vector.extract_strided_slice %241 {offsets = [0, 1, 0], sizes = [1, 1, 16], strides = [1, 1, 1]} : vector<3x3x16xbf16> to vector<1x1x16xbf16>
    %252 = vector.extract_strided_slice %243 {offsets = [0, 1, 0], sizes = [8, 16, 16], strides = [1, 1, 1]} : vector<10x18x16xbf16> to vector<8x16x16xbf16>
    %253 = vector.broadcast %251 : vector<1x1x16xbf16> to vector<8x16x16xbf16>
    %254 = arith.mulf %253, %252 : vector<8x16x16xbf16>
    %255 = arith.extf %254 : vector<8x16x16xbf16> to vector<8x16x16xf32>
    %256 = arith.addf %250, %255 : vector<8x16x16xf32>
    %257 = vector.extract_strided_slice %241 {offsets = [0, 2, 0], sizes = [1, 1, 16], strides = [1, 1, 1]} : vector<3x3x16xbf16> to vector<1x1x16xbf16>
    %258 = vector.extract_strided_slice %243 {offsets = [0, 2, 0], sizes = [8, 16, 16], strides = [1, 1, 1]} : vector<10x18x16xbf16> to vector<8x16x16xbf16>
    %259 = vector.broadcast %257 : vector<1x1x16xbf16> to vector<8x16x16xbf16>
    %260 = arith.mulf %259, %258 : vector<8x16x16xbf16>
    %261 = arith.extf %260 : vector<8x16x16xbf16> to vector<8x16x16xf32>
    %262 = arith.addf %256, %261 : vector<8x16x16xf32>
    %263 = vector.extract_strided_slice %241 {offsets = [1, 0, 0], sizes = [1, 1, 16], strides = [1, 1, 1]} : vector<3x3x16xbf16> to vector<1x1x16xbf16>
    %264 = vector.extract_strided_slice %243 {offsets = [1, 0, 0], sizes = [8, 16, 16], strides = [1, 1, 1]} : vector<10x18x16xbf16> to vector<8x16x16xbf16>
    %265 = vector.broadcast %263 : vector<1x1x16xbf16> to vector<8x16x16xbf16>
    %266 = arith.mulf %265, %264 : vector<8x16x16xbf16>
    %267 = arith.extf %266 : vector<8x16x16xbf16> to vector<8x16x16xf32>
    %268 = arith.addf %262, %267 : vector<8x16x16xf32>
    %269 = vector.extract_strided_slice %241 {offsets = [1, 1, 0], sizes = [1, 1, 16], strides = [1, 1, 1]} : vector<3x3x16xbf16> to vector<1x1x16xbf16>
    %270 = vector.extract_strided_slice %243 {offsets = [1, 1, 0], sizes = [8, 16, 16], strides = [1, 1, 1]} : vector<10x18x16xbf16> to vector<8x16x16xbf16>
    %271 = vector.broadcast %269 : vector<1x1x16xbf16> to vector<8x16x16xbf16>
    %272 = arith.mulf %271, %270 : vector<8x16x16xbf16>
    %273 = arith.extf %272 : vector<8x16x16xbf16> to vector<8x16x16xf32>
    %274 = arith.addf %268, %273 : vector<8x16x16xf32>
    %275 = vector.extract_strided_slice %241 {offsets = [1, 2, 0], sizes = [1, 1, 16], strides = [1, 1, 1]} : vector<3x3x16xbf16> to vector<1x1x16xbf16>
    %276 = vector.extract_strided_slice %243 {offsets = [1, 2, 0], sizes = [8, 16, 16], strides = [1, 1, 1]} : vector<10x18x16xbf16> to vector<8x16x16xbf16>
    %277 = vector.broadcast %275 : vector<1x1x16xbf16> to vector<8x16x16xbf16>
    %278 = arith.mulf %277, %276 : vector<8x16x16xbf16>
    %279 = arith.extf %278 : vector<8x16x16xbf16> to vector<8x16x16xf32>
    %280 = arith.addf %274, %279 : vector<8x16x16xf32>
    %281 = vector.extract_strided_slice %241 {offsets = [2, 0, 0], sizes = [1, 1, 16], strides = [1, 1, 1]} : vector<3x3x16xbf16> to vector<1x1x16xbf16>
    %282 = vector.extract_strided_slice %243 {offsets = [2, 0, 0], sizes = [8, 16, 16], strides = [1, 1, 1]} : vector<10x18x16xbf16> to vector<8x16x16xbf16>
    %283 = vector.broadcast %281 : vector<1x1x16xbf16> to vector<8x16x16xbf16>
    %284 = arith.mulf %283, %282 : vector<8x16x16xbf16>
    %285 = arith.extf %284 : vector<8x16x16xbf16> to vector<8x16x16xf32>
    %286 = arith.addf %280, %285 : vector<8x16x16xf32>
    %287 = vector.extract_strided_slice %241 {offsets = [2, 1, 0], sizes = [1, 1, 16], strides = [1, 1, 1]} : vector<3x3x16xbf16> to vector<1x1x16xbf16>
    %288 = vector.extract_strided_slice %243 {offsets = [2, 1, 0], sizes = [8, 16, 16], strides = [1, 1, 1]} : vector<10x18x16xbf16> to vector<8x16x16xbf16>
    %289 = vector.broadcast %287 : vector<1x1x16xbf16> to vector<8x16x16xbf16>
    %290 = arith.mulf %289, %288 : vector<8x16x16xbf16>
    %291 = arith.extf %290 : vector<8x16x16xbf16> to vector<8x16x16xf32>
    %292 = arith.addf %286, %291 : vector<8x16x16xf32>
    %293 = vector.extract_strided_slice %241 {offsets = [2, 2, 0], sizes = [1, 1, 16], strides = [1, 1, 1]} : vector<3x3x16xbf16> to vector<1x1x16xbf16>
    %294 = vector.extract_strided_slice %243 {offsets = [2, 2, 0], sizes = [8, 16, 16], strides = [1, 1, 1]} : vector<10x18x16xbf16> to vector<8x16x16xbf16>
    %295 = vector.broadcast %293 : vector<1x1x16xbf16> to vector<8x16x16xbf16>
    %296 = arith.mulf %295, %294 : vector<8x16x16xbf16>
    %297 = arith.extf %296 : vector<8x16x16xbf16> to vector<8x16x16xf32>
    %298 = arith.addf %292, %297 : vector<8x16x16xf32>
    %299 = vector.shape_cast %40 : vector<1x16xf32> to vector<1x1x16xf32>
    %300 = vector.broadcast %299 : vector<1x1x16xf32> to vector<8x16x16xf32>
    %301 = arith.addf %298, %300 : vector<8x16x16xf32>
    %cst_87 = arith.constant 5.000000e-01 : f32
    %302 = vector.broadcast %cst_87 : f32 to vector<8x16x16xf32>
    %303 = arith.mulf %302, %301 : vector<8x16x16xf32>
    %cst_88 = arith.constant 0.707106769 : f32
    %304 = vector.broadcast %cst_88 : f32 to vector<8x16x16xf32>
    %305 = arith.mulf %301, %304 : vector<8x16x16xf32>
    %cst_89 = arith.constant 0.000000e+00 : f32
    %306 = vector.broadcast %cst_89 : f32 to vector<8x16x16xf32>
    %307 = arith.cmpf oge, %305, %306 : vector<8x16x16xf32>
    %cst_90 = arith.constant 1.000000e+00 : f32
    %cst_91 = arith.constant -1.000000e+00 : f32
    %308 = vector.broadcast %cst_90 : f32 to vector<8x16x16xf32>
    %309 = vector.broadcast %cst_91 : f32 to vector<8x16x16xf32>
    %310 = arith.select %307, %308, %309 : vector<8x16x16xi1>, vector<8x16x16xf32>
    %311 = math.absf %305 : vector<8x16x16xf32>
    %cst_92 = arith.constant 0.327591091 : f32
    %312 = vector.broadcast %cst_92 : f32 to vector<8x16x16xf32>
    %313 = arith.mulf %312, %311 : vector<8x16x16xf32>
    %cst_93 = arith.constant 1.000000e+00 : f32
    %314 = vector.broadcast %cst_93 : f32 to vector<8x16x16xf32>
    %315 = arith.addf %314, %313 : vector<8x16x16xf32>
    %cst_94 = arith.constant 1.000000e+00 : f32
    %316 = vector.broadcast %cst_94 : f32 to vector<8x16x16xf32>
    %317 = arith.divf %316, %315 : vector<8x16x16xf32>
    %cst_95 = arith.constant 1.06140542 : f32
    %318 = vector.broadcast %cst_95 : f32 to vector<8x16x16xf32>
    %319 = arith.mulf %318, %317 : vector<8x16x16xf32>
    %cst_96 = arith.constant -1.45315206 : f32
    %320 = vector.broadcast %cst_96 : f32 to vector<8x16x16xf32>
    %321 = arith.addf %319, %320 : vector<8x16x16xf32>
    %322 = arith.mulf %321, %317 : vector<8x16x16xf32>
    %cst_97 = arith.constant 1.42141378 : f32
    %323 = vector.broadcast %cst_97 : f32 to vector<8x16x16xf32>
    %324 = arith.addf %322, %323 : vector<8x16x16xf32>
    %325 = arith.mulf %324, %317 : vector<8x16x16xf32>
    %cst_98 = arith.constant -0.284496725 : f32
    %326 = vector.broadcast %cst_98 : f32 to vector<8x16x16xf32>
    %327 = arith.addf %325, %326 : vector<8x16x16xf32>
    %328 = arith.mulf %327, %317 : vector<8x16x16xf32>
    %cst_99 = arith.constant 0.254829586 : f32
    %329 = vector.broadcast %cst_99 : f32 to vector<8x16x16xf32>
    %330 = arith.addf %328, %329 : vector<8x16x16xf32>
    %331 = arith.mulf %330, %317 : vector<8x16x16xf32>
    %cst_100 = arith.constant 0.000000e+00 : f32
    %332 = vector.broadcast %cst_100 : f32 to vector<8x16x16xf32>
    %333 = arith.subf %332, %311 : vector<8x16x16xf32>
    %334 = arith.mulf %333, %311 : vector<8x16x16xf32>
    %335 = math.exp %334 : vector<8x16x16xf32>
    %336 = arith.mulf %331, %335 : vector<8x16x16xf32>
    %cst_101 = arith.constant 1.000000e+00 : f32
    %337 = vector.broadcast %cst_101 : f32 to vector<8x16x16xf32>
    %338 = arith.subf %337, %336 : vector<8x16x16xf32>
    %339 = arith.mulf %310, %338 : vector<8x16x16xf32>
    %cst_102 = arith.constant 1.000000e+00 : f32
    %340 = vector.broadcast %cst_102 : f32 to vector<8x16x16xf32>
    %341 = arith.addf %340, %339 : vector<8x16x16xf32>
    %342 = arith.mulf %303, %341 : vector<8x16x16xf32>
    %343 = arith.truncf %342 : vector<8x16x16xf32> to vector<8x16x16xbf16>
    %344 = vector.shape_cast %343 : vector<8x16x16xbf16> to vector<128x16xbf16>
    %c0_103 = arith.constant 0 : index
    %c0_104 = arith.constant 0 : index
    %345 = vector.load %arg10[%c0_103, %c0_104] : memref<16x16xbf16, #tpu.memory_space<vmem>>, vector<16x16xbf16>
    %cst_105 = arith.constant dense<0.000000e+00> : vector<128x16xf32>
    %346 = tpu.matmul %344, %345, %cst_105 {dimension_numbers = #tpu.dot_dimension_numbers<[1], [0], [0], [1], [0, 0, 1, 1], [], []>} : vector<128x16xbf16>, vector<16x16xbf16>, vector<128x16xf32> -> vector<128x16xf32>
    %c0_106 = arith.constant 0 : index
    %c0_107 = arith.constant 0 : index
    %347 = vector.load %arg11[%c0_106, %c0_107] : memref<1x16xf32, #tpu.memory_space<vmem>>, vector<1x16xf32>
    %348 = vector.broadcast %347 : vector<1x16xf32> to vector<128x16xf32>
    %349 = arith.addf %346, %348 : vector<128x16xf32>
    %350 = vector.shape_cast %349 : vector<128x16xf32> to vector<8x16x16xf32>
    %c0_108 = arith.constant 0 : index
    %c0_109 = arith.constant 0 : index
    %c0_110 = arith.constant 0 : index
    %c0_111 = arith.constant 0 : index
    %351 = vector.load %arg12[%c0_108, %c0_109, %c0_110, %c0_111] : memref<1x8x16x16xf32, #tpu.memory_space<vmem>>, vector<1x8x16x16xf32>
    %352 = vector.shape_cast %351 : vector<1x8x16x16xf32> to vector<8x16x16xf32>
    %353 = vector.shape_cast %350 : vector<8x16x16xf32> to vector<1x8x16x16xf32>
    tpu.vector_store %arg12[%c0_108, %c0_109, %c0_110, %c0_111], %353 {strides = array<i32>} : memref<1x8x16x16xf32, #tpu.memory_space<vmem>>, vector<1x8x16x16xf32>,
    return
  }
  func.func @transform_2(%arg0: i32, %arg1: i32) -> (i32, i32) {
    %c0_i32 = arith.constant 0 : i32
    %c0_i32_0 = arith.constant 0 : i32
    %c0_i32_1 = arith.constant 0 : i32
    return %c0_i32, %c0_i32_0 : i32, i32
  }
  func.func @transform_3(%arg0: i32, %arg1: i32) -> (i32, i32) {
    %c0_i32 = arith.constant 0 : i32
    %c0_i32_0 = arith.constant 0 : i32
    %c0_i32_1 = arith.constant 0 : i32
    return %c0_i32, %c0_i32_0 : i32, i32
  }
  func.func @transform_4(%arg0: i32, %arg1: i32) -> (i32, i32) {
    %c0_i32 = arith.constant 0 : i32
    %c0_i32_0 = arith.constant 0 : i32
    %c0_i32_1 = arith.constant 0 : i32
    return %c0_i32, %c0_i32_0 : i32, i32
  }
  func.func @transform_5(%arg0: i32, %arg1: i32) -> (i32, i32, i32) {
    %c0_i32 = arith.constant 0 : i32
    %c0_i32_0 = arith.constant 0 : i32
    %c0_i32_1 = arith.constant 0 : i32
    %c0_i32_2 = arith.constant 0 : i32
    return %c0_i32, %c0_i32_0, %c0_i32_1 : i32, i32, i32
  }
  func.func @transform_6(%arg0: i32, %arg1: i32) -> (i32, i32) {
    %c0_i32 = arith.constant 0 : i32
    %c0_i32_0 = arith.constant 0 : i32
    %c0_i32_1 = arith.constant 0 : i32
    return %c0_i32, %c0_i32_0 : i32, i32
  }
  func.func @transform_7(%arg0: i32, %arg1: i32) -> (i32, i32, i32) {
    %c0_i32 = arith.constant 0 : i32
    %c0_i32_0 = arith.constant 0 : i32
    %c0_i32_1 = arith.constant 0 : i32
    %c0_i32_2 = arith.constant 0 : i32
    return %c0_i32, %c0_i32_0, %c0_i32_1 : i32, i32, i32
  }
  func.func @transform_8(%arg0: i32, %arg1: i32) -> (i32, i32) {
    %c0_i32 = arith.constant 0 : i32
    %c0_i32_0 = arith.constant 0 : i32
    %c0_i32_1 = arith.constant 0 : i32
    return %c0_i32, %c0_i32_0 : i32, i32
  }
  func.func @transform_9(%arg0: i32, %arg1: i32) -> (i32, i32) {
    %c0_i32 = arith.constant 0 : i32
    %c0_i32_0 = arith.constant 0 : i32
    %c0_i32_1 = arith.constant 0 : i32
    return %c0_i32, %c0_i32_0 : i32, i32
  }
  func.func @transform_10(%arg0: i32, %arg1: i32) -> (i32, i32, i32, i32) {
    %c0_i32 = arith.constant 0 : i32
    %c0_i32_0 = arith.constant 0 : i32
    %c0_i32_1 = arith.constant 0 : i32
    return %arg0, %arg1, %c0_i32, %c0_i32_0 : i32, i32, i32, i32
  }
}

</mosaic_0001>

<bundles_post_ra>
// kernel: tpu_custom_call.1
= control target key start
LH: loop header
LB: loop body
LE: loop exit
PB: predicated region body
PF: predicated region fallthrough
CT: control target
= control target key end

     0   :  { %s13728_s0 = inlined_call_operand.hbm [shape: bf16[2,16,16,16], index: 0, kind: input, shape index: {}]   ;;  %s13729_s1 = inlined_call_operand.hbm [shape: bf16[16,16,16], index: 1, kind: input, shape index: {}]   ;;  %s13730_s2 = inlined_call_operand.vmem [shape: f32[5,16], index: 2, kind: input, shape index: {}]   ;;  %s13731_s3 = inlined_call_operand.vmem [shape: f32[2,4], index: 3, kind: input, shape index: {}]   ;;  %s13732_s4 = inlined_call_operand.vmem [shape: bf16[16,4], index: 4, kind: input, shape index: {}]   ;;  %s13733_s5 = inlined_call_operand.hbm [shape: bf16[3,3,4], index: 5, kind: input, shape index: {}]   ;;  %s13734_s6 = inlined_call_operand.vmem [shape: bf16[4,16], index: 6, kind: input, shape index: {}]   ;;  %s13735_s7 = inlined_call_operand.hbm [shape: bf16[3,3,16], index: 7, kind: input, shape index: {}]   ;;  %s13736_s8 = inlined_call_operand.hbm [shape: bf16[16,16], index: 8, kind: input, shape index: {}]   ;;  %s13737_s9 = inlined_call_operand.vmem [shape: f32[1,16], index: 9, kind: input, shape index: {}]   ;;  %s13738_s10 = inlined_call_operand.hbm [shape: f32[2,16,16,16], index: 10, kind: output, shape index: {}]  }
   0x1   :  { %13889 = sst [smem:[#allocation98_spill]] %s13733_s5 }
   0x2   :  { %13890 = sst [smem:[#allocation99_spill]] %s13735_s7 }
   0x3   :  { %13891 = sst [smem:[#allocation100_spill]] %s13736_s8 }
   0x4   :  { %13892 = sst [smem:[#allocation101_spill]] %s13738_s10 }
   0x5   :  { %15 = vsyncpa [#allocation6], 0 }
   0x6   :  { %16 = vsyncpa [#allocation9], 0 }
   0x7   :  { %17 = vsyncpa [#allocation7], 0 }
   0x8   :  { %19 = vsyncpa [#allocation7 + $0x1], 0  ;;  %s8712_s13 = smov 0   ;;  %s8714_s14 = smov 0  }
   0x9   :  { %s8716_s15 = smov 0   ;;  %s8718_s16 = smov 0  }
   0xa   :  { %s8720_s17 = smov 0   ;;  %s8722_s18 = smov 0  }
   0xb   :  { %s8724_s19 = smov 0   ;;  %s8726_s20 = smov 0  }
   0xc LB: > { %13893 = sst [smem:[#allocation35_spill]] %s8608_s13  ;;  %s7671_s21 = sadd.s32 4294967295, %s8636_s20   ;;  %s8636_s20 = sphi %s8726_s20, %s25_s20   ;;  %s8632_s19 = sphi %s8724_s19, %s14185_s19   ;;  %s8628_s18 = sphi %s8722_s18, %s14184_s18   ;;  %s8624_s17 = sphi %s8720_s17, %s14183_s17   ;;  %s8620_s16 = sphi %s8718_s16, %s14182_s16   ;;  %s8616_s15 = sphi %s8716_s15, %s14181_s15   ;;  %s8612_s14 = sphi %s8714_s14, %s14180_s14   ;;  %s8608_s13 = sphi %s8712_s13, %s14179_s13  }
   0xd   : > { %13894 = sst [smem:[#allocation36_spill]] %s8612_s14  ;;  %s7672_s22 = sadd.s32 4294967294, %s8636_s20  }
   0xe   : > { %13895 = sst [smem:[#allocation37_spill]] %s8616_s15  ;;  %s34_s23 = sadd.s32 1, %s8628_s18 }
   0xf   : > { %13896 = sst [smem:[#allocation38_spill]] %s8628_s18  ;;  %s37_s24 = sadd.s32 1, %s8632_s19 }
  0x10   : > { %13897 = sst [smem:[#allocation39_spill]] %s8632_s19  ;;  %p35_p0 = scmp.ge.s32.totalorder %s34_s23, 2 }
  0x11   : > { %13898 = sst [smem:[#allocation40_spill]] %s8636_s20  ;;  %s214_s25 = sadd.s32 1, %s8616_s15 }
  0x12   : > { %p224_p1 = scmp.ne.s32.totalorder %s8616_s15, %s8612_s14  ;;  %p225_p2 = scmp.eq.s32.totalorder %s7671_s21, 3 }
  0x13   : > { %s14187_s23 = smov (%p35_p0, %s34_s23), 0  ;;  %s14189_s24 = smov (!%p35_p0, %s37_s24), %s8632_s19 }
  0x14   : > { %13899 = sst [smem:[#allocation41_spill]] %s14187_s23  ;;  %s210_s26 = ssub.s32 %s8628_s18, %s14187_s23 }
  0x15   : > { %p8764_p3 = por %p225_p2, %p224_p1  ;;  %p39_p4 = scmp.ge.s32.totalorder %s14189_s24, 2 }
  0x16   : > { %p230_p5 = scmp.ne.s32.totalorder %s8612_s14, %s8608_s13  ;;  %p231_p6 = scmp.eq.s32.totalorder %s7672_s22, 3 }
  0x17   : > { %s13900_s27 = scalar_select %p8764_p3, 1, 0 }
  0x18   : > { %p7673_p7 = scmp.ge.s32.totalorder %s8636_s20, 1  ;;  %s14191_s24 = smov (%p39_p4, %s14189_s24), 0 }
  0x19   : > { %13901 = sst [smem:[#allocation42_spill]] %s13900_s27  ;;  %p8773_p8 = por %p231_p6, %p230_p5 }
  0x1a   : > { %13902 = sst [smem:[#allocation43_spill]] %s14191_s24  ;;  %p238_p9 = scmp.lt.s32.totalorder %s8636_s20, 5 }
  0x1b   : > { %s13903_s28 = scalar_select %p8773_p8, 1, 0 }
  0x1c   : > { %s209_s29 = ssub.s32 %s8632_s19, %s14191_s24  ;;  %p8780_p10 = pnand %p7673_p7, %p238_p9 }
  0x1d   : > { %13904 = sst [smem:[#allocation44_spill]] %s13903_s28  ;;  %s211_s30 = sor.u32 %s210_s26, %s209_s29 }
  0x1e   : > { %p212_p11 = scmp.eq.s32.totalorder %s211_s30, 0  ;;  %p8784_p12 = scmp.eq.s32.totalorder %s7671_s21, 0 }
  0x1f   : > { %p7902_p13 = pneg %p8780_p10  ;;  %s13909_s7 = sld [smem:[#allocation99_spill]] }
  0x20   : > { %s8791_s22 = scalar_select %p212_p11, %s8616_s15, %s214_s25  }
  0x21   : > { %p8795_p0 = pnand %p8784_p12, %p7902_p13  ;;  %s8638_s21 = smov [#allocation8]  }
  0x22   : > { %13907 = sst [smem:[#allocation45_spill]] %s8791_s22  ;;  %s277_s24 = sshll.u32 %s8638_s21, 4  ;;  %s278_s24 = int_to_ptr.vmem [resolvable:$true] %s277_s24 }
  0x23   : > { %s8639_s19 = smov 32   ;;  %s8640_s18 = smov 2  }
  0x24   : > { %s13910_s5 = sld [smem:[#allocation98_spill]]  ;;  %s8641_s28 = smov [#allocation5]  }
  0x25   : > { %s275_s30 = sshll.u32 %s13909_s7, 4  ;;  %s260_s13 = sshll.u32 %s8641_s28, 4  ;;  %s276_s30 = int_to_ptr.hbm [resolvable:$true] %s275_s30  ;;  %s261_s13 = int_to_ptr.vmem [resolvable:$true] %s260_s13 }
  0x26   : > { %7908 = dma.hbm_to_vmem [thread:$0]  (!%p8795_p0), %s276_s30, 96, %s278_s24, [#allocation9], %s8639_s19, %s8639_s19, %s8640_s18  }
  0x27   : > { %s13911_s8 = sld [smem:[#allocation100_spill]]  ;;  %s8642_s21 = smov [#allocation10]  }
  0x28   : > { %s291_s20 = sshll.u32 %s8642_s21, 4  ;;  %s8643_s10 = smov 64   ;;  %s292_s20 = int_to_ptr.vmem [resolvable:$true] %s291_s20 }
  0x29   : > { %s8644_s24 = smov 4  }
  0x2a   : > { %s258_s15 = sshll.u32 %s13910_s5, 4  ;;  %310 = sbr.rel (%p8780_p10) target bundleno = 2276 (0x8e4), region = 52  ;;  %s259_s15 = int_to_ptr.hbm [resolvable:$true] %s258_s15 }
  0x2b   : > { %7905 = dma.hbm_to_vmem [thread:$0]  (!%p8795_p0), %s259_s15, 96, %s261_s13, [#allocation6], %s8639_s19, %s8639_s19, %s8640_s18  }
  0x2d   : > { %s289_s7 = sshll.u32 %s13911_s8, 4  ;;  %s290_s7 = int_to_ptr.hbm [resolvable:$true] %s289_s7 }
  0x2e   : > { %7911 = dma.hbm_to_vmem [thread:$0]  (!%p8795_p0), %s290_s7, 128, %s292_s20, [#allocation9], %s8643_s10, %s8643_s10, %s8644_s24  }
  0x2f   : > { %8575 = dma.done.wait (%p8784_p12), [#allocation6], 96  }
  0x30   : > { %8577 = vsyncadd (%p8784_p12), [#allocation6], 4294967200 }
  0x31   : > { %8579 = dma.done.wait (%p8784_p12), [#allocation9], 224  }
  0x32   : > { %8581 = vsyncadd (%p8784_p12), [#allocation9], 4294967072  ;;  %s13749_s7 = sand.u32 1, %s8612_s14   ;;  %s8826_s10 = sshll.u32 %s8620_s16, 3 }
  0x33   : > { %s8830_s13 = sshll.u32 %s13749_s7, 7  ;;  %s7758_s15 = sshll.u32 %s8620_s16, 4 }
  0x34   : > { %s7684_s18 = sshll.u32 %s8624_s17, 5  ;;  %s8645_s23 = smov [#allocation2 + $0x10]  }
  0x35   : > { %s8834_s19 = sadd.s32 %s7758_s15, %s7684_s18  ;;  %s372_s28 = sshll.u32 %s8645_s23, 4  ;;  %s373_s28 = int_to_ptr.vmem [resolvable:$true] %s372_s28 }
  0x36   : > { %s7685_s20 = sshll.u32 %s8834_s19, 2  ;;  %s7688_s25 = sadd.s32 4294967294, %s8826_s10 }
  0x37   : > { %s8840_s22 = scalar_lea.hbm %s13728_s0, %s7685_s20  ;;  %s7689_s26 = sshll.u32 %s7688_s25, 1 }
  0x38   : > { %s370_s30 = sshll.u32 %s8840_s22, 4  ;;  %s8847_s15 = scalar_lea.hbm %s13728_s0, 256  ;;  %s371_s30 = int_to_ptr.hbm [resolvable:$true] %s370_s30 }
  0x39   : > { %s8354_s29 = sshra.s32 %s371_s30, 4  ;;  %s8355_s29 = int_to_ptr.hbm [resolvable:$true] %s8354_s29 }
  0x3a   : > { %s8356_s17 = scalar_lea.hbm %s8355_s29, 64  ;;  %p8359_p2 = scmp.lt.s32.totalorder %s8355_s29, %s13728_s0 }
  0x3b   : > { %p8357_p1 = scmp.ne.s32.totalorder %s8355_s29, %s8356_s17  ;;  %p8360_p4 = scmp.lt.s32.totalorder %s8847_s15, %s8356_s17 }
  0x3d   : > { %p8361_p5 = por %p8360_p4, %p8359_p2 }
  0x3f   : > { %p8362_p6 = pnand %p8361_p5, %p8357_p1 }
  0x41   : > { %8365 = shalt.err (!%p8362_p6)  }
  0x42   : > { %375 = dma.hbm_to_vmem [thread:$0]  %s371_s30, 1024, %s373_s28, [#allocation4] }
  0x43   : > { %s398_s20 = sadd.s32 %s7689_s26, %s7684_s18  ;;  %s7760_s11 = sshll.u32 %s7688_s25, 3 }
  0x44   : > { %s7690_s12 = sshll.u32 %s398_s20, 2  ;;  %s416_s21 = scalar_lea.hbm %s13729_s1, %s7760_s11 }
  0x45   : > { %s400_s14 = scalar_lea.hbm %s13728_s0, %s7690_s12  ;;  %s8859_s7 = sshll.u32 %s416_s21, 4  ;;  %s426_s7 = int_to_ptr.hbm [resolvable:$true] %s8859_s7 }
  0x46   : > { %s409_s29 = sshll.u32 %s400_s14, 4  ;;  %s7759_s17 = sshll.u32 %s8620_s16, 6  ;;  %s8862_s29 = int_to_ptr.hbm [resolvable:$true] %s409_s29 }
  0x47   : > { %s8867_s18 = scalar_lea.hbm %s13729_s1, %s7759_s17  ;;  %s8646_s5 = smov [#allocation3 + $0x10]  }
  0x48   : > { %s387_s30 = sshll.u32 %s8867_s18, 4  ;;  %s389_s8 = sshll.u32 %s8646_s5, 4  ;;  %s388_s30 = int_to_ptr.hbm [resolvable:$true] %s387_s30  ;;  %s390_s8 = int_to_ptr.vmem [resolvable:$true] %s389_s8 }
  0x49   : > { %s8378_s25 = sshra.s32 %s388_s30, 4  ;;  %s8873_s20 = scalar_lea.hbm %s13729_s1, 128  ;;  %s8379_s25 = int_to_ptr.hbm [resolvable:$true] %s8378_s25 }
  0x4a   : > { %s8380_s27 = scalar_lea.hbm %s8379_s25, 64  ;;  %p8383_p9 = scmp.lt.s32.totalorder %s8379_s25, %s13729_s1 }
  0x4b   : > { %p8381_p7 = scmp.ne.s32.totalorder %s8379_s25, %s8380_s27  ;;  %p8384_p10 = scmp.lt.s32.totalorder %s8873_s20, %s8380_s27 }
  0x4d   : > { %p8385_p11 = por %p8384_p10, %p8383_p9 }
  0x4f   : > { %p8386_p12 = pnand %p8385_p11, %p8381_p7 }
  0x51   : > { %8389 = shalt.err (!%p8386_p12)  }
  0x52   : > { %392 = dma.hbm_to_vmem [thread:$0]  %s388_s30, 1024, %s390_s8, [#allocation4 + $0x1] }
  0x53   : > { %p7922_p13 = scmp.gt.s32.totalorder %s8620_s16, 0  ;;  %s8647_s21 = smov [#allocation2]  }
  0x54   : > { %s411_s24 = sshll.u32 %s8647_s21, 4  ;;  %s8402_s17 = sshra.s32 %s8862_s29, 4  ;;  %s412_s24 = int_to_ptr.vmem [resolvable:$true] %s411_s24  ;;  %s8403_s17 = int_to_ptr.hbm [resolvable:$true] %s8402_s17 }
  0x55   : > { %s8404_s23 = scalar_lea.hbm %s8403_s17, 16  ;;  %p8409_p4 = scmp.lt.s32.totalorder %s8403_s17, %s13728_s0 }
  0x56   : > { %p8405_p0 = scmp.ne.s32.totalorder %s8403_s17, %s8404_s23  ;;  %p8410_p5 = scmp.lt.s32.totalorder %s8847_s15, %s8404_s23 }
  0x58   : > { %p8406_p1 = pnand %p8405_p0, %p7922_p13  ;;  %p8411_p6 = por %p8410_p5, %p8409_p4 }
  0x5a   : > { %p8407_p2 = pneg %p8406_p1 }
  0x5c   : > { %p8412_p7 = pnand %p8411_p6, %p8407_p2 }
  0x5e   : > { %8415 = shalt.err (!%p8412_p7)  }
  0x5f   : > { %7889 = dma.hbm_to_vmem [thread:$0]  (%p7922_p13), %s8862_s29, 256, %s412_s24, [#allocation4 + $0x2] }
  0x60   : > { %s8648_s30 = smov [#allocation3]   ;;  %s8430_s25 = sshra.s32 %s426_s7, 4  ;;  %s8431_s25 = int_to_ptr.hbm [resolvable:$true] %s8430_s25 }
  0x61   : > { %s427_s8 = sshll.u32 %s8648_s30, 4  ;;  %s8432_s27 = scalar_lea.hbm %s8431_s25, 16  ;;  %s428_s8 = int_to_ptr.vmem [resolvable:$true] %s427_s8 }
  0x62   : > { %p8433_p9 = scmp.ne.s32.totalorder %s8431_s25, %s8432_s27  ;;  %p8437_p12 = scmp.lt.s32.totalorder %s8431_s25, %s13729_s1 }
  0x63   : > { %p8438_p0 = scmp.lt.s32.totalorder %s8873_s20, %s8432_s27 }
  0x64   : > { %p8434_p10 = pnand %p8433_p9, %p7922_p13 }
  0x65   : > { %p8439_p1 = por %p8438_p0, %p8437_p12 }
  0x66   : > { %p8435_p11 = pneg %p8434_p10 }
  0x68   : > { %p8440_p2 = pnand %p8439_p1, %p8435_p11 }
  0x6a   : > { %8443 = shalt.err (!%p8440_p2)  }
  0x6b   : > { %7890 = dma.hbm_to_vmem [thread:$0]  (%p7922_p13), %s426_s7, 256, %s428_s8, [#allocation4 + $0x3] }
  0x6c   : > { %s8900_s29 = scalar_lea.vmem [#allocation11], %s8830_s13  ;;  %p7692_p4 = scmp.ne.s32.totalorder %s8620_s16, 0 }
  0x6e   : > { %433 = sbr.rel (%p7692_p4) target bundleno = 122 (0x7a), region = 88 }
  0x73   : > { %vm434_vm0 = vcmask 125952   ;;  %v8649_v0 = vmov 0  }
  0x74   : > { %435 = vst.msk [vmem:[#allocation2] sm:$0xf] %vm434_vm0, %v8649_v0 }
  0x75   : > { %436 = vst.msk [vmem:[#allocation2 + $0x4] sm:$0xf] %vm434_vm0, %v8649_v0 }
  0x76   : > { %437 = vst.msk [vmem:[#allocation2 + $0x8] sm:$0xf] %vm434_vm0, %v8649_v0 }
  0x77   : > { %438 = vst.msk [vmem:[#allocation2 + $0xc] sm:$0xf] %vm434_vm0, %v8649_v0 }
  0x78   : > { %441 = vst.msk [vmem:[#allocation3 + $0x8] sm:$0xf] %vm434_vm0, %v8649_v0 }
  0x79   : > { %442 = vst.msk [vmem:[#allocation3 + $0xc] sm:$0xf] %vm434_vm0, %v8649_v0 }
  0x7a PF: > { %p7923_p5 = scmp.lt.s32.totalorder %s8620_s16, 1  ;;  %s7602_s7 = scalar_lea.hbm %s8840_s22, 64 }
  0x7b   : > { %s460_s13 = sshll.u32 %s7602_s7, 4  ;;  %s8650_s11 = smov [#allocation2 + $0x50]   ;;  %s461_s13 = int_to_ptr.hbm [resolvable:$true] %s460_s13 }
  0x7c   : > { %s462_s12 = sshll.u32 %s8650_s11, 4  ;;  %s8458_s21 = sshra.s32 %s461_s13, 4  ;;  %s463_s12 = int_to_ptr.vmem [resolvable:$true] %s462_s12  ;;  %s8459_s21 = int_to_ptr.hbm [resolvable:$true] %s8458_s21 }
  0x7d   : > { %s8460_s24 = scalar_lea.hbm %s8459_s21, 16  ;;  %p8465_p10 = scmp.lt.s32.totalorder %s8459_s21, %s13728_s0 }
  0x7e   : > { %p8461_p6 = scmp.ne.s32.totalorder %s8459_s21, %s8460_s24  ;;  %p8466_p11 = scmp.lt.s32.totalorder %s8847_s15, %s8460_s24 }
  0x80   : > { %p8462_p7 = pnand %p8461_p6, %p7923_p5  ;;  %p8467_p12 = por %p8466_p11, %p8465_p10 }
  0x82   : > { %p8463_p9 = pneg %p8462_p7 }
  0x84   : > { %p8468_p0 = pnand %p8467_p12, %p8463_p9 }
  0x86   : > { %8471 = shalt.err (!%p8468_p0)  }
  0x87   : > { %7892 = dma.hbm_to_vmem [thread:$0]  (%p7923_p5), %s461_s13, 256, %s463_s12, [#allocation4 + $0x4] }
  0x88   : > { %s7606_s22 = scalar_lea.hbm %s8867_s18, 64  ;;  %s8651_s5 = smov [#allocation3 + $0x50]  }
  0x89   : > { %s477_s28 = sshll.u32 %s7606_s22, 4  ;;  %s479_s30 = sshll.u32 %s8651_s5, 4  ;;  %s478_s28 = int_to_ptr.hbm [resolvable:$true] %s477_s28  ;;  %s480_s30 = int_to_ptr.vmem [resolvable:$true] %s479_s30 }
  0x8a   : > { %s8486_s8 = sshra.s32 %s478_s28, 4  ;;  %s8487_s8 = int_to_ptr.hbm [resolvable:$true] %s8486_s8 }
  0x8b   : > { %s8488_s25 = scalar_lea.hbm %s8487_s8, 16  ;;  %p8493_p6 = scmp.lt.s32.totalorder %s8487_s8, %s13729_s1 }
  0x8c   : > { %p8489_p1 = scmp.ne.s32.totalorder %s8487_s8, %s8488_s25  ;;  %p8494_p7 = scmp.lt.s32.totalorder %s8873_s20, %s8488_s25 }
  0x8e   : > { %p8490_p2 = pnand %p8489_p1, %p7923_p5  ;;  %p8495_p9 = por %p8494_p7, %p8493_p6 }
  0x90   : > { %p8491_p4 = pneg %p8490_p2 }
  0x92   : > { %p8496_p10 = pnand %p8495_p9, %p8491_p4 }
  0x94   : > { %8499 = shalt.err (!%p8496_p10)  }
  0x95   : > { %7893 = dma.hbm_to_vmem [thread:$0]  (%p7923_p5), %s478_s28, 256, %s480_s30, [#allocation4 + $0x5] }
  0x96   : > { %p7700_p11 = scmp.ne.s32.totalorder %s8620_s16, 1 }
  0x98   : > { %485 = sbr.rel (%p7700_p11) target bundleno = 164 (0xa4), region = 104 }
  0x9d   : > { %vm487_vm1 = vcmask 125952   ;;  %v8652_v1 = vmov 0  }
  0x9e   : > { %488 = vst.msk [vmem:[#allocation2 + $0x50] sm:$0xf] %vm487_vm1, %v8652_v1 }
  0x9f   : > { %489 = vst.msk [vmem:[#allocation2 + $0x54] sm:$0xf] %vm487_vm1, %v8652_v1 }
  0xa0   : > { %490 = vst.msk [vmem:[#allocation2 + $0x58] sm:$0xf] %vm487_vm1, %v8652_v1 }
  0xa1   : > { %491 = vst.msk [vmem:[#allocation2 + $0x5c] sm:$0xf] %vm487_vm1, %v8652_v1 }
  0xa2   : > { %493 = vst.msk [vmem:[#allocation3 + $0x50] sm:$0xf] %vm487_vm1, %v8652_v1 }
  0xa3   : > { %494 = vst.msk [vmem:[#allocation3 + $0x54] sm:$0xf] %vm487_vm1, %v8652_v1 }
  0xa4 PF: > { %8582 = dma.done.wait [#allocation4], 1024 }
  0xa5   : > { %8583 = vsyncadd [#allocation4], 4294966272 }
  0xa6   : > { %8584 = dma.done.wait [#allocation4 + $0x1], 1024 }
  0xa7   : > { %8585 = vsyncadd [#allocation4 + $0x1], 4294966272 }
  0xa8   : > { %8587 = dma.done.wait (%p7922_p13), [#allocation4 + $0x2], 256 }
  0xa9   : > { %8589 = vsyncadd (%p7922_p13), [#allocation4 + $0x2], 4294967040 }
  0xaa   : > { %8591 = dma.done.wait (%p7922_p13), [#allocation4 + $0x3], 256 }
  0xab   : > { %8593 = vsyncadd (%p7922_p13), [#allocation4 + $0x3], 4294967040 }
  0xac   : > { %8595 = dma.done.wait (%p7923_p5), [#allocation4 + $0x4], 256 }
  0xad   : > { %8597 = vsyncadd (%p7923_p5), [#allocation4 + $0x4], 4294967040 }
  0xae   : > { %8599 = dma.done.wait (%p7923_p5), [#allocation4 + $0x5], 256 }
  0xaf   : > { %8601 = vsyncadd (%p7923_p5), [#allocation4 + $0x5], 4294967040  ;;  %v7854_v2 = vld [vmem:[#allocation2 + $0x8] sm:$0xff]   ;;  %vm747_vm2 = vcmask 130048   ;;  %v7767_v3 = vld [vmem:[#allocation2] sm:$0xff]   ;;  %v8653_v20 = vmov 16.0  }
  0xb0   : > { %v8939_v4 = vld [vmem:[#allocation2 + $0x10] sm:$0xff]   ;;  %v7772_v5 = vunpack.c.l.bf16 %v7854_v2  ;;  %v7768_v6 = vunpack.c.l.bf16 %v7767_v3  ;;  %v7773_v11 = vunpack.c.h.bf16 %v7854_v2  ;;  %v7769_v12 = vunpack.c.h.bf16 %v7767_v3  ;;  %v8949_v17 = vld [vmem:[#allocation2 + $0x18] sm:$0xff]   ;;  %v8981_v49 = vld [vmem:[#allocation2 + $0x20] sm:$0xff]   ;;  %s555_s13 = ssub.s32 2, %s8826_s10  ;;  %s582_s11 = ssub.s32 18, %s8826_s10 }
  0xb1   : > { %v7776_v7 = vunpack.c.l.bf16 %v8939_v4  ;;  %v7777_v13 = vunpack.c.h.bf16 %v8939_v4  ;;  %v7780_v18 = vunpack.c.l.bf16 %v8949_v17  ;;  %8011 = vrcp.f32 %v8653_v20  ;;  %v8998_v61 = vld [vmem:[#allocation2 + $0x28] sm:$0xff]   ;;  %s7703_s12 = sshll.u32 %s555_s13, 4  ;;  %s7704_s21 = sshll.u32 %s582_s11, 4 }
  0xb2   : > { %v754_v8 = vsel %vm747_vm2, %v7772_v5, 0.0  ;;  %v748_v9 = vsel %vm747_vm2, %v7768_v6, 0.0  ;;  %v757_v14 = vsel %vm747_vm2, %v7773_v11, 0.0  ;;  %v751_v15 = vsel %vm747_vm2, %v7769_v12, 0.0  ;;  %s633_s28 = ssub.s32 1, %s8826_s10  ;;  %s656_s5 = ssub.s32 17, %s8826_s10 }
  0xb3   : > { %755 = vadd.xlane.f32.xlu1 %v754_v8  ;;  %749 = vadd.xlane.f32.xlu0 %v748_v9  ;;  %v760_v10 = vsel %vm747_vm2, %v7776_v7, 0.0  ;;  %v763_v16 = vsel %vm747_vm2, %v7777_v13, 0.0  ;;  %v766_v19 = vsel %vm747_vm2, %v7780_v18, 0.0  ;;  %v7781_v39 = vunpack.c.h.bf16 %v8949_v17  ;;  %s7705_s30 = sshll.u32 %s633_s28, 4  ;;  %s7706_s8 = sshll.u32 %s656_s5, 4 }
  0xb4   : > { %761 = vadd.xlane.f32.xlu2 %v760_v10  ;;  %v7784_v54 = vunpack.c.l.bf16 %v8981_v49  ;;  %v7789_v0 = vunpack.c.h.bf16 %v8998_v61  ;;  %v7785_v1 = vunpack.c.h.bf16 %v8981_v49  ;;  %v7788_v9 = vunpack.c.l.bf16 %v8998_v61  ;;  %s14172_s20 = sld [smem:[#allocation36_spill]]  ;;  %s7749_s26 = sshll.u32 %s8834_s19, 3 }
  0xb5   : > { %v769_v46 = vsel %vm747_vm2, %v7781_v39, 0.0  ;;  %s14174_s11 = sld [smem:[#allocation101_spill]] }
  0xb6   : > { %v772_v58 = vsel %vm747_vm2, %v7784_v54, 0.0  ;;  %v781_v4 = vsel %vm747_vm2, %v7789_v0, 0.0 }
  0xb7   : > { %v8012_v21 = vpop.eup %8011 }
  0xb8   : > { %v821_v22 = vmul.f32 16.0, %v8012_v21  ;;  %vm825_vm3 = vweird.f32 %v8012_v21 }
  0xba   : > { %v822_v23 = vsub.f32 1.0, %v821_v22  ;;  %v9043_v22 = vld [vmem:[#allocation2 + $0x48] sm:$0xff]   ;;  %s14175_s19 = sand.u32 1, %s14172_s20  }
  0xbb   : > { %758 = vadd.xlane.f32.xlu1 %v757_v14  ;;  %752 = vadd.xlane.f32.xlu0 %v751_v15  ;;  %v9031_v15 = vld [vmem:[#allocation2 + $0x38] sm:$0xff]   ;;  %s7492_s17 = scalar_lea.sflag [#allocation7], %s14175_s19 }
  0xbc   : > { %764 = vadd.xlane.f32.xlu2 %v763_v16  ;;  %v823_v24 = vmul.f32 %v8012_v21, %v822_v23  ;;  %v7796_v16 = vunpack.c.l.bf16 %v9031_v15  ;;  %v7804_v23 = vunpack.c.l.bf16 %v9043_v22 }
  0xbe   : > { %v824_v25 = vadd.f32 %v8012_v21, %v823_v24  ;;  %v802_v24 = vsel %vm747_vm2, %v7804_v23, 0.0 }
  0xc0   : > { %v8953_v26 = vsel %vm825_vm3, %v8012_v21, %v824_v25 }
  0xc1   : > { %13912 = vst [vmem:[#allocation46_spill] sm:$0xff] %v8953_v26 }
  0xc4   : > { %767 = vadd.xlane.f32.xlu2 %v766_v19  ;;  %v9037_v19 = vld [vmem:[#allocation2 + $0x40] sm:$0xff]  }
  0xc5   : > { %v7801_v20 = vunpack.c.h.bf16 %v9037_v19 }
  0xc7   : > { %v799_v21 = vsel %vm747_vm2, %v7801_v20, 0.0 }
 0x126   : > { %v756_v27 = vpop.xlane.xlu1 %755  ;;  %v750_v28 = vpop.xlane.xlu0 %749 }
 0x127   : > { %v827_v29 = vmul.f32 %v8953_v26, %v750_v28  ;;  %v762_v30 = vpop.xlane.xlu2 %761  ;;  %v829_v40 = vmul.f32 %v8953_v26, %v756_v27 }
 0x128   : > { %v831_v38 = vmul.f32 %v8953_v26, %v762_v30 }
 0x129   : > { %v8956_v31 = vsub.f32 %v7768_v6, %v827_v29  ;;  %v8979_v48 = vsub.f32 %v7772_v5, %v829_v40  ;;  %v775_v5 = vsel %vm747_vm2, %v7785_v1, 0.0  ;;  %v9014_v6 = vld [vmem:[#allocation2 + $0x30] sm:$0xff]  }
 0x12a   : > { %v8970_v44 = vsub.f32 %v7776_v7, %v831_v38  ;;  %v7792_v8 = vunpack.c.l.bf16 %v9014_v6 }
 0x12b   : > { %v875_v32 = vmul.f32 %v8956_v31, %v8956_v31  ;;  %v877_v55 = vmul.f32 %v8979_v48, %v8979_v48 }
 0x12c   : > { %v879_v53 = vmul.f32 %v8970_v44, %v8970_v44 }
 0x12d   : > { %v899_v33 = vsel %vm747_vm2, %v875_v32, 0.0  ;;  %v905_v59 = vsel %vm747_vm2, %v877_v55, 0.0  ;;  %v7763_v32 = vld [vmem:[%s13732_s4] sm:$0xff] }
 0x12e   : > { %v759_v34 = vpop.xlane.xlu1 %758  ;;  %900 = vadd.xlane.f32.xlu0 %v899_v33  ;;  %v753_v35 = vpop.xlane.xlu0 %752  ;;  %v911_v57 = vsel %vm747_vm2, %v879_v53, 0.0  ;;  %1469 = vmatpush.bf16.msra.mxu0 %v7763_v32 }
 0x12f   : > { %v830_v36 = vmul.f32 %v8953_v26, %v759_v34  ;;  %v828_v37 = vmul.f32 %v8953_v26, %v753_v35  ;;  %v765_v43 = vpop.xlane.xlu2 %764  ;;  %7874 = vmatpush.bf16.msra.mxu3 %v7763_v32 }
 0x130   : > { %v832_v52 = vmul.f32 %v8953_v26, %v765_v43 }
 0x131   : > { %v8966_v41 = vsub.f32 %v7773_v11, %v830_v36  ;;  %v8968_v42 = vsub.f32 %v7769_v12, %v828_v37  ;;  %v784_v11 = vsel %vm747_vm2, %v7792_v8, 0.0  ;;  %v778_v12 = vsel %vm747_vm2, %v7788_v9, 0.0 }
 0x132   : > { %v8991_v56 = vsub.f32 %v7777_v13, %v832_v52  ;;  %v7793_v13 = vunpack.c.h.bf16 %v9014_v6 }
 0x133   : > { %v878_v45 = vmul.f32 %v8966_v41, %v8966_v41  ;;  %v876_v47 = vmul.f32 %v8968_v42, %v8968_v42 }
 0x134   : > { %v880_v63 = vmul.f32 %v8991_v56, %v8991_v56  ;;  %v787_v14 = vsel %vm747_vm2, %v7793_v13, 0.0 }
 0x135   : > { %v908_v50 = vsel %vm747_vm2, %v878_v45, 0.0  ;;  %v902_v51 = vsel %vm747_vm2, %v876_v47, 0.0 }
 0x136   : > { %909 = vadd.xlane.f32.xlu2 %v908_v50  ;;  %770 = vadd.xlane.f32.xlu0 %v769_v46  ;;  %v914_v3 = vsel %vm747_vm2, %v880_v63, 0.0 }
 0x137   : > { %903 = vadd.xlane.f32.xlu1 %v902_v51  ;;  %v768_v60 = vpop.xlane.xlu2 %767 }
 0x138   : > { %v833_v62 = vmul.f32 %v8953_v26, %v768_v60 }
 0x13a   : > { %v9005_v2 = vsub.f32 %v7780_v18, %v833_v62  ;;  %v790_v18 = vsel %vm747_vm2, %v7796_v16, 0.0 }
 0x13c   : > { %v881_v7 = vmul.f32 %v9005_v2, %v9005_v2 }
 0x13e   : > { %912 = vadd.xlane.f32.xlu2 %v911_v57  ;;  %773 = vadd.xlane.f32.xlu0 %v772_v58  ;;  %v917_v10 = vsel %vm747_vm2, %v881_v7, 0.0 }
 0x13f   : > { %906 = vadd.xlane.f32.xlu1 %v905_v59 }
 0x146   : > { %915 = vadd.xlane.f32.xlu0 %v914_v3  ;;  %782 = vadd.xlane.f32.xlu2 %v781_v4 }
 0x147   : > { %776 = vadd.xlane.f32.xlu1 %v775_v5 }
 0x14e   : > { %918 = vadd.xlane.f32.xlu0 %v917_v10  ;;  %785 = vadd.xlane.f32.xlu2 %v784_v11  ;;  %v528_v10 = vld [vmem:[%s13730_s2] sm:$0x1f] }
 0x14f   : > { %779 = vadd.xlane.f32.xlu1 %v778_v12 }
 0x156   : > { %788 = vadd.xlane.f32.xlu0 %v787_v14 }
 0x15e   : > { %791 = vadd.xlane.f32.xlu0 %v790_v18 }
 0x166   : > { %800 = vadd.xlane.f32.xlu0 %v799_v21  ;;  %v9089_v21 = vperm.slane %v528_v10, 0 }
 0x168   : > { %13913 = vst [vmem:[#allocation47_spill] sm:$0xff] %v9089_v21 }
 0x16e   : > { %803 = vadd.xlane.f32.xlu0 %v802_v24 }
 0x1a1   : > { %v901_v25 = vpop.xlane.xlu0 %900 }
 0x1a2   : > { %v971_v27 = vmul.f32 %v901_v25, %v8953_v26 }
 0x1a4   : > { %v995_v28 = vadd.f32 1e-06, %v971_v27 }
 0x1a6   : > { %8013 = vrsqrt.f32 %v995_v28  ;;  %vm1025_vm5 = vweird.f32 %v995_v28 }
 0x1a9   : > { %v910_v29 = vpop.xlane.xlu2 %909  ;;  %v771_v30 = vpop.xlane.xlu0 %770 }
 0x1aa   : > { %v974_v33 = vmul.f32 %v910_v29, %v8953_v26  ;;  %v904_v34 = vpop.xlane.xlu1 %903  ;;  %v834_v35 = vmul.f32 %v8953_v26, %v771_v30 }
 0x1ab   : > { %v972_v36 = vmul.f32 %v904_v34, %v8953_v26 }
 0x1ac   : > { %v8014_v37 = vpop.eup %8013  ;;  %v9056_v38 = vadd.f32 1e-06, %v974_v33  ;;  %v9060_v40 = vsub.f32 %v7781_v39, %v834_v35  ;;  %v7797_v35 = vunpack.c.h.bf16 %v9031_v15 }
 0x1ad   : > { %v1020_v43 = vmul.f32 %v8014_v37, %v995_v28  ;;  %v996_v45 = vadd.f32 1e-06, %v972_v36  ;;  %vm1026_vm4 = vweird.f32 %v8014_v37 }
 0x1ae   : > { %8015 = vrsqrt.f32 %v9056_v38  ;;  %v882_v46 = vmul.f32 %v9060_v40, %v9060_v40  ;;  %vm1027_vm6 = vmor %vm1025_vm5, %vm1026_vm4  ;;  %vm1055_vm10 = vweird.f32 %v9056_v38 }
 0x1af   : > { %v1021_v47 = vmul.f32 %v8014_v37, %v1020_v43  ;;  %8017 = vrsqrt.f32 %v996_v45  ;;  %vm1035_vm8 = vweird.f32 %v996_v45 }
 0x1b0   : > { %v920_v50 = vsel %vm747_vm2, %v882_v46, 0.0 }
 0x1b1   : > { %v1022_v51 = vmul.f32 0.5, %v1021_v47  ;;  %v913_v52 = vpop.xlane.xlu2 %912  ;;  %921 = vadd.xlane.f32.xlu1 %v920_v50  ;;  %v774_v53 = vpop.xlane.xlu0 %773 }
 0x1b2   : > { %v975_v55 = vmul.f32 %v913_v52, %v8953_v26  ;;  %v907_v17 = vpop.xlane.xlu1 %906  ;;  %v835_v39 = vmul.f32 %v8953_v26, %v774_v53  ;;  %v793_v53 = vsel %vm747_vm2, %v7797_v35, 0.0 }
 0x1b3   : > { %v1023_v57 = vsub.f32 1.5, %v1022_v51  ;;  %v973_v58 = vmul.f32 %v907_v17, %v8953_v26 }
 0x1b4   : > { %v9069_v59 = vpop.eup %8015  ;;  %v9073_v60 = vsub.f32 %v7784_v54, %v835_v39  ;;  %v9077_v4 = vadd.f32 1e-06, %v975_v55  ;;  %v7800_v55 = vunpack.c.l.bf16 %v9037_v19 }
 0x1b5   : > { %v8018_v62 = vpop.eup %8017  ;;  %v1024_v63 = vmul.f32 %v8014_v37, %v1023_v57  ;;  %v1050_v3 = vmul.f32 %v9069_v59, %v9056_v38  ;;  %v9079_v5 = vadd.f32 1e-06, %v973_v58  ;;  %vm1056_vm11 = vweird.f32 %v9069_v59 }
 0x1b6   : > { %v1030_v7 = vmul.f32 %v8018_v62, %v996_v45  ;;  %v883_v14 = vmul.f32 %v9073_v60, %v9073_v60  ;;  %vm1036_vm7 = vweird.f32 %v8018_v62  ;;  %vm9134_vm12 = vmor %vm1055_vm10, %vm1056_vm11  ;;  %vm1065_vm3 = vweird.f32 %v9077_v4 }
 0x1b7   : > { %v1028_v11 = vsel %vm1027_vm6, %v8014_v37, %v1024_v63  ;;  %v1051_v12 = vmul.f32 %v9069_v59, %v1050_v3  ;;  %8019 = vrsqrt.f32 %v9079_v5  ;;  %v9102_v37 = vperm.slane %v528_v10, 1  ;;  %vm1037_vm9 = vmor %vm1035_vm8, %vm1036_vm7 }
 0x1b8   : > { %v1031_v54 = vmul.f32 %v8018_v62, %v1030_v7  ;;  %8021 = vrsqrt.f32 %v9077_v4  ;;  %v1259_v24 = vmul.f32 %v1028_v11, %v8956_v31  ;;  %v923_v28 = vsel %vm747_vm2, %v883_v14, 0.0 }
 0x1b9   : > { %v916_v18 = vpop.xlane.xlu0 %915  ;;  %v1052_v30 = vmul.f32 0.5, %v1051_v12  ;;  %924 = vadd.xlane.f32.xlu1 %v923_v28  ;;  %13914 = vst [vmem:[#allocation48_spill] sm:$0xff] %v9102_v37  ;;  %v783_v47 = vpop.xlane.xlu2 %782  ;;  %vm1045_vm14 = vweird.f32 %v9079_v5 }
 0x1ba   : > { %v1032_v25 = vmul.f32 0.5, %v1031_v54  ;;  %v777_v27 = vpop.xlane.xlu1 %776  ;;  %v976_v29 = vmul.f32 %v916_v18, %v8953_v26  ;;  %v1284_v50 = vmul.f32 %v9089_v21, %v1259_v24  ;;  %v838_v63 = vmul.f32 %v8953_v26, %v783_v47 }
 0x1bb   : > { %v836_v32 = vmul.f32 %v8953_v26, %v777_v27  ;;  %v1053_v52 = vsub.f32 1.5, %v1052_v30 }
 0x1bc   : > { %v1033_v33 = vsub.f32 1.5, %v1032_v25  ;;  %v9095_v34 = vadd.f32 1e-06, %v976_v29  ;;  %v1309_v3 = vadd.f32 %v9102_v37, %v1284_v50  ;;  %v796_v25 = vsel %vm747_vm2, %v7800_v55, 0.0 }
 0x1bd   : > { %v8020_v36 = vpop.eup %8019  ;;  %v9100_v31 = vsub.f32 %v7785_v1, %v836_v32  ;;  %v1054_v7 = vmul.f32 %v9069_v59, %v1053_v52  ;;  %v9150_v27 = vsub.f32 %v7789_v0, %v838_v63 }
 0x1be   : > { %v1034_v43 = vmul.f32 %v8018_v62, %v1033_v33  ;;  %v1040_v46 = vmul.f32 %v8020_v36, %v9079_v5  ;;  %8023 = vrsqrt.f32 %v9095_v34  ;;  %v9107_v51 = vpop.eup %8021  ;;  %vm1046_vm13 = vweird.f32 %v8020_v36 }
 0x1bf   : > { %v884_v45 = vmul.f32 %v9100_v31, %v9100_v31  ;;  %v1060_v10 = vmul.f32 %v9107_v51, %v9077_v4  ;;  %v1333_v29 = vpack.c.bf16 %v1309_v3, %v1309_v3  ;;  %v1058_v5 = vsel %vm9134_vm12, %v9069_v59, %v1054_v7  ;;  %vm1047_vm15 = vmor %vm1045_vm14, %vm1046_vm13 }
 0x1c0   : > { %v1038_v49 = vsel %vm1037_vm9, %v8018_v62, %v1034_v43  ;;  %v1041_v1 = vmul.f32 %v8020_v36, %v1040_v46  ;;  %v1262_v52 = vmul.f32 %v1058_v5, %v8966_v41  ;;  %vm1075_vm0 = vweird.f32 %v9095_v34 }
 0x1c1   : > { %v1260_v17 = vmul.f32 %v1038_v49, %v8968_v42  ;;  %v926_v39 = vsel %vm747_vm2, %v884_v45, 0.0  ;;  %v9119_v57 = vpop.xlane.xlu0 %918  ;;  %794 = vadd.xlane.f32.xlu1 %v793_v53  ;;  %v1061_v30 = vmul.f32 %v9107_v51, %v1060_v10  ;;  %v786_v61 = vpop.xlane.xlu2 %785  ;;  %v1384_v45 = vunpack.c.l.b16 %v1333_v29 }
 0x1c2   : > { %v1042_v58 = vmul.f32 0.5, %v1041_v1  ;;  %927 = vadd.xlane.f32.xlu2 %v926_v39  ;;  %v780_v62 = vpop.xlane.xlu1 %779  ;;  %v839_v53 = vmul.f32 %v8953_v26, %v786_v61  ;;  %v7805_v39 = vunpack.c.h.bf16 %v9043_v22  ;;  %v1287_v63 = vmul.f32 %v9089_v21, %v1262_v52 }
 0x1c3   : > { %v837_v11 = vmul.f32 %v8953_v26, %v780_v62  ;;  %v1285_v42 = vmul.f32 %v9089_v21, %v1260_v17  ;;  %v1062_v1 = vmul.f32 0.5, %v1061_v30  ;;  %vm1066_vm4 = vweird.f32 %v9107_v51 }
 0x1c4   : > { %v9128_v12 = vpop.eup %8023  ;;  %v1043_v14 = vsub.f32 1.5, %v1042_v58  ;;  %v805_v10 = vsel %vm747_vm2, %v7805_v39, 0.0  ;;  %vm1067_vm6 = vmor %vm1065_vm3, %vm1066_vm4 }
 0x1c5   : > { %v1070_v18 = vmul.f32 %v9128_v12, %v9095_v34  ;;  %v9143_v24 = vsub.f32 %v7788_v9, %v837_v11  ;;  %v1310_v28 = vadd.f32 %v9102_v37, %v1285_v42  ;;  %v1063_v3 = vsub.f32 1.5, %v1062_v1 }
 0x1c6   : > { %v1044_v38 = vmul.f32 %v8020_v36, %v1043_v14  ;;  %vm1076_vm1 = vweird.f32 %v9128_v12 }
 0x1c7   : > { %v1071_v9 = vmul.f32 %v9128_v12, %v1070_v18  ;;  %v885_v32 = vmul.f32 %v9143_v24, %v9143_v24  ;;  %v1334_v43 = vpack.c.bf16 %v1310_v28, %v1310_v28  ;;  %vm9196_vm5 = vmor %vm1075_vm0, %vm1076_vm1  ;;  %v1064_v4 = vmul.f32 %v9107_v51, %v1063_v3 }
 0x1c8   : > { %v1048_v33 = vsel %vm1047_vm15, %v8020_v36, %v1044_v38  ;;  %v886_v36 = vmul.f32 %v9150_v27, %v9150_v27 }
 0x1c9   : > { %v1261_v0 = vmul.f32 %v1048_v33, %v8979_v48  ;;  %v1072_v46 = vmul.f32 0.5, %v1071_v9  ;;  %v929_v47 = vsel %vm747_vm2, %v885_v32, 0.0  ;;  %v789_v50 = vpop.xlane.xlu0 %788  ;;  %v1385_v49 = vunpack.c.l.b16 %v1334_v43 }
 0x1ca   : > { %797 = vadd.xlane.f32.xlu2 %v796_v25  ;;  %v840_v59 = vmul.f32 %v8953_v26, %v789_v50  ;;  %930 = vadd.xlane.f32.xlu1 %v929_v47  ;;  %v932_v7 = vsel %vm747_vm2, %v886_v36, 0.0  ;;  %v1312_v25 = vadd.f32 %v9102_v37, %v1287_v63  ;;  %v1068_v32 = vsel %vm1067_vm6, %v9107_v51, %v1064_v4 }
 0x1cb   : > { %v1408_v17 = vpack.c.b16 %v1385_v49, %v1384_v45  ;;  %v1286_v41 = vmul.f32 %v9089_v21, %v1261_v0  ;;  %v1073_v58 = vsub.f32 1.5, %v1072_v46  ;;  %v1263_v46 = vmul.f32 %v1068_v32, %v8970_v44 }
 0x1cc   : > { %v9169_v48 = vsub.f32 %v7793_v13, %v840_v59  ;;  %v9181_v13 = vsub.f32 %v7792_v8, %v839_v53  ;;  %v9192_v8 = vld [vmem:[#allocation2 + $0x50] sm:$0xff]   ;;  %v9217_v9 = vpack.c.bf16 %v1312_v25, %v1312_v25 }
 0x1cd   : > { %7711 = vmatmul.msk.bf16.vlgmr.msra.gmra.mxu0 %vm747_vm2, %v1408_v17  ;;  %v1311_v42 = vadd.f32 %v9102_v37, %v1286_v41  ;;  %v1074_v54 = vmul.f32 %v9128_v12, %v1073_v58  ;;  %v7808_v34 = vunpack.c.l.bf16 %v9192_v8  ;;  %v1288_v45 = vmul.f32 %v9089_v21, %v1263_v46 }
 0x1ce   : > { %v888_v62 = vmul.f32 %v9169_v48, %v9169_v48  ;;  %v887_v38 = vmul.f32 %v9181_v13, %v9181_v13  ;;  %13920 = vst [vmem:[#allocation50_spill] sm:$0xff] %v9217_v9  ;;  %v1387_v51 = vunpack.c.l.b16 %v9217_v9 }
 0x1cf   : > { %v9210_v29 = vpack.c.bf16 %v1311_v42, %v1311_v42  ;;  %v1078_v5 = vsel %vm9196_vm5, %v9128_v12, %v1074_v54  ;;  %v808_v43 = vsel %vm747_vm2, %v7808_v34, 0.0  ;;  %v1313_v36 = vadd.f32 %v9102_v37, %v1288_v45 }
 0x1d0   : > { %v938_v11 = vsel %vm747_vm2, %v888_v62, 0.0  ;;  %v935_v33 = vsel %vm747_vm2, %v887_v38, 0.0  ;;  %v977_v42 = vmul.f32 %v9119_v57, %v8953_v26 }
 0x1d1   : > { %939 = vadd.xlane.f32.xlu0 %v938_v11  ;;  %v792_v6 = vpop.xlane.xlu0 %791  ;;  %13919 = vst [vmem:[#allocation49_spill] sm:$0xff] %v9210_v29  ;;  %v1386_v0 = vunpack.c.l.b16 %v9210_v29  ;;  %v9253_v62 = vpack.c.bf16 %v1313_v36, %v1313_v36 }
 0x1d2   : > { %933 = vadd.xlane.f32.xlu2 %v932_v7  ;;  %v841_v18 = vmul.f32 %v8953_v26, %v792_v6  ;;  %806 = vadd.xlane.f32.xlu1 %v805_v10 }
 0x1d3   : > { %v1409_v52 = vpack.c.b16 %v1387_v51, %v1386_v0  ;;  %13922 = vst [vmem:[#allocation52_spill] sm:$0xff] %v9253_v62  ;;  %v1388_v10 = vunpack.c.l.b16 %v9253_v62 }
 0x1d4   : > { %v9207_v28 = vsub.f32 %v7796_v16, %v841_v18  ;;  %v1264_v16 = vmul.f32 %v1078_v5, %v8991_v56  ;;  %v7809_v56 = vunpack.c.h.bf16 %v9192_v8 }
 0x1d6   : > { %v889_v30 = vmul.f32 %v9207_v28, %v9207_v28  ;;  %v1289_v59 = vmul.f32 %v9089_v21, %v1264_v16  ;;  %v811_v49 = vsel %vm747_vm2, %v7809_v56, 0.0 }
 0x1d8   : > { %v941_v61 = vsel %vm747_vm2, %v889_v30, 0.0  ;;  %v1314_v53 = vadd.f32 %v9102_v37, %v1289_v59 }
 0x1d9   : > { %942 = vadd.xlane.f32.xlu0 %v941_v61  ;;  %v801_v12 = vpop.xlane.xlu0 %800 }
 0x1da   : > { %936 = vadd.xlane.f32.xlu2 %v935_v33  ;;  %v844_v47 = vmul.f32 %v8953_v26, %v801_v12  ;;  %809 = vadd.xlane.f32.xlu1 %v808_v43  ;;  %v9247_v41 = vpack.c.bf16 %v1314_v53, %v1314_v53 }
 0x1dc   : > { %v9233_v50 = vsub.f32 %v7801_v20, %v844_v47  ;;  %13921 = vst [vmem:[#allocation51_spill] sm:$0xff] %v9247_v41  ;;  %v1389_v3 = vunpack.c.l.b16 %v9247_v41 }
 0x1dd   : > { %7712 = vmatmul.msk.bf16.gmra.mxu0 %vm747_vm2, %v1409_v52 }
 0x1de   : > { %v892_v44 = vmul.f32 %v9233_v50, %v9233_v50  ;;  %v1410_v11 = vpack.c.b16 %v1389_v3, %v1388_v10 }
 0x1e0   : > { %v950_v1 = vsel %vm747_vm2, %v892_v44, 0.0 }
 0x1e1   : > { %951 = vadd.xlane.f32.xlu0 %v950_v1  ;;  %v804_v20 = vpop.xlane.xlu0 %803 }
 0x1e2   : > { %812 = vadd.xlane.f32.xlu2 %v811_v49  ;;  %v845_v17 = vmul.f32 %v8953_v26, %v804_v20 }
 0x1e4   : > { %v9251_v58 = vsub.f32 %v7804_v23, %v845_v17  ;;  %v1001_v23 = vadd.f32 1e-06, %v977_v42 }
 0x1e6   : > { %v893_v63 = vmul.f32 %v9251_v58, %v9251_v58  ;;  %8025 = vrsqrt.f32 %v1001_v23  ;;  %vm1085_vm7 = vweird.f32 %v1001_v23 }
 0x1e8   : > { %v953_v7 = vsel %vm747_vm2, %v893_v63, 0.0  ;;  %v9283_v63 = vld [vmem:[#allocation2 + $0x58] sm:$0xff]  }
 0x1e9   : > { %954 = vadd.xlane.f32.xlu0 %v953_v7 }
 0x1ec   : > { %v8026_v54 = vpop.eup %8025 }
 0x1ed   : > { %7713 = vmatmul.msk.bf16.gmra.mxu0 %vm747_vm2, %v1410_v11  ;;  %v1080_v6 = vmul.f32 %v8026_v54, %v1001_v23  ;;  %vm1086_vm8 = vweird.f32 %v8026_v54 }
 0x1ee   : > { %vm1087_vm9 = vmor %vm1085_vm7, %vm1086_vm8 }
 0x1ef   : > { %v1081_v14 = vmul.f32 %v8026_v54, %v1080_v6 }
 0x1f1   : > { %v1082_v18 = vmul.f32 0.5, %v1081_v14 }
 0x1f3   : > { %v1083_v5 = vsub.f32 1.5, %v1082_v18 }
 0x1f5   : > { %v1084_v30 = vmul.f32 %v8026_v54, %v1083_v5 }
 0x1f7   : > { %v1088_v16 = vsel %vm1087_vm9, %v8026_v54, %v1084_v30 }
 0x1f8   : > { %v1265_v0 = vmul.f32 %v1088_v16, %v9005_v2 }
 0x1fa   : > { %v1290_v45 = vmul.f32 %v9089_v21, %v1265_v0 }
 0x1fc   : > { %v1315_v17 = vadd.f32 %v9102_v37, %v1290_v45 }
 0x1fe   : > { %v9292_v23 = vpack.c.bf16 %v1315_v17, %v1315_v17 }
 0x200   : > { %13923 = vst [vmem:[#allocation53_spill] sm:$0xff] %v9292_v23  ;;  %v1390_v5 = vunpack.c.l.b16 %v9292_v23 }
 0x224   : > { %v922_v25 = vpop.xlane.xlu1 %921 }
 0x225   : > { %v978_v4 = vmul.f32 %v922_v25, %v8953_v26 }
 0x227   : > { %v1002_v38 = vadd.f32 1e-06, %v978_v4 }
 0x229   : > { %8027 = vrsqrt.f32 %v1002_v38  ;;  %vm1095_vm10 = vweird.f32 %v1002_v38 }
 0x22c   : > { %v925_v32 = vpop.xlane.xlu1 %924 }
 0x22d   : > { %v979_v57 = vmul.f32 %v925_v32, %v8953_v26 }
 0x22f   : > { %v8028_v33 = vpop.eup %8027  ;;  %v9266_v12 = vadd.f32 1e-06, %v979_v57 }
 0x230   : > { %v1090_v43 = vmul.f32 %v8028_v33, %v1002_v38  ;;  %vm1096_vm11 = vweird.f32 %v8028_v33 }
 0x231   : > { %8029 = vrsqrt.f32 %v9266_v12  ;;  %vm1097_vm12 = vmor %vm1095_vm10, %vm1096_vm11  ;;  %vm1105_vm13 = vweird.f32 %v9266_v12 }
 0x232   : > { %v1091_v61 = vmul.f32 %v8028_v33, %v1090_v43  ;;  %v13753_v43 = vunpack.c.h.bf16 %v9283_v63 }
 0x234   : > { %v1092_v46 = vmul.f32 0.5, %v1091_v61  ;;  %v795_v59 = vpop.xlane.xlu1 %794  ;;  %v817_v45 = vsel %vm747_vm2, %v13753_v43, 0.0 }
 0x235   : > { %v928_v47 = vpop.xlane.xlu2 %927  ;;  %v842_v44 = vmul.f32 %v8953_v26, %v795_v59 }
 0x236   : > { %v1093_v51 = vsub.f32 1.5, %v1092_v46  ;;  %v980_v52 = vmul.f32 %v928_v47, %v8953_v26 }
 0x237   : > { %v9276_v2 = vsub.f32 %v7797_v35, %v842_v44  ;;  %v9285_v3 = vpop.eup %8029 }
 0x238   : > { %v1094_v49 = vmul.f32 %v8028_v33, %v1093_v51  ;;  %v9272_v1 = vadd.f32 1e-06, %v980_v52  ;;  %v1100_v6 = vmul.f32 %v9285_v3, %v9266_v12  ;;  %vm1106_vm14 = vweird.f32 %v9285_v3 }
 0x239   : > { %v890_v36 = vmul.f32 %v9276_v2, %v9276_v2  ;;  %vm1107_vm0 = vmor %vm1105_vm13, %vm1106_vm14 }
 0x23a   : > { %v1098_v53 = vsel %vm1097_vm12, %v8028_v33, %v1094_v49  ;;  %8031 = vrsqrt.f32 %v9272_v1  ;;  %v1101_v19 = vmul.f32 %v9285_v3, %v1100_v6  ;;  %v529_v33 = vld [vmem:[%s13731_s3] sm:$0x3]  ;;  %vm1115_vm1 = vweird.f32 %v9272_v1 }
 0x23b   : > { %v1266_v20 = vmul.f32 %v1098_v53, %v9060_v40  ;;  %v944_v10 = vsel %vm747_vm2, %v890_v36, 0.0  ;;  %v13754_v40 = vunpack.c.l.bf16 %v9283_v63  ;;  %v9322_v47 = vperm.slane %v529_v33, 0 }
 0x23c   : > { %945 = vadd.xlane.f32.xlu1 %v944_v10  ;;  %v1102_v46 = vmul.f32 0.5, %v1101_v19 }
 0x23d   : > { %v798_v7 = vpop.xlane.xlu2 %797  ;;  %v1291_v15 = vmul.f32 %v9089_v21, %v1266_v20  ;;  %v931_v11 = vpop.xlane.xlu1 %930  ;;  %v814_v38 = vsel %vm747_vm2, %v13754_v40, 0.0 }
 0x23e   : > { %v843_v35 = vmul.f32 %v8953_v26, %v798_v7  ;;  %v981_v51 = vmul.f32 %v931_v11, %v8953_v26  ;;  %v1103_v20 = vsub.f32 1.5, %v1102_v46 }
 0x23f   : > { %v1316_v42 = vadd.f32 %v9102_v37, %v1291_v15 }
 0x240   : > { %v9294_v54 = vpop.eup %8031  ;;  %v9300_v14 = vsub.f32 %v7800_v55, %v843_v35  ;;  %v9338_v17 = vadd.f32 1e-06, %v981_v51  ;;  %v1104_v15 = vmul.f32 %v9285_v3, %v1103_v20 }
 0x241   : > { %v9302_v18 = vpack.c.bf16 %v1316_v42, %v1316_v42  ;;  %v1110_v25 = vmul.f32 %v9294_v54, %v9272_v1  ;;  %vm1116_vm15 = vweird.f32 %v9294_v54 }
 0x242   : > { %v891_v4 = vmul.f32 %v9300_v14, %v9300_v14  ;;  %8033 = vrsqrt.f32 %v9338_v17  ;;  %vm1117_vm3 = vmor %vm1115_vm1, %vm1116_vm15  ;;  %vm1125_vm6 = vweird.f32 %v9338_v17 }
 0x243   : > { %13924 = vst [vmem:[#allocation54_spill] sm:$0xff] %v9302_v18  ;;  %v1391_v30 = vunpack.c.l.b16 %v9302_v18  ;;  %v1111_v57 = vmul.f32 %v9294_v54, %v1110_v25 }
 0x244   : > { %v947_v55 = vsel %vm747_vm2, %v891_v4, 0.0  ;;  %815 = vadd.xlane.f32.xlu1 %v814_v38  ;;  %v1108_v4 = vsel %vm1107_vm0, %v9285_v3, %v1104_v15 }
 0x245   : > { %948 = vadd.xlane.f32.xlu2 %v947_v55  ;;  %v1411_v32 = vpack.c.b16 %v1391_v30, %v1390_v5  ;;  %v807_v16 = vpop.xlane.xlu1 %806  ;;  %v934_v61 = vpop.xlane.xlu2 %933  ;;  %v1112_v59 = vmul.f32 0.5, %v1111_v57 }
 0x246   : > { %v846_v0 = vmul.f32 %v8953_v26, %v807_v16  ;;  %v982_v44 = vmul.f32 %v934_v61, %v8953_v26 }
 0x247   : > { %7714 = vmatmul.msk.bf16.gmra.mxu0 %vm747_vm2, %v1411_v32  ;;  %v1267_v32 = vmul.f32 %v1108_v4, %v9073_v60 }
 0x248   : > { %v9327_v52 = vsub.f32 %v7805_v39, %v846_v0  ;;  %v1113_v39 = vsub.f32 1.5, %v1112_v59  ;;  %v9341_v7 = vadd.f32 1e-06, %v982_v44  ;;  %v9366_v55 = vpop.eup %8033 }
 0x249   : > { %v1292_v60 = vmul.f32 %v9089_v21, %v1267_v32  ;;  %vm1126_vm9 = vweird.f32 %v9366_v55 }
 0x24a   : > { %v1471_v49 = vpop.f32.mrf.mxu0  ;;  %v894_v53 = vmul.f32 %v9327_v52, %v9327_v52  ;;  %v1114_v11 = vmul.f32 %v9294_v54, %v1113_v39  ;;  %8035 = vrsqrt.f32 %v9341_v7  ;;  %vm1135_vm10 = vweird.f32 %v9341_v7  ;;  %vm9435_vm12 = vmor %vm1125_vm6, %vm1126_vm9 }
 0x24b   : > { %v9336_v36 = vadd.f32 %v1471_v49, %v9322_v47  ;;  %v1317_v20 = vadd.f32 %v9102_v37, %v1292_v60 }
 0x24c   : > { %v956_v22 = vsel %vm747_vm2, %v894_v53, 0.0  ;;  %v1118_v30 = vsel %vm1117_vm3, %v9294_v54, %v1114_v11  ;;  %v1120_v54 = vmul.f32 %v9366_v55, %v9338_v17 }
 0x24d   : > { %818 = vadd.xlane.f32.xlu2 %v817_v45  ;;  %v9344_v10 = vmul.f32 0.70710677, %v9336_v36  ;;  %957 = vadd.xlane.f32.xlu1 %v956_v22  ;;  %v810_v42 = vpop.xlane.xlu1 %809  ;;  %v9357_v25 = vpop.xlane.xlu2 %936  ;;  %v1268_v3 = vmul.f32 %v1118_v30, %v9100_v31  ;;  %v9400_v32 = vpack.c.bf16 %v1317_v20, %v1317_v20 }
 0x24e   : > { %v847_v5 = vmul.f32 %v8953_v26, %v810_v42  ;;  %v1121_v59 = vmul.f32 %v9366_v55, %v1120_v54  ;;  %v940_v30 = vpop.xlane.xlu0 %939 }
 0x24f   : > { %v9351_v35 = vand.u32 2147483647, %v9344_v10  ;;  %v1293_v51 = vmul.f32 %v9089_v21, %v1268_v3  ;;  %13925 = vst [vmem:[#allocation55_spill] sm:$0xff] %v9400_v32 }
 0x250   : > { %v9369_v33 = vpop.eup %8035  ;;  %v9374_v1 = vsub.f32 %v7808_v34, %v847_v5 }
 0x251   : > { %v1651_v6 = vmul.f32 0.3275911, %v9351_v35  ;;  %v1130_v16 = vmul.f32 %v9369_v33, %v9341_v7  ;;  %v1318_v42 = vadd.f32 %v9102_v37, %v1293_v51  ;;  %v984_v51 = vmul.f32 %v940_v30, %v8953_v26 }
 0x252   : > { %v1473_v12 = vpop.f32.mrf.mxu0  ;;  %v895_v34 = vmul.f32 %v9374_v1, %v9374_v1  ;;  %vm1136_vm11 = vweird.f32 %v9369_v33 }
 0x253   : > { %v1675_v38 = vadd.f32 1.0, %v1651_v6  ;;  %v9364_v19 = vadd.f32 %v1473_v12, %v9322_v47  ;;  %v1131_v45 = vmul.f32 %v9369_v33, %v1130_v16  ;;  %v1122_v6 = vmul.f32 0.5, %v1121_v59  ;;  %vm9446_vm13 = vmor %vm1135_vm10, %vm1136_vm11 }
 0x254   : > { %v959_v53 = vsel %vm747_vm2, %v895_v34, 0.0  ;;  %vm1579_vm11 = vcmp.ge.f32.partialorder %v9344_v10, 0.0  ;;  %v1531_v10 = vmul.f32 0.5, %v9336_v36 }
 0x255   : > { %8037 = vrcp.f32 %v1675_v38  ;;  %v9377_v57 = vmul.f32 0.70710677, %v9364_v19  ;;  %v813_v31 = vpop.xlane.xlu2 %812  ;;  %960 = vadd.xlane.f32.xlu2 %v959_v53  ;;  %v1710_v15 = vand.u32 2147483648, %v1675_v38  ;;  %v1708_v4 = vand.u32 2147483647, %v1675_v38 }
 0x256   : > { %v848_v39 = vmul.f32 %v8953_v26, %v813_v31  ;;  %v1132_v5 = vmul.f32 0.5, %v1131_v45  ;;  %vm1704_vm5 = vweird.f32 %v1675_v38  ;;  %v9410_v31 = vpack.c.bf16 %v1318_v42, %v1318_v42 }
 0x257   : > { %v9385_v46 = vand.u32 2147483647, %v9377_v57  ;;  %v1711_v60 = vor.u32 1.1754944e-38, %v1710_v15  ;;  %v1123_v34 = vsub.f32 1.5, %v1122_v6  ;;  %vm1709_vm8 = vcmp.eq.f32.partialorder %v1708_v4, 8.507059e+37 }
 0x258   : > { %v9404_v54 = vsub.f32 %v7809_v56, %v848_v39  ;;  %13927 = vst [vmem:[#allocation57_spill] sm:$0xff] %v9410_v31  ;;  %v1133_v8 = vsub.f32 1.5, %v1132_v5  ;;  %v1392_v45 = vunpack.c.l.b16 %v9400_v32 }
 0x259   : > { %v1652_v49 = vmul.f32 0.3275911, %v9385_v46  ;;  %v2276_v6 = vsub.f32 0.0, %v9385_v46 }
 0x25a   : > { %v1476_v61 = vpop.f32.mrf.mxu0  ;;  %13926 = vst [vmem:[#allocation56_spill] sm:$0xff] %v9404_v54  ;;  %v896_v53 = vmul.f32 %v9404_v54, %v9404_v54  ;;  %v1134_v7 = vmul.f32 %v9369_v33, %v1133_v8 }
 0x25b   : > { %v8038_v0 = vpop.eup %8037  ;;  %v9396_v11 = vadd.f32 1.0, %v1652_v49  ;;  %v9407_v16 = vadd.f32 %v1476_v61, %v9322_v47 }
 0x25c   : > { %v1700_v44 = vmul.f32 %v8038_v0, %v1675_v38  ;;  %vm1705_vm4 = vweird.f32 %v8038_v0  ;;  %v1393_v38 = vunpack.c.l.b16 %v9410_v31  ;;  %v962_v5 = vsel %vm747_vm2, %v896_v53, 0.0 }
 0x25d   : > { %8039 = vrcp.f32 %v9396_v11  ;;  %vm1706_vm7 = vmor %vm1704_vm5, %vm1705_vm4  ;;  %v9420_v49 = vmul.f32 0.70710677, %v9407_v16  ;;  %963 = vadd.xlane.f32.xlu0 %v962_v5  ;;  %v1723_v8 = vand.u32 2147483647, %v9396_v11  ;;  %vm1719_vm15 = vweird.f32 %v9396_v11 }
 0x25e   : > { %v1701_v22 = vsub.f32 1.0, %v1700_v44  ;;  %v1412_v42 = vpack.c.b16 %v1393_v38, %v1392_v45  ;;  %v1138_v38 = vsel %vm9446_vm13, %v9369_v33, %v1134_v7 }
 0x25f   : > { %v9443_v4 = vand.u32 2147483647, %v9420_v49  ;;  %vm1724_vm1 = vcmp.eq.f32.partialorder %v1723_v8, 8.507059e+37  ;;  %v1270_v7 = vmul.f32 %v1138_v38, %v9150_v27 }
 0x260   : > { %v1702_v12 = vmul.f32 %v8038_v0, %v1701_v22  ;;  %v1124_v22 = vmul.f32 %v9366_v55, %v1123_v34  ;;  %7715 = vmatmul.msk.bf16.gmra.mxu0 %vm747_vm2, %v1412_v42 }
 0x261   : > { %v1653_v34 = vmul.f32 0.3275911, %v9443_v4  ;;  %v1295_v38 = vmul.f32 %v9089_v21, %v1270_v7  ;;  %v2277_v41 = vsub.f32 0.0, %v9443_v4 }
 0x262   : > { %v1703_v3 = vadd.f32 %v8038_v0, %v1702_v12  ;;  %v1478_v44 = vpop.f32.mrf.mxu0  ;;  %v9440_v12 = vadd.f32 1e-06, %v984_v51 }
 0x263   : > { %v9427_v20 = vadd.f32 %v1478_v44, %v9322_v47  ;;  %v9465_v45 = vadd.f32 1.0, %v1653_v34 }
 0x264   : > { %v1707_v59 = vsel %vm1706_vm7, %v8038_v0, %v1703_v3  ;;  %v8040_v0 = vpop.eup %8039  ;;  %8041 = vrsqrt.f32 %v9440_v12  ;;  %vm1155_vm13 = vweird.f32 %v9440_v12 }
 0x265   : > { %v9414_v56 = vsel %vm1709_vm8, %v1711_v60, %v1707_v59  ;;  %v1715_v15 = vmul.f32 %v8040_v0, %v9396_v11  ;;  %v1725_v60 = vand.u32 2147483648, %v9396_v11  ;;  %v9455_v51 = vmul.f32 0.70710677, %v9427_v20 }
 0x266   : > { %v2059_v61 = vmul.f32 1.0614054, %v9414_v56  ;;  %v1128_v59 = vsel %vm9435_vm12, %v9366_v55, %v1124_v22  ;;  %vm1720_vm14 = vweird.f32 %v8040_v0  ;;  %8043 = vrcp.f32 %v9465_v45 }
 0x267   : > { %v1716_v17 = vsub.f32 1.0, %v1715_v15  ;;  %v9469_v15 = vand.u32 2147483647, %v9455_v51  ;;  %v1269_v55 = vmul.f32 %v1128_v59, %v9143_v24  ;;  %vm1721_vm0 = vmor %vm1719_vm15, %vm1720_vm14  ;;  %v1726_v22 = vor.u32 1.1754944e-38, %v1725_v60 }
 0x268   : > { %v2083_v39 = vadd.f32 -1.4531521, %v2059_v61  ;;  %v943_v61 = vpop.xlane.xlu0 %942  ;;  %v983_v11 = vmul.f32 %v9357_v25, %v8953_v26  ;;  %v2300_v25 = vmul.f32 %v2276_v6, %v9385_v46  ;;  %vm1734_vm4 = vweird.f32 %v9465_v45 }
 0x269   : > { %v1717_v44 = vmul.f32 %v8040_v0, %v1716_v17  ;;  %v985_v33 = vmul.f32 %v943_v61, %v8953_v26  ;;  %v1654_v30 = vmul.f32 0.3275911, %v9469_v15  ;;  %v1294_v34 = vmul.f32 %v9089_v21, %v1269_v55 }
 0x26a   : > { %v2107_v3 = vmul.f32 %v2083_v39, %v9414_v56  ;;  %v9484_v60 = vpop.eup %8041  ;;  %v9492_v8 = vadd.f32 1e-06, %v983_v11  ;;  %v1738_v11 = vand.u32 2147483647, %v9465_v45  ;;  %vm1580_vm12 = vcmp.ge.f32.partialorder %v9377_v57, 0.0 }
 0x26b   : > { %v1718_v39 = vadd.f32 %v8040_v0, %v1717_v44  ;;  %v9489_v27 = vadd.f32 1e-06, %v985_v33  ;;  %v1319_v55 = vadd.f32 %v9102_v37, %v1294_v34  ;;  %v1150_v33 = vmul.f32 %v9484_v60, %v9440_v12 }
 0x26c   : > { %v2131_v53 = vadd.f32 1.4214138, %v2107_v3  ;;  %v2275_v3 = vsub.f32 0.0, %v9351_v35  ;;  %v8044_v44 = vpop.eup %8043  ;;  %v1740_v34 = vand.u32 2147483648, %v9465_v45  ;;  %vm1739_vm5 = vcmp.eq.f32.partialorder %v1738_v11, 8.507059e+37 }
 0x26d   : > { %v1722_v42 = vsel %vm1721_vm0, %v8040_v0, %v1718_v39  ;;  %v9486_v0 = vadd.f32 1.0, %v1654_v30  ;;  %v1481_v30 = vpop.f32.mrf.mxu0  ;;  %vm1735_vm3 = vweird.f32 %v8044_v44  ;;  %v9510_v43 = vpack.c.bf16 %v1319_v55, %v1319_v55 }
 0x26e   : > { %v9478_v5 = vsel %vm1724_vm1, %v1726_v22, %v1722_v42  ;;  %v2155_v24 = vmul.f32 %v2131_v53, %v9414_v56  ;;  %v2299_v53 = vmul.f32 %v2275_v3, %v9351_v35  ;;  %v1730_v22 = vmul.f32 %v8044_v44, %v9465_v45  ;;  %vm1736_vm6 = vmor %vm1734_vm4, %vm1735_vm3 }
 0x26f   : > { %v2060_v17 = vmul.f32 1.0614054, %v9478_v5  ;;  %8045 = vrcp.f32 %v9486_v0  ;;  %v2325_v42 = vmul.f32 1.442695, %v2300_v25  ;;  %v1320_v35 = vadd.f32 %v9102_v37, %v1295_v38  ;;  %13932 = vst [vmem:[#allocation58_spill] sm:$0xff] %v9510_v43 }
 0x270   : > { %v2179_v61 = vadd.f32 -0.28449672, %v2155_v24  ;;  %8047 = vrsqrt.f32 %v9489_v27  ;;  %v952_v6 = vpop.xlane.xlu0 %951  ;;  %v1731_v7 = vsub.f32 1.0, %v1730_v22  ;;  %v2323_v3 = vmul.f32 1.442695, %v2299_v53 }
 0x271   : > { %v2084_v59 = vadd.f32 -1.4531521, %v2060_v17  ;;  %8049 = vrsqrt.f32 %v9492_v8  ;;  %v9517_v53 = vadd.f32 %v1481_v30, %v9322_v47  ;;  %v1741_v55 = vor.u32 1.1754944e-38, %v1740_v34 }
 0x272   : > { %v2203_v24 = vmul.f32 %v2179_v61, %v9414_v56  ;;  %v1732_v25 = vmul.f32 %v8044_v44, %v1731_v7  ;;  %8051 = vpow2.f32 %v2325_v42  ;;  %v9514_v61 = vpack.c.bf16 %v1320_v35, %v1320_v35 }
 0x273   : > { %v2108_v39 = vmul.f32 %v2084_v59, %v9478_v5  ;;  %v1753_v11 = vand.u32 2147483647, %v9486_v0  ;;  %v1394_v35 = vunpack.c.l.b16 %v9510_v43  ;;  %v9532_v32 = vmul.f32 0.70710677, %v9517_v53 }
 0x274   : > { %v1733_v40 = vadd.f32 %v8044_v44, %v1732_v25  ;;  %13933 = vst [vmem:[#allocation59_spill] sm:$0xff] %v9514_v61  ;;  %v1395_v30 = vunpack.c.l.b16 %v9514_v61  ;;  %8053 = vpow2.f32 %v2323_v3  ;;  %vm1749_vm8 = vweird.f32 %v9486_v0 }
 0x275   : > { %v2132_v46 = vadd.f32 1.4214138, %v2108_v39  ;;  %v8046_v59 = vpop.eup %8045  ;;  %v988_v39 = vmul.f32 %v952_v6, %v8953_v26  ;;  %v2227_v6 = vadd.f32 0.2548296, %v2203_v24  ;;  %v1755_v24 = vand.u32 2147483648, %v9486_v0 }
 0x276   : > { %v1745_v38 = vmul.f32 %v8046_v59, %v9486_v0  ;;  %vm1750_vm7 = vweird.f32 %v8046_v59  ;;  %v9546_v43 = vand.u32 2147483647, %v9532_v32  ;;  %vm1754_vm10 = vcmp.eq.f32.partialorder %v1753_v11, 8.507059e+37 }
 0x277   : > { %v2156_v17 = vmul.f32 %v2132_v46, %v9478_v5  ;;  %v9519_v46 = vpop.eup %8047  ;;  %vm1751_vm9 = vmor %vm1749_vm8, %vm1750_vm7  ;;  %v1756_v3 = vor.u32 1.1754944e-38, %v1755_v24  ;;  %vm1156_vm14 = vweird.f32 %v9484_v60  ;;  %vm1145_vm15 = vweird.f32 %v9492_v8 }
 0x278   : > { %v1746_v42 = vsub.f32 1.0, %v1745_v38  ;;  %v9522_v45 = vpop.eup %8049  ;;  %v1413_v38 = vpack.c.b16 %v1395_v30, %v1394_v35  ;;  %v1151_v35 = vmul.f32 %v9484_v60, %v1150_v33  ;;  %v530_v30 = vlaneseq }
 0x279   : > { %v2180_v22 = vadd.f32 -0.28449672, %v2156_v17  ;;  %v1737_v17 = vsel %vm1736_vm6, %v8044_v44, %v1733_v40  ;;  %v8052_v40 = vpop.eup %8051  ;;  %v1140_v44 = vmul.f32 %v9522_v45, %v9492_v8  ;;  %v1655_v33 = vmul.f32 0.3275911, %v9546_v43 }
 0x27a   : > { %v9527_v31 = vsel %vm1739_vm5, %v1741_v55, %v1737_v17  ;;  %7716 = vmatmul.msk.bf16.gmra.mxu0 %vm747_vm2, %v1413_v38  ;;  %v9561_v18 = vshrl.u32 %v530_v30, 7  ;;  %vm1146_vm3 = vweird.f32 %v9522_v45  ;;  %vm1165_vm4 = vweird.f32 %v9489_v27  ;;  %vm9616_vm5 = vmor %vm1155_vm13, %vm1156_vm14 }
 0x27b   : > { %v2204_v7 = vmul.f32 %v2180_v22, %v9478_v5  ;;  %v2061_v34 = vmul.f32 1.0614054, %v9527_v31  ;;  %v1747_v22 = vmul.f32 %v8046_v59, %v1746_v42  ;;  %v1483_v42 = vpop.f32.mrf.mxu0  ;;  %v9567_v11 = vadd.f32 1.0, %v1655_v33  ;;  %vm9625_vm6 = vmor %vm1145_vm15, %vm1146_vm3 }
 0x27c   : > { %v9556_v24 = vadd.f32 %v1483_v42, %v9322_v47  ;;  %13934 = vst [vmem:[#allocation60_spill] sm:$0xff] %v9561_v18  ;;  %v9601_v57 = vadd.s32 8, %v9561_v18  ;;  %v1532_v12 = vmul.f32 0.5, %v9364_v19 }
 0x27d   : > { %v2228_v25 = vadd.f32 0.2548296, %v2204_v7  ;;  %v9538_v7 = vadd.f32 1e-06, %v988_v39  ;;  %v2085_v17 = vadd.f32 -1.4531521, %v2061_v34  ;;  %v1748_v61 = vadd.f32 %v8046_v59, %v1747_v22 }
 0x27e   : > { %v1160_v39 = vmul.f32 %v9519_v46, %v9489_v27  ;;  %13937 = vst [vmem:[#allocation63_spill] sm:$0xff] %v9601_v57  ;;  %vm1764_vm14 = vweird.f32 %v9567_v11 }
 0x27f   : > { %v2252_v55 = vmul.f32 %v2228_v25, %v9478_v5  ;;  %v2251_v5 = vmul.f32 %v2227_v6, %v9414_v56  ;;  %v1752_v0 = vsel %vm1751_vm9, %v8046_v59, %v1748_v61  ;;  %v1141_v25 = vmul.f32 %v9522_v45, %v1140_v44  ;;  %v8054_v6 = vpop.eup %8053 }
 0x280   : > { %v9552_v34 = vsel %vm1754_vm10, %v1756_v3, %v1752_v0  ;;  %8055 = vrsqrt.f32 %v9538_v7  ;;  %v2109_v38 = vmul.f32 %v2085_v17, %v9527_v31  ;;  %v9563_v59 = vstv %s7703_s12  ;;  %s7506_s12 = scalar_lea.hbm %s14174_s11, %s7749_s26 }
 0x281   : > { %v2372_v22 = vmul.f32 %v8052_v40, %v2252_v55  ;;  %v2062_v56 = vmul.f32 1.0614054, %v9552_v34  ;;  %13935 = vst [vmem:[#allocation61_spill] sm:$0xff] %v9563_v59  ;;  %v9565_v61 = vstv %s7704_s21  ;;  %v1152_v44 = vmul.f32 0.5, %v1151_v35  ;;  %s7507_s21 = sshll.u32 %s8900_s29, 4  ;;  %s7509_s24 = sshll.u32 %s7506_s12, 4  ;;  %s7508_s21 = int_to_ptr.vmem [resolvable:$true] %s7507_s21  ;;  %s7510_s24 = int_to_ptr.hbm [resolvable:$true] %s7509_s24 }
 0x282   : > { %13936 = vst [vmem:[#allocation62_spill] sm:$0xff] %v9565_v61  ;;  %v2371_v42 = vmul.f32 %v8054_v6, %v2251_v5  ;;  %v1161_v55 = vmul.f32 %v9519_v46, %v1160_v39  ;;  %8057 = vrcp.f32 %v9567_v11  ;;  %v9574_v17 = vmul.f32 0.70710677, %v9556_v24  ;;  %s8528_s23 = sshra.s32 %s7510_s24, 4  ;;  %s8529_s23 = int_to_ptr.hbm [resolvable:$true] %s8528_s23 }
 0x283   : > { %v2086_v40 = vadd.f32 -1.4531521, %v2062_v56  ;;  %v1142_v30 = vmul.f32 0.5, %v1141_v25  ;;  %v2396_v3 = vsub.f32 1.0, %v2372_v22  ;;  %v2133_v0 = vadd.f32 1.4214138, %v2109_v38  ;;  %p8535_p0 = scmp.lt.s32.totalorder %s8529_s23, %s14174_s11 }
 0x284   : > { %v13761_v35 = vmov -1.0   ;;  %v2395_v56 = vsub.f32 1.0, %v2371_v42  ;;  %v2278_v25 = vsub.f32 0.0, %v9469_v15  ;;  %v1153_v22 = vsub.f32 1.5, %v1152_v44  ;;  %s8530_s22 = scalar_lea.hbm %s8529_s23, 128 }
 0x285   : > { %v2110_v33 = vmul.f32 %v2086_v40, %v9552_v34  ;;  %v1603_v5 = vsel %vm1579_vm11, 1.0, %v13761_v35  ;;  %v1162_v38 = vmul.f32 0.5, %v1161_v55  ;;  %v1604_v40 = vsel %vm1580_vm12, 1.0, %v13761_v35  ;;  %p8531_p13 = scmp.ne.s32.totalorder %s8529_s23, %s8530_s22 }
 0x286   : > { %v9581_v39 = vpop.eup %8055  ;;  %v9589_v23 = vand.u32 2147483647, %v9574_v17  ;;  %vm558_vm0 = vcmp.ge.s32.totalorder %v9561_v18, %v9563_v59  ;;  %vm585_vm1 = vcmp.lt.s32.totalorder %v9561_v18, %v9565_v61  ;;  %v1143_v36 = vsub.f32 1.5, %v1142_v30 }
 0x287   : > { %v2134_v6 = vadd.f32 1.4214138, %v2110_v33  ;;  %v2420_v42 = vmul.f32 %v2396_v3, %v1604_v40  ;;  %v2157_v33 = vmul.f32 %v2133_v0, %v9527_v31  ;;  %v1190_v35 = vmul.f32 %v9581_v39, %v9538_v7  ;;  %vm609_vm13 = vmand %vm558_vm0, %vm585_vm1  ;;  %p8532_p5 = pnand %p8531_p13, %p8764_p3 }
 0x288   : > { %v9597_v55 = vpop.eup %8057  ;;  %v2419_v62 = vmul.f32 %v2395_v56, %v1603_v5  ;;  %v2302_v30 = vmul.f32 %v2278_v25, %v9469_v15  ;;  %v1154_v0 = vmul.f32 %v9484_v60, %v1153_v22  ;;  %v1656_v40 = vmul.f32 0.3275911, %v9589_v23 }
 0x289   : > { %v2158_v44 = vmul.f32 %v2134_v6, %v9552_v34  ;;  %v1760_v3 = vmul.f32 %v9597_v55, %v9567_v11  ;;  %v1163_v6 = vsub.f32 1.5, %v1162_v38  ;;  %v1144_v15 = vmul.f32 %v9522_v45, %v1143_v36  ;;  %p8533_p12 = pneg %p8532_p5 }
 0x28a   : > { %v2444_v5 = vadd.f32 1.0, %v2420_v42  ;;  %v2181_v56 = vadd.f32 -0.28449672, %v2157_v33  ;;  %vm559_vm7 = vcmp.ge.s32.totalorder %v9601_v57, %v9563_v59  ;;  %v1191_v38 = vmul.f32 %v9581_v39, %v1190_v35 }
 0x28b   : > { %v2182_v9 = vadd.f32 -0.28449672, %v2158_v44  ;;  %v1761_v25 = vsub.f32 1.0, %v1760_v3  ;;  %v2301_v36 = vmul.f32 %v2277_v41, %v9443_v4  ;;  %v2443_v42 = vadd.f32 1.0, %v2419_v62 }
 0x28c   : > { %vm586_vm8 = vcmp.lt.s32.totalorder %v9601_v57, %v9565_v61  ;;  %v2329_v8 = vmul.f32 1.442695, %v2302_v30  ;;  %v1158_v44 = vsel %vm9616_vm5, %v9484_v60, %v1154_v0  ;;  %vm1166_vm9 = vweird.f32 %v9519_v46 }
 0x28d   : > { %v2206_v33 = vmul.f32 %v2182_v9, %v9552_v34  ;;  %v1762_v3 = vmul.f32 %v9597_v55, %v1761_v25  ;;  %v9642_v19 = vadd.f32 1.0, %v1656_v40  ;;  %v1148_v41 = vsel %vm9625_vm6, %v9522_v45, %v1144_v15  ;;  %vm9652_vm10 = vmand %vm559_vm7, %vm586_vm8 }
 0x28e   : > { %v1164_v62 = vmul.f32 %v9519_v46, %v1163_v6  ;;  %v2468_v4 = vmul.f32 %v2444_v5, %v1532_v12  ;;  %v2205_v9 = vmul.f32 %v2181_v56, %v9527_v31  ;;  %v1192_v60 = vmul.f32 0.5, %v1191_v38  ;;  %vm9660_vm12 = vmor %vm1165_vm4, %vm1166_vm9  ;;  %v2587_v56 = vld [vmem:[#allocation5] sm:$0x3] }
 0x28f   : > { %v2327_v35 = vmul.f32 1.442695, %v2301_v36  ;;  %v1763_v30 = vadd.f32 %v9597_v55, %v1762_v3  ;;  %vm1765_vm11 = vweird.f32 %v9597_v55  ;;  %v2467_v0 = vmul.f32 %v2443_v42, %v1531_v10 }
 0x290   : > { %v2230_v6 = vadd.f32 0.2548296, %v2206_v33  ;;  %8059 = vpow2.f32 %v2329_v8  ;;  %v1770_v40 = vand.u32 2147483648, %v9567_v11  ;;  %v1768_v10 = vand.u32 2147483647, %v9567_v11  ;;  %vm9680_vm15 = vmor %vm1764_vm14, %vm1765_vm11 }
 0x291   : > { %8061 = vrcp.f32 %v9642_v19  ;;  %v1272_v27 = vmul.f32 %v1158_v44, %v9169_v48  ;;  %v1271_v15 = vmul.f32 %v1148_v41, %v9181_v13  ;;  %v2540_v5 = vsel %vm9652_vm10, %v2468_v4, 0.0 }
 0x292   : > { %v2229_v25 = vadd.f32 0.2548296, %v2205_v9  ;;  %v1168_v11 = vsel %vm9660_vm12, %v9519_v46, %v1164_v62  ;;  %vm1195_vm0 = vweird.f32 %v9538_v7  ;;  %8063 = vpow2.f32 %v2327_v35 }
 0x293   : > { %v1767_v48 = vsel %vm9680_vm15, %v9597_v55, %v1763_v30  ;;  %v2539_v13 = vsel %vm609_vm13, %v2467_v0, 0.0  ;;  %v1193_v12 = vsub.f32 1.5, %v1192_v60  ;;  %v2254_v38 = vmul.f32 %v2230_v6, %v9552_v34 }
 0x294   : > { %v1771_v36 = vor.u32 1.1754944e-38, %v1770_v40  ;;  %v2564_v42 = vpack.c.bf16 %v2540_v5, %v2540_v5  ;;  %v2890_v33 = vshrl.u32 %v2587_v56, 16  ;;  %vm1196_vm1 = vweird.f32 %v9581_v39 }
 0x295   : > { %vm1769_vm3 = vcmp.eq.f32.partialorder %v1768_v10, 8.507059e+37  ;;  %v2253_v46 = vmul.f32 %v2229_v25, %v9527_v31  ;;  %v1296_v3 = vmul.f32 %v9089_v21, %v1271_v15  ;;  %v1297_v41 = vmul.f32 %v9089_v21, %v1272_v27  ;;  %vm9716_vm6 = vmor %vm1195_vm0, %vm1196_vm1 }
 0x296   : > { %v8060_v8 = vpop.eup %8059  ;;  %v9694_v44 = vsel %vm1769_vm3, %v1771_v36, %v1767_v48  ;;  %v2563_v62 = vpack.c.bf16 %v2539_v13, %v2539_v13  ;;  %v9701_v34 = vmul.f32 %v1168_v11, %v9207_v28  ;;  %v9704_v4 = vmul.f32 %v9581_v39, %v1193_v12 }
 0x297   : > { %v9698_v55 = vpop.eup %8061  ;;  %vm1581_vm4 = vcmp.ge.f32.partialorder %v9420_v49, 0.0  ;;  %vm1582_vm5 = vcmp.ge.f32.partialorder %v9455_v51, 0.0  ;;  %v2374_v31 = vmul.f32 %v8060_v8, %v2254_v38  ;;  %v2615_v29 = vunpack.c.l.b16 %v2564_v42 }
 0x298   : > { %v8064_v9 = vpop.eup %8063  ;;  %v9708_v60 = vpack.i.b16 %v2587_v56, %v2587_v56  ;;  %v9710_v35 = vpack.i.b16 %v2890_v33, %v2890_v33  ;;  %v2063_v30 = vmul.f32 1.0614054, %v9694_v44  ;;  %v1775_v0 = vmul.f32 %v9698_v55, %v9642_v19 }
 0x299   : > { %v2373_v49 = vmul.f32 %v8064_v9, %v2253_v46  ;;  %v1321_v45 = vadd.f32 %v9102_v37, %v1296_v3  ;;  %v1322_v6 = vadd.f32 %v9102_v37, %v1297_v41  ;;  %v2614_v40 = vunpack.c.l.b16 %v2563_v62 }
 0x29a   : > { %v9726_v10 = vmul.f32 0.5, %v9407_v16  ;;  %v13950_v27 = vmov -1.0   ;;  %v2279_v15 = vsub.f32 0.0, %v9546_v43  ;;  %v1198_v5 = vsel %vm9716_vm6, %v9581_v39, %v9704_v4 }
 0x29b   : > { %v1605_v7 = vsel %vm1581_vm4, 1.0, %v13950_v27  ;;  %v1534_v56 = vmul.f32 0.5, %v9427_v20  ;;  %v1606_v25 = vsel %vm1582_vm5, 1.0, %v13950_v27  ;;  %v2398_v22 = vsub.f32 1.0, %v2374_v31 }
 0x29c   : > { %v2638_v11 = vpack.c.b16 %v2615_v29, %v2614_v40  ;;  %vm2758_vm7 = vcmask 1040384   ;;  %vm2759_vm8 = vsmask.f32 256  ;;  %v2893_v16 = vperm.slane %v9710_v35, 0 }
 0x29d   : > { %v3116_v48 = vperm.slane %v9708_v60, 1  ;;  %v2087_v13 = vadd.f32 -1.4531521, %v2063_v30  ;;  %v2397_v12 = vsub.f32 1.0, %v2373_v49  ;;  %v1776_v38 = vsub.f32 1.0, %v1775_v0  ;;  %vm9780_vm0 = vmand %vm2758_vm7, %vm2759_vm8 }
 0x29e   : > { %v9740_v36 = vpack.c.bf16 %v1321_v45, %v1321_v45  ;;  %v9742_v42 = vpack.c.bf16 %v1322_v6, %v1322_v6  ;;  %v9745_v20 = vadd.s32 16, %v9561_v18  ;;  %v2303_v33 = vmul.f32 %v2279_v15, %v9546_v43  ;;  %v9758_v43 = vld [vmem:[#allocation5 + $0x2] sm:$0x3] }
 0x29f   : > { %v2111_v51 = vmul.f32 %v2087_v13, %v9694_v44  ;;  %v1785_v8 = vand.u32 2147483648, %v9642_v19  ;;  %v2422_v46 = vmul.f32 %v2398_v22, %v1606_v25  ;;  %v1777_v3 = vmul.f32 %v9698_v55, %v1776_v38 }
 0x2a0   : > { %13951 = vst [vmem:[#allocation64_spill] sm:$0xff] %v9740_v36  ;;  %vm1780_vm9 = vweird.f32 %v9698_v55  ;;  %v1783_v41 = vand.u32 2147483647, %v9642_v19  ;;  %v2651_v62 = vshrl.u32 %v2638_v11, 16  ;;  %v1396_v9 = vunpack.c.l.b16 %v9740_v36 }
 0x2a1   : > { %13952 = vst [vmem:[#allocation65_spill] sm:$0xff] %v9742_v42  ;;  %v2135_v31 = vadd.f32 1.4214138, %v2111_v51  ;;  %v1397_v29 = vunpack.c.l.b16 %v9742_v42  ;;  %v2421_v35 = vmul.f32 %v2397_v12, %v1605_v7  ;;  %v9756_v30 = vadd.s32 24, %v9561_v18 }
 0x2a2   : > { %13953 = vst [vmem:[#allocation66_spill] sm:$0xff] %v9745_v20  ;;  %v1778_v49 = vadd.f32 %v9698_v55, %v1777_v3  ;;  %vm1779_vm10 = vweird.f32 %v9642_v19  ;;  %v2331_v45 = vmul.f32 1.442695, %v2303_v33  ;;  %v1786_v6 = vor.u32 1.1754944e-38, %v1785_v8 }
 0x2a3   : > { %13954 = vst [vmem:[#allocation67_spill] sm:$0xff] %v9756_v30  ;;  %v2159_v0 = vmul.f32 %v2135_v31, %v9694_v44  ;;  %vm1781_vm11 = vmor %vm1779_vm10, %vm1780_vm9  ;;  %v1414_v40 = vpack.c.b16 %v1397_v29, %v1396_v9  ;;  %v2446_v15 = vadd.f32 1.0, %v2422_v46  ;;  %vm1784_vm12 = vcmp.eq.f32.partialorder %v1783_v41, 8.507059e+37 }
 0x2a4   : > { %v1782_v25 = vsel %vm1781_vm11, %v9698_v55, %v1778_v49  ;;  %v2280_v7 = vsub.f32 0.0, %v9589_v23  ;;  %v2653_v22 = vrot.slane %v2651_v62, 7  ;;  %v3416_v13 = vshrl.u32 %v9758_v43, 16 }
 0x2a5   : > { %v2183_v12 = vadd.f32 -0.28449672, %v2159_v0  ;;  %v9766_v38 = vsel %vm1784_vm12, %v1786_v6, %v1782_v25  ;;  %7717 = vmatmul.msk.bf16.gmra.mxu0 %vm747_vm2, %v1414_v40  ;;  %v2445_v19 = vadd.f32 1.0, %v2421_v35  ;;  %vm561_vm13 = vcmp.ge.s32.totalorder %v9756_v30, %v9563_v59 }
 0x2a6   : > { %vm588_vm14 = vcmp.lt.s32.totalorder %v9756_v30, %v9565_v61  ;;  %v2064_v55 = vmul.f32 1.0614054, %v9766_v38  ;;  %v2654_v51 = vshll.u32 %v2638_v11, 16  ;;  %v2788_v33 = vperm.slane %v9708_v60, 0 }
 0x2a7   : > { %vm560_vm15 = vcmp.ge.s32.totalorder %v9745_v20, %v9563_v59  ;;  %v2207_v8 = vmul.f32 %v2183_v12, %v9694_v44  ;;  %v13955_v46 = vmov 0  ;;  %vm587_vm1 = vcmp.lt.s32.totalorder %v9745_v20, %v9565_v61  ;;  %vm612_vm3 = vmand %vm561_vm13, %vm588_vm14 }
 0x2a8   : > { %v13956_v46 = vsel %vm9780_vm0, 4294967295, %v13955_v46  ;;  %v2470_v3 = vmul.f32 %v2446_v15, %v1534_v56  ;;  %v2088_v41 = vadd.f32 -1.4531521, %v2064_v55  ;;  %v2304_v11 = vmul.f32 %v2280_v7, %v9589_v23  ;;  %vm611_vm4 = vmand %vm560_vm15, %vm587_vm1  ;;  %v955_v7 = vpop.xlane.xlu0 %954 }
 0x2a9   : > { %13957 = vst [vmem:[#allocation68_spill] sm:$0xff] %v13956_v46  ;;  %v2656_v62 = vor.u32 %v2654_v51, %v2653_v22  ;;  %v3417_v60 = vpack.i.b16 %v3416_v13, %v3416_v13  ;;  %v2231_v31 = vadd.f32 0.2548296, %v2207_v8  ;;  %8065 = vpow2.f32 %v2331_v45 }
 0x2aa   : > { %v9787_v9 = vunpack.c.l.bf16 %v2893_v16  ;;  %v9795_v29 = vmul.f32 %v1198_v5, %v9233_v50  ;;  %v2469_v56 = vmul.f32 %v2445_v19, %v9726_v10  ;;  %v2112_v35 = vmul.f32 %v2088_v41, %v9766_v38 }
 0x2ab   : > { %v2773_v23 = vsel %vm9780_vm0, %v2653_v22, 0  ;;  %v9801_v49 = vunpack.c.l.bf16 %v3116_v48  ;;  %vm1583_vm5 = vcmp.ge.f32.partialorder %v9532_v32, 0.0  ;;  %vm1584_vm6 = vcmp.ge.f32.partialorder %v9574_v17, 0.0 }
 0x2ac   : > { %13958 = vst [vmem:[#allocation69_spill] sm:$0xff] %v9787_v9  ;;  %v2542_v50 = vsel %vm612_vm3, %v2470_v3, 0.0  ;;  %v2255_v39 = vmul.f32 %v2231_v31, %v9694_v44  ;;  %v2136_v4 = vadd.f32 1.4214138, %v2112_v35  ;;  %v2333_v28 = vmul.f32 1.442695, %v2304_v11 }
 0x2ad   : > { %13959 = vst [vmem:[#allocation70_spill] sm:$0xff] %v9801_v49  ;;  %v2761_v10 = vsel %vm9780_vm0, 0, %v2656_v62  ;;  %v9814_v5 = vunpack.c.l.bf16 %v2788_v33  ;;  %v3419_v16 = vperm.slane %v3417_v60, 0  ;;  %v9817_v48 = vmul.f32 0.5, %v9517_v53 }
 0x2ae   : > { %v2895_v0 = vunpack.c.l.bf16 %v2773_v23  ;;  %v2541_v45 = vsel %vm611_vm4, %v2469_v56, 0.0  ;;  %v1607_v32 = vsel %vm1583_vm5, 1.0, %v13950_v27  ;;  %v2160_v6 = vmul.f32 %v2136_v4, %v9766_v38 }
 0x2af   : > { %13960 = vst [vmem:[#allocation71_spill] sm:$0xff] %v9814_v5  ;;  %v8066_v40 = vpop.eup %8065  ;;  %v2566_v15 = vpack.c.bf16 %v2542_v50, %v2542_v50  ;;  %v9822_v44 = vmul.f32 0.5, %v9556_v24  ;;  %v1608_v25 = vsel %vm1584_vm6, 1.0, %v13950_v27  ;;  %v9829_v53 = vmul.f32 %v9089_v21, %v9701_v34  ;;  %v946_v19 = vpop.xlane.xlu1 %945 }
 0x2b0   : > { %v2790_v22 = vunpack.c.l.bf16 %v2761_v10  ;;  %v2375_v13 = vmul.f32 %v8066_v40, %v2255_v39  ;;  %v2184_v12 = vadd.f32 -0.28449672, %v2160_v6  ;;  %8067 = vpow2.f32 %v2333_v28 }
 0x2b1   : > { %v2791_v51 = vunpack.c.h.bf16 %v2761_v10  ;;  %v2565_v33 = vpack.c.bf16 %v2541_v45, %v2541_v45  ;;  %v9831_v8 = vunpack.c.l.bf16 %v3419_v16  ;;  %v986_v24 = vmul.f32 %v946_v19, %v8953_v26 }
 0x2b2   : > { %v2907_v17 = vmul.f32 %v2895_v0, %v9787_v9  ;;  %v3120_v3 = vmul.f32 %v9801_v49, %v2895_v0  ;;  %v2208_v41 = vmul.f32 %v2184_v12, %v9766_v38  ;;  %v2617_v11 = vunpack.c.l.b16 %v2566_v15 }
 0x2b3   : > { %13961 = vst [vmem:[#allocation72_spill] sm:$0xff] %v9831_v8  ;;  %v9839_v62 = vadd.s32 32, %v9561_v18  ;;  %v989_v60 = vmul.f32 %v955_v7, %v8953_v26  ;;  %v9842_v31 = vadd.f32 1e-06, %v986_v24  ;;  %v2810_v56 = vmul.f32 %v2790_v22, %v9814_v5 }
 0x2b4   : > { %v2399_v35 = vsub.f32 1.0, %v2375_v13  ;;  %v2232_v23 = vadd.f32 0.2548296, %v2208_v41  ;;  %v2811_v39 = vmul.f32 %v2791_v51, %v9814_v5  ;;  %v9849_v4 = vmul.f32 %v9787_v9, %v2790_v22 }
 0x2b5   : > { %13962 = vst [vmem:[#allocation73_spill] sm:$0xff] %v9839_v62  ;;  %v2616_v28 = vunpack.c.l.b16 %v2565_v33  ;;  %8069 = vrsqrt.f32 %v9842_v31  ;;  %v2906_v16 = vmul.f32 %v9787_v9, %v2791_v51  ;;  %v2937_v0 = vpack.c.bf16 %v2907_v17, %v2907_v17 }
 0x2b6   : > { %v8068_v10 = vpop.eup %8067  ;;  %v3118_v45 = vmul.f32 %v9801_v49, %v2790_v22  ;;  %v2256_v6 = vmul.f32 %v2232_v23, %v9766_v38  ;;  %v9856_v40 = vmul.f32 %v9801_v49, %v2791_v51  ;;  %v9858_v7 = vadd.f32 1e-06, %v989_v60 }
 0x2b7   : > { %v2639_v15 = vpack.c.b16 %v2617_v11, %v2616_v28  ;;  %v3150_v13 = vpack.c.bf16 %v3120_v3, %v3120_v3  ;;  %v2423_v12 = vmul.f32 %v2399_v35, %v1607_v32  ;;  %v9862_v19 = vadd.s32 40, %v9561_v18  ;;  %v816_v33 = vpop.xlane.xlu1 %815 }
 0x2b8   : > { %v949_v55 = vpop.xlane.xlu2 %948  ;;  %v2830_v24 = vpack.c.bf16 %v2810_v56, %v2810_v56  ;;  %v2831_v17 = vpack.c.bf16 %v2811_v39, %v2811_v39  ;;  %v2935_v38 = vpack.c.bf16 %v9849_v4, %v9849_v4  ;;  %v849_v22 = vmul.f32 %v8953_v26, %v816_v33 }
 0x2b9   : > { %v987_v34 = vmul.f32 %v949_v55, %v8953_v26  ;;  %13963 = vst [vmem:[#allocation74_spill] sm:$0xff] %v9862_v19  ;;  %v2376_v55 = vmul.f32 %v8068_v10, %v2256_v6  ;;  %v2936_v41 = vpack.c.bf16 %v2906_v16, %v2906_v16  ;;  %v3148_v60 = vpack.c.bf16 %v3118_v45, %v3118_v45 }
 0x2ba   : > { %v2658_v35 = vshrl.u32 %v2639_v15, 16  ;;  %v13964_v56 = vunpack.c.l.bf16 %v9283_v63  ;;  %v2447_v39 = vadd.f32 1.0, %v2423_v12  ;;  %vm563_vm7 = vcmp.ge.s32.totalorder %v9862_v19, %v9563_v59 }
 0x2bb   : > { %v9845_v50 = vadd.f32 1e-06, %v987_v34  ;;  %v9867_v34 = vunpack.c.l.bf16 %v2937_v0  ;;  %v2400_v11 = vsub.f32 1.0, %v2376_v55  ;;  %v9872_v32 = vpop.eup %8069  ;;  %vm590_vm8 = vcmp.lt.s32.totalorder %v9862_v19, %v9565_v61 }
 0x2bc   : > { %v9877_v23 = vsub.f32 %v13964_v56, %v849_v22  ;;  %v3149_v10 = vpack.c.bf16 %v9856_v40, %v9856_v40  ;;  %vm562_vm9 = vcmp.ge.s32.totalorder %v9839_v62, %v9563_v59  ;;  %v1170_v16 = vmul.f32 %v9872_v32, %v9842_v31  ;;  %vm614_vm12 = vmand %vm563_vm7, %vm590_vm8 }
 0x2bd   : > { %8071 = vrsqrt.f32 %v9845_v50  ;;  %v2424_v4 = vmul.f32 %v2400_v11, %v1608_v25  ;;  %vm3025_vm10 = vcmask 1046528   ;;  %vm589_vm11 = vcmp.lt.s32.totalorder %v9839_v62, %v9565_v61 }
 0x2be   : > { %8073 = vrsqrt.f32 %v9858_v7  ;;  %13965 = vst [vmem:[#allocation75_spill] sm:$0xff] %v9877_v23  ;;  %v897_v0 = vmul.f32 %v9877_v23, %v9877_v23  ;;  %v1301_v6 = vmul.f32 %v9089_v21, %v9795_v29  ;;  %v9900_v40 = vunpack.c.l.bf16 %v2830_v24  ;;  %vm613_vm13 = vmand %vm562_vm9, %vm589_vm11 }
 0x2bf   : > { %v2448_v45 = vadd.f32 1.0, %v2424_v4  ;;  %v9902_v12 = vunpack.c.l.bf16 %v3150_v13  ;;  %v2660_v55 = vrot.slane %v2658_v35, 7  ;;  %v2471_v22 = vmul.f32 %v2447_v39, %v9817_v48 }
 0x2c0   : > { %v965_v33 = vsel %vm747_vm2, %v897_v0, 0.0  ;;  %v9920_v11 = vunpack.c.l.bf16 %v2831_v17  ;;  %v2966_v35 = vunpack.c.l.bf16 %v2936_v41  ;;  %v2661_v56 = vshll.u32 %v2639_v15, 16  ;;  %v819_v30 = vpop.xlane.xlu2 %818 }
 0x2c1   : > { %966 = vadd.xlane.f32.xlu1 %v965_v33  ;;  %v1171_v48 = vmul.f32 %v9872_v32, %v1170_v16  ;;  %v1323_v4 = vadd.f32 %v9102_v37, %v9829_v53  ;;  %v1326_v17 = vadd.f32 %v9102_v37, %v1301_v6  ;;  %v2965_v0 = vunpack.c.l.bf16 %v2935_v38 }
 0x2c2   : > { %v9933_v41 = vunpack.c.l.bf16 %v3148_v60  ;;  %v2663_v15 = vor.u32 %v2661_v56, %v2660_v55  ;;  %v2543_v33 = vsel %vm613_vm13, %v2471_v22, 0.0  ;;  %v3027_v19 = vrot.slane %v2966_v35, 1 }
 0x2c3   : > { %v9883_v28 = vpop.eup %8071  ;;  %v9942_v57 = vunpack.c.l.bf16 %v3149_v10  ;;  %v1172_v6 = vmul.f32 0.5, %v1171_v48  ;;  %v9947_v60 = vpack.c.bf16 %v1323_v4, %v1323_v4  ;;  %v3026_v22 = vrot.slane %v2965_v0, 1 }
 0x2c4   : > { %v1486_v51 = vpop.f32.mrf.mxu0  ;;  %v1180_v29 = vmul.f32 %v9883_v28, %v9845_v50  ;;  %v9918_v24 = vpop.eup %8073  ;;  %v3029_v56 = vrot.slane %v9867_v34, 1  ;;  %v3239_v10 = vrot.slane %v9933_v41, 2  ;;  %v2762_v35 = vsel %vm9780_vm0, 0, %v2663_v15 }
 0x2c5   : > { %v9870_v3 = vadd.f32 %v1486_v51, %v9322_v47  ;;  %v2472_v51 = vmul.f32 %v2448_v45, %v9822_v44  ;;  %v2774_v45 = vsel %vm9780_vm0, %v2660_v55, 0  ;;  %v1200_v62 = vmul.f32 %v9918_v24, %v9858_v7  ;;  %13966 = vst [vmem:[#allocation76_spill] sm:$0xff] %v9947_v60 }
 0x2c6   : > { %v1181_v16 = vmul.f32 %v9883_v28, %v1180_v29  ;;  %v9944_v38 = vunpack.c.l.bf16 %v2774_v45  ;;  %v9949_v55 = vpack.c.bf16 %v1326_v17, %v1326_v17  ;;  %v958_v45 = vpop.xlane.xlu1 %957  ;;  %v3030_v4 = vsel %vm3025_vm10, %v3027_v19, %v3029_v56 }
 0x2c7   : > { %v9896_v25 = vmul.f32 0.70710677, %v9870_v3  ;;  %v2544_v44 = vsel %vm614_vm12, %v2472_v51, 0.0  ;;  %v1201_v48 = vmul.f32 %v9918_v24, %v1200_v62  ;;  %v1173_v20 = vsub.f32 1.5, %v1172_v6 }
 0x2c8   : > { %v2568_v53 = vpack.c.bf16 %v2544_v44, %v2544_v44  ;;  %13967 = vst [vmem:[#allocation77_spill] sm:$0xff] %v9949_v55  ;;  %v1182_v44 = vmul.f32 0.5, %v1181_v16  ;;  %v9961_v34 = vmul.f32 %v9831_v8, %v9944_v38  ;;  %v9966_v29 = vunpack.c.l.bf16 %v2762_v35  ;;  %v961_v5 = vpop.xlane.xlu2 %960 }
 0x2c9   : > { %v9916_v13 = vand.u32 2147483647, %v9896_v25  ;;  %vm1175_vm14 = vweird.f32 %v9842_v31  ;;  %v990_v16 = vmul.f32 %v958_v45, %v8953_v26  ;;  %vm1176_vm15 = vweird.f32 %v9872_v32 }
 0x2ca   : > { %v2619_v0 = vunpack.c.l.b16 %v2568_v53  ;;  %13968 = vst [vmem:[#allocation78_spill] sm:$0xff] %v9966_v29  ;;  %v9972_v53 = vmul.f32 0.5, %v1201_v48  ;;  %v1183_v6 = vsub.f32 1.5, %v1182_v44  ;;  %v1174_v41 = vmul.f32 %v9872_v32, %v1173_v20  ;;  %vm9997_vm4 = vmor %vm1175_vm14, %vm1176_vm15 }
 0x2cb   : > { %v1657_v39 = vmul.f32 0.3275911, %v9916_v13  ;;  %v9981_v42 = vunpack.c.h.bf16 %v2762_v35  ;;  %vm1185_vm1 = vweird.f32 %v9845_v50  ;;  %v13970_v44 = vunpack.c.h.bf16 %v9283_v63 }
 0x2cc   : > { %vm3238_vm3 = vcmask 1045504   ;;  %v1184_v35 = vmul.f32 %v9883_v28, %v1183_v6  ;;  %vm1186_vm5 = vweird.f32 %v9883_v28  ;;  %v3097_v31 = vadd.f32 %v3030_v4, %v9920_v11 }
 0x2cd   : > { %v9940_v51 = vadd.f32 1.0, %v1657_v39  ;;  %v2567_v39 = vpack.c.bf16 %v2543_v33, %v2543_v33  ;;  %v850_v33 = vmul.f32 %v8953_v26, %v819_v30  ;;  %v3028_v30 = vsel %vm3025_vm10, %v3026_v22, %v3027_v19  ;;  %13969 = vst [vmem:[#allocation79_spill] sm:$0xff] %v9981_v42  ;;  %vm10029_vm7 = vmor %vm1185_vm1, %vm1186_vm5 }
 0x2ce   : > { %v9990_v19 = vadd.f32 1e-06, %v990_v16  ;;  %v3096_v63 = vadd.f32 %v3028_v30, %v9900_v40  ;;  %v3422_v40 = vmul.f32 %v9831_v8, %v9966_v29  ;;  %vm4603_vm11 = vcmask 1041408  }
 0x2cf   : > { %8075 = vrcp.f32 %v9940_v51  ;;  %v2618_v62 = vunpack.c.l.b16 %v2567_v39  ;;  %v3330_v39 = vpack.i.b16 %v9758_v43, %v9758_v43  ;;  %v9988_v45 = vsub.f32 %v13970_v44, %v850_v33 }
 0x2d0   : > { %v1800_v16 = vand.u32 2147483648, %v9940_v51  ;;  %v13974_v44 = vrot.slane %v9942_v57, 2  ;;  %8077 = vrsqrt.f32 %v9990_v19  ;;  %vm1794_vm8 = vweird.f32 %v9940_v51 }
 0x2d1   : > { %v2640_v17 = vpack.c.b16 %v2619_v0, %v2618_v62  ;;  %13971 = vst [vmem:[#allocation80_spill] sm:$0xff] %v9988_v45  ;;  %v3332_v22 = vperm.slane %v3330_v39, 0  ;;  %v3632_v4 = vperm.slane %v3330_v39, 1  ;;  %v3452_v39 = vpack.c.bf16 %v3422_v40, %v3422_v40 }
 0x2d2   : > { %v3241_v6 = vsel %vm3238_vm3, %v3239_v10, %v13974_v44  ;;  %v1798_v10 = vand.u32 2147483647, %v9940_v51  ;;  %vm1205_vm5 = vweird.f32 %v9858_v7 }
 0x2d3   : > { %v2665_v33 = vshrl.u32 %v2640_v17, 16  ;;  %v2668_v43 = vshll.u32 %v2640_v17, 16  ;;  %v4521_v17 = vld [vmem:[%s13734_s6] sm:$0x3]  ;;  %v10062_v11 = vunpack.c.l.bf16 %v3632_v4  ;;  %v13982_v4 = vrot.slane %v9942_v57, 2 }
 0x2d4   : > { %vm1799_vm12 = vcmp.eq.f32.partialorder %v1798_v10, 8.507059e+37 }
 0x2d5   : > { %v9970_v56 = vpop.eup %8075  ;;  %13980 = vst [vmem:[#allocation82_spill] sm:$0xff] %v10062_v11 }
 0x2d6   : > { %v1790_v15 = vmul.f32 %v9970_v56, %v9940_v51  ;;  %vm1795_vm6 = vweird.f32 %v9970_v56  ;;  %v898_v51 = vmul.f32 %v9988_v45, %v9988_v45  ;;  %v10064_v50 = vpop.eup %8077 }
 0x2d7   : > { %vm10042_vm9 = vmor %vm1794_vm8, %vm1795_vm6  ;;  %vm1206_vm6 = vweird.f32 %v9918_v24  ;;  %vm1215_vm8 = vweird.f32 %v9990_v19 }
 0x2d8   : > { %v1791_v20 = vsub.f32 1.0, %v1790_v15  ;;  %v1178_v15 = vsel %vm9997_vm4, %v9872_v32, %v1174_v41  ;;  %v10018_v32 = vunpack.c.l.bf16 %v3332_v22  ;;  %v3423_v41 = vmul.f32 %v9831_v8, %v9981_v42 }
 0x2d9   : > { %v10035_v22 = vrot.slane %v2665_v33, 7  ;;  %vm4572_vm4 = vcmask 31744  }
 0x2da   : > { %v1792_v62 = vmul.f32 %v9970_v56, %v1791_v20  ;;  %13975 = vst [vmem:[#allocation81_spill] sm:$0xff] %v10018_v32  ;;  %v10023_v20 = vmul.f32 %v1178_v15, %v9276_v2  ;;  %v1188_v2 = vsel %vm10029_vm7, %v9883_v28, %v1184_v35  ;;  %v1801_v15 = vor.u32 1.1754944e-38, %v1800_v16  ;;  %v1488_v28 = vpop.f32.mrf.mxu0  ;;  %vm10242_vm7 = vmor %vm1205_vm5, %vm1206_vm6 }
 0x2db   : > { %v4605_v35 = vsel %vm4603_vm11, %v4521_v17, 0  ;;  %v3336_v33 = vmul.f32 %v10018_v32, %v9966_v29  ;;  %v3337_v16 = vmul.f32 %v10018_v32, %v9981_v42  ;;  %v3453_v44 = vpack.c.bf16 %v3423_v41, %v3423_v41 }
 0x2dc   : > { %v1793_v30 = vadd.f32 %v9970_v56, %v1792_v62  ;;  %4614 = vmatpush.bf16.msra.mxu1 %v4605_v35  ;;  %7875 = vmatpush.bf16.msrb.mxu3 %v4605_v35  ;;  %v2670_v40 = vor.u32 %v2668_v43, %v10035_v22  ;;  %v10068_v17 = vmul.f32 %v1188_v2, %v9300_v14  ;;  %v2281_v41 = vsub.f32 0.0, %v9916_v13  ;;  %v2589_v14 = vld [vmem:[#allocation5 + $0x4] sm:$0x3] }
 0x2dd   : > { %v3309_v35 = vadd.f32 %v3241_v6, %v3096_v63  ;;  %v3634_v43 = vmul.f32 %v10062_v11, %v9966_v29  ;;  %v3356_v2 = vpack.c.bf16 %v3336_v33, %v3336_v33  ;;  %v3483_v48 = vunpack.c.l.bf16 %v3453_v44 }
 0x2de   : > { %v1797_v62 = vsel %vm10042_vm9, %v9970_v56, %v1793_v30  ;;  %v968_v56 = vsel %vm747_vm2, %v898_v51, 0.0  ;;  %v10060_v30 = vadd.f32 %v1488_v28, %v9322_v47  ;;  %v13981_v51 = vrot.slane %v9902_v12, 2 }
 0x2df   : > { %v10070_v0 = vsel %vm1799_vm12, %v1801_v15, %v1797_v62  ;;  %969 = vadd.xlane.f32.xlu2 %v968_v56  ;;  %v3357_v15 = vpack.c.bf16 %v3337_v16, %v3337_v16  ;;  %v3482_v62 = vunpack.c.l.bf16 %v3452_v39  ;;  %v3635_v12 = vmul.f32 %v10062_v11, %v9981_v42 }
 0x2e0   : > { %v10074_v10 = vmul.f32 0.70710677, %v10060_v30  ;;  %v3243_v28 = vsel %vm3238_vm3, %v13982_v4, %v13981_v51  ;;  %v2065_v56 = vmul.f32 1.0614054, %v10070_v0  ;;  %v3845_v57 = vpack.i.b16 %v2589_v14, %v2589_v14 }
 0x2e1   : > { %v2763_v63 = vsel %vm9780_vm0, 0, %v2670_v40  ;;  %v3310_v6 = vadd.f32 %v3243_v28, %v3097_v31  ;;  %v13983_v51 = vpack.c.bf16 %v9961_v34, %v9961_v34  ;;  %v3636_v39 = vmul.f32 %v10062_v11, %v9944_v38 }
 0x2e2   : > { %v10085_v36 = vand.u32 2147483647, %v10074_v10  ;;  %v3664_v44 = vpack.c.bf16 %v3634_v43, %v3634_v43  ;;  %v3665_v4 = vpack.c.bf16 %v3635_v12, %v3635_v12  ;;  %v3847_v45 = vperm.slane %v3845_v57, 0 }
 0x2e3   : > { %v3484_v33 = vunpack.c.l.bf16 %v13983_v51  ;;  %v3376_v23 = vunpack.c.l.bf16 %v3356_v2  ;;  %v3377_v8 = vunpack.c.l.bf16 %v3357_v15  ;;  %v3542_v32 = vrot.slane %v3482_v62, 1 }
 0x2e4   : > { %v1658_v16 = vmul.f32 0.3275911, %v10085_v36  ;;  %v3543_v42 = vrot.slane %v3483_v48, 1  ;;  %v2089_v29 = vadd.f32 -1.4531521, %v2065_v56  ;;  %v3666_v31 = vpack.c.bf16 %v3636_v39, %v3636_v39 }
 0x2e5   : > { %v3931_v28 = vshrl.u32 %v2589_v14, 16  ;;  %v2775_v34 = vsel %vm9780_vm0, %v10035_v22, 0  ;;  %v10102_v51 = vunpack.c.l.bf16 %v2763_v63  ;;  %v10104_v11 = vunpack.c.h.bf16 %v2763_v63 }
 0x2e6   : > { %v10097_v40 = vadd.f32 1.0, %v1658_v16  ;;  %v10106_v43 = vunpack.c.l.bf16 %v3847_v45  ;;  %v3545_v2 = vrot.slane %v3484_v33, 1  ;;  %v3694_v48 = vunpack.c.l.bf16 %v3664_v44 }
 0x2e7   : > { %13984 = vst [vmem:[#allocation83_spill] sm:$0xff] %v10102_v51  ;;  %v3695_v15 = vunpack.c.l.bf16 %v3665_v4  ;;  %v991_v62 = vmul.f32 %v961_v5, %v8953_v26  ;;  %v3396_v56 = vadd.f32 %v3376_v23, %v3309_v35  ;;  %v3397_v12 = vadd.f32 %v3377_v8, %v3310_v6 }
 0x2e8   : > { %13985 = vst [vmem:[#allocation84_spill] sm:$0xff] %v10104_v11  ;;  %8079 = vrcp.f32 %v10097_v40  ;;  %v3544_v14 = vsel %vm3025_vm10, %v3542_v32, %v3543_v42  ;;  %v2113_v39 = vmul.f32 %v2089_v29, %v10070_v0  ;;  %v3546_v22 = vsel %vm3025_vm10, %v3543_v42, %v3545_v2 }
 0x2e9   : > { %13986 = vst [vmem:[#allocation85_spill] sm:$0xff] %v10106_v43  ;;  %v3696_v16 = vunpack.c.l.bf16 %v3666_v31  ;;  %v3932_v63 = vpack.i.b16 %v3931_v28, %v3931_v28  ;;  %v10115_v45 = vmul.f32 %v10064_v50, %v9990_v19  ;;  %v10118_v33 = vmul.f32 %v2281_v41, %v9916_v13 }
 0x2ea   : > { %v3851_v5 = vmul.f32 %v10106_v43, %v10102_v51  ;;  %v4147_v23 = vperm.slane %v3845_v57, 1  ;;  %v10122_v8 = vunpack.c.l.bf16 %v2775_v34  ;;  %v1813_v32 = vand.u32 2147483647, %v10097_v40 }
 0x2eb   : > { %v3754_v29 = vrot.slane %v3694_v48, 2  ;;  %v3755_v35 = vrot.slane %v3695_v15, 2  ;;  %v10125_v42 = vadd.f32 1e-06, %v991_v62  ;;  %v3612_v6 = vadd.f32 %v3544_v14, %v3396_v56 }
 0x2ec   : > { %v3613_v44 = vadd.f32 %v3546_v22, %v3397_v12  ;;  %v3852_v4 = vmul.f32 %v10106_v43, %v10104_v11  ;;  %v2137_v13 = vadd.f32 1.4214138, %v2113_v39  ;;  %v1815_v41 = vand.u32 2147483648, %v10097_v40 }
 0x2ed   : > { %v3757_v28 = vrot.slane %v3696_v16, 2  ;;  %v3934_v2 = vperm.slane %v3932_v63, 0  ;;  %vm1809_vm13 = vweird.f32 %v10097_v40  ;;  %v3871_v34 = vpack.c.bf16 %v3851_v5, %v3851_v5 }
 0x2ee   : > { %v8080_v31 = vpop.eup %8079  ;;  %v10132_v48 = vunpack.c.l.bf16 %v4147_v23  ;;  %vm10134_vm14 = vcmp.eq.f32.partialorder %v1813_v32, 8.507059e+37  ;;  %v3756_v62 = vsel %vm3238_vm3, %v3754_v29, %v3755_v35  ;;  %v3872_v39 = vpack.c.bf16 %v3852_v4, %v3852_v4 }
 0x2ef   : > { %v1805_v57 = vmul.f32 %v8080_v31, %v10097_v40  ;;  %v3758_v56 = vsel %vm3238_vm3, %v3755_v35, %v3757_v28  ;;  %v10140_v12 = vunpack.c.l.bf16 %v3934_v2  ;;  %v1816_v63 = vor.u32 1.1754944e-38, %v1815_v41 }
 0x2f0   : > { %13987 = vst [vmem:[#allocation86_spill] sm:$0xff] %v10132_v48  ;;  %v4149_v22 = vmul.f32 %v10132_v48, %v10102_v51  ;;  %v4150_v16 = vmul.f32 %v10132_v48, %v10104_v11  ;;  %v3824_v5 = vadd.f32 %v3756_v62, %v3612_v6  ;;  %v3825_v23 = vadd.f32 %v3758_v56, %v3613_v44 }
 0x2f1   : > { %13990 = vst [vmem:[#allocation87_spill] sm:$0xff] %v10140_v12  ;;  %v1806_v14 = vsub.f32 1.0, %v1805_v57  ;;  %v3937_v32 = vmul.f32 %v10140_v12, %v10102_v51  ;;  %vm1810_vm15 = vweird.f32 %v8080_v31  ;;  %v3891_v29 = vunpack.c.l.bf16 %v3871_v34 }
 0x2f2   : > { %v3938_v35 = vmul.f32 %v10140_v12, %v10104_v11  ;;  %v3939_v4 = vmul.f32 %v10140_v12, %v10122_v8  ;;  %v4151_v2 = vmul.f32 %v10132_v48, %v10122_v8  ;;  %v4179_v57 = vpack.c.bf16 %v4149_v22, %v4149_v22  ;;  %vm1811_vm1 = vmor %vm1809_vm13, %vm1810_vm15 }
 0x2f3   : > { %v1807_v43 = vmul.f32 %v8080_v31, %v1806_v14  ;;  %v3967_v28 = vpack.c.bf16 %v3937_v32, %v3937_v32  ;;  %v3892_v6 = vunpack.c.l.bf16 %v3872_v39  ;;  %v4180_v62 = vpack.c.bf16 %v4150_v16, %v4150_v16 }
 0x2f4   : > { %v3968_v44 = vpack.c.bf16 %v3938_v35, %v3938_v35  ;;  %v3969_v56 = vpack.c.bf16 %v3939_v4, %v3939_v4  ;;  %v4181_v14 = vpack.c.bf16 %v4151_v2, %v4151_v2  ;;  %v4209_v51 = vunpack.c.l.bf16 %v4179_v57  ;;  %v1491_v35 = vpop.f32.mrf.mxu0 }
 0x2f5   : > { %v1808_v41 = vadd.f32 %v8080_v31, %v1807_v43  ;;  %v3997_v34 = vunpack.c.l.bf16 %v3967_v28  ;;  %v3911_v46 = vadd.f32 %v3891_v29, %v3824_v5  ;;  %v4210_v12 = vunpack.c.l.bf16 %v4180_v62 }
 0x2f6   : > { %v3998_v54 = vunpack.c.l.bf16 %v3968_v44  ;;  %v3999_v22 = vunpack.c.l.bf16 %v3969_v56  ;;  %v4211_v39 = vunpack.c.l.bf16 %v4181_v14  ;;  %v3912_v40 = vadd.f32 %v3892_v6, %v3825_v23  ;;  %v964_v44 = vpop.xlane.xlu0 %963 }
 0x2f7   : > { %v1812_v11 = vsel %vm1811_vm1, %v8080_v31, %v1808_v41  ;;  %v4057_v43 = vrot.slane %v3997_v34, 1  ;;  %v4269_v4 = vrot.slane %v4209_v51, 2  ;;  %v2161_v28 = vmul.f32 %v2137_v13, %v10070_v0 }
 0x2f8   : > { %v10158_v32 = vsel %vm10134_vm14, %v1816_v63, %v1812_v11  ;;  %v4058_v48 = vrot.slane %v3998_v54, 1  ;;  %v2335_v31 = vmul.f32 1.442695, %v10118_v33  ;;  %v4060_v5 = vrot.slane %v3999_v22, 1  ;;  %v8261_v54 = vld [vmem:[%s13731_s3] sm:$0x3] }
 0x2f9   : > { %v2066_v16 = vmul.f32 1.0614054, %v10158_v32  ;;  %v4270_v29 = vrot.slane %v4210_v12, 2  ;;  %v2282_v15 = vsub.f32 0.0, %v10085_v36  ;;  %v4272_v63 = vrot.slane %v4211_v39, 2 }
 0x2fa   : > { %v4059_v11 = vsel %vm3025_vm10, %v4057_v43, %v4058_v48  ;;  %8081 = vrsqrt.f32 %v10125_v42  ;;  %v4061_v57 = vsel %vm3025_vm10, %v4058_v48, %v4060_v5  ;;  %v10170_v51 = vperm.slane %v8261_v54, 1 }
 0x2fb   : > { %v2090_v2 = vadd.f32 -1.4531521, %v2066_v16  ;;  %v4127_v41 = vadd.f32 %v4059_v11, %v3911_v46  ;;  %v4128_v13 = vadd.f32 %v4061_v57, %v3912_v40  ;;  %v4271_v12 = vsel %vm3238_vm3, %v4269_v4, %v4270_v29 }
 0x2fc   : > { %v4273_v23 = vsel %vm3238_vm3, %v4270_v29, %v4272_v63  ;;  %v1299_v62 = vmul.f32 %v9089_v21, %v10023_v20  ;;  %v10178_v46 = vadd.f32 %v1491_v35, %v9322_v47  ;;  %v1300_v48 = vmul.f32 %v9089_v21, %v10068_v17  ;;  %v1493_v35 = vpop.f32.mrf.mxu0 }
 0x2fd   : > { %v2114_v33 = vmul.f32 %v2090_v2, %v10158_v32  ;;  %v4339_v6 = vadd.f32 %v4271_v12, %v4127_v41  ;;  %v2185_v56 = vadd.f32 -0.28449672, %v2161_v28  ;;  %v2306_v14 = vmul.f32 %v2282_v15, %v10085_v36 }
 0x2fe   : > { %v4340_v22 = vadd.f32 %v4273_v23, %v4128_v13  ;;  %v1211_v43 = vmul.f32 %v10064_v50, %v10115_v45  ;;  %v1324_v16 = vadd.f32 %v9102_v37, %v1299_v62  ;;  %v10188_v20 = vmul.f32 0.70710677, %v10178_v46 }
 0x2ff   : > { %v2138_v34 = vadd.f32 1.4214138, %v2114_v33  ;;  %v4360_v39 = vadd.f32 %v10170_v51, %v4339_v6  ;;  %8083 = vpow2.f32 %v2335_v31  ;;  %v992_v4 = vmul.f32 %v964_v44, %v8953_v26 }
 0x300   : > { %v4361_v17 = vadd.f32 %v10170_v51, %v4340_v22  ;;  %v10193_v36 = vpop.eup %8081  ;;  %v10195_v5 = vpack.c.bf16 %v1324_v16, %v1324_v16  ;;  %v10198_v45 = vand.u32 2147483647, %v10188_v20  ;;  %v1325_v29 = vadd.f32 %v9102_v37, %v1300_v48 }
 0x301   : > { %v2162_v40 = vmul.f32 %v2138_v34, %v10158_v32  ;;  %v4501_v28 = vpack.c.bf16 %v4360_v39, %v4360_v39  ;;  %v2209_v2 = vmul.f32 %v2185_v56, %v10070_v0  ;;  %v2337_v31 = vmul.f32 1.442695, %v2306_v14 }
 0x302   : > { %13991 = vst [vmem:[#allocation88_spill] sm:$0xff] %v10195_v5  ;;  %v4502_v11 = vpack.c.bf16 %v4361_v17, %v4361_v17  ;;  %v1212_v63 = vmul.f32 0.5, %v1211_v43  ;;  %v1399_v41 = vunpack.c.l.b16 %v10195_v5  ;;  %v1659_v54 = vmul.f32 0.3275911, %v10198_v45 }
 0x303   : > { %v2186_v15 = vadd.f32 -0.28449672, %v2162_v40  ;;  %v4542_v57 = vunpack.c.l.b16 %v4501_v28  ;;  %v1220_v33 = vmul.f32 %v10193_v36, %v10125_v42  ;;  %v10207_v23 = vadd.f32 1e-06, %v992_v4 }
 0x304   : > { %v4543_v12 = vunpack.c.l.b16 %v4502_v11  ;;  %v13992_v6 = vunpack.c.l.b16 %v9947_v60  ;;  %v10211_v62 = vadd.f32 1.0, %v1659_v54  ;;  %v10213_v48 = vpack.c.bf16 %v1325_v29, %v1325_v29 }
 0x305   : > { %v2210_v13 = vmul.f32 %v2186_v15, %v10158_v32  ;;  %v8084_v56 = vpop.eup %8083  ;;  %v2233_v34 = vadd.f32 0.2548296, %v2209_v2  ;;  %8085 = vpow2.f32 %v2337_v31  ;;  %v10216_v22 = vadd.f32 %v1493_v35, %v9322_v47  ;;  %v1496_v2 = vpop.f32.mrf.mxu0 }
 0x306   : > { %v1415_v44 = vpack.c.b16 %v1399_v41, %v13992_v6  ;;  %13993 = vst [vmem:[#allocation89_spill] sm:$0xff] %v10213_v48  ;;  %v4562_v14 = vpack.c.b16 %v4543_v12, %v4542_v57  ;;  %8087 = vrcp.f32 %v10211_v62  ;;  %v10224_v39 = vmul.f32 %v9944_v38, %v9787_v9 }
 0x307   : > { %v2234_v43 = vadd.f32 0.2548296, %v2210_v13  ;;  %v10228_v16 = vmul.f32 %v9801_v49, %v9944_v38  ;;  %v1213_v40 = vsub.f32 1.5, %v1212_v63  ;;  %8089 = vrsqrt.f32 %v10207_v23 }
 0x308   : > { %7718 = vmatmul.msk.bf16.gmra.mxu0 %vm747_vm2, %v1415_v44  ;;  %7723 = vmatmul.msk.bf16.vlgmr.msra.gmra.mxu1 %vm4572_vm4, %v4562_v14  ;;  %v13994_v35 = vsub.f32 1.5, %v9972_v53  ;;  %v1221_v4 = vmul.f32 %v10193_v36, %v1220_v33  ;;  %v1400_v28 = vunpack.c.l.b16 %v10213_v48  ;;  %v10238_v29 = vmul.f32 0.70710677, %v10216_v22 }
 0x309   : > { %vm1216_vm9 = vweird.f32 %v10064_v50  ;;  %v2257_v53 = vmul.f32 %v2233_v34, %v10070_v0  ;;  %v2258_v15 = vmul.f32 %v2234_v43, %v10158_v32  ;;  %v13997_v31 = vunpack.c.l.b16 %v9949_v55 }
 0x30a   : > { %v1204_v17 = vmul.f32 %v9918_v24, %v13994_v35  ;;  %v10253_v63 = vand.u32 2147483647, %v10238_v29  ;;  %v2940_v7 = vpack.c.bf16 %v10224_v39, %v10224_v39  ;;  %v1214_v41 = vmul.f32 %v10064_v50, %v1213_v40  ;;  %vm10267_vm12 = vmor %vm1215_vm8, %vm1216_vm9 }
 0x30b   : > { %v1416_v11 = vpack.c.b16 %v13997_v31, %v1400_v28  ;;  %v8086_v57 = vpop.eup %8085  ;;  %vm1585_vm11 = vcmp.ge.f32.partialorder %v9896_v25, 0.0  ;;  %v10260_v19 = vadd.f32 %v1496_v2, %v9322_v47  ;;  %v3153_v32 = vpack.c.bf16 %v10228_v16, %v10228_v16 }
 0x30c   : > { %v8088_v0 = vpop.eup %8087  ;;  %v1208_v54 = vsel %vm10242_vm7, %v9918_v24, %v1204_v17  ;;  %v1222_v13 = vmul.f32 0.5, %v1221_v4  ;;  %v1660_v25 = vmul.f32 0.3275911, %v10253_v63  ;;  %v10276_v6 = vadd.s32 48, %v9561_v18 }
 0x30d   : > { %7719 = vmatmul.msk.bf16.vlgmr.msra.gmra.mxu3 %vm747_vm2, %v1416_v11  ;;  %v10273_v12 = vpop.eup %8089  ;;  %v10279_v44 = vmul.f32 0.5, %v9870_v3  ;;  %v2377_v34 = vmul.f32 %v8084_v56, %v2257_v53  ;;  %v1820_v24 = vmul.f32 %v8088_v0, %v10211_v62  ;;  %v1609_v14 = vsel %vm1585_vm11, 1.0, %v13950_v27 }
 0x30e   : > { %14000 = vst [vmem:[#allocation90_spill] sm:$0xff] %v10276_v6  ;;  %v2378_v43 = vmul.f32 %v8086_v57, %v2258_v15  ;;  %v10283_v40 = vadd.f32 1.0, %v1660_v25  ;;  %v10286_v35 = vmul.f32 0.70710677, %v10260_v19  ;;  %v1277_v17 = vmul.f32 %v1208_v54, %v9251_v58 }
 0x30f   : > { %v1218_v4 = vsel %vm10267_vm12, %v10064_v50, %v1214_v41  ;;  %vm1586_vm13 = vcmp.ge.f32.partialorder %v10074_v10, 0.0  ;;  %v1821_v3 = vsub.f32 1.0, %v1820_v24  ;;  %v1223_v56 = vsub.f32 1.5, %v1222_v13 }
 0x310   : > { %v1230_v28 = vmul.f32 %v10273_v12, %v10207_v23  ;;  %v1830_v2 = vand.u32 2147483648, %v10211_v62  ;;  %8091 = vrcp.f32 %v10283_v40  ;;  %v2401_v38 = vsub.f32 1.0, %v2377_v34 }
 0x311   : > { %v1822_v53 = vmul.f32 %v8088_v0, %v1821_v3  ;;  %vm1825_vm14 = vweird.f32 %v8088_v0  ;;  %v1828_v58 = vand.u32 2147483647, %v10211_v62  ;;  %v1278_v15 = vmul.f32 %v1218_v4, %v9327_v52 }
 0x312   : > { %v10300_v50 = vadd.s32 56, %v9561_v18  ;;  %v2402_v31 = vsub.f32 1.0, %v2378_v43  ;;  %v10303_v11 = vand.u32 2147483647, %v10286_v35  ;;  %vm1225_vm15 = vweird.f32 %v10125_v42 }
 0x313   : > { %vm1226_vm1 = vweird.f32 %v10193_v36  ;;  %v1823_v57 = vadd.f32 %v8088_v0, %v1822_v53  ;;  %vm1824_vm5 = vweird.f32 %v10211_v62  ;;  %v1610_v41 = vsel %vm1586_vm13, 1.0, %v13950_v27 }
 0x314   : > { %14001 = vst [vmem:[#allocation91_spill] sm:$0xff] %v10300_v50  ;;  %v1231_v52 = vmul.f32 %v10273_v12, %v1230_v28  ;;  %vm1826_vm6 = vmor %vm1824_vm5, %vm1825_vm14  ;;  %v1831_v54 = vor.u32 1.1754944e-38, %v1830_v2  ;;  %v1661_v33 = vmul.f32 0.3275911, %v10303_v11  ;;  %v2425_v13 = vmul.f32 %v2401_v38, %v1609_v14 }
 0x315   : > { %v1224_v25 = vmul.f32 %v10193_v36, %v1223_v56  ;;  %v1827_v34 = vsel %vm1826_vm6, %v8088_v0, %v1823_v57  ;;  %vm1829_vm7 = vcmp.eq.f32.partialorder %v1828_v58, 8.507059e+37  ;;  %vm10314_vm8 = vmor %vm1225_vm15, %vm1226_vm1  ;;  %v2426_v62 = vmul.f32 %v2402_v31, %v1610_v41 }
 0x316   : > { %v8092_v42 = vpop.eup %8091  ;;  %v10318_v43 = vsel %vm1829_vm7, %v1831_v54, %v1827_v34  ;;  %v10320_v10 = vadd.f32 1.0, %v1661_v33  ;;  %v1302_v4 = vmul.f32 %v9089_v21, %v1277_v17  ;;  %vm565_vm9 = vcmp.ge.s32.totalorder %v10300_v50, %v9563_v59 }
 0x317   : > { %v2067_v14 = vmul.f32 1.0614054, %v10318_v43  ;;  %v1835_v0 = vmul.f32 %v8092_v42, %v10283_v40  ;;  %v1303_v3 = vmul.f32 %v9089_v21, %v1278_v15  ;;  %vm564_vm11 = vcmp.ge.s32.totalorder %v10276_v6, %v9563_v59 }
 0x318   : > { %vm592_vm12 = vcmp.lt.s32.totalorder %v10300_v50, %v9565_v61  ;;  %v1538_v56 = vmul.f32 0.5, %v10060_v30  ;;  %v1232_v28 = vmul.f32 0.5, %v1231_v52  ;;  %8093 = vrcp.f32 %v10320_v10 }
 0x319   : > { %v2449_v17 = vadd.f32 1.0, %v2425_v13  ;;  %v1228_v2 = vsel %vm10314_vm8, %v10193_v36, %v1224_v25  ;;  %v2091_v38 = vadd.f32 -1.4531521, %v2067_v14  ;;  %v1836_v53 = vsub.f32 1.0, %v1835_v0  ;;  %vm616_vm8 = vmand %vm565_vm9, %vm592_vm12 }
 0x31a   : > { %v2450_v58 = vadd.f32 1.0, %v2426_v62  ;;  %v1843_v15 = vand.u32 2147483647, %v10283_v40  ;;  %v1845_v31 = vand.u32 2147483648, %v10283_v40  ;;  %v1327_v57 = vadd.f32 %v9102_v37, %v1302_v4 }
 0x31b   : > { %v2115_v41 = vmul.f32 %v2091_v38, %v10318_v43  ;;  %v1837_v30 = vmul.f32 %v8092_v42, %v1836_v53  ;;  %vm1840_vm13 = vweird.f32 %v8092_v42  ;;  %v1328_v52 = vadd.f32 %v9102_v37, %v1303_v3 }
 0x31c   : > { %v1233_v54 = vsub.f32 1.5, %v1232_v28  ;;  %vm1235_vm14 = vweird.f32 %v10207_v23  ;;  %vm1236_vm15 = vweird.f32 %v10273_v12  ;;  %v2283_v36 = vsub.f32 0.0, %v10198_v45 }
 0x31d   : > { %v2139_v33 = vadd.f32 1.4214138, %v2115_v41  ;;  %v1838_v13 = vadd.f32 %v8092_v42, %v1837_v30  ;;  %vm1839_vm1 = vweird.f32 %v10283_v40  ;;  %v2284_v25 = vsub.f32 0.0, %v10253_v63 }
 0x31e   : > { %v8094_v34 = vpop.eup %8093  ;;  %v2474_v24 = vmul.f32 %v2450_v58, %v1538_v56  ;;  %vm1841_vm5 = vmor %vm1839_vm1, %vm1840_vm13  ;;  %v1846_v62 = vor.u32 1.1754944e-38, %v1845_v31  ;;  %v10347_v4 = vpack.c.bf16 %v1327_v57, %v1327_v57  ;;  %v10349_v14 = vpack.c.bf16 %v1328_v52, %v1328_v52 }
 0x31f   : > { %v2163_v0 = vmul.f32 %v2139_v33, %v10318_v43  ;;  %v1842_v3 = vsel %vm1841_vm5, %v8092_v42, %v1838_v13  ;;  %vm1844_vm6 = vcmp.eq.f32.partialorder %v1843_v15, 8.507059e+37  ;;  %v1850_v28 = vmul.f32 %v8094_v34, %v10320_v10  ;;  %vm10372_vm13 = vmor %vm1235_vm14, %vm1236_vm15 }
 0x320   : > { %14004 = vst [vmem:[#allocation92_spill] sm:$0xff] %v10347_v4  ;;  %vm591_vm7 = vcmp.lt.s32.totalorder %v10276_v6, %v9565_v61  ;;  %v2473_v40 = vmul.f32 %v2449_v17, %v10279_v44  ;;  %v1279_v38 = vmul.f32 %v1228_v2, %v9374_v1  ;;  %v10363_v56 = vsel %vm1844_vm6, %v1846_v62, %v1842_v3 }
 0x321   : > { %14005 = vst [vmem:[#allocation93_spill] sm:$0xff] %v10349_v14  ;;  %v1234_v42 = vmul.f32 %v10273_v12, %v1233_v54  ;;  %v2187_v53 = vadd.f32 -0.28449672, %v2163_v0  ;;  %v2307_v58 = vmul.f32 %v2283_v36, %v10198_v45  ;;  %v2068_v15 = vmul.f32 1.0614054, %v10363_v56  ;;  %vm615_vm9 = vmand %vm564_vm11, %vm591_vm7 }
 0x322   : > { %v2308_v44 = vmul.f32 %v2284_v25, %v10253_v63  ;;  %v1851_v17 = vsub.f32 1.0, %v1850_v28  ;;  %v1402_v2 = vunpack.c.l.b16 %v10347_v4  ;;  %v1403_v31 = vunpack.c.l.b16 %v10349_v14  ;;  %v14008_v28 = vld [vmem:[#allocation56_spill] sm:$0xff] }
 0x323   : > { %v2546_v45 = vsel %vm616_vm8, %v2474_v24, 0.0  ;;  %v2092_v57 = vadd.f32 -1.4531521, %v2068_v15  ;;  %v1858_v41 = vand.u32 2147483647, %v10320_v10  ;;  %v1860_v23 = vand.u32 2147483648, %v10320_v10 }
 0x324   : > { %v2211_v30 = vmul.f32 %v2187_v53, %v10318_v43  ;;  %v1852_v52 = vmul.f32 %v8094_v34, %v1851_v17  ;;  %vm1855_vm12 = vweird.f32 %v8094_v34  ;;  %v1417_v63 = vpack.c.b16 %v1403_v31, %v1402_v2  ;;  %v1498_v17 = vpop.f32.mrf.mxu0 }
 0x325   : > { %v10388_v54 = vunpack.c.l.bf16 %v2940_v7  ;;  %v1238_v36 = vsel %vm10372_vm13, %v10273_v12, %v1234_v42  ;;  %v2339_v33 = vmul.f32 1.442695, %v2307_v58  ;;  %v2116_v13 = vmul.f32 %v2092_v57, %v10363_v56 }
 0x326   : > { %v2545_v25 = vsel %vm615_vm9, %v2473_v40, 0.0  ;;  %v2341_v24 = vmul.f32 1.442695, %v2308_v44  ;;  %v1853_v62 = vadd.f32 %v8094_v34, %v1852_v52  ;;  %vm1854_vm11 = vweird.f32 %v10320_v10  ;;  %7720 = vmatmul.msk.bf16.gmra.mxu3 %vm747_vm2, %v1417_v63 }
 0x327   : > { %v2570_v0 = vpack.c.bf16 %v2546_v45, %v2546_v45  ;;  %v2140_v3 = vadd.f32 1.4214138, %v2116_v13  ;;  %vm1856_vm14 = vmor %vm1854_vm11, %vm1855_vm12  ;;  %v1861_v39 = vor.u32 1.1754944e-38, %v1860_v23  ;;  %v1304_v7 = vmul.f32 %v9089_v21, %v1279_v38 }
 0x328   : > { %v1280_v53 = vmul.f32 %v1238_v36, %v14008_v28  ;;  %v2235_v15 = vadd.f32 0.2548296, %v2211_v30  ;;  %v1857_v12 = vsel %vm1856_vm14, %v8094_v34, %v1853_v62  ;;  %vm1859_vm15 = vcmp.eq.f32.partialorder %v1858_v41, 8.507059e+37 }
 0x329   : > { %v2569_v42 = vpack.c.bf16 %v2545_v25, %v2545_v25  ;;  %8095 = vpow2.f32 %v2339_v33  ;;  %v2164_v40 = vmul.f32 %v2140_v3, %v10363_v56  ;;  %v10399_v58 = vsel %vm1859_vm15, %v1861_v39, %v1857_v12  ;;  %v14013_v12 = vld [vmem:[#allocation78_spill] sm:$0xff] }
 0x32a   : > { %v10404_v10 = vunpack.c.l.bf16 %v3153_v32  ;;  %v2069_v1 = vmul.f32 1.0614054, %v10399_v58  ;;  %v2621_v44 = vunpack.c.l.b16 %v2570_v0  ;;  %8097 = vpow2.f32 %v2341_v24 }
 0x32b   : > { %v2188_v38 = vadd.f32 -0.28449672, %v2164_v40  ;;  %v1329_v34 = vadd.f32 %v9102_v37, %v1304_v7  ;;  %v2259_v2 = vmul.f32 %v2235_v15, %v10318_v43  ;;  %v10410_v45 = vadd.f32 %v1498_v17, %v9322_v47  ;;  %v14012_v15 = vld [vmem:[#allocation71_spill] sm:$0xff] }
 0x32c   : > { %v2093_v31 = vadd.f32 -1.4531521, %v2069_v1  ;;  %v1305_v57 = vmul.f32 %v9089_v21, %v1280_v53  ;;  %v2620_v32 = vunpack.c.l.b16 %v2569_v42  ;;  %v10417_v30 = vmul.f32 0.5, %v10178_v46 }
 0x32d   : > { %v2212_v41 = vmul.f32 %v2188_v38, %v10363_v56  ;;  %vm1587_vm1 = vcmp.ge.f32.partialorder %v10188_v20, 0.0  ;;  %v10422_v33 = vmul.f32 0.70710677, %v10410_v45  ;;  %v10426_v25 = vadd.s32 64, %v9561_v18 }
 0x32e   : > { %v2117_v43 = vmul.f32 %v2093_v31, %v10399_v58  ;;  %v2641_v63 = vpack.c.b16 %v2621_v44, %v2620_v32  ;;  %v1330_v13 = vadd.f32 %v9102_v37, %v1305_v57  ;;  %v10428_v0 = vpack.c.bf16 %v1329_v34, %v1329_v34 }
 0x32f   : > { %v8096_v52 = vpop.eup %8095  ;;  %v2236_v36 = vadd.f32 0.2548296, %v2212_v41  ;;  %14009 = vst [vmem:[#allocation56_spill] sm:$0xff] %v10426_v25  ;;  %v1611_v20 = vsel %vm1587_vm1, 1.0, %v13950_v27  ;;  %v2285_v39 = vsub.f32 0.0, %v10303_v11  ;;  %vm1588_vm5 = vcmp.ge.f32.partialorder %v10238_v29, 0.0 }
 0x330   : > { %v2379_v24 = vmul.f32 %v8096_v52, %v2259_v2  ;;  %v2141_v62 = vadd.f32 1.4214138, %v2117_v43  ;;  %14010 = vst [vmem:[#allocation94_spill] sm:$0xff] %v10428_v0  ;;  %v8098_v46 = vpop.eup %8097  ;;  %v10434_v7 = vand.u32 2147483647, %v10422_v33  ;;  %v10438_v53 = vpack.c.bf16 %v1330_v13, %v1330_v13  ;;  %v14014_v41 = vld [vmem:[#allocation79_spill] sm:$0xff] }
 0x331   : > { %v2260_v3 = vmul.f32 %v2236_v36, %v10363_v56  ;;  %v2812_v42 = vmul.f32 %v14013_v12, %v14012_v15  ;;  %v2672_v40 = vshrl.u32 %v2641_v63, 16  ;;  %v2908_v56 = vmul.f32 %v9787_v9, %v14013_v12 }
 0x332   : > { %v2165_v28 = vmul.f32 %v2141_v62, %v10399_v58  ;;  %14011 = vst [vmem:[#allocation95_spill] sm:$0xff] %v10438_v53  ;;  %v1662_v44 = vmul.f32 0.3275911, %v10434_v7  ;;  %v2403_v38 = vsub.f32 1.0, %v2379_v24  ;;  %v1404_v34 = vunpack.c.l.b16 %v10428_v0  ;;  %v1501_v62 = vpop.f32.mrf.mxu0 }
 0x333   : > { %v2380_v1 = vmul.f32 %v8098_v46, %v2260_v3  ;;  %v1405_v2 = vunpack.c.l.b16 %v10438_v53  ;;  %v2309_v57 = vmul.f32 %v2285_v39, %v10303_v11  ;;  %v2909_v43 = vmul.f32 %v9787_v9, %v14014_v41 }
 0x334   : > { %v2189_v17 = vadd.f32 -0.28449672, %v2165_v28  ;;  %v10448_v32 = vadd.f32 1.0, %v1662_v44  ;;  %vm566_vm6 = vcmp.ge.s32.totalorder %v10426_v25, %v9563_v59  ;;  %vm593_vm7 = vcmp.lt.s32.totalorder %v10426_v25, %v9565_v61 }
 0x335   : > { %v2404_v31 = vsub.f32 1.0, %v2380_v1  ;;  %v1612_v52 = vsel %vm1588_vm5, 1.0, %v13950_v27  ;;  %vm1589_vm8 = vcmp.ge.f32.partialorder %v10286_v35, 0.0  ;;  %v1418_v36 = vpack.c.b16 %v1405_v2, %v1404_v34  ;;  %vm617_vm11 = vmand %vm566_vm6, %vm593_vm7 }
 0x336   : > { %v2813_v11 = vmul.f32 %v14014_v41, %v14012_v15  ;;  %v2674_v13 = vrot.slane %v2672_v40, 7  ;;  %8099 = vrcp.f32 %v10448_v32  ;;  %v2938_v46 = vpack.c.bf16 %v2908_v56, %v2908_v56 }
 0x337   : > { %v2428_v24 = vmul.f32 %v2404_v31, %v1612_v52  ;;  %v2427_v3 = vmul.f32 %v2403_v38, %v1611_v20  ;;  %v10464_v39 = vadd.s32 72, %v9561_v18  ;;  %v2213_v28 = vmul.f32 %v2189_v17, %v10399_v58  ;;  %7721 = vmatmul.msk.bf16.gmra.mxu3 %vm747_vm2, %v1418_v36 }
 0x338   : > { %v10468_v29 = vadd.f32 %v1501_v62, %v9322_v47  ;;  %v2675_v1 = vshll.u32 %v2641_v63, 16  ;;  %v2343_v44 = vmul.f32 1.442695, %v2309_v57  ;;  %v2832_v34 = vpack.c.bf16 %v2812_v42, %v2812_v42 }
 0x339   : > { %14015 = vst [vmem:[#allocation78_spill] sm:$0xff] %v10464_v39  ;;  %v2939_v40 = vpack.c.bf16 %v2909_v43, %v2909_v43  ;;  %v1540_v2 = vmul.f32 0.5, %v10216_v22  ;;  %v2452_v31 = vadd.f32 1.0, %v2428_v24  ;;  %v10473_v56 = vmul.f32 0.5, %v10260_v19 }
 0x33a   : > { %14016 = vst [vmem:[#allocation79_spill] sm:$0xff] %v10468_v29  ;;  %v2833_v20 = vpack.c.bf16 %v2813_v11, %v2813_v11  ;;  %v2677_v38 = vor.u32 %v2675_v1, %v2674_v13  ;;  %v10478_v17 = vsel %vm1589_vm8, 1.0, %v13950_v27  ;;  %v10481_v52 = vmul.f32 0.70710677, %v10468_v29  ;;  %v1503_v1 = vpop.f32.mrf.mxu0 }
 0x33b   : > { %v2968_v63 = vunpack.c.l.bf16 %v2938_v46  ;;  %v2451_v57 = vadd.f32 1.0, %v2427_v3  ;;  %vm567_vm13 = vcmp.ge.s32.totalorder %v10464_v39, %v9563_v59  ;;  %vm594_vm9 = vcmp.lt.s32.totalorder %v10464_v39, %v9565_v61 }
 0x33c   : > { %v2237_v22 = vadd.f32 0.2548296, %v2213_v28  ;;  %v8100_v19 = vpop.eup %8099  ;;  %8101 = vpow2.f32 %v2343_v44  ;;  %v10488_v42 = vand.u32 2147483647, %v10481_v52  ;;  %v2852_v35 = vunpack.c.l.bf16 %v2832_v34  ;;  %vm618_vm12 = vmand %vm567_vm13, %vm594_vm9 }
 0x33d   : > { %v2969_v43 = vunpack.c.l.bf16 %v2939_v40  ;;  %v2776_v11 = vsel %vm9780_vm0, %v2674_v13, 0  ;;  %v2476_v24 = vmul.f32 %v2452_v31, %v1540_v2  ;;  %v1865_v62 = vmul.f32 %v8100_v19, %v10448_v32 }
 0x33e   : > { %v2853_v46 = vunpack.c.l.bf16 %v2833_v20  ;;  %v2764_v3 = vsel %vm9780_vm0, 0, %v2677_v38  ;;  %v1663_v28 = vmul.f32 0.3275911, %v10488_v42  ;;  %v3031_v44 = vrot.slane %v2968_v63, 1 }
 0x33f   : > { %v3121_v23 = vmul.f32 %v9801_v49, %v14013_v12  ;;  %v2475_v34 = vmul.f32 %v2451_v57, %v10417_v30  ;;  %v2261_v40 = vmul.f32 %v2237_v22, %v10399_v58  ;;  %v1866_v13 = vsub.f32 1.0, %v1865_v62 }
 0x340   : > { %v3122_v2 = vmul.f32 %v9801_v49, %v14014_v41  ;;  %v1875_v31 = vand.u32 2147483648, %v10448_v32  ;;  %v10509_v20 = vadd.f32 1.0, %v1663_v28  ;;  %v10512_v12 = vadd.f32 %v1503_v1, %v9322_v47 }
 0x341   : > { %v3032_v30 = vrot.slane %v2969_v43, 1  ;;  %v2548_v58 = vsel %vm618_vm12, %v2476_v24, 0.0  ;;  %v1867_v38 = vmul.f32 %v8100_v19, %v1866_v13  ;;  %vm1870_vm14 = vweird.f32 %v8100_v19 }
 0x342   : > { %14018 = vst [vmem:[#allocation96_spill] sm:$0xff] %v10512_v12  ;;  %v1873_v41 = vand.u32 2147483647, %v10448_v32  ;;  %v8102_v63 = vpop.eup %8101  ;;  %v10515_v57 = vunpack.c.l.bf16 %v2764_v3  ;;  %v10517_v22 = vunpack.c.l.bf16 %v2776_v11  ;;  %8103 = vrcp.f32 %v10509_v20 }
 0x343   : > { %v3151_v62 = vpack.c.bf16 %v3121_v23, %v3121_v23  ;;  %v2547_v16 = vsel %vm617_vm11, %v2475_v34, 0.0  ;;  %v2381_v28 = vmul.f32 %v8102_v63, %v2261_v40  ;;  %v1868_v39 = vadd.f32 %v8100_v19, %v1867_v38 }
 0x344   : > { %vm1869_vm15 = vweird.f32 %v10448_v32  ;;  %v2572_v1 = vpack.c.bf16 %v2548_v58, %v2548_v58  ;;  %v1876_v43 = vor.u32 1.1754944e-38, %v1875_v31  ;;  %v10522_v24 = vmul.f32 0.70710677, %v10512_v12 }
 0x345   : > { %vm1871_vm1 = vmor %vm1869_vm15, %vm1870_vm14  ;;  %v3152_v13 = vpack.c.bf16 %v3122_v2, %v3122_v2  ;;  %vm1874_vm5 = vcmp.eq.f32.partialorder %v1873_v41, 8.507059e+37  ;;  %v3033_v11 = vsel %vm3025_vm10, %v3031_v44, %v3032_v30  ;;  %v14019_v53 = vrot.slane %v10388_v54, 1 }
 0x346   : > { %v1872_v25 = vsel %vm1871_vm1, %v8100_v19, %v1868_v39  ;;  %v10528_v34 = vunpack.c.h.bf16 %v2764_v3  ;;  %v2571_v40 = vpack.c.bf16 %v2547_v16, %v2547_v16  ;;  %v3181_v32 = vunpack.c.l.bf16 %v3151_v62  ;;  %v14021_v39 = vld [vmem:[#allocation83_spill] sm:$0xff]  ;;  %v14022_v19 = vld [vmem:[#allocation81_spill] sm:$0xff] }
 0x347   : > { %v3035_v23 = vsel %vm3025_vm10, %v3032_v30, %v14019_v53  ;;  %v10530_v38 = vsel %vm1874_vm5, %v1876_v43, %v1872_v25  ;;  %v10533_v31 = vadd.s32 80, %v9561_v18  ;;  %v2405_v58 = vsub.f32 1.0, %v2381_v28 }
 0x348   : > { %v2070_v2 = vmul.f32 1.0614054, %v10530_v38  ;;  %v3338_v41 = vmul.f32 %v14022_v19, %v14021_v39  ;;  %v8104_v44 = vpop.eup %8103  ;;  %v2623_v63 = vunpack.c.l.b16 %v2572_v1  ;;  %v10539_v54 = vand.u32 2147483647, %v10522_v24 }
 0x349   : > { %14020 = vst [vmem:[#allocation97_spill] sm:$0xff] %v10533_v31  ;;  %v10541_v53 = vadd.f32 %v3033_v11, %v2852_v35  ;;  %v10543_v16 = vadd.f32 %v3035_v23, %v2853_v46  ;;  %v10546_v25 = vadd.s32 88, %v9561_v18  ;;  %v1880_v30 = vmul.f32 %v8104_v44, %v10509_v20 }
 0x34a   : > { %v2094_v3 = vadd.f32 -1.4531521, %v2070_v2  ;;  %v3182_v62 = vunpack.c.l.bf16 %v3152_v13  ;;  %v2622_v28 = vunpack.c.l.b16 %v2571_v40  ;;  %v2286_v43 = vsub.f32 0.0, %v10434_v7 }
 0x34b   : > { %14023 = vst [vmem:[#allocation83_spill] sm:$0xff] %v10546_v25  ;;  %v1664_v0 = vmul.f32 0.3275911, %v10539_v54  ;;  %v3244_v1 = vrot.slane %v3181_v32, 2  ;;  %vm568_vm6 = vcmp.ge.s32.totalorder %v10533_v31, %v9563_v59  ;;  %v2429_v35 = vmul.f32 %v2405_v58, %v10478_v17  ;;  %v14024_v58 = vld [vmem:[#allocation84_spill] sm:$0xff] }
 0x34c   : > { %v2118_v46 = vmul.f32 %v2094_v3, %v10530_v38  ;;  %v1881_v11 = vsub.f32 1.0, %v1880_v30  ;;  %v2642_v23 = vpack.c.b16 %v2623_v63, %v2622_v28  ;;  %vm595_vm7 = vcmp.lt.s32.totalorder %v10533_v31, %v9565_v61 }
 0x34d   : > { %v1890_v13 = vand.u32 2147483648, %v10509_v20  ;;  %v10558_v40 = vadd.f32 1.0, %v1664_v0  ;;  %vm1885_vm8 = vweird.f32 %v8104_v44  ;;  %v1888_v32 = vand.u32 2147483647, %v10509_v20  ;;  %vm619_vm11 = vmand %vm568_vm6, %vm595_vm7 }
 0x34e   : > { %v2142_v2 = vadd.f32 1.4214138, %v2118_v46  ;;  %v1882_v50 = vmul.f32 %v8104_v44, %v1881_v11  ;;  %v10562_v6 = vmul.f32 0.5, %v10410_v45  ;;  %v2310_v17 = vmul.f32 %v2286_v43, %v10434_v7 }
 0x34f   : > { %8105 = vrcp.f32 %v10558_v40  ;;  %v3339_v63 = vmul.f32 %v14022_v19, %v14024_v58  ;;  %v2453_v3 = vadd.f32 1.0, %v2429_v35  ;;  %vm1884_vm13 = vweird.f32 %v10509_v20  ;;  %v14025_v35 = vld [vmem:[#allocation72_spill] sm:$0xff] }
 0x350   : > { %v2166_v30 = vmul.f32 %v2142_v2, %v10530_v38  ;;  %v1883_v0 = vadd.f32 %v8104_v44, %v1882_v50  ;;  %v2679_v28 = vshrl.u32 %v2642_v23, 16  ;;  %vm1886_vm9 = vmor %vm1884_vm13, %vm1885_vm8  ;;  %v1891_v46 = vor.u32 1.1754944e-38, %v1890_v13 }
 0x351   : > { %v3245_v11 = vrot.slane %v3182_v62, 2  ;;  %v3358_v14 = vpack.c.bf16 %v3338_v41, %v3338_v41  ;;  %vm1889_vm12 = vcmp.eq.f32.partialorder %v1888_v32, 8.507059e+37  ;;  %v2287_v7 = vsub.f32 0.0, %v10488_v42 }
 0x352   : > { %v2190_v45 = vadd.f32 -0.28449672, %v2166_v30  ;;  %v1887_v4 = vsel %vm1886_vm9, %v8104_v44, %v1883_v0  ;;  %v3359_v55 = vpack.c.bf16 %v3339_v63, %v3339_v63  ;;  %v3425_v48 = vmul.f32 %v14025_v35, %v14021_v39 }
 0x353   : > { %v10571_v43 = vsel %vm1889_vm12, %v1891_v46, %v1887_v4  ;;  %v3426_v50 = vmul.f32 %v14025_v35, %v14024_v58  ;;  %v2477_v20 = vmul.f32 %v2453_v3, %v10473_v56  ;;  %v2345_v62 = vmul.f32 1.442695, %v2310_v17 }
 0x354   : > { %v2214_v13 = vmul.f32 %v2190_v45, %v10530_v38  ;;  %v2071_v41 = vmul.f32 1.0614054, %v10571_v43  ;;  %v10582_v2 = vrot.slane %v2679_v28, 7  ;;  %vm1590_vm14 = vcmp.ge.f32.partialorder %v10422_v33, 0.0 }
 0x355   : > { %v10580_v44 = vpop.eup %8105  ;;  %v3246_v4 = vsel %vm3238_vm3, %v3244_v1, %v3245_v11  ;;  %v14026_v56 = vrot.slane %v10404_v10, 2  ;;  %v2311_v17 = vmul.f32 %v2287_v7, %v10488_v42  ;;  %v3378_v3 = vunpack.c.l.bf16 %v3358_v14  ;;  %v14027_v42 = vld [vmem:[#allocation82_spill] sm:$0xff] }
 0x356   : > { %v1895_v63 = vmul.f32 %v10580_v44, %v10558_v40  ;;  %v3427_v30 = vmul.f32 %v14025_v35, %v10122_v8  ;;  %v2682_v0 = vshll.u32 %v2642_v23, 16  ;;  %v2238_v28 = vadd.f32 0.2548296, %v2214_v13 }
 0x357   : > { %v3248_v32 = vsel %vm3238_vm3, %v3245_v11, %v14026_v56  ;;  %v3455_v46 = vpack.c.bf16 %v3425_v48, %v3425_v48  ;;  %v3456_v45 = vpack.c.bf16 %v3426_v50, %v3426_v50  ;;  %v2549_v31 = vsel %vm619_vm11, %v2477_v20, 0.0 }
 0x358   : > { %8107 = vpow2.f32 %v2345_v62  ;;  %v2095_v1 = vadd.f32 -1.4531521, %v2071_v41  ;;  %v3379_v5 = vunpack.c.l.bf16 %v3359_v55  ;;  %v2684_v10 = vor.u32 %v2682_v0, %v10582_v2 }
 0x359   : > { %v3311_v11 = vadd.f32 %v3246_v4, %v10541_v53  ;;  %v3637_v7 = vmul.f32 %v14027_v42, %v14021_v39  ;;  %v3638_v14 = vmul.f32 %v14027_v42, %v14024_v58  ;;  %v2347_v56 = vmul.f32 1.442695, %v2311_v17 }
 0x35a   : > { %v1896_v60 = vsub.f32 1.0, %v1895_v63  ;;  %v3312_v23 = vadd.f32 %v3248_v32, %v10543_v16  ;;  %v3457_v48 = vpack.c.bf16 %v3427_v30, %v3427_v30  ;;  %v2573_v50 = vpack.c.bf16 %v2549_v31, %v2549_v31 }
 0x35b   : > { %v2262_v20 = vmul.f32 %v2238_v28, %v10530_v38  ;;  %v3485_v13 = vunpack.c.l.bf16 %v3455_v46  ;;  %v3486_v55 = vunpack.c.l.bf16 %v3456_v45  ;;  %v1614_v53 = vsel %vm1590_vm14, 1.0, %v13950_v27 }
 0x35c   : > { %v2119_v62 = vmul.f32 %v2095_v1, %v10571_v43  ;;  %v3398_v41 = vadd.f32 %v3378_v3, %v3311_v11  ;;  %v3399_v4 = vadd.f32 %v3379_v5, %v3312_v23  ;;  %v2765_v17 = vsel %vm9780_vm0, 0, %v2684_v10 }
 0x35d   : > { %v3639_v16 = vmul.f32 %v14027_v42, %v10122_v8  ;;  %v3667_v32 = vpack.c.bf16 %v3637_v7, %v3637_v7  ;;  %v3668_v31 = vpack.c.bf16 %v3638_v14, %v3638_v14  ;;  %8109 = vpow2.f32 %v2347_v56 }
 0x35e   : > { %v8108_v63 = vpop.eup %8107  ;;  %v1897_v33 = vmul.f32 %v10580_v44, %v1896_v60  ;;  %v3487_v30 = vunpack.c.l.bf16 %v3457_v48  ;;  %v10620_v0 = vunpack.c.l.b16 %v2573_v50  ;;  %v3547_v3 = vrot.slane %v3485_v13, 1 }
 0x35f   : > { %v2382_v5 = vmul.f32 %v8108_v63, %v2262_v20  ;;  %v3548_v28 = vrot.slane %v3486_v55, 1  ;;  %v10622_v46 = vunpack.c.l.bf16 %v2765_v17  ;;  %v10624_v45 = vunpack.c.h.bf16 %v2765_v17 }
 0x360   : > { %v2143_v1 = vadd.f32 1.4214138, %v2119_v62  ;;  %v2288_v10 = vsub.f32 0.0, %v10539_v54  ;;  %v3669_v11 = vpack.c.bf16 %v3639_v16, %v3639_v16  ;;  %v3697_v7 = vunpack.c.l.bf16 %v3667_v32 }
 0x361   : > { %v3698_v14 = vunpack.c.l.bf16 %v3668_v31  ;;  %v2814_v56 = vmul.f32 %v14021_v39, %v14012_v15  ;;  %v1898_v60 = vadd.f32 %v10580_v44, %v1897_v33  ;;  %vm1899_vm15 = vweird.f32 %v10558_v40 }
 0x362   : > { %vm1900_vm1 = vweird.f32 %v10580_v44  ;;  %v3550_v23 = vrot.slane %v3487_v30, 1  ;;  %v2406_v48 = vsub.f32 1.0, %v2382_v5  ;;  %v1903_v50 = vand.u32 2147483647, %v10558_v40 }
 0x363   : > { %v1905_v20 = vand.u32 2147483648, %v10558_v40  ;;  %v3549_v13 = vsel %vm3025_vm10, %v3547_v3, %v3548_v28  ;;  %v10635_v55 = vpop.eup %8109  ;;  %v2167_v62 = vmul.f32 %v2143_v1, %v10571_v43  ;;  %v2815_v16 = vmul.f32 %v14024_v58, %v14012_v15  ;;  %vm10647_vm7 = vmor %vm1899_vm15, %vm1900_vm1 }
 0x364   : > { %v3551_v17 = vsel %vm3025_vm10, %v3548_v28, %v3550_v23  ;;  %v2911_v32 = vmul.f32 %v9787_v9, %v14021_v39  ;;  %vm569_vm5 = vcmp.ge.s32.totalorder %v10546_v25, %v9563_v59  ;;  %vm596_vm6 = vcmp.lt.s32.totalorder %v10546_v25, %v9565_v61 }
 0x365   : > { %v3699_v31 = vunpack.c.l.bf16 %v3669_v11  ;;  %v3759_v63 = vrot.slane %v3697_v7, 2  ;;  %v3760_v33 = vrot.slane %v3698_v14, 2  ;;  %v2834_v30 = vpack.c.bf16 %v2814_v56, %v2814_v56  ;;  %vm620_vm13 = vmand %vm569_vm5, %vm596_vm6 }
 0x366   : > { %v1902_v5 = vsel %vm10647_vm7, %v10580_v44, %v1898_v60  ;;  %v10655_v3 = vmul.f32 %v2288_v10, %v10539_v54  ;;  %v2912_v28 = vmul.f32 %v9787_v9, %v14024_v58  ;;  %v2913_v1 = vmul.f32 %v10122_v8, %v9787_v9  ;;  %v14030_v60 = vld [vmem:[#allocation85_spill] sm:$0xff] }
 0x367   : > { %v2430_v23 = vmul.f32 %v2406_v48, %v1614_v53  ;;  %vm1904_vm8 = vcmp.eq.f32.partialorder %v1903_v50, 8.507059e+37  ;;  %v1906_v38 = vor.u32 1.1754944e-38, %v1905_v20  ;;  %v3614_v11 = vadd.f32 %v3549_v13, %v3398_v41 }
 0x368   : > { %v2191_v7 = vadd.f32 -0.28449672, %v2167_v62  ;;  %v3615_v14 = vadd.f32 %v3551_v17, %v3399_v4  ;;  %v2835_v56 = vpack.c.bf16 %v2815_v16, %v2815_v16  ;;  %v2941_v37 = vpack.c.bf16 %v2911_v32, %v2911_v32  ;;  %v14031_v4 = vld [vmem:[#allocation87_spill] sm:$0xff] }
 0x369   : > { %v10661_v21 = vsel %vm1904_vm8, %v1906_v38, %v1902_v5  ;;  %v3761_v44 = vsel %vm3238_vm3, %v3759_v63, %v3760_v33  ;;  %v3762_v54 = vrot.slane %v3699_v31, 2  ;;  %v10664_v10 = vunpack.c.l.bf16 %v2834_v30 }
 0x36a   : > { %v3853_v40 = vmul.f32 %v14030_v60, %v10515_v57  ;;  %v3854_v53 = vmul.f32 %v14030_v60, %v10528_v34  ;;  %v2942_v48 = vpack.c.bf16 %v2912_v28, %v2912_v28  ;;  %v2943_v50 = vpack.c.bf16 %v2913_v1, %v2913_v1 }
 0x36b   : > { %v2454_v41 = vadd.f32 1.0, %v2430_v23  ;;  %v3826_v20 = vadd.f32 %v3761_v44, %v3614_v11  ;;  %v3940_v13 = vmul.f32 %v14031_v4, %v10515_v57  ;;  %v3941_v38 = vmul.f32 %v14031_v4, %v10528_v34 }
 0x36c   : > { %v2215_v62 = vmul.f32 %v2191_v7, %v10571_v43  ;;  %v2072_v17 = vmul.f32 1.0614054, %v10661_v21  ;;  %v3763_v16 = vsel %vm3238_vm3, %v3760_v33, %v3762_v54  ;;  %v2971_v32 = vunpack.c.l.bf16 %v2941_v37 }
 0x36d   : > { %v3873_v31 = vpack.c.bf16 %v3853_v40, %v3853_v40  ;;  %v3942_v63 = vmul.f32 %v14031_v4, %v10517_v22  ;;  %v3970_v30 = vpack.c.bf16 %v3940_v13, %v3940_v13  ;;  %v3971_v5 = vpack.c.bf16 %v3941_v38, %v3941_v38 }
 0x36e   : > { %v3874_v28 = vpack.c.bf16 %v3854_v53, %v3854_v53  ;;  %v10679_v1 = vunpack.c.l.bf16 %v2835_v56  ;;  %v2972_v23 = vunpack.c.l.bf16 %v2942_v48  ;;  %v2973_v11 = vunpack.c.l.bf16 %v2943_v50 }
 0x36f   : > { %v2478_v44 = vmul.f32 %v2454_v41, %v10562_v6  ;;  %v3827_v26 = vadd.f32 %v3763_v16, %v3615_v14  ;;  %v3972_v7 = vpack.c.bf16 %v3942_v63, %v3942_v63  ;;  %v4000_v29 = vunpack.c.l.bf16 %v3970_v30 }
 0x370   : > { %v10688_v37 = vadd.f32 0.2548296, %v2215_v62  ;;  %v2096_v33 = vadd.f32 -1.4531521, %v2072_v17  ;;  %v3124_v56 = vmul.f32 %v9801_v49, %v14021_v39  ;;  %v3125_v54 = vmul.f32 %v9801_v49, %v14024_v58  ;;  %v14032_v17 = vld [vmem:[#allocation86_spill] sm:$0xff] }
 0x371   : > { %v3893_v6 = vunpack.c.l.bf16 %v3873_v31  ;;  %v4001_v14 = vunpack.c.l.bf16 %v3971_v5  ;;  %v3036_v40 = vrot.slane %v2971_v32, 1  ;;  %v3126_v53 = vmul.f32 %v9801_v49, %v10122_v8 }
 0x372   : > { %v3894_v48 = vunpack.c.l.bf16 %v3874_v28  ;;  %v4002_v50 = vunpack.c.l.bf16 %v3972_v7  ;;  %v3037_v41 = vrot.slane %v2972_v23, 1  ;;  %v3039_v13 = vrot.slane %v2973_v11, 1 }
 0x373   : > { %v2550_v38 = vsel %vm620_vm13, %v2478_v44, 0.0  ;;  %v4062_v62 = vrot.slane %v4000_v29, 1  ;;  %v4063_v16 = vrot.slane %v4001_v14, 1  ;;  %v4152_v63 = vmul.f32 %v14032_v17, %v10515_v57 }
 0x374   : > { %v2120_v39 = vmul.f32 %v2096_v33, %v10661_v21  ;;  %v4153_v58 = vmul.f32 %v14032_v17, %v10528_v34  ;;  %v4154_v32 = vmul.f32 %v14032_v17, %v10517_v22  ;;  %v3154_v31 = vpack.c.bf16 %v3124_v56, %v3124_v56 }
 0x375   : > { %v3913_v8 = vadd.f32 %v3893_v6, %v3826_v20  ;;  %v4065_v30 = vrot.slane %v4002_v50, 1  ;;  %v4182_v5 = vpack.c.bf16 %v4152_v63, %v4152_v63  ;;  %v3155_v28 = vpack.c.bf16 %v3125_v54, %v3125_v54 }
 0x376   : > { %v2574_v23 = vpack.c.bf16 %v2550_v38, %v2550_v38  ;;  %v3914_v11 = vadd.f32 %v3894_v48, %v3827_v26  ;;  %v4064_v29 = vsel %vm3025_vm10, %v4062_v62, %v4063_v16  ;;  %v4183_v44 = vpack.c.bf16 %v4153_v58, %v4153_v58 }
 0x377   : > { %v4066_v7 = vsel %vm3025_vm10, %v4063_v16, %v4065_v30  ;;  %v4184_v14 = vpack.c.bf16 %v4154_v32, %v4154_v32  ;;  %v4212_v33 = vunpack.c.l.bf16 %v4182_v5  ;;  %v3038_v25 = vsel %vm3025_vm10, %v3036_v40, %v3037_v41 }
 0x378   : > { %v2144_v61 = vadd.f32 1.4214138, %v2120_v39  ;;  %v4213_v59 = vunpack.c.l.bf16 %v4183_v44  ;;  %v3040_v12 = vsel %vm3025_vm10, %v3037_v41, %v3039_v13  ;;  %v3156_v56 = vpack.c.bf16 %v3126_v53, %v3126_v53 }
 0x379   : > { %v4129_v20 = vadd.f32 %v4064_v29, %v3913_v8  ;;  %v4214_v6 = vunpack.c.l.bf16 %v4184_v14  ;;  %v4274_v50 = vrot.slane %v4212_v33, 2  ;;  %v3184_v54 = vunpack.c.l.bf16 %v3154_v31 }
 0x37a   : > { %v4130_v38 = vadd.f32 %v4066_v7, %v3914_v11  ;;  %v4275_v26 = vrot.slane %v4213_v59, 2  ;;  %v3185_v48 = vunpack.c.l.bf16 %v3155_v28  ;;  %v3340_v62 = vmul.f32 %v14022_v19, %v10515_v57 }
 0x37b   : > { %v4277_v16 = vrot.slane %v4214_v6, 2  ;;  %v3341_v63 = vmul.f32 %v14022_v19, %v10528_v34  ;;  %v3428_v40 = vmul.f32 %v14025_v35, %v10515_v57  ;;  %v3429_v53 = vmul.f32 %v14025_v35, %v10528_v34 }
 0x37c   : > { %v2625_v41 = vunpack.c.l.b16 %v2574_v23  ;;  %v4276_v13 = vsel %vm3238_vm3, %v4274_v50, %v4275_v26  ;;  %v3186_v39 = vunpack.c.l.bf16 %v3156_v56  ;;  %v3430_v59 = vmul.f32 %v14025_v35, %v10517_v22 }
 0x37d   : > { %v2168_v58 = vmul.f32 %v2144_v61, %v10661_v21  ;;  %v4278_v32 = vsel %vm3238_vm3, %v4275_v26, %v4277_v16  ;;  %v4341_v31 = vadd.f32 %v4276_v13, %v4129_v20  ;;  %v3249_v8 = vrot.slane %v3184_v54, 2 }
 0x37e   : > { %v4342_v30 = vadd.f32 %v4278_v32, %v4130_v38  ;;  %v3360_v5 = vpack.c.bf16 %v3340_v62, %v3340_v62  ;;  %v3458_v28 = vpack.c.bf16 %v3428_v40, %v3428_v40  ;;  %v3459_v11 = vpack.c.bf16 %v3429_v53, %v3429_v53 }
 0x37f   : > { %v4362_v29 = vadd.f32 %v10170_v51, %v4341_v31  ;;  %v3250_v44 = vrot.slane %v3185_v48, 2  ;;  %v3361_v23 = vpack.c.bf16 %v3341_v63, %v3341_v63  ;;  %v3460_v7 = vpack.c.bf16 %v3430_v59, %v3430_v59 }
 0x380   : > { %v10722_v14 = vpack.c.b16 %v2625_v41, %v10620_v0  ;;  %v4363_v33 = vadd.f32 %v10170_v51, %v4342_v30  ;;  %v3100_v61 = vadd.f32 %v3038_v25, %v10664_v10  ;;  %v3101_v56 = vadd.f32 %v3040_v12, %v10679_v1 }
 0x381   : > { %v2192_v20 = vadd.f32 -0.28449672, %v2168_v58  ;;  %v4503_v6 = vpack.c.bf16 %v4362_v29, %v4362_v29  ;;  %v3252_v50 = vrot.slane %v3186_v39, 2  ;;  %v3488_v54 = vunpack.c.l.bf16 %v3458_v28 }
 0x382   : > { %v4504_v38 = vpack.c.bf16 %v4363_v33, %v4363_v33  ;;  %v3380_v26 = vunpack.c.l.bf16 %v3360_v5  ;;  %v3489_v62 = vunpack.c.l.bf16 %v3459_v11  ;;  %v3490_v16 = vunpack.c.l.bf16 %v3460_v7 }
 0x383   : > { %v4544_v48 = vunpack.c.l.b16 %v4503_v6  ;;  %v3251_v63 = vsel %vm3238_vm3, %v3249_v8, %v3250_v44  ;;  %v3381_v40 = vunpack.c.l.bf16 %v3361_v23  ;;  %v3552_v0 = vrot.slane %v3488_v54, 1 }
 0x384   : > { %v4545_v53 = vunpack.c.l.b16 %v4504_v38  ;;  %v3253_v41 = vsel %vm3238_vm3, %v3250_v44, %v3252_v50  ;;  %v3313_v13 = vadd.f32 %v3251_v63, %v3100_v61  ;;  %v3553_v25 = vrot.slane %v3489_v62, 1 }
 0x385   : > { %v3314_v10 = vadd.f32 %v3253_v41, %v3101_v56  ;;  %v3640_v12 = vmul.f32 %v14027_v42, %v10515_v57  ;;  %v3641_v1 = vmul.f32 %v14027_v42, %v10528_v34  ;;  %v3642_v39 = vmul.f32 %v14027_v42, %v10517_v22 }
 0x386   : > { %v2686_v59 = vshrl.u32 %v10722_v14, 16  ;;  %v4563_v58 = vpack.c.b16 %v4545_v53, %v4544_v48  ;;  %v3400_v32 = vadd.f32 %v3380_v26, %v3313_v13  ;;  %v3555_v31 = vrot.slane %v3490_v16, 1 }
 0x387   : > { %v14033_v8 = vsel %vm9780_vm0, %v10582_v2, 0  ;;  %v2349_v5 = vmul.f32 1.442695, %v10655_v3  ;;  %v3401_v28 = vadd.f32 %v3381_v40, %v3314_v10  ;;  %v3554_v11 = vsel %vm3025_vm10, %v3552_v0, %v3553_v25 }
 0x388   : > { %v10740_v30 = vunpack.c.l.bf16 %v14033_v8  ;;  %v2263_v29 = vmul.f32 %v10688_v37, %v10571_v43  ;;  %7724 = vmatmul.msk.bf16.gmra.mxu1 %vm4572_vm4, %v4563_v58  ;;  %v3556_v44 = vsel %vm3025_vm10, %v3553_v25, %v3555_v31  ;;  %v3670_v23 = vpack.c.bf16 %v3640_v12, %v3640_v12 }
 0x389   : > { %v3671_v7 = vpack.c.bf16 %v3641_v1, %v3641_v1  ;;  %v2689_v33 = vshll.u32 %v10722_v14, 16  ;;  %v3672_v61 = vpack.c.bf16 %v3642_v39, %v3642_v39  ;;  %v3855_v2 = vmul.f32 %v14030_v60, %v10622_v46 }
 0x38a   : > { %v3856_v3 = vmul.f32 %v14030_v60, %v10624_v45  ;;  %v10753_v56 = vrot.slane %v2686_v59, 7  ;;  %v2216_v6 = vmul.f32 %v2192_v20, %v10661_v21  ;;  %v3616_v43 = vadd.f32 %v3554_v11, %v3400_v32 }
 0x38b   : > { %v3700_v37 = vunpack.c.l.bf16 %v3670_v23  ;;  %v3617_v50 = vadd.f32 %v3556_v44, %v3401_v28  ;;  %v3701_v54 = vunpack.c.l.bf16 %v3671_v7  ;;  %v3702_v38 = vunpack.c.l.bf16 %v3672_v61 }
 0x38c   : > { %v3875_v26 = vpack.c.bf16 %v3855_v2, %v3855_v2  ;;  %v3876_v16 = vpack.c.bf16 %v3856_v3, %v3856_v3  ;;  %v3943_v14 = vmul.f32 %v14031_v4, %v10622_v46  ;;  %v3944_v48 = vmul.f32 %v14031_v4, %v10624_v45 }
 0x38d   : > { %v3764_v62 = vrot.slane %v3700_v37, 2  ;;  %v3765_v63 = vrot.slane %v3701_v54, 2  ;;  %v3767_v40 = vrot.slane %v3702_v38, 2  ;;  %v3945_v20 = vmul.f32 %v14031_v4, %v10740_v30 }
 0x38e   : > { %v3895_v0 = vunpack.c.l.bf16 %v3875_v26  ;;  %v3896_v53 = vunpack.c.l.bf16 %v3876_v16  ;;  %v3973_v41 = vpack.c.bf16 %v3943_v14, %v3943_v14  ;;  %v3974_v13 = vpack.c.bf16 %v3944_v48, %v3944_v48 }
 0x38f   : > { %v4155_v25 = vmul.f32 %v14032_v17, %v10622_v46  ;;  %v3766_v10 = vsel %vm3238_vm3, %v3764_v62, %v3765_v63  ;;  %v3768_v12 = vsel %vm3238_vm3, %v3765_v63, %v3767_v40  ;;  %v3975_v1 = vpack.c.bf16 %v3945_v20, %v3945_v20 }
 0x390   : > { %v4156_v39 = vmul.f32 %v14032_v17, %v10624_v45  ;;  %v3828_v59 = vadd.f32 %v3766_v10, %v3616_v43  ;;  %v3829_v58 = vadd.f32 %v3768_v12, %v3617_v50  ;;  %v4003_v32 = vunpack.c.l.bf16 %v3973_v41 }
 0x391   : > { %v4004_v31 = vunpack.c.l.bf16 %v3974_v13  ;;  %v4005_v8 = vunpack.c.l.bf16 %v3975_v1  ;;  %v4157_v28 = vmul.f32 %v14032_v17, %v10740_v30  ;;  %v4185_v11 = vpack.c.bf16 %v4155_v25, %v4155_v25 }
 0x392   : > { %v4186_v44 = vpack.c.bf16 %v4156_v39, %v4156_v39  ;;  %v3915_v23 = vadd.f32 %v3895_v0, %v3828_v59  ;;  %v3916_v7 = vadd.f32 %v3896_v53, %v3829_v58  ;;  %v4067_v61 = vrot.slane %v4003_v32, 1 }
 0x393   : > { %v4068_v2 = vrot.slane %v4004_v31, 1  ;;  %v4070_v3 = vrot.slane %v4005_v8, 1  ;;  %v4187_v37 = vpack.c.bf16 %v4157_v28, %v4157_v28  ;;  %v4215_v54 = vunpack.c.l.bf16 %v4185_v11 }
 0x394   : > { %v4216_v38 = vunpack.c.l.bf16 %v4186_v44  ;;  %v2691_v26 = vor.u32 %v2689_v33, %v10753_v56  ;;  %v2816_v50 = vmul.f32 %v10515_v57, %v14012_v15  ;;  %v2817_v62 = vmul.f32 %v10528_v34, %v14012_v15 }
 0x395   : > { %v4069_v43 = vsel %vm3025_vm10, %v4067_v61, %v4068_v2  ;;  %v4071_v16 = vsel %vm3025_vm10, %v4068_v2, %v4070_v3  ;;  %v4217_v48 = vunpack.c.l.bf16 %v4187_v37  ;;  %v4279_v63 = vrot.slane %v4215_v54, 2 }
 0x396   : > { %v4131_v14 = vadd.f32 %v4069_v43, %v3915_v23  ;;  %v10778_v40 = vmul.f32 %v10635_v55, %v2263_v29  ;;  %8111 = vpow2.f32 %v2349_v5  ;;  %v4132_v0 = vadd.f32 %v4071_v16, %v3916_v7 }
 0x397   : > { %v4280_v20 = vrot.slane %v4216_v38, 2  ;;  %v2240_v33 = vadd.f32 0.2548296, %v2216_v6  ;;  %v4282_v53 = vrot.slane %v4217_v48, 2  ;;  %v2914_v41 = vmul.f32 %v9787_v9, %v10515_v57 }
 0x398   : > { %v2915_v13 = vmul.f32 %v9787_v9, %v10528_v34  ;;  %v2766_v25 = vsel %vm9780_vm0, 0, %v2691_v26  ;;  %v2778_v10 = vsel %vm9780_vm0, %v10753_v56, 0  ;;  %v2836_v5 = vpack.c.bf16 %v2816_v50, %v2816_v50 }
 0x399   : > { %v4281_v55 = vsel %vm3238_vm3, %v4279_v63, %v4280_v20  ;;  %v4283_v29 = vsel %vm3238_vm3, %v4280_v20, %v4282_v53  ;;  %v2837_v12 = vpack.c.bf16 %v2817_v62, %v2817_v62  ;;  %v2916_v1 = vmul.f32 %v10517_v22, %v9787_v9 }
 0x39a   : > { %v4343_v6 = vadd.f32 %v4281_v55, %v4131_v14  ;;  %v4344_v39 = vadd.f32 %v4283_v29, %v4132_v0  ;;  %v2944_v59 = vpack.c.bf16 %v2914_v41, %v2914_v41  ;;  %v2945_v58 = vpack.c.bf16 %v2915_v13, %v2915_v13 }
 0x39b   : > { %v3127_v32 = vmul.f32 %v9801_v49, %v10515_v57  ;;  %v2946_v8 = vpack.c.bf16 %v2916_v1, %v2916_v1  ;;  %v3128_v28 = vmul.f32 %v9801_v49, %v10528_v34  ;;  %v3129_v11 = vmul.f32 %v9801_v49, %v10517_v22 }
 0x39c   : > { %v4364_v31 = vadd.f32 %v10170_v51, %v4343_v6  ;;  %v8112_v44 = vpop.eup %8111  ;;  %v4365_v23 = vadd.f32 %v10170_v51, %v4344_v39  ;;  %v2974_v7 = vunpack.c.l.bf16 %v2944_v59  ;;  %v2975_v61 = vunpack.c.l.bf16 %v2945_v58 }
 0x39d   : > { %v3157_v2 = vpack.c.bf16 %v3127_v32, %v3127_v32  ;;  %v2976_v37 = vunpack.c.l.bf16 %v2946_v8  ;;  %v3158_v54 = vpack.c.bf16 %v3128_v28, %v3128_v28  ;;  %v3159_v38 = vpack.c.bf16 %v3129_v11, %v3129_v11 }
 0x39e   : > { %v4505_v3 = vpack.c.bf16 %v4364_v31, %v4364_v31  ;;  %v4506_v57 = vpack.c.bf16 %v4365_v23, %v4365_v23  ;;  %v3041_v26 = vrot.slane %v2974_v7, 1  ;;  %v3042_v43 = vrot.slane %v2975_v61, 1 }
 0x39f   : > { %v3187_v50 = vunpack.c.l.bf16 %v3157_v2  ;;  %v2856_v16 = vunpack.c.l.bf16 %v2836_v5  ;;  %v2857_v34 = vunpack.c.l.bf16 %v2837_v12  ;;  %v3044_v14 = vrot.slane %v2976_v37, 1 }
 0x3a0   : > { %v4546_v62 = vunpack.c.l.b16 %v4505_v3  ;;  %v4547_v48 = vunpack.c.l.b16 %v4506_v57  ;;  %v3043_v22 = vsel %vm3025_vm10, %v3041_v26, %v3042_v43  ;;  %v3188_v63 = vunpack.c.l.bf16 %v3158_v54 }
 0x3a1   : > { %v3189_v0 = vunpack.c.l.bf16 %v3159_v38  ;;  %v2264_v20 = vmul.f32 %v2240_v33, %v10661_v21  ;;  %v3045_v53 = vsel %vm3025_vm10, %v3042_v43, %v3044_v14  ;;  %v3102_v41 = vadd.f32 %v3043_v22, %v2856_v16 }
 0x3a2   : > { %v3254_v13 = vrot.slane %v3187_v50, 2  ;;  %v10804_v55 = vunpack.c.l.bf16 %v2766_v25  ;;  %v4564_v29 = vpack.c.b16 %v4547_v48, %v4546_v62  ;;  %v3103_v6 = vadd.f32 %v3045_v53, %v2857_v34 }
 0x3a3   : > { %v3255_v1 = vrot.slane %v3188_v63, 2  ;;  %v3257_v39 = vrot.slane %v3189_v0, 2  ;;  %v3342_v5 = vmul.f32 %v14022_v19, %v10622_v46  ;;  %v3343_v12 = vmul.f32 %v14022_v19, %v10624_v45 }
 0x3a4   : > { %v3431_v59 = vmul.f32 %v14025_v35, %v10622_v46  ;;  %v10812_v21 = vunpack.c.h.bf16 %v2766_v25  ;;  %7725 = vmatmul.msk.bf16.gmra.mxu1 %vm4572_vm4, %v4564_v29  ;;  %v3432_v58 = vmul.f32 %v14025_v35, %v10624_v45  ;;  %v3433_v32 = vmul.f32 %v14025_v35, %v10740_v30 }
 0x3a5   : > { %v3256_v33 = vsel %vm3238_vm3, %v3254_v13, %v3255_v1  ;;  %v10820_v31 = vmul.f32 %v8112_v44, %v2264_v20  ;;  %v3258_v8 = vsel %vm3238_vm3, %v3255_v1, %v3257_v39  ;;  %v3362_v11 = vpack.c.bf16 %v3342_v5, %v3342_v5 }
 0x3a6   : > { %v3315_v28 = vadd.f32 %v3256_v33, %v3102_v41  ;;  %v3363_v23 = vpack.c.bf16 %v3343_v12, %v3343_v12  ;;  %v3461_v7 = vpack.c.bf16 %v3431_v59, %v3431_v59  ;;  %v3462_v25 = vpack.c.bf16 %v3432_v58, %v3432_v58 }
 0x3a7   : > { %v3463_v61 = vpack.c.bf16 %v3433_v32, %v3433_v32  ;;  %v3316_v2 = vadd.f32 %v3258_v8, %v3103_v6  ;;  %v3382_v3 = vunpack.c.l.bf16 %v3362_v11  ;;  %v3643_v37 = vmul.f32 %v14027_v42, %v10622_v46 }
 0x3a8   : > { %v3644_v54 = vmul.f32 %v14027_v42, %v10624_v45  ;;  %v3383_v38 = vunpack.c.l.bf16 %v3363_v23  ;;  %v3491_v57 = vunpack.c.l.bf16 %v3461_v7  ;;  %v3492_v44 = vunpack.c.l.bf16 %v3462_v25 }
 0x3a9   : > { %v3493_v26 = vunpack.c.l.bf16 %v3463_v61  ;;  %v10831_v43 = vunpack.c.l.bf16 %v2778_v10  ;;  %v3402_v50 = vadd.f32 %v3382_v3, %v3315_v28  ;;  %v3645_v62 = vmul.f32 %v14027_v42, %v10740_v30 }
 0x3aa   : > { %v3673_v16 = vpack.c.bf16 %v3643_v37, %v3643_v37  ;;  %v2408_v34 = vsub.f32 1.0, %v10820_v31  ;;  %v3403_v14 = vadd.f32 %v3383_v38, %v3316_v2  ;;  %v3557_v48 = vrot.slane %v3491_v57, 1 }
 0x3ab   : > { %v3558_v22 = vrot.slane %v3492_v44, 1  ;;  %vm1592_vm9 = vcmp.ge.f32.partialorder %v10522_v24, 0.0  ;;  %v3560_v63 = vrot.slane %v3493_v26, 1  ;;  %v3674_v0 = vpack.c.bf16 %v3644_v54, %v3644_v54 }
 0x3ac   : > { %v3675_v20 = vpack.c.bf16 %v3645_v62, %v3645_v62  ;;  %v3703_v53 = vunpack.c.l.bf16 %v3673_v16  ;;  %v3857_v10 = vmul.f32 %v14030_v60, %v10804_v55  ;;  %v3858_v41 = vmul.f32 %v14030_v60, %v10812_v21  ;;  %v1506_v16 = vpop.f32.mrf.mxu0 }
 0x3ad   : > { %v3559_v56 = vsel %vm3025_vm10, %v3557_v48, %v3558_v22  ;;  %v3946_v13 = vmul.f32 %v14031_v4, %v10804_v55  ;;  %v3561_v29 = vsel %vm3025_vm10, %v3558_v22, %v3560_v63  ;;  %v3704_v1 = vunpack.c.l.bf16 %v3674_v0 }
 0x3ae   : > { %v3618_v6 = vadd.f32 %v3559_v56, %v3402_v50  ;;  %v3705_v39 = vunpack.c.l.bf16 %v3675_v20  ;;  %vm1591_vm12 = vcmp.ge.f32.partialorder %v10481_v52, 0.0  ;;  %v3619_v5 = vadd.f32 %v3561_v29, %v3403_v14 }
 0x3af   : > { %v3769_v12 = vrot.slane %v3703_v53, 2  ;;  %v3877_v59 = vpack.c.bf16 %v3857_v10, %v3857_v10  ;;  %v3878_v33 = vpack.c.bf16 %v3858_v41, %v3858_v41  ;;  %v3770_v58 = vrot.slane %v3704_v1, 2 }
 0x3b0   : > { %v3772_v32 = vrot.slane %v3705_v39, 2  ;;  %v3947_v31 = vmul.f32 %v14031_v4, %v10812_v21  ;;  %v3948_v8 = vmul.f32 %v14031_v4, %v10831_v43  ;;  %v3976_v23 = vpack.c.bf16 %v3946_v13, %v3946_v13 }
 0x3b1   : > { %v3897_v28 = vunpack.c.l.bf16 %v3877_v59  ;;  %v3898_v11 = vunpack.c.l.bf16 %v3878_v33  ;;  %v4158_v7 = vmul.f32 %v14032_v17, %v10804_v55  ;;  %v3771_v25 = vsel %vm3238_vm3, %v3769_v12, %v3770_v58 }
 0x3b2   : > { %v3773_v61 = vsel %vm3238_vm3, %v3770_v58, %v3772_v32  ;;  %v3977_v2 = vpack.c.bf16 %v3947_v31, %v3947_v31  ;;  %v3978_v3 = vpack.c.bf16 %v3948_v8, %v3948_v8  ;;  %v3830_v37 = vadd.f32 %v3771_v25, %v3618_v6 }
 0x3b3   : > { %v3831_v54 = vadd.f32 %v3773_v61, %v3619_v5  ;;  %v4006_v38 = vunpack.c.l.bf16 %v3976_v23  ;;  %v4159_v57 = vmul.f32 %v14032_v17, %v10812_v21  ;;  %v4160_v50 = vmul.f32 %v14032_v17, %v10831_v43  ;;  %v10884_v61 = vld [vmem:[#allocation3 + $0x8] sm:$0xff]  }
 0x3b4   : > { %v4007_v44 = vunpack.c.l.bf16 %v3977_v2  ;;  %v4008_v26 = vunpack.c.l.bf16 %v3978_v3  ;;  %v4188_v62 = vpack.c.bf16 %v4158_v7, %v4158_v7  ;;  %v3917_v14 = vadd.f32 %v3897_v28, %v3830_v37  ;;  %v14036_v2 = vld [vmem:[#allocation96_spill] sm:$0xff] }
 0x3b5   : > { %v3918_v48 = vadd.f32 %v3898_v11, %v3831_v54  ;;  %v4072_v22 = vrot.slane %v4006_v38, 1  ;;  %v4189_v63 = vpack.c.bf16 %v4159_v57, %v4159_v57  ;;  %v4190_v53 = vpack.c.bf16 %v4160_v50, %v4160_v50  ;;  %v967_v50 = vpop.xlane.xlu1 %966 }
 0x3b6   : > { %v4073_v0 = vrot.slane %v4007_v44, 1  ;;  %v4075_v20 = vrot.slane %v4008_v26, 1  ;;  %v4218_v56 = vunpack.c.l.bf16 %v4188_v62  ;;  %v2407_v10 = vsub.f32 1.0, %v10778_v40  ;;  %v14037_v44 = vld [vmem:[#allocation61_spill] sm:$0xff]  ;;  %v14038_v26 = vld [vmem:[#allocation62_spill] sm:$0xff] }
 0x3b7   : > { %v1616_v41 = vsel %vm1592_vm9, 1.0, %v13950_v27  ;;  %v4219_v13 = vunpack.c.l.bf16 %v4189_v63  ;;  %v10863_v29 = vadd.f32 %v1506_v16, %v9322_v47  ;;  %v4220_v39 = vunpack.c.l.bf16 %v4190_v53  ;;  %v14039_v16 = vld [vmem:[#allocation79_spill] sm:$0xff] }
 0x3b8   : > { %v4074_v6 = vsel %vm3025_vm10, %v4072_v22, %v4073_v0  ;;  %v4076_v1 = vsel %vm3025_vm10, %v4073_v0, %v4075_v20  ;;  %v4284_v5 = vrot.slane %v4218_v56, 2  ;;  %v2432_v12 = vmul.f32 %v2408_v34, %v1616_v41  ;;  %v14040_v22 = vld [vmem:[#allocation49_spill] sm:$0xff]  ;;  %v14041_v56 = vld [vmem:[#allocation46_spill] sm:$0xff] }
 0x3b9   : > { %v4133_v59 = vadd.f32 %v4074_v6, %v3917_v14  ;;  %v4134_v33 = vadd.f32 %v4076_v1, %v3918_v48  ;;  %v4285_v58 = vrot.slane %v4219_v13, 2  ;;  %v1615_v40 = vsel %vm1591_vm12, 1.0, %v13950_v27 }
 0x3ba   : > { %v4287_v24 = vrot.slane %v4220_v39, 2  ;;  %v10871_v32 = vmul.f32 0.70710677, %v10863_v29  ;;  %v2431_v31 = vmul.f32 %v2407_v10, %v1615_v40  ;;  %v10874_v8 = vadd.s32 104, %v9561_v18  ;;  %v970_v40 = vpop.xlane.xlu2 %969 }
 0x3bb   : > { %v4286_v28 = vsel %vm3238_vm3, %v4284_v5, %v4285_v58  ;;  %v10882_v7 = vadd.s32 96, %v9561_v18  ;;  %v2456_v52 = vadd.f32 1.0, %v2432_v12  ;;  %v1544_v3 = vmul.f32 0.5, %v14036_v2 }
 0x3bc   : > { %14034 = vst [vmem:[#allocation84_spill] sm:$0xff] %v10874_v8  ;;  %v4288_v11 = vsel %vm3238_vm3, %v4285_v58, %v4287_v24  ;;  %v4345_v34 = vadd.f32 %v4286_v28, %v4133_v59  ;;  %v10879_v23 = vand.u32 2147483647, %v10871_v32  ;;  %v7816_v54 = vunpack.c.l.bf16 %v10884_v61 }
 0x3bd   : > { %14035 = vst [vmem:[#allocation85_spill] sm:$0xff] %v10882_v7  ;;  %v4346_v25 = vadd.f32 %v4288_v11, %v4134_v33  ;;  %v2455_v57 = vadd.f32 1.0, %v2431_v31  ;;  %vm571_vm11 = vcmp.ge.s32.totalorder %v10874_v8, %v14037_v44  ;;  %vm598_vm14 = vcmp.lt.s32.totalorder %v10874_v8, %v14038_v26 }
 0x3be   : > { %v4366_v37 = vadd.f32 %v10170_v51, %v4345_v34  ;;  %v1665_v38 = vmul.f32 0.3275911, %v10879_v23  ;;  %v1543_v14 = vmul.f32 0.5, %v14039_v16  ;;  %v4401_v63 = vunpack.c.l.bf16 %v14040_v22  ;;  %vm622_vm5 = vmand %vm571_vm11, %vm598_vm14  ;;  %v4616_v34 = vpop.f32.mrf.mxu1 }
 0x3bf   : > { %v4367_v62 = vadd.f32 %v10170_v51, %v4346_v25  ;;  %vm570_vm15 = vcmp.ge.s32.totalorder %v10882_v7, %v14037_v44  ;;  %vm597_vm1 = vcmp.lt.s32.totalorder %v10882_v7, %v14038_v26  ;;  %v2480_v20 = vmul.f32 %v2456_v52, %v1544_v3 }
 0x3c0   : > { %v4507_v48 = vpack.c.bf16 %v4366_v37, %v4366_v37  ;;  %v1689_v0 = vadd.f32 1.0, %v1665_v38  ;;  %v993_v10 = vmul.f32 %v967_v50, %v14041_v56  ;;  %v2479_v13 = vmul.f32 %v2455_v57, %v1543_v14  ;;  %vm621_vm6 = vmand %vm570_vm15, %vm597_vm1 }
 0x3c1   : > { %v4508_v53 = vpack.c.bf16 %v4367_v62, %v4367_v62  ;;  %v4441_v1 = vmul.f32 %v7816_v54, %v4401_v63  ;;  %v2552_v39 = vsel %vm622_vm5, %v2480_v20, 0.0  ;;  %v994_v11 = vmul.f32 %v970_v40, %v14041_v56 }
 0x3c2   : > { %v4548_v41 = vunpack.c.l.b16 %v4507_v48  ;;  %8113 = vrcp.f32 %v1689_v0  ;;  %v10902_v12 = vadd.f32 1e-06, %v993_v10  ;;  %v2551_v59 = vsel %vm621_vm6, %v2479_v13, 0.0 }
 0x3c3   : > { %v4549_v6 = vunpack.c.l.b16 %v4508_v53  ;;  %v2576_v58 = vpack.c.bf16 %v2552_v39, %v2552_v39  ;;  %v4461_v24 = vpack.c.bf16 %v4441_v1, %v4441_v1  ;;  %v2575_v28 = vpack.c.bf16 %v2551_v59, %v2551_v59  ;;  %v1508_v53 = vpop.f32.mrf.mxu0 }
 0x3c4   : > { %8115 = vrsqrt.f32 %v10902_v12  ;;  %v1920_v3 = vand.u32 2147483648, %v1689_v0  ;;  %v1918_v54 = vand.u32 2147483647, %v1689_v0  ;;  %v10909_v50 = vadd.f32 1e-06, %v994_v11 }
 0x3c5   : > { %v4565_v5 = vpack.c.b16 %v4549_v6, %v4548_v41  ;;  %v2627_v25 = vunpack.c.l.b16 %v2576_v58  ;;  %v4481_v2 = vunpack.c.l.bf16 %v4461_v24  ;;  %v2626_v38 = vunpack.c.l.b16 %v2575_v28 }
 0x3c6   : > { %vm1914_vm8 = vweird.f32 %v1689_v0  ;;  %v1921_v48 = vor.u32 1.1754944e-38, %v1920_v3  ;;  %vm1919_vm9 = vcmp.eq.f32.partialorder %v1918_v54, 8.507059e+37  ;;  %8117 = vrsqrt.f32 %v10909_v50 }
 0x3c7   : > { %7726 = vmatmul.msk.bf16.gmra.mxu1 %vm4572_vm4, %v4565_v5  ;;  %v10907_v57 = vadd.f32 %v4616_v34, %v4481_v2  ;;  %v2644_v14 = vpack.c.b16 %v2627_v25, %v2626_v38  ;;  %v10922_v41 = vadd.f32 %v1508_v53, %v9322_v47  ;;  %v7817_v39 = vunpack.c.h.bf16 %v10884_v61  ;;  %v14043_v5 = vld [vmem:[#allocation50_spill] sm:$0xff] }
 0x3c8   : > { %v8114_v33 = vpop.eup %8113  ;;  %v4402_v59 = vunpack.c.l.bf16 %v14043_v5  ;;  %v14044_v5 = vld [vmem:[#allocation52_spill] sm:$0xff]  ;;  %vm1245_vm12 = vweird.f32 %v10902_v12  ;;  %v3131_v8 = vmul.f32 %v9801_v49, %v10624_v45 }
 0x3c9   : > { %v1910_v31 = vmul.f32 %v8114_v33, %v1689_v0  ;;  %vm1915_vm7 = vweird.f32 %v8114_v33  ;;  %14042 = vst [vmem:[#allocation87_spill] sm:$0xff] %v10907_v57  ;;  %v4686_v20 = vsel %vm747_vm2, %v10907_v57, 0.0  ;;  %v2693_v13 = vshrl.u32 %v2644_v14, 16 }
 0x3ca   : > { %v10911_v16 = vpop.eup %8115  ;;  %vm1916_vm13 = vmor %vm1914_vm8, %vm1915_vm7  ;;  %4687 = vadd.xlane.f32.xlu0 %v4686_v20  ;;  %v10925_v1 = vmul.f32 0.70710677, %v10922_v41  ;;  %v4442_v25 = vmul.f32 %v7817_v39, %v4402_v59  ;;  %v10939_v20 = vld [vmem:[#allocation3 + $0x10] sm:$0xff]   ;;  %vm1593_vm7 = vcmp.ge.f32.partialorder %v10871_v32, 0.0 }
 0x3cb   : > { %v1911_v52 = vsub.f32 1.0, %v1910_v31  ;;  %v1240_v10 = vmul.f32 %v10911_v16, %v10902_v12  ;;  %v2695_v24 = vrot.slane %v2693_v13, 7  ;;  %v2289_v31 = vsub.f32 0.0, %v10879_v23 }
 0x3cc   : > { %v1642_v40 = vand.u32 2147483647, %v10925_v1  ;;  %v10933_v28 = vpop.eup %8117  ;;  %vm1246_vm11 = vweird.f32 %v10911_v16  ;;  %vm1594_vm8 = vcmp.ge.f32.partialorder %v10925_v1, 0.0 }
 0x3cd   : > { %v1912_v37 = vmul.f32 %v8114_v33, %v1911_v52  ;;  %v2696_v52 = vshll.u32 %v2644_v14, 16  ;;  %v1250_v54 = vmul.f32 %v10933_v28, %v10909_v50  ;;  %v2313_v38 = vmul.f32 %v2289_v31, %v10879_v23  ;;  %vm10995_vm6 = vmor %vm1245_vm12, %vm1246_vm11 }
 0x3ce   : > { %v1666_v34 = vmul.f32 0.3275911, %v1642_v40  ;;  %v2779_v53 = vsel %vm9780_vm0, %v2695_v24, 0 }
 0x3cf   : > { %v1913_v62 = vadd.f32 %v8114_v33, %v1912_v37  ;;  %v2698_v37 = vor.u32 %v2696_v52, %v2695_v24 }
 0x3d0   : > { %v1690_v3 = vadd.f32 1.0, %v1666_v34 }
 0x3d1   : > { %v1917_v22 = vsel %vm1916_vm13, %v8114_v33, %v1913_v62  ;;  %v1241_v33 = vmul.f32 %v10911_v16, %v1240_v10  ;;  %v2767_v14 = vsel %vm9780_vm0, 0, %v2698_v37  ;;  %v1251_v10 = vmul.f32 %v10933_v28, %v1250_v54 }
 0x3d2   : > { %v10913_v63 = vsel %vm1919_vm9, %v1921_v48, %v1917_v22  ;;  %8119 = vrcp.f32 %v1690_v3  ;;  %v4462_v48 = vpack.c.bf16 %v4442_v25, %v4442_v25  ;;  %v1933_v13 = vand.u32 2147483647, %v1690_v3 }
 0x3d3   : > { %v2073_v0 = vmul.f32 1.0614054, %v10913_v63  ;;  %v1242_v2 = vmul.f32 0.5, %v1241_v33  ;;  %v10953_v31 = vunpack.c.h.bf16 %v2767_v14  ;;  %v10962_v34 = vmul.f32 0.5, %v1251_v10 }
 0x3d4   : > { %v10947_v39 = vunpack.c.l.bf16 %v4462_v48  ;;  %v2919_v25 = vmul.f32 %v10740_v30, %v9787_v9  ;;  %vm1929_vm14 = vweird.f32 %v1690_v3  ;;  %vm10966_vm15 = vcmp.eq.f32.partialorder %v1933_v13, 8.507059e+37 }
 0x3d5   : > { %v2097_v6 = vadd.f32 -1.4531521, %v2073_v0  ;;  %v1243_v22 = vsub.f32 1.5, %v1242_v2  ;;  %v2351_v0 = vmul.f32 1.442695, %v2313_v38  ;;  %14045 = vst [vmem:[#allocation86_spill] sm:$0xff] %v10953_v31  ;;  %v2917_v48 = vmul.f32 %v9787_v9, %v10622_v46 }
 0x3d6   : > { %v2290_v37 = vsub.f32 0.0, %v1642_v40  ;;  %v3130_v10 = vmul.f32 %v9801_v49, %v10622_v46 }
 0x3d7   : > { %v2121_v58 = vmul.f32 %v2097_v6, %v10913_v63  ;;  %v10958_v24 = vmul.f32 %v10911_v16, %v1243_v22  ;;  %8121 = vpow2.f32 %v2351_v0  ;;  %v2819_v22 = vmul.f32 %v10624_v45, %v14012_v15 }
 0x3d8   : > { %v8120_v33 = vpop.eup %8119  ;;  %v2947_v13 = vpack.c.bf16 %v2917_v48, %v2917_v48 }
 0x3d9   : > { %v2145_v11 = vadd.f32 1.4214138, %v2121_v58  ;;  %v10951_v58 = vunpack.c.l.bf16 %v2767_v14  ;;  %v1925_v52 = vmul.f32 %v8120_v33, %v1690_v3  ;;  %v2918_v14 = vmul.f32 %v9787_v9, %v10624_v45 }
 0x3da   : > { %vm1930_vm1 = vweird.f32 %v8120_v33  ;;  %v2977_v36 = vunpack.c.l.bf16 %v2947_v13  ;;  %v11010_v13 = vadd.s32 112, %v9561_v18 }
 0x3db   : > { %v2169_v61 = vmul.f32 %v2145_v11, %v10913_v63  ;;  %v10955_v11 = vunpack.c.l.bf16 %v2779_v53  ;;  %v1926_v38 = vsub.f32 1.0, %v1925_v52  ;;  %v2949_v53 = vpack.c.bf16 %v2919_v25, %v2919_v25  ;;  %vm1931_vm5 = vmor %vm1929_vm14, %vm1930_vm1 }
 0x3dc   : > { %v2948_v23 = vpack.c.bf16 %v2918_v14, %v2918_v14  ;;  %v2314_v25 = vmul.f32 %v2290_v37, %v1642_v40  ;;  %14051 = vst [vmem:[#allocation61_spill] sm:$0xff] %v11010_v13  ;;  %v3949_v1 = vmul.f32 %v14031_v4, %v10951_v58  ;;  %vm572_vm12 = vcmp.ge.s32.totalorder %v11010_v13, %v14037_v44 }
 0x3dd   : > { %v2193_v62 = vadd.f32 -0.28449672, %v2169_v61  ;;  %14046 = vst [vmem:[#allocation96_spill] sm:$0xff] %v10955_v11  ;;  %v1935_v61 = vand.u32 2147483648, %v1690_v3  ;;  %v1927_v0 = vmul.f32 %v8120_v33, %v1926_v38  ;;  %v2979_v59 = vunpack.c.l.bf16 %v2949_v53  ;;  %v8122_v7 = vpop.eup %8121 }
 0x3de   : > { %v2839_v38 = vpack.c.bf16 %v2819_v22, %v2819_v22  ;;  %v2978_v48 = vunpack.c.l.bf16 %v2948_v23  ;;  %v2353_v37 = vmul.f32 1.442695, %v2314_v25  ;;  %v11018_v25 = vadd.s32 120, %v9561_v18 }
 0x3df   : > { %v2217_v6 = vmul.f32 %v2193_v62, %v10913_v63  ;;  %v2818_v62 = vmul.f32 %v10622_v46, %v14012_v15  ;;  %v1936_v52 = vor.u32 1.1754944e-38, %v1935_v61  ;;  %v1928_v56 = vadd.f32 %v8120_v33, %v1927_v0 }
 0x3e0   : > { %v3160_v15 = vpack.c.bf16 %v3130_v10, %v3130_v10  ;;  %v3161_v61 = vpack.c.bf16 %v3131_v8, %v3131_v8  ;;  %v3047_v45 = vrot.slane %v2978_v48, 1  ;;  %14053 = vst [vmem:[#allocation79_spill] sm:$0xff] %v11018_v25  ;;  %8123 = vpow2.f32 %v2353_v37 }
 0x3e1   : > { %v2241_v54 = vadd.f32 0.2548296, %v2217_v6  ;;  %v3132_v6 = vmul.f32 %v9801_v49, %v10740_v30  ;;  %v2838_v46 = vpack.c.bf16 %v2818_v62, %v2818_v62  ;;  %v1932_v9 = vsel %vm1931_vm5, %v8120_v33, %v1928_v56 }
 0x3e2   : > { %v3046_v30 = vrot.slane %v2977_v36, 1  ;;  %v10988_v53 = vsel %vm10966_vm15, %v1936_v52, %v1932_v9  ;;  %v3049_v49 = vrot.slane %v2979_v59, 1  ;;  %v3191_v3 = vunpack.c.l.bf16 %v3161_v61  ;;  %v4618_v59 = vpop.f32.mrf.mxu1 }
 0x3e3   : > { %v2265_v57 = vmul.f32 %v2241_v54, %v10913_v63  ;;  %v3162_v14 = vpack.c.bf16 %v3132_v6, %v3132_v6  ;;  %v3190_v63 = vunpack.c.l.bf16 %v3160_v15  ;;  %v2074_v40 = vmul.f32 1.0614054, %v10988_v53 }
 0x3e4   : > { %v2858_v8 = vunpack.c.l.bf16 %v2838_v46  ;;  %v2859_v56 = vunpack.c.l.bf16 %v2839_v38  ;;  %v3048_v9 = vsel %vm3025_vm10, %v3046_v30, %v3047_v45  ;;  %v3050_v23 = vsel %vm3025_vm10, %v3047_v45, %v3049_v49 }
 0x3e5   : > { %v3192_v54 = vunpack.c.l.bf16 %v3162_v14  ;;  %v2098_v33 = vadd.f32 -1.4531521, %v2074_v40  ;;  %v3259_v12 = vrot.slane %v3190_v63, 2  ;;  %v11006_v2 = vmul.f32 %v8122_v7, %v2265_v57 }
 0x3e6   : > { %v3104_v62 = vadd.f32 %v3048_v9, %v2858_v8  ;;  %v3105_v22 = vadd.f32 %v3050_v23, %v2859_v56  ;;  %v3260_v10 = vrot.slane %v3191_v3, 2  ;;  %v1617_v52 = vsel %vm1593_vm7, 1.0, %v13950_v27 }
 0x3e7   : > { %v2122_v49 = vmul.f32 %v2098_v33, %v10988_v53  ;;  %v3262_v6 = vrot.slane %v3192_v54, 2  ;;  %v11015_v32 = vadd.f32 %v4618_v59, %v10947_v39  ;;  %v3436_v38 = vmul.f32 %v14025_v35, %v10831_v43  ;;  %v8124_v33 = vpop.eup %8123 }
 0x3e8   : > { %v3261_v57 = vsel %vm3238_vm3, %v3259_v12, %v3260_v10  ;;  %v2409_v48 = vsub.f32 1.0, %v11006_v2  ;;  %v3648_v39 = vmul.f32 %v14027_v42, %v10831_v43  ;;  %v3344_v45 = vmul.f32 %v14022_v19, %v10804_v55 }
 0x3e9   : > { %14052 = vst [vmem:[#allocation62_spill] sm:$0xff] %v11015_v32  ;;  %v2146_v7 = vadd.f32 1.4214138, %v2122_v49  ;;  %v3263_v46 = vsel %vm3238_vm3, %v3260_v10, %v3262_v6  ;;  %v3317_v30 = vadd.f32 %v3261_v57, %v3104_v62  ;;  %v3345_v63 = vmul.f32 %v14022_v19, %v10812_v21 }
 0x3ea   : > { %v3318_v61 = vadd.f32 %v3263_v46, %v3105_v22  ;;  %v3434_v40 = vmul.f32 %v14025_v35, %v10804_v55  ;;  %v3435_v37 = vmul.f32 %v14025_v35, %v10812_v21  ;;  %v3466_v3 = vpack.c.bf16 %v3436_v38, %v3436_v38 }
 0x3eb   : > { %v2170_v14 = vmul.f32 %v2146_v7, %v10988_v53  ;;  %v3646_v54 = vmul.f32 %v14027_v42, %v10804_v55  ;;  %v3647_v8 = vmul.f32 %v14027_v42, %v10812_v21  ;;  %v4689_v9 = vsel %vm747_vm2, %v11015_v32, 0.0 }
 0x3ec   : > { %v3364_v23 = vpack.c.bf16 %v3344_v45, %v3344_v45  ;;  %v3365_v59 = vpack.c.bf16 %v3345_v63, %v3345_v63  ;;  %4690 = vadd.xlane.f32.xlu1 %v4689_v9  ;;  %v3464_v12 = vpack.c.bf16 %v3434_v40, %v3434_v40  ;;  %v3465_v2 = vpack.c.bf16 %v3435_v37, %v3435_v37 }
 0x3ed   : > { %v2194_v56 = vadd.f32 -0.28449672, %v2170_v14  ;;  %v3496_v62 = vunpack.c.l.bf16 %v3466_v3  ;;  %v3676_v22 = vpack.c.bf16 %v3646_v54, %v3646_v54  ;;  %v3677_v7 = vpack.c.bf16 %v3647_v8, %v3647_v8 }
 0x3ee   : > { %v3384_v49 = vunpack.c.l.bf16 %v3364_v23  ;;  %v3385_v6 = vunpack.c.l.bf16 %v3365_v59  ;;  %v3494_v57 = vunpack.c.l.bf16 %v3464_v12  ;;  %v3495_v46 = vunpack.c.l.bf16 %v3465_v2 }
 0x3ef   : > { %v2218_v10 = vmul.f32 %v2194_v56, %v10988_v53  ;;  %v3565_v38 = vrot.slane %v3496_v62, 1  ;;  %v3678_v14 = vpack.c.bf16 %v3648_v39, %v3648_v39  ;;  %v3706_v45 = vunpack.c.l.bf16 %v3676_v22 }
 0x3f0   : > { %v3404_v0 = vadd.f32 %v3384_v49, %v3317_v30  ;;  %v3405_v32 = vadd.f32 %v3385_v6, %v3318_v61  ;;  %v3562_v63 = vrot.slane %v3494_v57, 1  ;;  %v3563_v42 = vrot.slane %v3495_v46, 1 }
 0x3f1   : > { %v2242_v15 = vadd.f32 0.2548296, %v2218_v10  ;;  %v3707_v9 = vunpack.c.l.bf16 %v3677_v7  ;;  %v3708_v40 = vunpack.c.l.bf16 %v3678_v14  ;;  %v3774_v3 = vrot.slane %v3706_v45, 2 }
 0x3f2   : > { %v3859_v54 = vmul.f32 %v14030_v60, %v10951_v58  ;;  %v3860_v8 = vmul.f32 %v14030_v60, %v10953_v31  ;;  %v1618_v39 = vsel %vm1594_vm8, 1.0, %v13950_v27  ;;  %v3564_v30 = vsel %vm3025_vm10, %v3562_v63, %v3563_v42 }
 0x3f3   : > { %v2266_v37 = vmul.f32 %v2242_v15, %v10988_v53  ;;  %v3566_v61 = vsel %vm3025_vm10, %v3563_v42, %v3565_v38  ;;  %v3775_v56 = vrot.slane %v3707_v9, 2  ;;  %v3620_v59 = vadd.f32 %v3564_v30, %v3404_v0 }
 0x3f4   : > { %v3777_v12 = vrot.slane %v3708_v40, 2  ;;  %v3879_v53 = vpack.c.bf16 %v3859_v54, %v3859_v54  ;;  %v2433_v15 = vmul.f32 %v2409_v48, %v1617_v52  ;;  %vm573_vm13 = vcmp.ge.s32.totalorder %v11018_v25, %v14037_v44 }
 0x3f5   : > { %v2386_v23 = vmul.f32 %v8124_v33, %v2266_v37  ;;  %vm600_vm9 = vcmp.lt.s32.totalorder %v11018_v25, %v14038_v26  ;;  %v3621_v2 = vadd.f32 %v3566_v61, %v3405_v32  ;;  %v3880_v62 = vpack.c.bf16 %v3860_v8, %v3860_v8 }
 0x3f6   : > { %v3776_v42 = vsel %vm3238_vm3, %v3774_v3, %v3775_v56  ;;  %v3778_v33 = vsel %vm3238_vm3, %v3775_v56, %v3777_v12  ;;  %v3899_v0 = vunpack.c.l.bf16 %v3879_v53  ;;  %vm599_vm11 = vcmp.lt.s32.totalorder %v11010_v13, %v14038_v26  ;;  %vm11093_vm15 = vmand %vm573_vm13, %vm600_vm9 }
 0x3f7   : > { %v2410_v22 = vsub.f32 1.0, %v2386_v23  ;;  %v3832_v52 = vadd.f32 %v3776_v42, %v3620_v59  ;;  %v3950_v32 = vmul.f32 %v14031_v4, %v10953_v31  ;;  %v3951_v48 = vmul.f32 %v14031_v4, %v10955_v11  ;;  %v1511_v59 = vpop.f32.mrf.mxu3  ;;  %vm623_vm5 = vmand %vm572_vm12, %vm599_vm11 }
 0x3f8   : > { %v3979_v10 = vpack.c.bf16 %v3949_v1, %v3949_v1  ;;  %vm1256_vm14 = vweird.f32 %v10933_v28  ;;  %v3900_v6 = vunpack.c.l.bf16 %v3880_v62  ;;  %v4161_v7 = vmul.f32 %v14032_v17, %v10951_v58 }
 0x3f9   : > { %v2434_v49 = vmul.f32 %v2410_v22, %v1618_v39  ;;  %v4162_v57 = vmul.f32 %v14032_v17, %v10953_v31  ;;  %v3833_v46 = vadd.f32 %v3778_v33, %v3621_v2  ;;  %v3980_v38 = vpack.c.bf16 %v3950_v32, %v3950_v32 }
 0x3fa   : > { %v3981_v14 = vpack.c.bf16 %v3951_v48, %v3951_v48  ;;  %v4009_v45 = vunpack.c.l.bf16 %v3979_v10  ;;  %v3919_v63 = vadd.f32 %v3899_v0, %v3832_v52  ;;  %v4163_v9 = vmul.f32 %v14032_v17, %v10955_v11 }
 0x3fb   : > { %v4191_v40 = vpack.c.bf16 %v4161_v7, %v4161_v7  ;;  %v4192_v37 = vpack.c.bf16 %v4162_v57, %v4162_v57  ;;  %v2458_v3 = vadd.f32 1.0, %v2434_v49  ;;  %v4010_v54 = vunpack.c.l.bf16 %v3980_v38  ;;  %v14057_v7 = vld [vmem:[#allocation75_spill] sm:$0xff] }
 0x3fc   : > { %v4011_v8 = vunpack.c.l.bf16 %v3981_v14  ;;  %v4077_v39 = vrot.slane %v4009_v45, 1  ;;  %v3920_v30 = vadd.f32 %v3900_v6, %v3833_v46  ;;  %v4193_v61 = vpack.c.bf16 %v4163_v9, %v4163_v9  ;;  %v11107_v45 = vld [vmem:[#allocation3 + $0x18] sm:$0xff]  }
 0x3fd   : > { %v4221_v56 = vunpack.c.l.bf16 %v4191_v40  ;;  %v4222_v23 = vunpack.c.l.bf16 %v4192_v37  ;;  %v2457_v12 = vadd.f32 1.0, %v2433_v15  ;;  %v1546_v53 = vmul.f32 0.5, %v10922_v41  ;;  %v14059_v40 = vld [vmem:[#allocation51_spill] sm:$0xff] }
 0x3fe   : > { %v4078_v2 = vrot.slane %v4010_v54, 1  ;;  %v4080_v62 = vrot.slane %v4011_v8, 1  ;;  %v1545_v1 = vmul.f32 0.5, %v10863_v29  ;;  %v4223_v22 = vunpack.c.l.bf16 %v4193_v61 }
 0x3ff   : > { %v4289_v42 = vrot.slane %v4221_v56, 2  ;;  %v4290_v33 = vrot.slane %v4222_v23, 2  ;;  %v2482_v0 = vmul.f32 %v2458_v3, %v1546_v53  ;;  %v11082_v48 = vadd.f32 %v1511_v59, %v9322_v47  ;;  %v14061_v59 = vld [vmem:[#allocation47_spill] sm:$0xff] }
 0x400   : > { %v4079_v52 = vsel %vm3025_vm10, %v4077_v39, %v4078_v2  ;;  %v4081_v32 = vsel %vm3025_vm10, %v4078_v2, %v4080_v62  ;;  %v14054_v10 = vsub.f32 1.5, %v10962_v34  ;;  %v4292_v6 = vrot.slane %v4223_v22, 2  ;;  %v14060_v39 = vld [vmem:[#allocation53_spill] sm:$0xff]  ;;  %v14062_v62 = vld [vmem:[#allocation80_spill] sm:$0xff] }
 0x401   : > { %v4135_v41 = vadd.f32 %v4079_v52, %v3919_v63  ;;  %v4136_v49 = vadd.f32 %v4081_v32, %v3920_v30  ;;  %v14058_v34 = vsel %vm10995_vm6, %v10911_v16, %v10958_v24  ;;  %v2481_v46 = vmul.f32 %v2457_v12, %v1545_v1 }
 0x402   : > { %v1254_v15 = vmul.f32 %v10933_v28, %v14054_v10  ;;  %v1281_v57 = vmul.f32 %v14058_v34, %v14057_v7  ;;  %v4291_v38 = vsel %vm3238_vm3, %v4289_v42, %v4290_v33  ;;  %v11105_v14 = vmul.f32 0.70710677, %v11082_v48 }
 0x403   : > { %vm1255_vm1 = vweird.f32 %v10909_v50  ;;  %v4293_v16 = vsel %vm3238_vm3, %v4290_v33, %v4292_v6  ;;  %v4347_v24 = vadd.f32 %v4291_v38, %v4135_v41  ;;  %v7821_v36 = vunpack.c.h.bf16 %v10939_v20  ;;  %v14065_v41 = vld [vmem:[#allocation48_spill] sm:$0xff] }
 0x404   : > { %vm1257_vm6 = vmor %vm1255_vm1, %vm1256_vm14  ;;  %v2554_v63 = vsel %vm11093_vm15, %v2482_v0, 0.0  ;;  %v4348_v9 = vadd.f32 %v4293_v16, %v4136_v49  ;;  %v11123_v50 = vand.u32 2147483647, %v11105_v14  ;;  %v4404_v37 = vunpack.c.l.bf16 %v14059_v40 }
 0x405   : > { %v1258_v3 = vsel %vm1257_vm6, %v10933_v28, %v1254_v15  ;;  %v4368_v54 = vadd.f32 %v10170_v51, %v4347_v24  ;;  %v7824_v8 = vunpack.c.l.bf16 %v11107_v45  ;;  %v4405_v30 = vunpack.c.l.bf16 %v14060_v39 }
 0x406   : > { %v2553_v61 = vsel %vm623_vm5, %v2481_v46, 0.0  ;;  %v4369_v56 = vadd.f32 %v10170_v51, %v4348_v9  ;;  %v1667_v23 = vmul.f32 0.3275911, %v11123_v50  ;;  %v1306_v12 = vmul.f32 %v14061_v59, %v1281_v57  ;;  %v14066_v9 = vld [vmem:[#allocation69_spill] sm:$0xff] }
 0x407   : > { %v2578_v53 = vpack.c.bf16 %v2554_v63, %v2554_v63  ;;  %v4509_v2 = vpack.c.bf16 %v4368_v54, %v4368_v54  ;;  %v1282_v1 = vmul.f32 %v1258_v3, %v14062_v62  ;;  %v14063_v28 = vunpack.c.l.bf16 %v14044_v5 }
 0x408   : > { %v4510_v22 = vpack.c.bf16 %v4369_v56, %v4369_v56  ;;  %v1691_v42 = vadd.f32 1.0, %v1667_v23  ;;  %v14064_v33 = vunpack.c.l.bf16 %v10939_v20  ;;  %v2577_v52 = vpack.c.bf16 %v2553_v61, %v2553_v61 }
 0x409   : > { %v4550_v32 = vunpack.c.l.b16 %v4509_v2  ;;  %v4444_v10 = vmul.f32 %v7821_v36, %v4404_v37  ;;  %v4445_v15 = vmul.f32 %v7824_v8, %v4405_v30  ;;  %v1331_v49 = vadd.f32 %v14065_v41, %v1306_v12 }
 0x40a   : > { %v4443_v0 = vmul.f32 %v14064_v33, %v14063_v28  ;;  %v4551_v29 = vunpack.c.l.b16 %v4510_v22  ;;  %8125 = vrcp.f32 %v1691_v42  ;;  %v2629_v6 = vunpack.c.l.b16 %v2578_v53  ;;  %v14068_v53 = vld [vmem:[#allocation71_spill] sm:$0xff] }
 0x40b   : > { %v1307_v34 = vmul.f32 %v14061_v59, %v1282_v1  ;;  %v2628_v57 = vunpack.c.l.b16 %v2577_v52  ;;  %v4464_v38 = vpack.c.bf16 %v4444_v10, %v4444_v10  ;;  %v4465_v16 = vpack.c.bf16 %v4445_v15, %v4445_v15  ;;  %v14069_v15 = vld [vmem:[#allocation70_spill] sm:$0xff] }
 0x40c   : > { %v4566_v7 = vpack.c.b16 %v4551_v29, %v4550_v32  ;;  %v4463_v46 = vpack.c.bf16 %v4443_v0, %v4443_v0  ;;  %v1355_v5 = vpack.c.bf16 %v1331_v49, %v1331_v49  ;;  %v2920_v40 = vmul.f32 %v14066_v9, %v10804_v55 }
 0x40d   : > { %v1332_v20 = vadd.f32 %v14065_v41, %v1307_v34  ;;  %v2645_v24 = vpack.c.b16 %v2629_v6, %v2628_v57  ;;  %v2921_v37 = vmul.f32 %v14066_v9, %v10812_v21  ;;  %v11148_v8 = vunpack.c.l.bf16 %v4464_v38 }
 0x40e   : > { %7727 = vmatmul.msk.bf16.gmra.mxu1 %vm4572_vm4, %v4566_v7  ;;  %v11146_v54 = vunpack.c.l.bf16 %v4463_v46  ;;  %v11150_v39 = vunpack.c.l.bf16 %v4465_v16  ;;  %v11153_v30 = vadd.s32 128, %v9561_v18  ;;  %v1406_v61 = vunpack.c.l.b16 %v1355_v5 }
 0x40f   : > { %v1356_v63 = vpack.c.bf16 %v1332_v20, %v1332_v20  ;;  %v2922_v23 = vmul.f32 %v10831_v43, %v14066_v9  ;;  %v2700_v59 = vshrl.u32 %v2645_v24, 16  ;;  %vm1595_vm7 = vcmp.ge.f32.partialorder %v11105_v14, 0.0 }
 0x410   : > { %v8126_v36 = vpop.eup %8125  ;;  %14067 = vst [vmem:[#allocation49_spill] sm:$0xff] %v11153_v30  ;;  %v2820_v2 = vmul.f32 %v10804_v55, %v14068_v53  ;;  %v1950_v62 = vand.u32 2147483648, %v1691_v42  ;;  %v2950_v22 = vpack.c.bf16 %v2920_v40, %v2920_v40  ;;  %v2951_v28 = vpack.c.bf16 %v2921_v37, %v2921_v37 }
 0x411   : > { %v1940_v3 = vmul.f32 %v8126_v36, %v1691_v42  ;;  %v1407_v56 = vunpack.c.l.b16 %v1356_v63  ;;  %v11161_v33 = vmul.f32 0.5, %v11082_v48  ;;  %vm1945_vm8 = vweird.f32 %v8126_v36 }
 0x412   : > { %v1948_v52 = vand.u32 2147483647, %v1691_v42  ;;  %v11164_v32 = vsel %vm1595_vm7, 1.0, %v13950_v27  ;;  %v2821_v14 = vmul.f32 %v10812_v21, %v14068_v53  ;;  %v2952_v10 = vpack.c.bf16 %v2922_v23, %v2922_v23 }
 0x413   : > { %v1941_v12 = vsub.f32 1.0, %v1940_v3  ;;  %v1419_v1 = vpack.c.b16 %v1407_v56, %v1406_v61  ;;  %v3133_v29 = vmul.f32 %v14069_v15, %v10804_v55  ;;  %vm1944_vm13 = vweird.f32 %v1691_v42  ;;  %v1513_v42 = vpop.f32.mrf.mxu3 }
 0x414   : > { %v2840_v49 = vpack.c.bf16 %v2820_v2, %v2820_v2  ;;  %v3134_v48 = vmul.f32 %v14069_v15, %v10812_v21  ;;  %v2702_v6 = vrot.slane %v2700_v59, 7  ;;  %vm1946_vm9 = vmor %vm1944_vm13, %vm1945_vm8  ;;  %v1951_v7 = vor.u32 1.1754944e-38, %v1950_v62 }
 0x415   : > { %v1942_v0 = vmul.f32 %v8126_v36, %v1941_v12  ;;  %7722 = vmatmul.msk.bf16.gmra.mxu3 %vm747_vm2, %v1419_v1  ;;  %v2980_v34 = vunpack.c.l.bf16 %v2950_v22  ;;  %v2981_v57 = vunpack.c.l.bf16 %v2951_v28  ;;  %v2703_v46 = vshll.u32 %v2645_v24, 16 }
 0x416   : > { %vm1949_vm12 = vcmp.eq.f32.partialorder %v1948_v52, 8.507059e+37  ;;  %v3135_v16 = vmul.f32 %v14069_v15, %v10831_v43  ;;  %v2291_v55 = vsub.f32 0.0, %v11123_v50  ;;  %v2982_v5 = vunpack.c.l.bf16 %v2952_v10 }
 0x417   : > { %v1943_v41 = vadd.f32 %v8126_v36, %v1942_v0  ;;  %v3163_v63 = vpack.c.bf16 %v3133_v29, %v3133_v29  ;;  %v1514_v40 = vadd.f32 %v1513_v42, %v9322_v47  ;;  %v2841_v37 = vpack.c.bf16 %v2821_v14, %v2821_v14 }
 0x418   : > { %v3164_v3 = vpack.c.bf16 %v3134_v48, %v3134_v48  ;;  %v2705_v61 = vor.u32 %v2703_v46, %v2702_v6  ;;  %v2860_v24 = vunpack.c.l.bf16 %v2840_v49  ;;  %v3052_v56 = vrot.slane %v2981_v57, 1 }
 0x419   : > { %v1947_v38 = vsel %vm1946_vm9, %v8126_v36, %v1943_v41  ;;  %v3051_v36 = vrot.slane %v2980_v34, 1  ;;  %v2780_v43 = vsel %vm9780_vm0, %v2702_v6, 0  ;;  %v11182_v12 = vmul.f32 0.70710677, %v1514_v40 }
 0x41a   : > { %v11175_v20 = vsel %vm1949_vm12, %v1951_v7, %v1947_v38  ;;  %v3165_v2 = vpack.c.bf16 %v3135_v16, %v3135_v16  ;;  %v2315_v62 = vmul.f32 %v2291_v55, %v11123_v50  ;;  %v3054_v1 = vrot.slane %v2982_v5, 1 }
 0x41b   : > { %v2075_v21 = vmul.f32 1.0614054, %v11175_v20  ;;  %v3193_v22 = vunpack.c.l.bf16 %v3163_v63  ;;  %v3346_v28 = vmul.f32 %v14022_v19, %v10951_v58  ;;  %v11189_v52 = vand.u32 2147483647, %v11182_v12 }
 0x41c   : > { %v3194_v14 = vunpack.c.l.bf16 %v3164_v3  ;;  %v3347_v10 = vmul.f32 %v14022_v19, %v10953_v31  ;;  %v2861_v29 = vunpack.c.l.bf16 %v2841_v37  ;;  %v3053_v41 = vsel %vm3025_vm10, %v3051_v36, %v3052_v56 }
 0x41d   : > { %v2099_v59 = vadd.f32 -1.4531521, %v2075_v21  ;;  %v3055_v49 = vsel %vm3025_vm10, %v3052_v56, %v3054_v1  ;;  %v3437_v50 = vmul.f32 %v14025_v35, %v10951_v58  ;;  %v1668_v6 = vmul.f32 0.3275911, %v11189_v52  ;;  %v1516_v21 = vpop.f32.mrf.mxu3 }
 0x41e   : > { %v3195_v7 = vunpack.c.l.bf16 %v3165_v2  ;;  %v3438_v34 = vmul.f32 %v14025_v35, %v10953_v31  ;;  %v2768_v57 = vsel %vm9780_vm0, 0, %v2705_v61  ;;  %v11202_v46 = vunpack.c.l.bf16 %v2780_v43 }
 0x41f   : > { %v2123_v0 = vmul.f32 %v2099_v59, %v11175_v20  ;;  %v2355_v38 = vmul.f32 1.442695, %v2315_v62  ;;  %v3366_v16 = vpack.c.bf16 %v3346_v28, %v3346_v28  ;;  %v11204_v55 = vadd.f32 1.0, %v1668_v6 }
 0x420   : > { %v3264_v42 = vrot.slane %v3193_v22, 2  ;;  %v3265_v5 = vrot.slane %v3194_v14, 2  ;;  %v3367_v63 = vpack.c.bf16 %v3347_v10, %v3347_v10  ;;  %v3106_v37 = vadd.f32 %v3053_v41, %v2860_v24 }
 0x421   : > { %v2147_v48 = vadd.f32 1.4214138, %v2123_v0  ;;  %v3107_v3 = vadd.f32 %v3055_v49, %v2861_v29  ;;  %v3439_v36 = vmul.f32 %v14025_v35, %v10955_v11  ;;  %v3467_v56 = vpack.c.bf16 %v3437_v50, %v3437_v50 }
 0x422   : > { %8127 = vrcp.f32 %v11204_v55  ;;  %v3267_v61 = vrot.slane %v3195_v7, 2  ;;  %v3468_v43 = vpack.c.bf16 %v3438_v34, %v3438_v34  ;;  %v11210_v2 = vunpack.c.l.bf16 %v2768_v57 }
 0x423   : > { %v2171_v59 = vmul.f32 %v2147_v48, %v11175_v20  ;;  %v11212_v62 = vunpack.c.h.bf16 %v2768_v57  ;;  %v11215_v1 = vadd.f32 %v1516_v21, %v9322_v47  ;;  %v3386_v22 = vunpack.c.l.bf16 %v3366_v16 }
 0x424   : > { %8129 = vpow2.f32 %v2355_v38  ;;  %v3266_v24 = vsel %vm3238_vm3, %v3264_v42, %v3265_v5  ;;  %v3268_v28 = vsel %vm3238_vm3, %v3265_v5, %v3267_v61  ;;  %v3387_v0 = vunpack.c.l.bf16 %v3367_v63  ;;  %v14072_v38 = vld [vmem:[#allocation82_spill] sm:$0xff] }
 0x425   : > { %v11220_v14 = vmul.f32 0.70710677, %v11215_v1  ;;  %v3319_v10 = vadd.f32 %v3266_v24, %v3106_v37  ;;  %v3469_v29 = vpack.c.bf16 %v3439_v36, %v3439_v36  ;;  %v3497_v41 = vunpack.c.l.bf16 %v3467_v56 }
 0x426   : > { %v2195_v49 = vadd.f32 -0.28449672, %v2171_v59  ;;  %v11223_v50 = vadd.s32 136, %v9561_v18  ;;  %v3320_v48 = vadd.f32 %v3268_v28, %v3107_v3  ;;  %v3498_v6 = vunpack.c.l.bf16 %v3468_v43  ;;  %v1518_v3 = vpop.f32.mrf.mxu3 }
 0x427   : > { %v11225_v7 = vmul.f32 0.5, %v1514_v40  ;;  %v11228_v34 = vand.u32 2147483647, %v11220_v14  ;;  %v3406_v57 = vadd.f32 %v3386_v22, %v3319_v10  ;;  %v3649_v16 = vmul.f32 %v14072_v38, %v10951_v58 }
 0x428   : > { %14071 = vst [vmem:[#allocation50_spill] sm:$0xff] %v11223_v50  ;;  %v8128_v42 = vpop.eup %8127  ;;  %vm1596_vm11 = vcmp.ge.f32.partialorder %v11182_v12, 0.0  ;;  %v3407_v5 = vadd.f32 %v3387_v0, %v3320_v48  ;;  %v3650_v63 = vmul.f32 %v14072_v38, %v10953_v31  ;;  %v3651_v21 = vmul.f32 %v14072_v38, %v10955_v11 }
 0x429   : > { %v1955_v40 = vmul.f32 %v8128_v42, %v11204_v55  ;;  %v1669_v37 = vmul.f32 0.3275911, %v11228_v34  ;;  %v3499_v36 = vunpack.c.l.bf16 %v3469_v29  ;;  %v3567_v56 = vrot.slane %v3497_v41, 1 }
 0x42a   : > { %v8130_v59 = vpop.eup %8129  ;;  %v2219_v61 = vmul.f32 %v2195_v49, %v11175_v20  ;;  %v2292_v43 = vsub.f32 0.0, %v11189_v52  ;;  %v11242_v12 = vadd.f32 %v1518_v3, %v9322_v47  ;;  %v3568_v22 = vrot.slane %v3498_v6, 1 }
 0x42b   : > { %v11245_v24 = vsel %vm1596_vm11, 1.0, %v13950_v27  ;;  %v1956_v28 = vsub.f32 1.0, %v1955_v40  ;;  %v11247_v0 = vadd.f32 1.0, %v1669_v37  ;;  %v3679_v10 = vpack.c.bf16 %v3649_v16, %v3649_v16 }
 0x42c   : > { %v1965_v48 = vand.u32 2147483648, %v11204_v55  ;;  %v11251_v29 = vmul.f32 0.70710677, %v11242_v12  ;;  %v3680_v41 = vpack.c.bf16 %v3650_v63, %v3650_v63  ;;  %v3681_v49 = vpack.c.bf16 %v3651_v21, %v3651_v21 }
 0x42d   : > { %v1957_v25 = vmul.f32 %v8128_v42, %v1956_v28  ;;  %vm1960_vm14 = vweird.f32 %v8128_v42  ;;  %v1963_v3 = vand.u32 2147483647, %v11204_v55  ;;  %8131 = vrcp.f32 %v11247_v0 }
 0x42e   : > { %v2243_v6 = vadd.f32 0.2548296, %v2219_v61  ;;  %v2316_v13 = vmul.f32 %v2292_v43, %v11189_v52  ;;  %v3569_v40 = vsel %vm3025_vm10, %v3567_v56, %v3568_v22  ;;  %v3570_v37 = vrot.slane %v3499_v36, 1  ;;  %v1521_v56 = vpop.f32.mrf.mxu3 }
 0x42f   : > { %v1958_v16 = vadd.f32 %v8128_v42, %v1957_v25  ;;  %vm1959_vm15 = vweird.f32 %v11204_v55  ;;  %v11259_v38 = vand.u32 2147483647, %v11251_v29  ;;  %v1966_v21 = vor.u32 1.1754944e-38, %v1965_v48 }
 0x430   : > { %vm1961_vm1 = vmor %vm1959_vm15, %vm1960_vm14  ;;  %v3571_v28 = vsel %vm3025_vm10, %v3568_v22, %v3570_v37  ;;  %v3709_v35 = vunpack.c.l.bf16 %v3679_v10  ;;  %v3710_v19 = vunpack.c.l.bf16 %v3680_v41  ;;  %vm1964_vm5 = vcmp.eq.f32.partialorder %v1963_v3, 8.507059e+37  ;;  %v11277_v3 = vld [vmem:[#allocation3 + $0x20] sm:$0xff]   ;;  %v14073_v37 = vld [vmem:[#allocation54_spill] sm:$0xff] }
 0x431   : > { %v1962_v61 = vsel %vm1961_vm1, %v8128_v42, %v1958_v16  ;;  %v1670_v52 = vmul.f32 0.3275911, %v11259_v38  ;;  %v3711_v36 = vunpack.c.l.bf16 %v3681_v49  ;;  %v2267_v25 = vmul.f32 %v2243_v6, %v11175_v20 }
 0x432   : > { %v11265_v55 = vsel %vm1964_vm5, %v1966_v21, %v1962_v61  ;;  %v2357_v43 = vmul.f32 1.442695, %v2316_v13  ;;  %v3622_v15 = vadd.f32 %v3569_v40, %v3406_v57  ;;  %v11271_v22 = vadd.f32 %v1521_v56, %v9322_v47 }
 0x433   : > { %v8132_v11 = vpop.eup %8131  ;;  %v2076_v63 = vmul.f32 1.0614054, %v11265_v55  ;;  %v11268_v48 = vadd.f32 1.0, %v1670_v52  ;;  %v3623_v42 = vadd.f32 %v3571_v28, %v3407_v5  ;;  %v11274_v10 = vmul.f32 0.5, %v11215_v1 }
 0x434   : > { %v1970_v41 = vmul.f32 %v8132_v11, %v11247_v0  ;;  %v3779_v49 = vrot.slane %v3709_v35, 2  ;;  %v3780_v20 = vrot.slane %v3710_v19, 2  ;;  %vm1597_vm6 = vcmp.ge.f32.partialorder %v11220_v14, 0.0 }
 0x435   : > { %v2100_v13 = vadd.f32 -1.4531521, %v2076_v63  ;;  %8133 = vrcp.f32 %v11268_v48  ;;  %v3782_v57 = vrot.slane %v3711_v36, 2  ;;  %v2387_v6 = vmul.f32 %v8130_v59, %v2267_v25 }
 0x436   : > { %8135 = vpow2.f32 %v2357_v43  ;;  %v1971_v40 = vsub.f32 1.0, %v1970_v41  ;;  %v4406_v5 = vunpack.c.l.bf16 %v14073_v37  ;;  %v1980_v16 = vand.u32 2147483648, %v11247_v0  ;;  %v1523_v52 = vpop.f32.mrf.mxu3 }
 0x437   : > { %v2124_v1 = vmul.f32 %v2100_v13, %v11265_v55  ;;  %v11285_v35 = vmul.f32 0.70710677, %v11271_v22  ;;  %v11289_v63 = vsel %vm1597_vm6, 1.0, %v13950_v27  ;;  %vm1975_vm7 = vweird.f32 %v8132_v11 }
 0x438   : > { %v1972_v14 = vmul.f32 %v8132_v11, %v1971_v40  ;;  %v1978_v59 = vand.u32 2147483647, %v11247_v0  ;;  %v2293_v28 = vsub.f32 0.0, %v11228_v34  ;;  %v3781_v56 = vsel %vm3238_vm3, %v3779_v49, %v3780_v20 }
 0x439   : > { %v2148_v21 = vadd.f32 1.4214138, %v2124_v1  ;;  %v11294_v61 = vand.u32 2147483647, %v11285_v35  ;;  %v2411_v36 = vsub.f32 1.0, %v2387_v6  ;;  %vm1974_vm8 = vweird.f32 %v11247_v0 }
 0x43a   : > { %v1973_v25 = vadd.f32 %v8132_v11, %v1972_v14  ;;  %v3783_v43 = vsel %vm3238_vm3, %v3780_v20, %v3782_v57  ;;  %vm1976_vm13 = vmor %vm1974_vm8, %vm1975_vm7  ;;  %v1981_v40 = vor.u32 1.1754944e-38, %v1980_v16  ;;  %v11301_v1 = vadd.f32 %v3781_v56, %v3622_v15 }
 0x43b   : > { %v8134_v41 = vpop.eup %8133  ;;  %v2172_v13 = vmul.f32 %v2148_v21, %v11265_v55  ;;  %v1671_v37 = vmul.f32 0.3275911, %v11294_v61  ;;  %vm1979_vm9 = vcmp.eq.f32.partialorder %v1978_v59, 8.507059e+37  ;;  %v11305_v6 = vadd.f32 %v1523_v52, %v9322_v47 }
 0x43c   : > { %v8136_v19 = vpop.eup %8135  ;;  %v1977_v31 = vsel %vm1976_vm13, %v8132_v11, %v1973_v25  ;;  %v1985_v49 = vmul.f32 %v8134_v41, %v11268_v48  ;;  %vm574_vm12 = vcmp.ge.s32.totalorder %v11153_v30, %v14037_v44  ;;  %vm601_vm11 = vcmp.lt.s32.totalorder %v11153_v30, %v14038_v26 }
 0x43d   : > { %v2196_v0 = vadd.f32 -0.28449672, %v2172_v13  ;;  %v11311_v20 = vsel %vm1979_vm9, %v1981_v40, %v1977_v31  ;;  %v2317_v15 = vmul.f32 %v2293_v28, %v11228_v34  ;;  %v11314_v57 = vadd.f32 1.0, %v1671_v37  ;;  %v14075_v37 = vld [vmem:[#allocation55_spill] sm:$0xff]  ;;  %vm625_vm13 = vmand %vm574_vm12, %vm601_vm11 }
 0x43e   : > { %v2435_v11 = vmul.f32 %v2411_v36, %v11164_v32  ;;  %v2077_v16 = vmul.f32 1.0614054, %v11311_v20  ;;  %v1986_v14 = vsub.f32 1.0, %v1985_v49  ;;  %v11318_v59 = vadd.f32 %v3783_v43, %v3623_v42 }
 0x43f   : > { %v2220_v21 = vmul.f32 %v2196_v0, %v11265_v55  ;;  %v1993_v52 = vand.u32 2147483647, %v11268_v48  ;;  %v1995_v56 = vand.u32 2147483648, %v11268_v48  ;;  %8137 = vrcp.f32 %v11314_v57 }
 0x440   : > { %v2101_v31 = vadd.f32 -1.4531521, %v2077_v16  ;;  %v1987_v25 = vmul.f32 %v8134_v41, %v1986_v14  ;;  %vm1990_vm14 = vweird.f32 %v8134_v41  ;;  %v11325_v34 = vmul.f32 0.70710677, %v11305_v6 }
 0x441   : > { %v2244_v32 = vadd.f32 0.2548296, %v2220_v21  ;;  %v2359_v28 = vmul.f32 1.442695, %v2317_v15  ;;  %v11328_v36 = vmul.f32 0.5, %v11242_v12  ;;  %v14074_v42 = vunpack.c.h.bf16 %v11107_v45 }
 0x442   : > { %v2125_v13 = vmul.f32 %v2101_v31, %v11311_v20  ;;  %v1988_v40 = vadd.f32 %v8134_v41, %v1987_v25  ;;  %vm1989_vm15 = vweird.f32 %v11268_v48  ;;  %v4407_v49 = vunpack.c.l.bf16 %v14075_v37 }
 0x443   : > { %v11332_v43 = vmul.f32 %v14074_v42, %v4406_v5  ;;  %v2459_v0 = vadd.f32 1.0, %v2435_v11  ;;  %vm575_vm1 = vcmp.ge.s32.totalorder %v11223_v50, %v14037_v44  ;;  %vm602_vm5 = vcmp.lt.s32.totalorder %v11223_v50, %v14038_v26  ;;  %vm1991_vm6 = vmor %vm1989_vm15, %vm1990_vm14 }
 0x444   : > { %v2268_v12 = vmul.f32 %v2244_v32, %v11265_v55  ;;  %v1996_v45 = vor.u32 1.1754944e-38, %v1995_v56  ;;  %v2294_v5 = vsub.f32 0.0, %v11259_v38  ;;  %v2149_v15 = vadd.f32 1.4214138, %v2125_v13  ;;  %vm626_vm14 = vmand %vm575_vm1, %vm602_vm5 }
 0x445   : > { %v1992_v16 = vsel %vm1991_vm6, %v8134_v41, %v1988_v40  ;;  %vm1994_vm7 = vcmp.eq.f32.partialorder %v1993_v52, 8.507059e+37  ;;  %v11344_v48 = vand.u32 2147483647, %v11325_v34  ;;  %v8138_v14 = vpop.eup %8137  ;;  %8139 = vpow2.f32 %v2359_v28 }
 0x446   : > { %v2388_v11 = vmul.f32 %v8136_v19, %v2268_v12  ;;  %vm1598_vm8 = vcmp.ge.f32.partialorder %v11251_v29, 0.0  ;;  %v11347_v21 = vsel %vm1994_vm7, %v1996_v45, %v1992_v16  ;;  %v2173_v31 = vmul.f32 %v2149_v15, %v11311_v20 }
 0x447   : > { %v2078_v55 = vmul.f32 1.0614054, %v11347_v21  ;;  %v2000_v56 = vmul.f32 %v8138_v14, %v11314_v57  ;;  %v4466_v41 = vpack.c.bf16 %v11332_v43, %v11332_v43  ;;  %v2483_v52 = vmul.f32 %v2459_v0, %v11161_v33 }
 0x448   : > { %v2412_v25 = vsub.f32 1.0, %v2388_v11  ;;  %v2318_v32 = vmul.f32 %v2294_v5, %v11259_v38  ;;  %v1672_v19 = vmul.f32 0.3275911, %v11344_v48  ;;  %v2197_v28 = vadd.f32 -0.28449672, %v2173_v31 }
 0x449   : > { %v2102_v42 = vadd.f32 -1.4531521, %v2078_v55  ;;  %v2001_v13 = vsub.f32 1.0, %v2000_v56  ;;  %v14076_v40 = vunpack.c.l.bf16 %v11277_v3  ;;  %v2008_v37 = vand.u32 2147483647, %v11314_v57 }
 0x44a   : > { %v2436_v33 = vmul.f32 %v2412_v25, %v11245_v24  ;;  %v2010_v38 = vand.u32 2147483648, %v11314_v57  ;;  %v11368_v0 = vadd.f32 1.0, %v1672_v19  ;;  %v2221_v12 = vmul.f32 %v2197_v28, %v11311_v20 }
 0x44b   : > { %v4447_v43 = vmul.f32 %v14076_v40, %v4407_v49  ;;  %v2126_v45 = vmul.f32 %v2102_v42, %v11347_v21  ;;  %v2002_v5 = vmul.f32 %v8138_v14, %v2001_v13  ;;  %vm2005_vm9 = vweird.f32 %v8138_v14  ;;  %v8140_v15 = vpop.eup %8139 }
 0x44c   : > { %v2555_v16 = vsel %vm625_vm13, %v2483_v52, 0.0  ;;  %v2460_v11 = vadd.f32 1.0, %v2436_v33  ;;  %v2361_v31 = vmul.f32 1.442695, %v2318_v32  ;;  %8141 = vrcp.f32 %v11368_v0 }
 0x44d   : > { %v2245_v49 = vadd.f32 0.2548296, %v2221_v12  ;;  %v2150_v24 = vadd.f32 1.4214138, %v2126_v45  ;;  %v2003_v55 = vadd.f32 %v8138_v14, %v2002_v5  ;;  %vm2004_vm12 = vweird.f32 %v11314_v57  ;;  %v14078_v5 = vld [vmem:[#allocation57_spill] sm:$0xff] }
 0x44e   : > { %v2484_v56 = vmul.f32 %v2460_v11, %v11225_v7  ;;  %v11378_v25 = vsel %vm1598_vm8, 1.0, %v13950_v27  ;;  %vm2006_vm11 = vmor %vm2004_vm12, %vm2005_vm9  ;;  %v2011_v19 = vor.u32 1.1754944e-38, %v2010_v38  ;;  %v2295_v52 = vsub.f32 0.0, %v11294_v61 }
 0x44f   : > { %v2269_v57 = vmul.f32 %v2245_v49, %v11311_v20  ;;  %v2174_v7 = vmul.f32 %v2150_v24, %v11347_v21  ;;  %v2007_v32 = vsel %vm2006_vm11, %v8138_v14, %v2003_v55  ;;  %vm2009_vm15 = vcmp.eq.f32.partialorder %v2008_v37, 8.507059e+37 }
 0x450   : > { %v2579_v29 = vpack.c.bf16 %v2555_v16, %v2555_v16  ;;  %v11389_v28 = vsel %vm2009_vm15, %v2011_v19, %v2007_v32  ;;  %v11391_v42 = vunpack.c.l.bf16 %v4466_v41  ;;  %v4467_v13 = vpack.c.bf16 %v4447_v43, %v4447_v43  ;;  %v11407_v16 = vld [vmem:[#allocation3 + $0x28] sm:$0xff]  }
 0x451   : > { %v2198_v40 = vadd.f32 -0.28449672, %v2174_v7  ;;  %8143 = vpow2.f32 %v2361_v31  ;;  %v11394_v33 = vmul.f32 0.5, %v11271_v22  ;;  %vm1599_vm6 = vcmp.ge.f32.partialorder %v11285_v35, 0.0 }
 0x452   : > { %v11397_v38 = vpop.eup %8141  ;;  %v2556_v20 = vsel %vm626_vm14, %v2484_v56, 0.0  ;;  %v2389_v12 = vmul.f32 %v8140_v15, %v2269_v57  ;;  %v2079_v14 = vmul.f32 1.0614054, %v11389_v28  ;;  %v7829_v37 = vunpack.c.h.bf16 %v11277_v3 }
 0x453   : > { %v11402_v45 = vadd.s32 152, %v9561_v18  ;;  %v2222_v41 = vmul.f32 %v2198_v40, %v11347_v21  ;;  %v2319_v43 = vmul.f32 %v2295_v52, %v11294_v61  ;;  %v4408_v22 = vunpack.c.l.bf16 %v14078_v5 }
 0x454   : > { %v2630_v11 = vunpack.c.l.b16 %v2579_v29  ;;  %v11410_v31 = vadd.s32 144, %v9561_v18  ;;  %v2103_v15 = vadd.f32 -1.4531521, %v2079_v14  ;;  %v11412_v49 = vunpack.c.l.bf16 %v4467_v13 }
 0x455   : > { %14077 = vst [vmem:[#allocation52_spill] sm:$0xff] %v11402_v45  ;;  %v2580_v24 = vpack.c.bf16 %v2556_v20, %v2556_v20  ;;  %v2246_v3 = vadd.f32 0.2548296, %v2222_v41  ;;  %v11417_v55 = vsel %vm1599_vm6, 1.0, %v13950_v27  ;;  %v2015_v61 = vmul.f32 %v11397_v38, %v11368_v0 }
 0x456   : > { %14079 = vst [vmem:[#allocation75_spill] sm:$0xff] %v11410_v31  ;;  %v2413_v56 = vsub.f32 1.0, %v2389_v12  ;;  %v2127_v19 = vmul.f32 %v2103_v15, %v11389_v28  ;;  %v11423_v52 = vmul.f32 0.5, %v11305_v6  ;;  %v7832_v57 = vunpack.c.l.bf16 %v11407_v16 }
 0x457   : > { %v8144_v7 = vpop.eup %8143  ;;  %vm577_vm1 = vcmp.ge.s32.totalorder %v11402_v45, %v14037_v44  ;;  %v2270_v32 = vmul.f32 %v2246_v3, %v11347_v21  ;;  %v2363_v35 = vmul.f32 1.442695, %v2319_v43  ;;  %v4448_v29 = vmul.f32 %v7829_v37, %v4408_v22  ;;  %v4621_v22 = vpop.f32.mrf.mxu1 }
 0x458   : > { %vm576_vm5 = vcmp.ge.s32.totalorder %v11410_v31, %v14037_v44  ;;  %vm603_vm7 = vcmp.lt.s32.totalorder %v11410_v31, %v14038_v26  ;;  %v2151_v13 = vadd.f32 1.4214138, %v2127_v19  ;;  %vm1600_vm8 = vcmp.ge.f32.partialorder %v11325_v34, 0.0 }
 0x459   : > { %v2016_v6 = vsub.f32 1.0, %v2015_v61  ;;  %v2296_v40 = vsub.f32 0.0, %v11344_v48  ;;  %v2631_v20 = vunpack.c.l.b16 %v2580_v24  ;;  %vm604_vm13 = vcmp.lt.s32.totalorder %v11402_v45, %v14038_v26  ;;  %vm627_vm6 = vmand %vm576_vm5, %vm603_vm7 }
 0x45a   : > { %v2390_v12 = vmul.f32 %v8144_v7, %v2270_v32  ;;  %v2023_v21 = vand.u32 2147483647, %v11368_v0  ;;  %v2437_v14 = vmul.f32 %v2413_v56, %v11289_v63  ;;  %v2175_v37 = vmul.f32 %v2151_v13, %v11389_v28  ;;  %v14080_v63 = vld [vmem:[#allocation58_spill] sm:$0xff]  ;;  %vm11467_vm15 = vmand %vm577_vm1, %vm604_vm13 }
 0x45b   : > { %v2017_v41 = vmul.f32 %v11397_v38, %v2016_v6  ;;  %v2025_v43 = vand.u32 2147483648, %v11368_v0  ;;  %8145 = vpow2.f32 %v2363_v35  ;;  %v11443_v34 = vsel %vm1600_vm8, 1.0, %v13950_v27 }
 0x45c   : > { %v2414_v5 = vsub.f32 1.0, %v2390_v12  ;;  %vm2020_vm9 = vweird.f32 %v11397_v38  ;;  %v2320_v24 = vmul.f32 %v2296_v40, %v11344_v48  ;;  %v4468_v3 = vpack.c.bf16 %v4448_v29, %v4448_v29 }
 0x45d   : > { %v2018_v15 = vadd.f32 %v11397_v38, %v2017_v41  ;;  %v4409_v61 = vunpack.c.l.bf16 %v14080_v63  ;;  %v11449_v56 = vpack.c.b16 %v2631_v20, %v2630_v11  ;;  %vm2019_vm12 = vweird.f32 %v11368_v0 }
 0x45e   : > { %v2438_v19 = vmul.f32 %v2414_v5, %v11378_v25  ;;  %v11454_v7 = vadd.f32 %v4621_v22, %v11146_v54  ;;  %v2461_v32 = vadd.f32 1.0, %v2437_v14  ;;  %v2199_v35 = vadd.f32 -0.28449672, %v2175_v37  ;;  %vm2021_vm11 = vmor %vm2019_vm12, %vm2020_vm9 }
 0x45f   : > { %vm2024_vm14 = vcmp.eq.f32.partialorder %v2023_v21, 8.507059e+37  ;;  %v2026_v13 = vor.u32 1.1754944e-38, %v2025_v43  ;;  %v2022_v48 = vsel %vm2021_vm11, %v11397_v38, %v2018_v15  ;;  %v3954_v11 = vmul.f32 %v14031_v4, %v11202_v46 }
 0x460   : > { %14081 = vst [vmem:[#allocation51_spill] sm:$0xff] %v11454_v7  ;;  %v2462_v6 = vadd.f32 1.0, %v2438_v19  ;;  %v4692_v29 = vsel %vm747_vm2, %v11454_v7, 0.0  ;;  %v3861_v25 = vmul.f32 %v14030_v60, %v11210_v2  ;;  %v3862_v38 = vmul.f32 %v14030_v60, %v11212_v62 }
 0x461   : > { %v11471_v0 = vsel %vm2024_vm14, %v2026_v13, %v2022_v48  ;;  %4693 = vadd.xlane.f32.xlu2 %v4692_v29  ;;  %v11477_v40 = vunpack.c.l.bf16 %v4468_v3  ;;  %v8146_v20 = vpop.eup %8145  ;;  %v2707_v12 = vshrl.u32 %v11449_v56, 16  ;;  %v3952_v37 = vmul.f32 %v14031_v4, %v11210_v2  ;;  %v4623_v3 = vpop.f32.mrf.mxu1 }
 0x462   : > { %v2486_v21 = vmul.f32 %v2462_v6, %v11328_v36  ;;  %v2080_v14 = vmul.f32 1.0614054, %v11471_v0  ;;  %v2485_v41 = vmul.f32 %v2461_v32, %v11274_v10  ;;  %v2223_v43 = vmul.f32 %v2199_v35, %v11389_v28 }
 0x463   : > { %v3881_v5 = vpack.c.bf16 %v3861_v25, %v3861_v25  ;;  %v3953_v22 = vmul.f32 %v14031_v4, %v11212_v62  ;;  %v3982_v63 = vpack.c.bf16 %v3952_v37, %v3952_v37  ;;  %v3984_v10 = vpack.c.bf16 %v3954_v11, %v3954_v11 }
 0x464   : > { %v2558_v36 = vsel %vm11467_vm15, %v2486_v21, 0.0  ;;  %v2104_v15 = vadd.f32 -1.4531521, %v2080_v14  ;;  %v2365_v19 = vmul.f32 1.442695, %v2320_v24  ;;  %v11497_v32 = vadd.f32 %v4623_v3, %v11148_v8 }
 0x465   : > { %v3882_v35 = vpack.c.bf16 %v3862_v38, %v3862_v38  ;;  %v4449_v13 = vmul.f32 %v7832_v57, %v4409_v61  ;;  %v2709_v6 = vrot.slane %v2707_v12, 7  ;;  %v3983_v29 = vpack.c.bf16 %v3953_v22, %v3953_v22 }
 0x466   : > { %14084 = vst [vmem:[#allocation53_spill] sm:$0xff] %v11497_v32  ;;  %v2128_v48 = vmul.f32 %v2104_v15, %v11471_v0  ;;  %v4012_v25 = vunpack.c.l.bf16 %v3982_v63  ;;  %v2557_v31 = vsel %vm627_vm6, %v2485_v41, 0.0  ;;  %v2582_v54 = vpack.c.bf16 %v2558_v36, %v2558_v36 }
 0x467   : > { %v2247_v21 = vadd.f32 0.2548296, %v2223_v43  ;;  %v4695_v14 = vsel %vm747_vm2, %v11497_v32, 0.0  ;;  %v3901_v24 = vunpack.c.l.bf16 %v3881_v5  ;;  %v4013_v8 = vunpack.c.l.bf16 %v3983_v29 }
 0x468   : > { %v2152_v11 = vadd.f32 1.4214138, %v2128_v48  ;;  %4696 = vadd.xlane.f32.xlu0 %v4695_v14  ;;  %v4014_v37 = vunpack.c.l.bf16 %v3984_v10  ;;  %v3902_v38 = vunpack.c.l.bf16 %v3882_v35  ;;  %v4082_v3 = vrot.slane %v4012_v25, 1 }
 0x469   : > { %v4164_v57 = vmul.f32 %v14032_v17, %v11210_v2  ;;  %v4165_v61 = vmul.f32 %v14032_v17, %v11212_v62  ;;  %v2710_v12 = vshll.u32 %v11449_v56, 16  ;;  %v2581_v41 = vpack.c.bf16 %v2557_v31, %v2557_v31  ;;  %v4626_v45 = vpop.f32.mrf.mxu1 }
 0x46a   : > { %v2176_v43 = vmul.f32 %v2152_v11, %v11471_v0  ;;  %v4083_v22 = vrot.slane %v4013_v8, 1  ;;  %v2271_v36 = vmul.f32 %v2247_v21, %v11389_v28  ;;  %v4166_v5 = vmul.f32 %v14032_v17, %v11202_v46 }
 0x46b   : > { %v4194_v15 = vpack.c.bf16 %v4164_v57, %v4164_v57  ;;  %v4469_v63 = vpack.c.bf16 %v4449_v13, %v4449_v13  ;;  %v2712_v10 = vor.u32 %v2710_v12, %v2709_v6  ;;  %v2633_v35 = vunpack.c.l.b16 %v2582_v54 }
 0x46c   : > { %v3921_v48 = vadd.f32 %v3901_v24, %v11301_v1  ;;  %v4085_v29 = vrot.slane %v4014_v37, 1  ;;  %v2200_v25 = vadd.f32 -0.28449672, %v2176_v43  ;;  %v3922_v14 = vadd.f32 %v3902_v38, %v11318_v59 }
 0x46d   : > { %v4084_v31 = vsel %vm3025_vm10, %v4082_v3, %v4083_v22  ;;  %v4195_v56 = vpack.c.bf16 %v4165_v61, %v4165_v61  ;;  %v2632_v11 = vunpack.c.l.b16 %v2581_v41  ;;  %v4196_v28 = vpack.c.bf16 %v4166_v5, %v4166_v5 }
 0x46e   : > { %v4086_v8 = vsel %vm3025_vm10, %v4083_v22, %v4085_v29  ;;  %v4224_v21 = vunpack.c.l.bf16 %v4194_v15  ;;  %v2391_v30 = vmul.f32 %v8146_v20, %v2271_v36  ;;  %8147 = vpow2.f32 %v2365_v19 }
 0x46f   : > { %v4225_v13 = vunpack.c.l.bf16 %v4195_v56  ;;  %v11518_v54 = vadd.f32 %v4626_v45, %v11150_v39  ;;  %v2781_v1 = vsel %vm9780_vm0, %v2709_v6, 0  ;;  %v11522_v24 = vpack.c.b16 %v2633_v35, %v2632_v11  ;;  %v14086_v56 = vld [vmem:[#allocation86_spill] sm:$0xff] }
 0x470   : > { %v4137_v59 = vadd.f32 %v4084_v31, %v3921_v48  ;;  %v4226_v37 = vunpack.c.l.bf16 %v4196_v28  ;;  %v2224_v38 = vmul.f32 %v2200_v25, %v11471_v0  ;;  %v4138_v3 = vadd.f32 %v4086_v8, %v3922_v14 }
 0x471   : > { %14085 = vst [vmem:[#allocation47_spill] sm:$0xff] %v11518_v54  ;;  %v4294_v57 = vrot.slane %v4224_v21, 2  ;;  %v4295_v61 = vrot.slane %v4225_v13, 2  ;;  %v2769_v20 = vsel %vm9780_vm0, 0, %v2712_v10  ;;  %v11528_v19 = vadd.s32 160, %v9561_v18  ;;  %v4628_v14 = vpop.f32.mrf.mxu1  ;;  %v14088_v13 = vld [vmem:[#allocation96_spill] sm:$0xff] }
 0x472   : > { %v4297_v39 = vrot.slane %v4226_v37, 2  ;;  %v11530_v45 = vunpack.c.l.bf16 %v4469_v63  ;;  %v2415_v12 = vsub.f32 1.0, %v2391_v30  ;;  %v11533_v6 = vadd.s32 168, %v9561_v18 }
 0x473   : > { %v4296_v41 = vsel %vm3238_vm3, %v4294_v57, %v4295_v61  ;;  %v4698_v43 = vsel %vm747_vm2, %v11518_v54, 0.0  ;;  %v11538_v22 = vunpack.c.l.bf16 %v2781_v1  ;;  %v2714_v36 = vshrl.u32 %v11522_v24, 16 }
 0x474   : > { %v4298_v5 = vsel %vm3238_vm3, %v4295_v61, %v4297_v39  ;;  %v4349_v15 = vadd.f32 %v4296_v41, %v4137_v59  ;;  %4699 = vadd.xlane.f32.xlu1 %v4698_v43  ;;  %v8148_v10 = vpop.eup %8147  ;;  %v11542_v63 = vunpack.c.l.bf16 %v2769_v20  ;;  %v2248_v30 = vadd.f32 0.2548296, %v2224_v38 }
 0x475   : > { %v4350_v35 = vadd.f32 %v4298_v5, %v4138_v3  ;;  %v2923_v48 = vmul.f32 %v14066_v9, %v10951_v58  ;;  %v11546_v29 = vunpack.c.h.bf16 %v2769_v20  ;;  %v2822_v31 = vmul.f32 %v10951_v58, %v14068_v53 }
 0x476   : > { %v4370_v25 = vadd.f32 %v10170_v51, %v4349_v15  ;;  %v2924_v11 = vmul.f32 %v14066_v9, %v14086_v56  ;;  %v2439_v8 = vmul.f32 %v2415_v12, %v11417_v55  ;;  %v11556_v21 = vadd.f32 %v4628_v14, %v11391_v42 }
 0x477   : > { %v4371_v28 = vadd.f32 %v10170_v51, %v4350_v35  ;;  %v2925_v1 = vmul.f32 %v14088_v13, %v14066_v9  ;;  %v2716_v59 = vrot.slane %v2714_v36, 7  ;;  %v2823_v38 = vmul.f32 %v14086_v56, %v14068_v53  ;;  %v14089_v36 = vld [vmem:[#allocation70_spill] sm:$0xff] }
 0x478   : > { %14087 = vst [vmem:[#allocation80_spill] sm:$0xff] %v11556_v21  ;;  %v4511_v37 = vpack.c.bf16 %v4370_v25, %v4370_v25  ;;  %v2953_v3 = vpack.c.bf16 %v2923_v48, %v2923_v48  ;;  %v2272_v57 = vmul.f32 %v2248_v30, %v11471_v0  ;;  %v4701_v55 = vsel %vm747_vm2, %v11556_v21, 0.0 }
 0x479   : > { %v4512_v61 = vpack.c.bf16 %v4371_v28, %v4371_v28  ;;  %v2954_v20 = vpack.c.bf16 %v2924_v11, %v2924_v11  ;;  %4702 = vadd.xlane.f32.xlu2 %v4701_v55  ;;  %v2842_v42 = vpack.c.bf16 %v2822_v31, %v2822_v31  ;;  %v2955_v12 = vpack.c.bf16 %v2925_v1, %v2925_v1 }
 0x47a   : > { %v4552_v39 = vunpack.c.l.b16 %v4511_v37  ;;  %v2983_v41 = vunpack.c.l.bf16 %v2953_v3  ;;  %v3136_v15 = vmul.f32 %v14089_v36, %v10951_v58  ;;  %v3137_v35 = vmul.f32 %v14089_v36, %v14086_v56 }
 0x47b   : > { %v4553_v43 = vunpack.c.l.b16 %v4512_v61  ;;  %v2984_v5 = vunpack.c.l.bf16 %v2954_v20  ;;  %v2843_v48 = vpack.c.bf16 %v2823_v38, %v2823_v38  ;;  %v2985_v0 = vunpack.c.l.bf16 %v2955_v12  ;;  %v14090_v61 = vld [vmem:[#allocation81_spill] sm:$0xff] }
 0x47c   : > { %v3056_v30 = vrot.slane %v2983_v41, 1  ;;  %v3138_v25 = vmul.f32 %v14089_v36, %v14088_v13  ;;  %v3166_v28 = vpack.c.bf16 %v3136_v15, %v3136_v15  ;;  %v3167_v31 = vpack.c.bf16 %v3137_v35, %v3137_v35 }
 0x47d   : > { %v4567_v14 = vpack.c.b16 %v4553_v43, %v4552_v39  ;;  %v3057_v11 = vrot.slane %v2984_v5, 1  ;;  %v2717_v1 = vshll.u32 %v11522_v24, 16  ;;  %v3059_v37 = vrot.slane %v2985_v0, 1  ;;  %v14091_v0 = vld [vmem:[#allocation72_spill] sm:$0xff] }
 0x47e   : > { %v3168_v3 = vpack.c.bf16 %v3138_v25, %v3138_v25  ;;  %v3348_v58 = vmul.f32 %v14090_v61, %v11210_v2  ;;  %v2392_v55 = vmul.f32 %v8148_v10, %v2272_v57  ;;  %v3196_v38 = vunpack.c.l.bf16 %v3166_v28 }
 0x47f   : > { %7728 = vmatmul.msk.bf16.gmra.mxu1 %vm4572_vm4, %v4567_v14  ;;  %v3058_v56 = vsel %vm3025_vm10, %v3056_v30, %v3057_v11  ;;  %v3197_v20 = vunpack.c.l.bf16 %v3167_v31  ;;  %v2862_v12 = vunpack.c.l.bf16 %v2842_v42  ;;  %v3060_v13 = vsel %vm3025_vm10, %v3057_v11, %v3059_v37 }
 0x480   : > { %v3198_v39 = vunpack.c.l.bf16 %v3168_v3  ;;  %v3349_v41 = vmul.f32 %v14090_v61, %v11212_v62  ;;  %v2782_v24 = vsel %vm9780_vm0, %v2716_v59, 0  ;;  %v2863_v43 = vunpack.c.l.bf16 %v2843_v48 }
 0x481   : > { %v3269_v5 = vrot.slane %v3196_v38, 2  ;;  %v3270_v15 = vrot.slane %v3197_v20, 2  ;;  %v3108_v10 = vadd.f32 %v3058_v56, %v2862_v12  ;;  %v3368_v57 = vpack.c.bf16 %v3348_v58, %v3348_v58 }
 0x482   : > { %v3369_v35 = vpack.c.bf16 %v3349_v41, %v3349_v41  ;;  %v3440_v30 = vmul.f32 %v14091_v0, %v11210_v2  ;;  %v3109_v25 = vadd.f32 %v3060_v13, %v2863_v43  ;;  %v3272_v42 = vrot.slane %v3198_v39, 2  ;;  %v14092_v39 = vld [vmem:[#allocation82_spill] sm:$0xff] }
 0x483   : > { %v3441_v14 = vmul.f32 %v14091_v0, %v11212_v62  ;;  %v3442_v11 = vmul.f32 %v14091_v0, %v11202_v46  ;;  %v2719_v28 = vor.u32 %v2717_v1, %v2716_v59  ;;  %v11587_v31 = vunpack.c.l.bf16 %v2782_v24 }
 0x484   : > { %v11589_v48 = vadd.f32 1.0, %v2439_v8  ;;  %v2416_v37 = vsub.f32 1.0, %v2392_v55  ;;  %v3271_v3 = vsel %vm3238_vm3, %v3269_v5, %v3270_v15  ;;  %v3273_v58 = vsel %vm3238_vm3, %v3270_v15, %v3272_v42 }
 0x485   : > { %v3388_v56 = vunpack.c.l.bf16 %v3368_v57  ;;  %v3470_v38 = vpack.c.bf16 %v3440_v30, %v3440_v30  ;;  %v3389_v20 = vunpack.c.l.bf16 %v3369_v35  ;;  %v3471_v12 = vpack.c.bf16 %v3441_v14, %v3441_v14  ;;  %v4688_v57 = vpop.xlane.xlu0 %4687 }
 0x486   : > { %v3472_v13 = vpack.c.bf16 %v3442_v11, %v3442_v11  ;;  %v3652_v41 = vmul.f32 %v14092_v39, %v11210_v2  ;;  %v3321_v43 = vadd.f32 %v3271_v3, %v3108_v10  ;;  %v3322_v50 = vadd.f32 %v3273_v58, %v3109_v25  ;;  %v4631_v3 = vpop.f32.mrf.mxu1 }
 0x487   : > { %v3500_v59 = vunpack.c.l.bf16 %v3470_v38  ;;  %v3653_v8 = vmul.f32 %v14092_v39, %v11212_v62  ;;  %v3501_v1 = vunpack.c.l.bf16 %v3471_v12  ;;  %v3654_v24 = vmul.f32 %v14092_v39, %v11202_v46 }
 0x488   : > { %v3502_v55 = vunpack.c.l.bf16 %v3472_v13  ;;  %v3682_v5 = vpack.c.bf16 %v3652_v41, %v3652_v41  ;;  %v2770_v15 = vsel %vm9780_vm0, 0, %v2719_v28  ;;  %v3408_v35 = vadd.f32 %v3388_v56, %v3321_v43  ;;  %v14093_v28 = vld [vmem:[#allocation46_spill] sm:$0xff] }
 0x489   : > { %v3572_v30 = vrot.slane %v3500_v59, 1  ;;  %v3683_v42 = vpack.c.bf16 %v3653_v8, %v3653_v8  ;;  %v2440_v10 = vmul.f32 %v2416_v37, %v11443_v34  ;;  %v3409_v25 = vadd.f32 %v3389_v20, %v3322_v50 }
 0x48a   : > { %v3573_v14 = vrot.slane %v3501_v1, 1  ;;  %v3684_v11 = vpack.c.bf16 %v3654_v24, %v3654_v24  ;;  %v3575_v58 = vrot.slane %v3502_v55, 1  ;;  %v3712_v38 = vunpack.c.l.bf16 %v3682_v5 }
 0x48b   : > { %v3713_v12 = vunpack.c.l.bf16 %v3683_v42  ;;  %v3863_v13 = vmul.f32 %v14030_v60, %v11542_v63  ;;  %v11604_v41 = vunpack.c.l.bf16 %v2770_v15  ;;  %v11606_v21 = vunpack.c.h.bf16 %v2770_v15 }
 0x48c   : > { %v4746_v56 = vmul.f32 %v4688_v57, %v14093_v28  ;;  %v3574_v43 = vsel %vm3025_vm10, %v3572_v30, %v3573_v14  ;;  %v3576_v34 = vsel %vm3025_vm10, %v3573_v14, %v3575_v58  ;;  %v3714_v37 = vunpack.c.l.bf16 %v3684_v11 }
 0x48d   : > { %v3624_v50 = vadd.f32 %v3574_v43, %v3408_v35  ;;  %v3784_v20 = vrot.slane %v3712_v38, 2  ;;  %v2464_v59 = vadd.f32 1.0, %v2440_v10  ;;  %v3625_v8 = vadd.f32 %v3576_v34, %v3409_v25 }
 0x48e   : > { %v3785_v1 = vrot.slane %v3713_v12, 2  ;;  %v3864_v55 = vmul.f32 %v14030_v60, %v11546_v29  ;;  %v3787_v24 = vrot.slane %v3714_v37, 2  ;;  %v3883_v5 = vpack.c.bf16 %v3863_v13, %v3863_v13 }
 0x48f   : > { %v3955_v15 = vmul.f32 %v14031_v4, %v11542_v63  ;;  %v3956_v57 = vmul.f32 %v14031_v4, %v11546_v29  ;;  %v3957_v35 = vmul.f32 %v14031_v4, %v11538_v22  ;;  %v4167_v10 = vmul.f32 %v14032_v17, %v11542_v63 }
 0x490   : > { %v3786_v30 = vsel %vm3238_vm3, %v3784_v20, %v3785_v1  ;;  %v3884_v42 = vpack.c.bf16 %v3864_v55, %v3864_v55  ;;  %v3788_v25 = vsel %vm3238_vm3, %v3785_v1, %v3787_v24  ;;  %v3903_v11 = vunpack.c.l.bf16 %v3883_v5  ;;  %v4633_v1 = vpop.f32.mrf.mxu1 }
 0x491   : > { %v3836_v14 = vadd.f32 %v3786_v30, %v3624_v50  ;;  %v3985_v58 = vpack.c.bf16 %v3955_v15, %v3955_v15  ;;  %v3837_v38 = vadd.f32 %v3788_v25, %v3625_v8  ;;  %v3986_v13 = vpack.c.bf16 %v3956_v57, %v3956_v57  ;;  %v14094_v15 = vld [vmem:[#allocation87_spill] sm:$0xff] }
 0x492   : > { %v3904_v12 = vunpack.c.l.bf16 %v3884_v42  ;;  %v3987_v43 = vpack.c.bf16 %v3957_v35, %v3957_v35  ;;  %v4168_v20 = vmul.f32 %v14032_v17, %v11546_v29  ;;  %v4169_v55 = vmul.f32 %v14032_v17, %v11538_v22 }
 0x493   : > { %v3923_v34 = vadd.f32 %v3903_v11, %v3836_v14  ;;  %v4015_v37 = vunpack.c.l.bf16 %v3985_v58  ;;  %v4016_v32 = vunpack.c.l.bf16 %v3986_v13  ;;  %v4197_v18 = vpack.c.bf16 %v4167_v10, %v4167_v10 }
 0x494   : > { %v3924_v54 = vadd.f32 %v3904_v12, %v3837_v38  ;;  %v4017_v7 = vunpack.c.l.bf16 %v3987_v43  ;;  %v4198_v24 = vpack.c.bf16 %v4168_v20, %v4168_v20  ;;  %v4199_v5 = vpack.c.bf16 %v4169_v55, %v4169_v55 }
 0x495   : > { %v4087_v50 = vrot.slane %v4015_v37, 1  ;;  %v11628_v8 = vadd.f32 %v4631_v3, %v11412_v49  ;;  %v11631_v57 = vsub.f32 %v14094_v15, %v4746_v56  ;;  %v4088_v30 = vrot.slane %v4016_v32, 1 }
 0x496   : > { %v4090_v42 = vrot.slane %v4017_v7, 1  ;;  %v4227_v35 = vunpack.c.l.bf16 %v4197_v18  ;;  %v4228_v25 = vunpack.c.l.bf16 %v4198_v24  ;;  %v4229_v14 = vunpack.c.l.bf16 %v4199_v5 }
 0x497   : > { %v4704_v11 = vsel %vm747_vm2, %v11628_v8, 0.0  ;;  %v11636_v10 = vadd.f32 %v4633_v1, %v11477_v40  ;;  %v11639_v58 = vmul.f32 %v2464_v59, %v11423_v52  ;;  %v4089_v49 = vsel %vm3025_vm10, %v4087_v50, %v4088_v30 }
 0x498   : > { %v4091_v3 = vsel %vm3025_vm10, %v4088_v30, %v4090_v42  ;;  %v4299_v56 = vrot.slane %v4227_v35, 2  ;;  %4705 = vadd.xlane.f32.xlu0 %v4704_v11  ;;  %v4139_v32 = vadd.f32 %v4089_v49, %v3923_v34  ;;  %v4300_v18 = vrot.slane %v4228_v25, 2 }
 0x499   : > { %v4140_v7 = vadd.f32 %v4091_v3, %v3924_v54  ;;  %v4302_v38 = vrot.slane %v4229_v14, 2  ;;  %v4707_v12 = vsel %vm747_vm2, %v11636_v10, 0.0  ;;  %v2824_v40 = vmul.f32 %v11210_v2, %v14068_v53 }
 0x49a   : > { %v2825_v52 = vmul.f32 %v11212_v62, %v14068_v53  ;;  %v2926_v59 = vmul.f32 %v14066_v9, %v11210_v2  ;;  %v4301_v13 = vsel %vm3238_vm3, %v4299_v56, %v4300_v18  ;;  %4708 = vadd.xlane.f32.xlu1 %v4707_v12  ;;  %v2927_v54 = vmul.f32 %v14066_v9, %v11212_v62 }
 0x49b   : > { %v4303_v43 = vsel %vm3238_vm3, %v4300_v18, %v4302_v38  ;;  %v2928_v34 = vmul.f32 %v11202_v46, %v14066_v9  ;;  %v4351_v37 = vadd.f32 %v4301_v13, %v4139_v32  ;;  %v2844_v55 = vpack.c.bf16 %v2824_v40, %v2824_v40 }
 0x49c   : > { %v4352_v20 = vadd.f32 %v4303_v43, %v4140_v7  ;;  %v2845_v1 = vpack.c.bf16 %v2825_v52, %v2825_v52  ;;  %v2956_v50 = vpack.c.bf16 %v2926_v59, %v2926_v59  ;;  %v2957_v24 = vpack.c.bf16 %v2927_v54, %v2927_v54 }
 0x49d   : > { %v2958_v5 = vpack.c.bf16 %v2928_v34, %v2928_v34  ;;  %v3139_v15 = vmul.f32 %v14089_v36, %v11210_v2  ;;  %v4372_v30 = vadd.f32 %v10170_v51, %v4351_v37  ;;  %v2864_v35 = vunpack.c.l.bf16 %v2844_v55 }
 0x49e   : > { %v4373_v42 = vadd.f32 %v10170_v51, %v4352_v20  ;;  %v2865_v25 = vunpack.c.l.bf16 %v2845_v1  ;;  %v2986_v14 = vunpack.c.l.bf16 %v2956_v50  ;;  %v2987_v11 = vunpack.c.l.bf16 %v2957_v24 }
 0x49f   : > { %v2988_v49 = vunpack.c.l.bf16 %v2958_v5  ;;  %v3140_v3 = vmul.f32 %v14089_v36, %v11212_v62  ;;  %v4513_v56 = vpack.c.bf16 %v4372_v30, %v4372_v30  ;;  %v3141_v7 = vmul.f32 %v14089_v36, %v11202_v46 }
 0x4a0   : > { %v4514_v32 = vpack.c.bf16 %v4373_v42, %v4373_v42  ;;  %v3169_v18 = vpack.c.bf16 %v3139_v15, %v3139_v15  ;;  %v3061_v38 = vrot.slane %v2986_v14, 1  ;;  %v3062_v2 = vrot.slane %v2987_v11, 1 }
 0x4a1   : > { %v3064_v12 = vrot.slane %v2988_v49, 1  ;;  %v3170_v40 = vpack.c.bf16 %v3140_v3, %v3140_v3  ;;  %v4554_v52 = vunpack.c.l.b16 %v4513_v56  ;;  %v3171_v13 = vpack.c.bf16 %v3141_v7, %v3141_v7 }
 0x4a2   : > { %v4555_v59 = vunpack.c.l.b16 %v4514_v32  ;;  %v3199_v43 = vunpack.c.l.bf16 %v3169_v18  ;;  %v3063_v54 = vsel %vm3025_vm10, %v3061_v38, %v3062_v2  ;;  %v3350_v62 = vmul.f32 %v14090_v61, %v11542_v63 }
 0x4a3   : > { %v3065_v34 = vsel %vm3025_vm10, %v3062_v2, %v3064_v12  ;;  %v3200_v37 = vunpack.c.l.bf16 %v3170_v40  ;;  %v3110_v55 = vadd.f32 %v3063_v54, %v2864_v35  ;;  %v3201_v1 = vunpack.c.l.bf16 %v3171_v13 }
 0x4a4   : > { %v4568_v20 = vpack.c.b16 %v4555_v59, %v4554_v52  ;;  %v3111_v46 = vadd.f32 %v3065_v34, %v2865_v25  ;;  %v3274_v50 = vrot.slane %v3199_v43, 2  ;;  %v3351_v5 = vmul.f32 %v14090_v61, %v11546_v29 }
 0x4a5   : > { %v3275_v24 = vrot.slane %v3200_v37, 2  ;;  %v3370_v15 = vpack.c.bf16 %v3350_v62, %v3350_v62  ;;  %v3277_v30 = vrot.slane %v3201_v1, 2  ;;  %v3443_v42 = vmul.f32 %v14091_v0, %v11542_v63 }
 0x4a6   : > { %7729 = vmatmul.msk.bf16.gmra.mxu1 %vm4572_vm4, %v4568_v20  ;;  %v3444_v14 = vmul.f32 %v14091_v0, %v11546_v29  ;;  %v3445_v35 = vmul.f32 %v14091_v0, %v11538_v22  ;;  %v3371_v11 = vpack.c.bf16 %v3351_v5, %v3351_v5  ;;  %v3655_v3 = vmul.f32 %v14092_v39, %v11542_v63 }
 0x4a7   : > { %v3276_v25 = vsel %vm3238_vm3, %v3274_v50, %v3275_v24  ;;  %v3390_v49 = vunpack.c.l.bf16 %v3370_v15  ;;  %v3278_v56 = vsel %vm3238_vm3, %v3275_v24, %v3277_v30  ;;  %v3473_v7 = vpack.c.bf16 %v3443_v42, %v3443_v42 }
 0x4a8   : > { %v3323_v32 = vadd.f32 %v3276_v25, %v3110_v55  ;;  %v3474_v18 = vpack.c.bf16 %v3444_v14, %v3444_v14  ;;  %v3324_v38 = vadd.f32 %v3278_v56, %v3111_v46  ;;  %v3391_v2 = vunpack.c.l.bf16 %v3371_v11 }
 0x4a9   : > { %v3475_v12 = vpack.c.bf16 %v3445_v35, %v3445_v35  ;;  %v3656_v40 = vmul.f32 %v14092_v39, %v11546_v29  ;;  %v3503_v59 = vunpack.c.l.bf16 %v3473_v7  ;;  %v3657_v43 = vmul.f32 %v14092_v39, %v11538_v22 }
 0x4aa   : > { %v3410_v52 = vadd.f32 %v3390_v49, %v3323_v32  ;;  %v3504_v13 = vunpack.c.l.bf16 %v3474_v18  ;;  %vm579_vm1 = vcmp.ge.s32.totalorder %v11533_v6, %v14037_v44  ;;  %vm606_vm5 = vcmp.lt.s32.totalorder %v11533_v6, %v14038_v26  ;;  %v14097_v6 = vld [vmem:[#allocation59_spill] sm:$0xff] }
 0x4ab   : > { %v3411_v54 = vadd.f32 %v3391_v2, %v3324_v38  ;;  %v3505_v34 = vunpack.c.l.bf16 %v3475_v12  ;;  %v3685_v37 = vpack.c.bf16 %v3655_v3, %v3655_v3  ;;  %v3686_v62 = vpack.c.bf16 %v3656_v40, %v3656_v40  ;;  %vm630_vm13 = vmand %vm579_vm1, %vm606_vm5 }
 0x4ac   : > { %v3577_v20 = vrot.slane %v3503_v59, 1  ;;  %v3578_v55 = vrot.slane %v3504_v13, 1  ;;  %v3687_v46 = vpack.c.bf16 %v3657_v43, %v3657_v43  ;;  %v3865_v1 = vmul.f32 %v14030_v60, %v11604_v41 }
 0x4ad   : > { %vm578_vm7 = vcmp.ge.s32.totalorder %v11528_v19, %v14037_v44  ;;  %vm605_vm8 = vcmp.lt.s32.totalorder %v11528_v19, %v14038_v26  ;;  %v3580_v50 = vrot.slane %v3505_v34, 1  ;;  %v3715_v24 = vunpack.c.l.bf16 %v3685_v37 }
 0x4ae   : > { %v3716_v5 = vunpack.c.l.bf16 %v3686_v62  ;;  %v3866_v15 = vmul.f32 %v14030_v60, %v11606_v21  ;;  %v3579_v30 = vsel %vm3025_vm10, %v3577_v20, %v3578_v55  ;;  %v3717_v42 = vunpack.c.l.bf16 %v3687_v46  ;;  %v4636_v20 = vpop.f32.mrf.mxu1  ;;  %vm11733_vm9 = vmand %vm578_vm7, %vm605_vm8 }
 0x4af   : > { %v3885_v14 = vpack.c.bf16 %v3865_v1, %v3865_v1  ;;  %v3958_v35 = vmul.f32 %v14031_v4, %v11604_v41  ;;  %v3581_v25 = vsel %vm3025_vm10, %v3578_v55, %v3580_v50  ;;  %v3626_v11 = vadd.f32 %v3579_v30, %v3410_v52 }
 0x4b0   : > { %v3789_v49 = vrot.slane %v3715_v24, 2  ;;  %v3790_v3 = vrot.slane %v3716_v5, 2  ;;  %v3627_v56 = vadd.f32 %v3581_v25, %v3411_v54  ;;  %v3792_v32 = vrot.slane %v3717_v42, 2 }
 0x4b1   : > { %v3886_v7 = vpack.c.bf16 %v3866_v15, %v3866_v15  ;;  %v3905_v18 = vunpack.c.l.bf16 %v3885_v14  ;;  %v3959_v2 = vmul.f32 %v14031_v4, %v11606_v21  ;;  %v3960_v12 = vmul.f32 %v14031_v4, %v11587_v31 }
 0x4b2   : > { %v3791_v38 = vsel %vm3238_vm3, %v3789_v49, %v3790_v3  ;;  %v3988_v40 = vpack.c.bf16 %v3958_v35, %v3958_v35  ;;  %v3793_v59 = vsel %vm3238_vm3, %v3790_v3, %v3792_v32  ;;  %v4170_v52 = vmul.f32 %v14032_v17, %v11604_v41 }
 0x4b3   : > { %v3838_v13 = vadd.f32 %v3791_v38, %v3626_v11  ;;  %v3906_v43 = vunpack.c.l.bf16 %v3886_v7  ;;  %v3839_v54 = vadd.f32 %v3793_v59, %v3627_v56  ;;  %v3989_v34 = vpack.c.bf16 %v3959_v2, %v3959_v2 }
 0x4b4   : > { %v3990_v37 = vpack.c.bf16 %v3960_v12, %v3960_v12  ;;  %v4018_v62 = vunpack.c.l.bf16 %v3988_v40  ;;  %v4171_v46 = vmul.f32 %v14032_v17, %v11606_v21  ;;  %v4172_v1 = vmul.f32 %v14032_v17, %v11587_v31 }
 0x4b5   : > { %v3925_v55 = vadd.f32 %v3905_v18, %v3838_v13  ;;  %v4200_v50 = vpack.c.bf16 %v4170_v52, %v4170_v52  ;;  %v3926_v24 = vadd.f32 %v3906_v43, %v3839_v54  ;;  %v4019_v5 = vunpack.c.l.bf16 %v3989_v34 }
 0x4b6   : > { %v4020_v15 = vunpack.c.l.bf16 %v3990_v37  ;;  %v4092_v30 = vrot.slane %v4018_v62, 1  ;;  %v4201_v42 = vpack.c.bf16 %v4171_v46, %v4171_v46  ;;  %v4202_v14 = vpack.c.bf16 %v4172_v1, %v4172_v1 }
 0x4b7   : > { %v4230_v35 = vunpack.c.l.bf16 %v4200_v50  ;;  %v11721_v25 = vadd.f32 %v4636_v20, %v11530_v45  ;;  %v2487_v11 = vmul.f32 %v11589_v48, %v11394_v33  ;;  %v4093_v49 = vrot.slane %v4019_v5, 1  ;;  %v1526_v48 = vpop.f32.mrf.mxu3 }
 0x4b8   : > { %v4095_v3 = vrot.slane %v4020_v15, 1  ;;  %v4786_v56 = vmul.f32 %v11631_v57, %v11631_v57  ;;  %v4231_v45 = vunpack.c.l.bf16 %v4201_v42  ;;  %v4232_v32 = vunpack.c.l.bf16 %v4202_v14 }
 0x4b9   : > { %v4304_v7 = vrot.slane %v4230_v35, 2  ;;  %v4710_v33 = vsel %vm747_vm2, %v11721_v25, 0.0  ;;  %v2560_v18 = vsel %vm630_vm13, %v11639_v58, 0.0  ;;  %v4094_v38 = vsel %vm3025_vm10, %v4092_v30, %v4093_v49 }
 0x4ba   : > { %v4096_v2 = vsel %vm3025_vm10, %v4093_v49, %v4095_v3  ;;  %v4806_v12 = vsel %vm747_vm2, %v4786_v56, 0.0  ;;  %4711 = vadd.xlane.f32.xlu2 %v4710_v33  ;;  %v4141_v19 = vadd.f32 %v4094_v38, %v3925_v55  ;;  %v4305_v59 = vrot.slane %v4231_v45, 2 }
 0x4bb   : > { %v4142_v40 = vadd.f32 %v4096_v2, %v3926_v24  ;;  %v4307_v13 = vrot.slane %v4232_v32, 2  ;;  %4807 = vadd.xlane.f32.xlu1 %v4806_v12  ;;  %v2559_v43 = vsel %vm11733_vm9, %v2487_v11, 0.0  ;;  %v11746_v52 = vadd.f32 %v1526_v48, %v9322_v47 }
 0x4bc   : > { %v2584_v54 = vpack.c.bf16 %v2560_v18, %v2560_v18  ;;  %v4306_v58 = vsel %vm3238_vm3, %v4304_v7, %v4305_v59  ;;  %v2583_v55 = vpack.c.bf16 %v2559_v43, %v2559_v43  ;;  %v7833_v56 = vunpack.c.h.bf16 %v11407_v16 }
 0x4bd   : > { %v4308_v34 = vsel %vm3238_vm3, %v4305_v59, %v4307_v13  ;;  %v4353_v37 = vadd.f32 %v4306_v58, %v4141_v19  ;;  %v11751_v20 = vmul.f32 0.70710677, %v11746_v52  ;;  %v4410_v45 = vunpack.c.l.bf16 %v14097_v6 }
 0x4be   : > { %v4354_v62 = vadd.f32 %v4308_v34, %v4142_v40  ;;  %v2635_v24 = vunpack.c.l.b16 %v2584_v54  ;;  %v2634_v42 = vunpack.c.l.b16 %v2583_v55  ;;  %v2931_v38 = vmul.f32 %v11538_v22, %v14066_v9 }
 0x4bf   : > { %v4374_v46 = vadd.f32 %v10170_v51, %v4353_v37  ;;  %v11756_v50 = vand.u32 2147483647, %v11751_v20  ;;  %v4450_v33 = vmul.f32 %v7833_v56, %v4410_v45  ;;  %v3144_v45 = vmul.f32 %v14089_v36, %v11538_v22 }
 0x4c0   : > { %v4375_v1 = vadd.f32 %v10170_v51, %v4354_v62  ;;  %v2648_v49 = vpack.c.b16 %v2635_v24, %v2634_v42  ;;  %v2961_v43 = vpack.c.bf16 %v2931_v38, %v2931_v38  ;;  %v2929_v24 = vmul.f32 %v14066_v9, %v11542_v63 }
 0x4c1   : > { %v4515_v5 = vpack.c.bf16 %v4374_v46, %v4374_v46  ;;  %v1673_v30 = vmul.f32 0.3275911, %v11756_v50  ;;  %v4470_v19 = vpack.c.bf16 %v4450_v33, %v4450_v33  ;;  %v2826_v46 = vmul.f32 %v11542_v63, %v14068_v53 }
 0x4c2   : > { %v4516_v15 = vpack.c.bf16 %v4375_v1, %v4375_v1  ;;  %v2721_v32 = vshrl.u32 %v2648_v49, 16  ;;  %v2724_v2 = vshll.u32 %v2648_v49, 16  ;;  %v2827_v1 = vmul.f32 %v11546_v29, %v14068_v53 }
 0x4c3   : > { %v4556_v14 = vunpack.c.l.b16 %v4515_v5  ;;  %v1697_v11 = vadd.f32 1.0, %v1673_v30  ;;  %v11769_v37 = vunpack.c.l.bf16 %v4470_v19  ;;  %v2991_v30 = vunpack.c.l.bf16 %v2961_v43 }
 0x4c4   : > { %v4557_v35 = vunpack.c.l.b16 %v4516_v15  ;;  %v11762_v48 = vrot.slane %v2721_v32, 7  ;;  %v2930_v15 = vmul.f32 %v14066_v9, %v11546_v29  ;;  %v3142_v42 = vmul.f32 %v14089_v36, %v11542_v63 }
 0x4c5   : > { %8149 = vrcp.f32 %v1697_v11  ;;  %v2040_v40 = vand.u32 2147483648, %v1697_v11  ;;  %v2038_v16 = vand.u32 2147483647, %v1697_v11  ;;  %vm2034_vm11 = vweird.f32 %v1697_v11 }
 0x4c6   : > { %v4569_v3 = vpack.c.b16 %v4557_v35, %v4556_v14  ;;  %v2726_v59 = vor.u32 %v2724_v2, %v11762_v48  ;;  %v2783_v14 = vsel %vm9780_vm0, %v11762_v48, 0  ;;  %v2846_v35 = vpack.c.bf16 %v2826_v46, %v2826_v46 }
 0x4c7   : > { %v2041_v58 = vor.u32 1.1754944e-38, %v2040_v40  ;;  %vm2039_vm15 = vcmp.eq.f32.partialorder %v2038_v16, 8.507059e+37  ;;  %v3143_v49 = vmul.f32 %v14089_v36, %v11546_v29  ;;  %v2847_v56 = vpack.c.bf16 %v2827_v1, %v2827_v1 }
 0x4c8   : > { %7730 = vmatmul.msk.bf16.gmra.mxu1 %vm4572_vm4, %v4569_v3  ;;  %v2771_v34 = vsel %vm9780_vm0, 0, %v2726_v59  ;;  %v2960_v6 = vpack.c.bf16 %v2930_v15, %v2930_v15  ;;  %v3069_v33 = vrot.slane %v2991_v30, 1  ;;  %v3172_v63 = vpack.c.bf16 %v3142_v42, %v3142_v42 }
 0x4c9   : > { %v11791_v32 = vunpack.c.l.bf16 %v2771_v34  ;;  %v3173_v2 = vpack.c.bf16 %v3143_v49, %v3143_v49  ;;  %v3352_v29 = vmul.f32 %v14090_v61, %v11604_v41  ;;  %v3353_v59 = vmul.f32 %v14090_v61, %v11606_v21 }
 0x4ca   : > { %v2990_v38 = vunpack.c.l.bf16 %v2960_v6  ;;  %v3202_v40 = vunpack.c.l.bf16 %v3172_v63  ;;  %v2867_v16 = vunpack.c.l.bf16 %v2847_v56  ;;  %v3446_v1 = vmul.f32 %v14091_v0, %v11604_v41 }
 0x4cb   : > { %v8150_v7 = vpop.eup %8149  ;;  %v3372_v46 = vpack.c.bf16 %v3352_v29, %v3352_v29  ;;  %v3373_v30 = vpack.c.bf16 %v3353_v59, %v3353_v59  ;;  %v11802_v42 = vunpack.c.h.bf16 %v2771_v34  ;;  %v3659_v59 = vmul.f32 %v14092_v39, %v11606_v21 }
 0x4cc   : > { %v2030_v18 = vmul.f32 %v8150_v7, %v1697_v11  ;;  %vm2035_vm12 = vweird.f32 %v8150_v7  ;;  %v2959_v11 = vpack.c.bf16 %v2929_v24, %v2929_v24  ;;  %v3067_v43 = vrot.slane %v2990_v38, 1 }
 0x4cd   : > { %vm2036_vm14 = vmor %vm2034_vm11, %vm2035_vm12  ;;  %v3392_v6 = vunpack.c.l.bf16 %v3372_v46  ;;  %v3476_v38 = vpack.c.bf16 %v3446_v1, %v3446_v1  ;;  %v3689_v46 = vpack.c.bf16 %v3659_v59, %v3659_v59  ;;  %v3962_v48 = vmul.f32 %v14031_v4, %v11802_v42 }
 0x4ce   : > { %v2031_v12 = vsub.f32 1.0, %v2030_v18  ;;  %v2866_v18 = vunpack.c.l.bf16 %v2846_v35  ;;  %vm1601_vm6 = vcmp.ge.f32.partialorder %v11751_v20, 0.0 }
 0x4cf   : > { %v3506_v29 = vunpack.c.l.bf16 %v3476_v38 }
 0x4d0   : > { %v2032_v13 = vmul.f32 %v8150_v7, %v2031_v12  ;;  %v3174_v12 = vpack.c.bf16 %v3144_v45, %v3144_v45  ;;  %v3447_v45 = vmul.f32 %v14091_v0, %v11606_v21 }
 0x4d2   : > { %v2033_v54 = vadd.f32 %v8150_v7, %v2032_v13  ;;  %v4691_v13 = vpop.xlane.xlu1 %4690 }
 0x4d3   : > { %v4747_v35 = vmul.f32 %v4691_v13, %v14093_v28 }
 0x4d4   : > { %v2037_v62 = vsel %vm2036_vm14, %v8150_v7, %v2033_v54  ;;  %v2989_v7 = vunpack.c.l.bf16 %v2959_v11  ;;  %v3203_v54 = vunpack.c.l.bf16 %v3173_v2  ;;  %v2297_v11 = vsub.f32 0.0, %v11756_v50 }
 0x4d5   : > { %v11771_v55 = vsel %vm2039_vm15, %v2041_v58, %v2037_v62  ;;  %v3204_v58 = vunpack.c.l.bf16 %v3174_v12  ;;  %v3279_v62 = vrot.slane %v3202_v40, 2  ;;  %v3393_v2 = vunpack.c.l.bf16 %v3373_v30  ;;  %v4638_v30 = vpop.f32.mrf.mxu1 }
 0x4d6   : > { %v2081_v5 = vmul.f32 1.0614054, %v11771_v55  ;;  %v3066_v19 = vrot.slane %v2989_v7, 1  ;;  %v3280_v15 = vrot.slane %v3203_v54, 2  ;;  %v3477_v12 = vpack.c.bf16 %v3447_v45, %v3447_v45 }
 0x4d7   : > { %v3282_v63 = vrot.slane %v3204_v58, 2  ;;  %v3582_v58 = vrot.slane %v3506_v29, 1  ;;  %v11835_v29 = vadd.f32 %v4638_v30, %v11769_v37 }
 0x4d8   : > { %v2105_v3 = vadd.f32 -1.4531521, %v2081_v5  ;;  %v3068_v24 = vsel %vm3025_vm10, %v3066_v19, %v3067_v43  ;;  %v3070_v5 = vsel %vm3025_vm10, %v3067_v43, %v3069_v33  ;;  %v3281_v7 = vsel %vm3238_vm3, %v3279_v62, %v3280_v15 }
 0x4d9   : > { %v3112_v49 = vadd.f32 %v3068_v24, %v2866_v18  ;;  %v3113_v56 = vadd.f32 %v3070_v5, %v2867_v16  ;;  %v3448_v33 = vmul.f32 %v14091_v0, %v11587_v31  ;;  %v3658_v19 = vmul.f32 %v14092_v39, %v11604_v41 }
 0x4da   : > { %v2129_v22 = vmul.f32 %v2105_v3, %v11771_v55  ;;  %v3283_v18 = vsel %vm3238_vm3, %v3280_v15, %v3282_v63  ;;  %v3507_v16 = vunpack.c.l.bf16 %v3477_v12  ;;  %v3660_v43 = vmul.f32 %v14092_v39, %v11587_v31 }
 0x4db   : > { %v3325_v34 = vadd.f32 %v3281_v7, %v3112_v49  ;;  %v3478_v40 = vpack.c.bf16 %v3448_v33, %v3448_v33  ;;  %v3326_v13 = vadd.f32 %v3283_v18, %v3113_v56  ;;  %v3688_v62 = vpack.c.bf16 %v3658_v19, %v3658_v19  ;;  %v14098_v18 = vld [vmem:[#allocation62_spill] sm:$0xff] }
 0x4dc   : > { %v2153_v3 = vadd.f32 1.4214138, %v2129_v22  ;;  %v3583_v24 = vrot.slane %v3507_v16, 1  ;;  %v3690_v5 = vpack.c.bf16 %v3660_v43, %v3660_v43  ;;  %v3867_v15 = vmul.f32 %v14030_v60, %v11791_v32 }
 0x4dd   : > { %v3412_v22 = vadd.f32 %v3392_v6, %v3325_v34  ;;  %v3508_v54 = vunpack.c.l.bf16 %v3478_v40  ;;  %v3413_v1 = vadd.f32 %v3393_v2, %v3326_v13  ;;  %v3718_v45 = vunpack.c.l.bf16 %v3688_v62 }
 0x4de   : > { %v3719_v7 = vunpack.c.l.bf16 %v3689_v46  ;;  %v3868_v56 = vmul.f32 %v14030_v60, %v11802_v42  ;;  %v2177_v6 = vmul.f32 %v2153_v3, %v11771_v55  ;;  %v3584_v63 = vsel %vm3025_vm10, %v3582_v58, %v3583_v24 }
 0x4df   : > { %v3585_v49 = vrot.slane %v3508_v54, 1  ;;  %v3720_v33 = vunpack.c.l.bf16 %v3690_v5  ;;  %v3887_v38 = vpack.c.bf16 %v3867_v15, %v3867_v15  ;;  %v11828_v34 = vunpack.c.l.bf16 %v2783_v14 }
 0x4e0   : > { %v3794_v12 = vrot.slane %v3718_v45, 2  ;;  %v3795_v19 = vrot.slane %v3719_v7, 2  ;;  %v11832_v40 = vsub.f32 %v14098_v18, %v4747_v35  ;;  %v3628_v3 = vadd.f32 %v3584_v63, %v3412_v22 }
 0x4e1   : > { %v3586_v2 = vsel %vm3025_vm10, %v3583_v24, %v3585_v49  ;;  %v3888_v59 = vpack.c.bf16 %v3868_v56, %v3868_v56  ;;  %v3797_v16 = vrot.slane %v3720_v33, 2  ;;  %v3961_v43 = vmul.f32 %v14031_v4, %v11791_v32 }
 0x4e2   : > { %v3629_v13 = vadd.f32 %v3586_v2, %v3413_v1  ;;  %v2201_v14 = vadd.f32 -0.28449672, %v2177_v6  ;;  %v2321_v54 = vmul.f32 %v2297_v11, %v11756_v50  ;;  %v3796_v58 = vsel %vm3238_vm3, %v3794_v12, %v3795_v19 }
 0x4e3   : > { %v3907_v35 = vunpack.c.l.bf16 %v3887_v38  ;;  %v3798_v62 = vsel %vm3238_vm3, %v3795_v19, %v3797_v16  ;;  %v3963_v37 = vmul.f32 %v14031_v4, %v11828_v34  ;;  %v3991_v22 = vpack.c.bf16 %v3961_v43, %v3961_v43 }
 0x4e4   : > { %v3992_v46 = vpack.c.bf16 %v3962_v48, %v3962_v48  ;;  %v3840_v1 = vadd.f32 %v3796_v58, %v3628_v3  ;;  %v3908_v24 = vunpack.c.l.bf16 %v3888_v59  ;;  %v4173_v5 = vmul.f32 %v14032_v17, %v11791_v32  ;;  %v1528_v48 = vpop.f32.mrf.mxu3 }
 0x4e5   : > { %v4174_v15 = vmul.f32 %v14032_v17, %v11802_v42  ;;  %v3841_v30 = vadd.f32 %v3798_v62, %v3629_v13  ;;  %v3993_v50 = vpack.c.bf16 %v3963_v37, %v3963_v37  ;;  %v4021_v11 = vunpack.c.l.bf16 %v3991_v22 }
 0x4e6   : > { %v4022_v49 = vunpack.c.l.bf16 %v3992_v46  ;;  %v3927_v45 = vadd.f32 %v3907_v35, %v3840_v1  ;;  %v4175_v7 = vmul.f32 %v14032_v17, %v11828_v34  ;;  %v4203_v56 = vpack.c.bf16 %v4173_v5, %v4173_v5 }
 0x4e7   : > { %v4204_v6 = vpack.c.bf16 %v4174_v15, %v4174_v15  ;;  %v4023_v63 = vunpack.c.l.bf16 %v3993_v50  ;;  %v4097_v33 = vrot.slane %v4021_v11, 1  ;;  %v4787_v2 = vmul.f32 %v11832_v40, %v11832_v40 }
 0x4e8   : > { %v4098_v38 = vrot.slane %v4022_v49, 1  ;;  %v3928_v12 = vadd.f32 %v3908_v24, %v3841_v30  ;;  %v4205_v19 = vpack.c.bf16 %v4175_v7, %v4175_v7  ;;  %v4233_v18 = vunpack.c.l.bf16 %v4203_v56 }
 0x4e9   : > { %v4234_v3 = vunpack.c.l.bf16 %v4204_v6  ;;  %v2225_v59 = vmul.f32 %v2201_v14, %v11771_v55  ;;  %v4100_v16 = vrot.slane %v4023_v63, 1  ;;  %v4809_v43 = vsel %vm747_vm2, %v4787_v2, 0.0 }
 0x4ea   : > { %v4099_v13 = vsel %vm3025_vm10, %v4097_v33, %v4098_v38  ;;  %v4235_v35 = vunpack.c.l.bf16 %v4205_v19  ;;  %v4309_v62 = vrot.slane %v4233_v18, 2  ;;  %4810 = vadd.xlane.f32.xlu2 %v4809_v43  ;;  %v2367_v22 = vmul.f32 1.442695, %v2321_v54 }
 0x4eb   : > { %v4143_v58 = vadd.f32 %v4099_v13, %v3927_v45  ;;  %v4310_v37 = vrot.slane %v4234_v3, 2  ;;  %v4101_v46 = vsel %vm3025_vm10, %v4098_v38, %v4100_v16  ;;  %v4713_v1 = vsel %vm747_vm2, %v11835_v29, 0.0 }
 0x4ec   : > { %v4144_v24 = vadd.f32 %v4101_v46, %v3928_v12  ;;  %v4312_v5 = vrot.slane %v4235_v35, 2  ;;  %4714 = vadd.xlane.f32.xlu0 %v4713_v1  ;;  %v11862_v15 = vadd.f32 %v1528_v48, %v9322_v47  ;;  %v2249_v50 = vadd.f32 0.2548296, %v2225_v59  ;;  %v14099_v48 = vld [vmem:[#allocation60_spill] sm:$0xff] }
 0x4ed   : > { %v4311_v14 = vsel %vm3238_vm3, %v4309_v62, %v4310_v37  ;;  %8151 = vpow2.f32 %v2367_v22  ;;  %v1625_v16 = vsel %vm1601_vm6, 1.0, %v13950_v27 }
 0x4ee   : > { %v4355_v30 = vadd.f32 %v4311_v14, %v4143_v58  ;;  %v4313_v11 = vsel %vm3238_vm3, %v4310_v37, %v4312_v5  ;;  %v11866_v49 = vmul.f32 0.70710677, %v11862_v15  ;;  %v2273_v63 = vmul.f32 %v2249_v50, %v11771_v55  ;;  %v7869_v37 = vld [vmem:[#allocation3 + $0x30] sm:$0xff]   ;;  %v14100_v14 = vld [vmem:[#allocation64_spill] sm:$0xff] }
 0x4ef   : > { %v4356_v54 = vadd.f32 %v4313_v11, %v4144_v24  ;;  %v553_v55 = vadd.s32 176, %v14099_v48  ;;  %v7836_v1 = vunpack.c.l.bf16 %v7869_v37  ;;  %v11876_v24 = vld [vmem:[#allocation3 + $0x38] sm:$0xff]   ;;  %v4411_v5 = vunpack.c.l.bf16 %v14100_v14  ;;  %v14101_v11 = vld [vmem:[#allocation65_spill] sm:$0xff] }
 0x4f0   : > { %v4376_v45 = vadd.f32 %v10170_v51, %v4355_v30  ;;  %v1650_v7 = vand.u32 2147483647, %v11866_v49  ;;  %v7837_v50 = vunpack.c.h.bf16 %v7869_v37  ;;  %vm1602_vm11 = vcmp.ge.f32.partialorder %v11866_v49, 0.0 }
 0x4f1   : > { %v4377_v56 = vadd.f32 %v10170_v51, %v4356_v54  ;;  %vm580_vm5 = vcmp.ge.s32.totalorder %v553_v55, %v14037_v44  ;;  %vm607_vm7 = vcmp.lt.s32.totalorder %v553_v55, %v14038_v26  ;;  %v4412_v54 = vunpack.c.l.bf16 %v14101_v11 }
 0x4f2   : > { %v4517_v6 = vpack.c.bf16 %v4376_v45, %v4376_v45  ;;  %v1674_v47 = vmul.f32 0.3275911, %v1650_v7  ;;  %v1553_v45 = vmul.f32 0.5, %v11746_v52  ;;  %vm631_vm12 = vmand %vm580_vm5, %vm607_vm7  ;;  %v11906_v11 = vmul.f32 0.5, %v11862_v15 }
 0x4f3   : > { %v4518_v33 = vpack.c.bf16 %v4377_v56, %v4377_v56  ;;  %v8152_v12 = vpop.eup %8151  ;;  %v1626_v49 = vsel %vm1602_vm11, 1.0, %v13950_v27  ;;  %v2932_v15 = vmul.f32 %v14066_v9, %v11604_v41 }
 0x4f4   : > { %v4558_v38 = vunpack.c.l.b16 %v4517_v6  ;;  %v1698_v2 = vadd.f32 1.0, %v1674_v47  ;;  %v2393_v18 = vmul.f32 %v8152_v12, %v2273_v63  ;;  %v7840_v6 = vunpack.c.l.bf16 %v11876_v24  ;;  %v14102_v63 = vld [vmem:[#allocation76_spill] sm:$0xff] }
 0x4f5   : > { %v4559_v19 = vunpack.c.l.b16 %v4518_v33  ;;  %v4413_v47 = vunpack.c.l.bf16 %v14102_v63 }
 0x4f6   : > { %8153 = vrcp.f32 %v1698_v2  ;;  %v2417_v59 = vsub.f32 1.0, %v2393_v18  ;;  %v2055_v62 = vand.u32 2147483648, %v1698_v2  ;;  %v2053_v46 = vand.u32 2147483647, %v1698_v2 }
 0x4f7   : > { %v4570_v3 = vpack.c.b16 %v4559_v19, %v4558_v38  ;;  %vm2049_vm8 = vweird.f32 %v1698_v2  ;;  %v2298_v19 = vsub.f32 0.0, %v1650_v7  ;;  %v4451_v18 = vmul.f32 %v7836_v1, %v4411_v5 }
 0x4f8   : > { %v2441_v58 = vmul.f32 %v2417_v59, %v1625_v16  ;;  %v2056_v56 = vor.u32 1.1754944e-38, %v2055_v62  ;;  %vm2054_vm9 = vcmp.eq.f32.partialorder %v2053_v46, 8.507059e+37  ;;  %v4453_v52 = vmul.f32 %v7840_v6, %v4413_v47  ;;  %v4694_v47 = vpop.xlane.xlu2 %4693 }
 0x4f9   : > { %7731 = vmatmul.msk.bf16.vlgmr.msrb.gmra.mxu3 %vm4572_vm4, %v4570_v3  ;;  %v4452_v3 = vmul.f32 %v7837_v50, %v4412_v54  ;;  %v11903_v50 = vadd.s32 184, %v14099_v48 }
 0x4fa   : > { %v2465_v20 = vadd.f32 1.0, %v2441_v58  ;;  %v4473_v37 = vpack.c.bf16 %v4453_v52, %v4453_v52  ;;  %v2933_v52 = vmul.f32 %v14066_v9, %v11606_v21 }
 0x4fb   : > { %v4472_v62 = vpack.c.bf16 %v4452_v3, %v4452_v3  ;;  %v4700_v3 = vpop.xlane.xlu1 %4699  ;;  %vm581_vm14 = vcmp.ge.s32.totalorder %v11903_v50, %v14037_v44  ;;  %vm608_vm15 = vcmp.lt.s32.totalorder %v11903_v50, %v14038_v26  ;;  %v3449_v50 = vmul.f32 %v14091_v0, %v11791_v32 }
 0x4fc   : > { %v8154_v13 = vpop.eup %8153  ;;  %v2489_v38 = vmul.f32 %v2465_v20, %v1553_v45  ;;  %v7841_v45 = vunpack.c.h.bf16 %v11876_v24  ;;  %v4641_v24 = vpop.f32.mrf.mxu1  ;;  %vm632_vm6 = vmand %vm581_vm14, %vm608_vm15 }
 0x4fd   : > { %v2045_v43 = vmul.f32 %v8154_v13, %v1698_v2  ;;  %vm2050_vm1 = vweird.f32 %v8154_v13  ;;  %v11896_v5 = vunpack.c.l.bf16 %v4472_v62 }
 0x4fe   : > { %vm2051_vm13 = vmor %vm2049_vm8, %vm2050_vm1  ;;  %v2561_v16 = vsel %vm631_vm12, %v2489_v38, 0.0  ;;  %v2828_v38 = vmul.f32 %v11604_v41, %v14068_v53 }
 0x4ff   : > { %v2046_v35 = vsub.f32 1.0, %v2045_v43  ;;  %v2322_v43 = vmul.f32 %v2298_v19, %v1650_v7  ;;  %v11898_v7 = vunpack.c.l.bf16 %v4473_v37  ;;  %v2829_v19 = vmul.f32 %v11606_v21, %v14068_v53  ;;  %v14105_v37 = vld [vmem:[#allocation53_spill] sm:$0xff] }
 0x501   : > { %v2047_v22 = vmul.f32 %v8154_v13, %v2046_v35  ;;  %v4471_v35 = vpack.c.bf16 %v4451_v18, %v4451_v18  ;;  %v2369_v20 = vmul.f32 1.442695, %v2322_v43 }
 0x503   : > { %v2048_v30 = vadd.f32 %v8154_v13, %v2047_v22  ;;  %v2585_v22 = vpack.c.bf16 %v2561_v16, %v2561_v16  ;;  %v4491_v14 = vunpack.c.l.bf16 %v4471_v35  ;;  %8155 = vpow2.f32 %v2369_v20  ;;  %v14104_v35 = vld [vmem:[#allocation51_spill] sm:$0xff] }
 0x504   : > { %v4750_v16 = vmul.f32 %v4700_v3, %v14093_v28 }
 0x505   : > { %v2052_v33 = vsel %vm2051_vm13, %v8154_v13, %v2048_v30  ;;  %v11891_v13 = vmul.f32 %v11828_v34, %v14091_v0  ;;  %v11900_v30 = vunpack.c.l.b16 %v2585_v22  ;;  %v11928_v43 = vadd.f32 %v4641_v24, %v4491_v14 }
 0x506   : > { %v2057_v12 = vsel %vm2054_vm9, %v2056_v56, %v2052_v33  ;;  %v14103_v56 = vld [vmem:[#allocation88_spill] sm:$0xff]  ;;  %v4697_v33 = vpop.xlane.xlu0 %4696  ;;  %v3145_v24 = vmul.f32 %v14089_v36, %v11604_v41 }
 0x507   : > { %v2082_v2 = vmul.f32 1.0614054, %v2057_v12  ;;  %v3481_v1 = vpack.c.bf16 %v11891_v13, %v11891_v13  ;;  %v4414_v6 = vunpack.c.l.bf16 %v14103_v56  ;;  %v4749_v18 = vmul.f32 %v4697_v33, %v14093_v28 }
 0x508   : > { %v4716_v56 = vsel %vm747_vm2, %v11928_v43, 0.0 }
 0x509   : > { %v2106_v59 = vadd.f32 -1.4531521, %v2082_v2  ;;  %v4748_v2 = vmul.f32 %v4694_v47, %v14093_v28  ;;  %v11934_v22 = vsub.f32 %v14105_v37, %v4749_v18  ;;  %v8156_v14 = vpop.eup %8155 }
 0x50b   : > { %v2130_v58 = vmul.f32 %v2106_v59, %v2057_v12  ;;  %v2934_v59 = vmul.f32 %v11587_v31, %v14066_v9  ;;  %v11931_v62 = vsub.f32 %v14104_v35, %v4748_v2  ;;  %v11936_v9 = vmul.f32 %v7841_v45, %v4414_v6 }
 0x50c   : > { %v4789_v33 = vmul.f32 %v11934_v22, %v11934_v22  ;;  %v2963_v2 = vpack.c.bf16 %v2933_v52, %v2933_v52 }
 0x50d   : > { %v2154_v46 = vadd.f32 1.4214138, %v2130_v58  ;;  %v2848_v58 = vpack.c.bf16 %v2828_v38, %v2828_v38  ;;  %v4788_v47 = vmul.f32 %v11931_v62, %v11931_v62  ;;  %v2964_v45 = vpack.c.bf16 %v2934_v59, %v2934_v59 }
 0x50e   : > { %v4815_v3 = vsel %vm747_vm2, %v4789_v33, 0.0 }
 0x50f   : > { %v2178_v55 = vmul.f32 %v2154_v46, %v2057_v12  ;;  %v2962_v46 = vpack.c.bf16 %v2932_v15, %v2932_v15  ;;  %v2868_v38 = vunpack.c.l.bf16 %v2848_v58  ;;  %v4812_v18 = vsel %vm747_vm2, %v4788_v47, 0.0  ;;  %4816 = vadd.xlane.f32.xlu1 %v4815_v3  ;;  %v4706_v58 = vpop.xlane.xlu0 %4705 }
 0x510   : > { %4813 = vadd.xlane.f32.xlu0 %v4812_v18  ;;  %v2994_v35 = vunpack.c.l.bf16 %v2964_v45  ;;  %v4752_v45 = vmul.f32 %v4706_v58, %v14093_v28 }
 0x511   : > { %v2202_v54 = vadd.f32 -0.28449672, %v2178_v55  ;;  %v14106_v55 = vld [vmem:[#allocation47_spill] sm:$0xff]  ;;  %v2992_v6 = vunpack.c.l.bf16 %v2962_v46  ;;  %v4643_v46 = vpop.f32.mrf.mxu1 }
 0x512   : > { %v11958_v41 = vadd.f32 %v4643_v46, %v11896_v5  ;;  %v3074_v33 = vrot.slane %v2994_v35, 1 }
 0x513   : > { %v2226_v63 = vmul.f32 %v2202_v54, %v2057_v12  ;;  %v11939_v54 = vsub.f32 %v14106_v55, %v4750_v16  ;;  %v4703_v16 = vpop.xlane.xlu2 %4702  ;;  %v3071_v37 = vrot.slane %v2992_v6, 1 }
 0x514   : > { %v4751_v59 = vmul.f32 %v4703_v16, %v14093_v28  ;;  %v3354_v16 = vmul.f32 %v11791_v32, %v14090_v61 }
 0x515   : > { %v2250_v53 = vadd.f32 0.2548296, %v2226_v63  ;;  %v2849_v63 = vpack.c.bf16 %v2829_v19, %v2829_v19  ;;  %v2993_v19 = vunpack.c.l.bf16 %v2963_v2  ;;  %v3147_v2 = vmul.f32 %v14089_v36, %v11587_v31 }
 0x517   : > { %v2274_v20 = vmul.f32 %v2250_v53, %v2057_v12  ;;  %v4790_v12 = vmul.f32 %v11939_v54, %v11939_v54  ;;  %v3072_v55 = vrot.slane %v2993_v19, 1  ;;  %v3177_v19 = vpack.c.bf16 %v3147_v2, %v3147_v2  ;;  %4717 = vadd.xlane.f32.xlu1 %v4716_v56 }
 0x519   : > { %v2394_v15 = vmul.f32 %v8156_v14, %v2274_v20  ;;  %v4818_v52 = vsel %vm747_vm2, %v4790_v12, 0.0  ;;  %v2869_v20 = vunpack.c.l.bf16 %v2849_v63  ;;  %v3146_v14 = vmul.f32 %v14089_v36, %v11606_v21 }
 0x51a   : > { %4819 = vadd.xlane.f32.xlu2 %v4818_v52  ;;  %v3073_v6 = vsel %vm3025_vm10, %v3071_v37, %v3072_v55  ;;  %v3175_v63 = vpack.c.bf16 %v3145_v24, %v3145_v24  ;;  %v4719_v21 = vsel %vm747_vm2, %v11958_v41, 0.0  ;;  %v3207_v44 = vunpack.c.l.bf16 %v3177_v19 }
 0x51b   : > { %v2418_v53 = vsub.f32 1.0, %v2394_v15  ;;  %v14107_v15 = vld [vmem:[#allocation80_spill] sm:$0xff]  ;;  %v3114_v5 = vadd.f32 %v3073_v6, %v2868_v38  ;;  %v3176_v3 = vpack.c.bf16 %v3146_v14, %v3146_v14  ;;  %v3355_v38 = vmul.f32 %v11802_v42, %v14090_v61 }
 0x51c   : > { %v11963_v12 = vsub.f32 %v14107_v15, %v4751_v59  ;;  %v3374_v37 = vpack.c.bf16 %v3354_v16, %v3354_v16  ;;  %v3450_v61 = vmul.f32 %v14091_v0, %v11802_v42  ;;  %v3511_v0 = vunpack.c.l.bf16 %v3481_v1  ;;  %v4709_v16 = vpop.xlane.xlu1 %4708 }
 0x51d   : > { %v2442_v47 = vmul.f32 %v2418_v53, %v1626_v49  ;;  %v3075_v49 = vsel %vm3025_vm10, %v3072_v55, %v3074_v33  ;;  %v3205_v53 = vunpack.c.l.bf16 %v3175_v63  ;;  %v3206_v52 = vunpack.c.l.bf16 %v3176_v3 }
 0x51e   : > { %v4791_v36 = vmul.f32 %v11963_v12, %v11963_v12  ;;  %v3115_v31 = vadd.f32 %v3075_v49, %v2869_v20  ;;  %v3287_v20 = vrot.slane %v3207_v44, 2  ;;  %v11989_v55 = vsub.f32 %v11628_v8, %v4752_v45 }
 0x51f   : > { %v2466_v18 = vadd.f32 1.0, %v2442_v47  ;;  %v3284_v35 = vrot.slane %v3205_v53, 2  ;;  %v3285_v46 = vrot.slane %v3206_v52, 2  ;;  %v3394_v14 = vunpack.c.l.bf16 %v3374_v37 }
 0x520   : > { %v4821_v26 = vsel %vm747_vm2, %v4791_v36, 0.0  ;;  %v3479_v33 = vpack.c.bf16 %v3449_v50, %v3449_v50  ;;  %v3480_v63 = vpack.c.bf16 %v3450_v61, %v3450_v61  ;;  %v3661_v36 = vmul.f32 %v14092_v39, %v11791_v32 }
 0x521   : > { %v2490_v24 = vmul.f32 %v2466_v18, %v11906_v11  ;;  %4822 = vadd.xlane.f32.xlu0 %v4821_v26  ;;  %v3375_v11 = vpack.c.bf16 %v3355_v38, %v3355_v38  ;;  %v3286_v56 = vsel %vm3238_vm3, %v3284_v35, %v3285_v46  ;;  %v3288_v6 = vsel %vm3238_vm3, %v3285_v46, %v3287_v20 }
 0x522   : > { %4720 = vadd.xlane.f32.xlu2 %v4719_v21  ;;  %v3327_v18 = vadd.f32 %v3286_v56, %v3114_v5  ;;  %v3328_v21 = vadd.f32 %v3288_v6, %v3115_v31  ;;  %v3509_v49 = vunpack.c.l.bf16 %v3479_v33  ;;  %v3510_v45 = vunpack.c.l.bf16 %v3480_v63 }
 0x523   : > { %v2562_v58 = vsel %vm632_vm6, %v2490_v24, 0.0  ;;  %v3395_v47 = vunpack.c.l.bf16 %v3375_v11  ;;  %v4646_v15 = vpop.f32.mrf.mxu1  ;;  %v3662_v3 = vmul.f32 %v14092_v39, %v11802_v42  ;;  %v4474_v31 = vpack.c.bf16 %v11936_v9, %v11936_v9 }
 0x524   : > { %v2586_v59 = vpack.c.bf16 %v2562_v58, %v2562_v58  ;;  %v12002_v19 = vadd.f32 %v4646_v15, %v11898_v7  ;;  %v3414_v24 = vadd.f32 %v3394_v14, %v3327_v18  ;;  %v3587_v5 = vrot.slane %v3509_v49, 1 }
 0x525   : > { %v3415_v13 = vadd.f32 %v3395_v47, %v3328_v21  ;;  %v3588_v1 = vrot.slane %v3510_v45, 1  ;;  %v3590_v38 = vrot.slane %v3511_v0, 1  ;;  %v3691_v32 = vpack.c.bf16 %v3661_v36, %v3661_v36 }
 0x526   : > { %v2637_v2 = vunpack.c.l.b16 %v2586_v59  ;;  %v3692_v26 = vpack.c.bf16 %v3662_v3, %v3662_v3  ;;  %v4792_v42 = vmul.f32 %v11989_v55, %v11989_v55  ;;  %v4753_v37 = vmul.f32 %v4709_v16, %v14093_v28 }
 0x527   : > { %v3589_v44 = vsel %vm3025_vm10, %v3587_v5, %v3588_v1  ;;  %v3591_v9 = vsel %vm3025_vm10, %v3588_v1, %v3590_v38  ;;  %v3721_v58 = vunpack.c.l.bf16 %v3691_v32  ;;  %v4494_v15 = vunpack.c.l.bf16 %v4474_v31 }
 0x528   : > { %v2649_v8 = vpack.c.b16 %v2637_v2, %v11900_v30  ;;  %v3663_v30 = vmul.f32 %v14092_v39, %v11828_v34  ;;  %v3722_v35 = vunpack.c.l.bf16 %v3692_v26  ;;  %v3630_v34 = vadd.f32 %v3589_v44, %v3414_v24 }
 0x529   : > { %v3799_v20 = vrot.slane %v3721_v58, 2  ;;  %v4824_v14 = vsel %vm747_vm2, %v4792_v42, 0.0  ;;  %v4722_v2 = vsel %vm747_vm2, %v12002_v19, 0.0  ;;  %v3631_v18 = vadd.f32 %v3591_v9, %v3415_v13 }
 0x52a   : > { %v2728_v53 = vshrl.u32 %v2649_v8, 16  ;;  %v2731_v52 = vshll.u32 %v2649_v8, 16  ;;  %v3693_v50 = vpack.c.bf16 %v3663_v30, %v3663_v30  ;;  %v3800_v61 = vrot.slane %v3722_v35, 2  ;;  %4825 = vadd.xlane.f32.xlu0 %v4824_v14  ;;  %4723 = vadd.xlane.f32.xlu2 %v4722_v2 }
 0x52b   : > { %v12025_v8 = vsub.f32 %v11636_v10, %v4753_v37 }
 0x52c   : > { %v2730_v7 = vrot.slane %v2728_v53, 7  ;;  %v3723_v59 = vunpack.c.l.bf16 %v3693_v50  ;;  %v3801_v21 = vsel %vm3238_vm3, %v3799_v20, %v3800_v61 }
 0x52d   : > { %v3842_v36 = vadd.f32 %v3801_v21, %v3630_v34 }
 0x52e   : > { %v2733_v11 = vor.u32 %v2731_v52, %v2730_v7  ;;  %v2784_v39 = vsel %vm9780_vm0, %v2730_v7, 0  ;;  %v3802_v33 = vrot.slane %v3723_v59, 2  ;;  %v4648_v7 = vpop.f32.mrf.mxu1 }
 0x52f   : > { %v3936_v46 = vunpack.c.l.bf16 %v2784_v39  ;;  %v12033_v39 = vadd.f32 %v4648_v7, %v4494_v15 }
 0x530   : > { %v2772_v47 = vsel %vm9780_vm0, 0, %v2733_v11  ;;  %v3803_v49 = vsel %vm3238_vm3, %v3800_v61, %v3802_v33 }
 0x531   : > { %v3849_v56 = vunpack.c.l.bf16 %v2772_v47  ;;  %v3850_v6 = vunpack.c.h.bf16 %v2772_v47  ;;  %v3966_v63 = vmul.f32 %v3936_v46, %v14031_v4  ;;  %v4178_v0 = vmul.f32 %v14032_v17, %v3936_v46 }
 0x532   : > { %v3843_v52 = vadd.f32 %v3803_v49, %v3631_v18  ;;  %v4725_v15 = vsel %vm747_vm2, %v12033_v39, 0.0 }
 0x533   : > { %v3996_v45 = vpack.c.bf16 %v3966_v63, %v3966_v63  ;;  %v3869_v3 = vmul.f32 %v3849_v56, %v14030_v60  ;;  %v3870_v24 = vmul.f32 %v3850_v6, %v14030_v60  ;;  %v3964_v5 = vmul.f32 %v14031_v4, %v3849_v56  ;;  %4726 = vadd.xlane.f32.xlu0 %v4725_v15 }
 0x534   : > { %v3965_v31 = vmul.f32 %v14031_v4, %v3850_v6  ;;  %v4176_v53 = vmul.f32 %v14032_v17, %v3849_v56  ;;  %v4177_v13 = vmul.f32 %v14032_v17, %v3850_v6  ;;  %v4208_v38 = vpack.c.bf16 %v4178_v0, %v4178_v0 }
 0x535   : > { %v3889_v1 = vpack.c.bf16 %v3869_v3, %v3869_v3  ;;  %v3890_v30 = vpack.c.bf16 %v3870_v24, %v3870_v24  ;;  %v4026_v16 = vunpack.c.l.bf16 %v3996_v45  ;;  %v3994_v10 = vpack.c.bf16 %v3964_v5, %v3964_v5 }
 0x536   : > { %v3995_v32 = vpack.c.bf16 %v3965_v31, %v3965_v31  ;;  %v4206_v26 = vpack.c.bf16 %v4176_v53, %v4176_v53  ;;  %v4207_v42 = vpack.c.bf16 %v4177_v13, %v4177_v13  ;;  %v4238_v50 = vunpack.c.l.bf16 %v4208_v38  ;;  %v7871_v53 = vld [vmem:[#allocation3 + $0x40] sm:$0xff]   ;;  %v4712_v38 = vpop.xlane.xlu2 %4711 }
 0x537   : > { %v3909_v44 = vunpack.c.l.bf16 %v3889_v1  ;;  %v3910_v60 = vunpack.c.l.bf16 %v3890_v30  ;;  %v4024_v9 = vunpack.c.l.bf16 %v3994_v10  ;;  %v4105_v17 = vrot.slane %v4026_v16, 1  ;;  %v14108_v1 = vld [vmem:[#allocation89_spill] sm:$0xff] }
 0x538   : > { %v4025_v58 = vunpack.c.l.bf16 %v3995_v32  ;;  %v4236_v4 = vunpack.c.l.bf16 %v4206_v26  ;;  %v4237_v35 = vunpack.c.l.bf16 %v4207_v42  ;;  %v4317_v47 = vrot.slane %v4238_v50, 2  ;;  %v14109_v26 = vld [vmem:[#allocation77_spill] sm:$0xff] }
 0x539   : > { %v3929_v37 = vadd.f32 %v3909_v44, %v3842_v36  ;;  %v3930_v11 = vadd.f32 %v3910_v60, %v3843_v52  ;;  %v4102_v34 = vrot.slane %v4024_v9, 1  ;;  %v4793_v63 = vmul.f32 %v12025_v8, %v12025_v8  ;;  %v12055_v9 = vld [vmem:[#allocation3 + $0x48] sm:$0xff]  }
 0x53a   : > { %v4103_v59 = vrot.slane %v4025_v58, 1  ;;  %v4314_v46 = vrot.slane %v4236_v4, 2  ;;  %v4315_v20 = vrot.slane %v4237_v35, 2  ;;  %v7844_v13 = vunpack.c.l.bf16 %v7871_v53  ;;  %v14110_v35 = vld [vmem:[#allocation92_spill] sm:$0xff] }
 0x53b   : > { %v4827_v49 = vsel %vm747_vm2, %v4793_v63, 0.0  ;;  %v4415_v30 = vunpack.c.l.bf16 %v14108_v1  ;;  %v7845_v32 = vunpack.c.h.bf16 %v7871_v53  ;;  %v4416_v42 = vunpack.c.l.bf16 %v14109_v26 }
 0x53c   : > { %v4104_v61 = vsel %vm3025_vm10, %v4102_v34, %v4103_v59  ;;  %v4106_v14 = vsel %vm3025_vm10, %v4103_v59, %v4105_v17  ;;  %v4316_v56 = vsel %vm3238_vm3, %v4314_v46, %v4315_v20  ;;  %v4318_v6 = vsel %vm3238_vm3, %v4315_v20, %v4317_v47  ;;  %4828 = vadd.xlane.f32.xlu1 %v4827_v49 }
 0x53d   : > { %v4145_v33 = vadd.f32 %v4104_v61, %v3929_v37  ;;  %v4146_v2 = vadd.f32 %v4106_v14, %v3930_v11  ;;  %v4455_v16 = vmul.f32 %v7844_v13, %v4415_v30  ;;  %v4456_v44 = vmul.f32 %v7845_v32, %v4416_v42 }
 0x53e   : > { %v7848_v4 = vunpack.c.l.bf16 %v12055_v9  ;;  %v4417_v37 = vunpack.c.l.bf16 %v14110_v35 }
 0x53f   : > { %v4357_v18 = vadd.f32 %v4316_v56, %v4145_v33  ;;  %v4358_v21 = vadd.f32 %v4318_v6, %v4146_v2  ;;  %v4475_v10 = vpack.c.bf16 %v4455_v16, %v4455_v16  ;;  %v4476_v58 = vpack.c.bf16 %v4456_v44, %v4456_v44 }
 0x540   : > { %v4457_v14 = vmul.f32 %v7848_v4, %v4417_v37 }
 0x541   : > { %v4378_v0 = vadd.f32 %v10170_v51, %v4357_v18  ;;  %v4379_v45 = vadd.f32 %v10170_v51, %v4358_v21  ;;  %v4754_v51 = vmul.f32 %v4712_v38, %v14093_v28  ;;  %v4495_v52 = vunpack.c.l.bf16 %v4475_v10  ;;  %v12079_v21 = vpop.xlane.xlu1 %4807 }
 0x542   : > { %v4496_v20 = vunpack.c.l.bf16 %v4476_v58  ;;  %v4477_v56 = vpack.c.bf16 %v4457_v14, %v4457_v14  ;;  %v14111_v58 = vld [vmem:[#allocation93_spill] sm:$0xff]  ;;  %v14113_v14 = vld [vmem:[#allocation67_spill] sm:$0xff] }
 0x543   : > { %v4519_v36 = vpack.c.bf16 %v4378_v0, %v4378_v0  ;;  %v4520_v3 = vpack.c.bf16 %v4379_v45, %v4379_v45  ;;  %v12051_v60 = vsub.f32 %v11721_v25, %v4754_v51  ;;  %v7849_v51 = vunpack.c.h.bf16 %v12055_v9 }
 0x544   : > { %v4497_v63 = vunpack.c.l.bf16 %v4477_v56  ;;  %v4418_v4 = vunpack.c.l.bf16 %v14111_v58 }
 0x545   : > { %v4560_v24 = vunpack.c.l.b16 %v4519_v36  ;;  %v4561_v5 = vunpack.c.l.b16 %v4520_v3  ;;  %v4651_v7 = vpop.f32.mrf.mxu1  ;;  %v4794_v17 = vmul.f32 %v12051_v60, %v12051_v60 }
 0x546   : > { %v12053_v50 = vadd.f32 %v4651_v7, %v4495_v52  ;;  %v4458_v56 = vmul.f32 %v7849_v51, %v4418_v4 }
 0x547   : > { %v4571_v31 = vpack.c.b16 %v4561_v5, %v4560_v24  ;;  %v4830_v46 = vsel %vm747_vm2, %v4794_v17, 0.0  ;;  %v12096_v17 = vstv %s7706_s8 }
 0x548   : > { %v4728_v34 = vsel %vm747_vm2, %v12053_v50, 0.0  ;;  %4831 = vadd.xlane.f32.xlu1 %v4830_v46  ;;  %vm662_vm14 = vcmp.lt.s32.totalorder %v14113_v14, %v12096_v17 }
 0x549   : > { %7732 = vmatmul.msk.bf16.gmra.mxu3 %vm4572_vm4, %v4571_v31  ;;  %4729 = vadd.xlane.f32.xlu0 %v4728_v34  ;;  %v12101_v34 = vld [vmem:[%s13730_s2] sm:$0x1f] }
 0x54a   : > { %v12104_v9 = vperm.slane %v12101_v34, 2 }
 0x54d   : > { %v4653_v25 = vpop.f32.mrf.mxu1 }
 0x54e   : > { %v12068_v47 = vadd.f32 %v4653_v25, %v4496_v20  ;;  %v14112_v25 = vld [vmem:[#allocation66_spill] sm:$0xff] }
 0x54f   : > { %vm661_vm12 = vcmp.lt.s32.totalorder %v14112_v25, %v12096_v17 }
 0x550   : > { %v4731_v6 = vsel %vm747_vm2, %v12068_v47, 0.0 }
 0x551   : > { %4732 = vadd.xlane.f32.xlu1 %v4731_v6 }
 0x55d   : > { %v12083_v31 = vpop.xlane.xlu2 %4810 }
 0x55f   : > { %v4715_v11 = vpop.xlane.xlu0 %4714 }
 0x560   : > { %v4755_v59 = vmul.f32 %v4715_v11, %v14093_v28  ;;  %v12094_v11 = vstv %s7705_s30  ;;  %s8534_s30 = scalar_lea.hbm %s14174_s11, 512 }
 0x561   : > { %vm638_vm9 = vcmp.ge.s32.totalorder %v14112_v25, %v12094_v11  ;;  %vm639_vm11 = vcmp.ge.s32.totalorder %v14113_v14, %v12094_v11  ;;  %p8536_p1 = scmp.lt.s32.totalorder %s8534_s30, %s8530_s22 }
 0x562   : > { %v12066_v61 = vsub.f32 %v11835_v29, %v4755_v59  ;;  %vm681_vm15 = vmand %vm638_vm9, %vm661_vm12 }
 0x563   : > { %vm682_vm6 = vmand %vm639_vm11, %vm662_vm14  ;;  %p8537_p2 = por %p8536_p1, %p8535_p0 }
 0x564   : > { %v4795_v33 = vmul.f32 %v12066_v61, %v12066_v61 }
 0x565   : > { %p8538_p4 = pnand %p8537_p2, %p8533_p12 }
 0x566   : > { %v4833_v2 = vsel %vm747_vm2, %v4795_v33, 0.0 }
 0x567   : > { %4834 = vadd.xlane.f32.xlu2 %v4833_v2  ;;  %v12118_v2 = vperm.slane %v12101_v34, 3 }
 0x569   : > { %14114 = vst [vmem:[#allocation48_spill] sm:$0xff] %v12118_v2 }
 0x57c   : > { %v4656_v15 = vpop.f32.mrf.mxu3 }
 0x57d   : > { %v12075_v18 = vadd.f32 %v4656_v15, %v4497_v63 }
 0x57f   : > { %v4734_v29 = vsel %vm747_vm2, %v12075_v18, 0.0 }
 0x580   : > { %4735 = vadd.xlane.f32.xlu1 %v4734_v29 }
 0x582   : > { %v4817_v0 = vpop.xlane.xlu1 %4816 }
 0x583   : > { %v4814_v49 = vpop.xlane.xlu0 %4813  ;;  %v4869_v36 = vmul.f32 %v4817_v0, %v14093_v28 }
 0x584   : > { %v4868_v45 = vmul.f32 %v4814_v49, %v14093_v28  ;;  %v4478_v49 = vpack.c.bf16 %v4458_v56, %v4458_v56 }
 0x585   : > { %v4889_v24 = vadd.f32 1e-06, %v4869_v36 }
 0x586   : > { %v4888_v3 = vadd.f32 1e-06, %v4868_v45 }
 0x587   : > { %vm4942_vm8 = vweird.f32 %v4889_v24 }
 0x588   : > { %8157 = vrsqrt.f32 %v4888_v3  ;;  %vm4932_vm5 = vweird.f32 %v4888_v3 }
 0x589   : > { %8159 = vrsqrt.f32 %v4889_v24 }
 0x58a   : > { %v4718_v26 = vpop.xlane.xlu1 %4717 }
 0x58b   : > { %v4756_v37 = vmul.f32 %v4718_v26, %v14093_v28 }
 0x58d   : > { %v12087_v7 = vpop.xlane.xlu2 %4819  ;;  %v12122_v63 = vsub.f32 %v11928_v43, %v4756_v37 }
 0x58e   : > { %v8158_v5 = vpop.eup %8157 }
 0x58f   : > { %v8160_v53 = vpop.eup %8159  ;;  %v4927_v13 = vmul.f32 %v8158_v5, %v4888_v3  ;;  %vm4933_vm4 = vweird.f32 %v8158_v5  ;;  %v4796_v45 = vmul.f32 %v12122_v63, %v12122_v63 }
 0x590   : > { %v4937_v1 = vmul.f32 %v8160_v53, %v4889_v24  ;;  %vm4943_vm1 = vweird.f32 %v8160_v53  ;;  %vm4934_vm7 = vmor %vm4932_vm5, %vm4933_vm4 }
 0x591   : > { %v4928_v30 = vmul.f32 %v8158_v5, %v4927_v13  ;;  %vm4944_vm13 = vmor %vm4942_vm8, %vm4943_vm1  ;;  %v4658_v13 = vpop.f32.mrf.mxu3 }
 0x592   : > { %v4938_v16 = vmul.f32 %v8160_v53, %v4937_v1 }
 0x593   : > { %v4929_v38 = vmul.f32 0.5, %v4928_v30  ;;  %v4498_v30 = vunpack.c.l.bf16 %v4478_v49 }
 0x594   : > { %v4939_v10 = vmul.f32 0.5, %v4938_v16  ;;  %v12090_v44 = vpop.xlane.xlu0 %4822 }
 0x595   : > { %v4930_v32 = vsub.f32 1.5, %v4929_v38  ;;  %v12137_v26 = vadd.f32 %v4658_v13, %v4498_v30  ;;  %v14116_v30 = vld [vmem:[#allocation91_spill] sm:$0xff] }
 0x596   : > { %v4940_v42 = vsub.f32 1.5, %v4939_v10  ;;  %vm643_vm14 = vcmp.ge.s32.totalorder %v14116_v30, %v12094_v11 }
 0x597   : > { %v4931_v52 = vmul.f32 %v8158_v5, %v4930_v32  ;;  %v4737_v4 = vsel %vm747_vm2, %v12137_v26, 0.0 }
 0x598   : > { %v4941_v35 = vmul.f32 %v8160_v53, %v4940_v42 }
 0x599   : > { %v4935_v59 = vsel %vm4934_vm7, %v8158_v5, %v4931_v52 }
 0x59a   : > { %v5108_v46 = vmul.f32 %v4935_v59, %v11931_v62  ;;  %v4945_v20 = vsel %vm4944_vm13, %v8160_v53, %v4941_v35  ;;  %v4836_v53 = vsel %vm747_vm2, %v4796_v45, 0.0 }
 0x59b   : > { %v5109_v33 = vmul.f32 %v4945_v20, %v11934_v22  ;;  %v4721_v22 = vpop.xlane.xlu2 %4720  ;;  %4837 = vadd.xlane.f32.xlu2 %v4836_v53 }
 0x59c   : > { %v5129_v6 = vmul.f32 %v12104_v9, %v5108_v46  ;;  %v4757_v24 = vmul.f32 %v4721_v22, %v14093_v28 }
 0x59d   : > { %v5130_v62 = vmul.f32 %v12104_v9, %v5109_v33  ;;  %v4826_v43 = vpop.xlane.xlu0 %4825 }
 0x59e   : > { %v5150_v15 = vadd.f32 %v12118_v2, %v5129_v6  ;;  %v12132_v1 = vsub.f32 %v11958_v41, %v4757_v24  ;;  %v4872_v10 = vmul.f32 %v4826_v43, %v14093_v28 }
 0x59f   : > { %v5151_v29 = vadd.f32 %v12118_v2, %v5130_v62  ;;  %v4866_v62 = vmul.f32 %v12079_v21, %v14093_v28 }
 0x5a0   : > { %v5210_v0 = vsel %vm681_vm15, %v5150_v15, 0.0  ;;  %v4797_v32 = vmul.f32 %v12132_v1, %v12132_v1  ;;  %v4892_v51 = vadd.f32 1e-06, %v4872_v10  ;;  %vm666_vm15 = vcmp.lt.s32.totalorder %v14116_v30, %v12096_v17 }
 0x5a1   : > { %v5230_v36 = vpack.c.bf16 %v5210_v0, %v5210_v0  ;;  %v5211_v3 = vsel %vm682_vm6, %v5151_v29, 0.0  ;;  %v4867_v29 = vmul.f32 %v12083_v31, %v14093_v28  ;;  %v12156_v45 = vadd.f32 1e-06, %v4866_v62  ;;  %v14115_v31 = vld [vmem:[#allocation90_spill] sm:$0xff]  ;;  %vm686_vm6 = vmand %vm643_vm14, %vm666_vm15 }
 0x5a2   : > { %v5231_v5 = vpack.c.bf16 %v5211_v3, %v5211_v3  ;;  %v4839_v52 = vsel %vm747_vm2, %v4797_v32, 0.0  ;;  %8161 = vrsqrt.f32 %v4892_v51  ;;  %vm4972_vm1 = vweird.f32 %v4892_v51 }
 0x5a3   : > { %v5273_v16 = vunpack.c.l.b16 %v5230_v36  ;;  %4840 = vadd.xlane.f32.xlu0 %v4839_v52  ;;  %v4724_v41 = vpop.xlane.xlu2 %4723  ;;  %4738 = vadd.xlane.f32.xlu2 %v4737_v4  ;;  %v12158_v3 = vadd.f32 1e-06, %v4867_v29  ;;  %vm642_vm8 = vcmp.ge.s32.totalorder %v14115_v31, %v12094_v11  ;;  %vm665_vm13 = vcmp.lt.s32.totalorder %v14115_v31, %v12096_v17 }
 0x5a4   : > { %v5274_v38 = vunpack.c.l.b16 %v5231_v5  ;;  %v4758_v37 = vmul.f32 %v4724_v41, %v14093_v28  ;;  %vm685_vm11 = vmand %vm642_vm8, %vm665_vm13 }
 0x5a5   : > { %vm4922_vm8 = vweird.f32 %v12158_v3 }
 0x5a6   : > { %v12139_v42 = vpack.c.b16 %v5274_v38, %v5273_v16  ;;  %v12147_v20 = vsub.f32 %v12002_v19, %v4758_v37 }
 0x5a8   : > { %v8162_v25 = vpop.eup %8161  ;;  %v4798_v6 = vmul.f32 %v12147_v20, %v12147_v20 }
 0x5a9   : > { %v4967_v46 = vmul.f32 %v8162_v25, %v4892_v51  ;;  %vm4973_vm4 = vweird.f32 %v8162_v25 }
 0x5aa   : > { %v4842_v0 = vsel %vm747_vm2, %v4798_v6, 0.0  ;;  %vm4974_vm5 = vmor %vm4972_vm1, %vm4973_vm4 }
 0x5ab   : > { %v4968_v14 = vmul.f32 %v8162_v25, %v4967_v46  ;;  %4843 = vadd.xlane.f32.xlu0 %v4842_v0 }
 0x5ad   : > { %v4969_v56 = vmul.f32 0.5, %v4968_v14 }
 0x5af   : > { %v4829_v58 = vpop.xlane.xlu1 %4828  ;;  %v4970_v49 = vsub.f32 1.5, %v4969_v56 }
 0x5b0   : > { %v4873_v35 = vmul.f32 %v4829_v58, %v14093_v28  ;;  %v7873_v58 = vld [vmem:[#allocation3 + $0x50] sm:$0xff]  }
 0x5b1   : > { %v4971_v19 = vmul.f32 %v8162_v25, %v4970_v49 }
 0x5b2   : > { %v4893_v59 = vadd.f32 1e-06, %v4873_v35 }
 0x5b3   : > { %v4975_v24 = vsel %vm4974_vm5, %v8162_v25, %v4971_v19  ;;  %v7852_v25 = vunpack.c.l.bf16 %v7873_v58  ;;  %vm4912_vm5 = vweird.f32 %v12156_v45 }
 0x5b4   : > { %8163 = vrsqrt.f32 %v4893_v59  ;;  %v5112_v21 = vmul.f32 %v4975_v24, %v11989_v55  ;;  %vm4982_vm9 = vweird.f32 %v4893_v59  ;;  %v4727_v24 = vpop.xlane.xlu0 %4726 }
 0x5b5   : > { %8165 = vrsqrt.f32 %v12156_v45  ;;  %v4759_v31 = vmul.f32 %v4727_v24, %v14093_v28 }
 0x5b6   : > { %v5133_v5 = vmul.f32 %v12104_v9, %v5112_v21  ;;  %8167 = vrsqrt.f32 %v12158_v3 }
 0x5b7   : > { %v12195_v30 = vsub.f32 %v12033_v39, %v4759_v31 }
 0x5b8   : > { %v5154_v55 = vadd.f32 %v12118_v2, %v5133_v5 }
 0x5b9   : > { %14118 = vst [vmem:[#allocation69_spill] sm:$0xff] %v12195_v30 }
 0x5ba   : > { %v8164_v33 = vpop.eup %8163  ;;  %v5214_v38 = vsel %vm685_vm11, %v5154_v55, 0.0 }
 0x5bb   : > { %v4977_v15 = vmul.f32 %v8164_v33, %v4893_v59  ;;  %vm4983_vm7 = vweird.f32 %v8164_v33  ;;  %v8166_v32 = vpop.eup %8165  ;;  %v5234_v41 = vpack.c.bf16 %v5214_v38, %v5214_v38 }
 0x5bc   : > { %vm4984_vm12 = vmor %vm4982_vm9, %vm4983_vm7  ;;  %v8168_v51 = vpop.eup %8167  ;;  %v4907_v4 = vmul.f32 %v8166_v32, %v12156_v45  ;;  %vm4913_vm4 = vweird.f32 %v8166_v32  ;;  %v4832_v45 = vpop.xlane.xlu1 %4831  ;;  %vm636_vm9 = vcmp.ge.s32.totalorder %v14099_v48, %v12094_v11 }
 0x5bd   : > { %v4978_v22 = vmul.f32 %v8164_v33, %v4977_v15  ;;  %v4917_v37 = vmul.f32 %v8168_v51, %v12158_v3  ;;  %v5277_v46 = vunpack.c.l.b16 %v5234_v41  ;;  %v4870_v15 = vmul.f32 %v12087_v7, %v14093_v28  ;;  %vm12202_vm7 = vmor %vm4912_vm5, %vm4913_vm4  ;;  %v14121_v41 = vld [vmem:[#allocation95_spill] sm:$0xff] }
 0x5be   : > { %v4908_v6 = vmul.f32 %v8166_v32, %v4907_v4  ;;  %vm4923_vm1 = vweird.f32 %v8168_v51  ;;  %v4420_v4 = vunpack.c.l.bf16 %v14121_v41 }
 0x5bf   : > { %v4979_v36 = vmul.f32 0.5, %v4978_v22  ;;  %v4918_v62 = vmul.f32 %v8168_v51, %v4917_v37  ;;  %vm4924_vm13 = vmor %vm4922_vm8, %vm4923_vm1 }
 0x5c0   : > { %v4909_v22 = vmul.f32 0.5, %v4908_v6  ;;  %v4730_v6 = vpop.xlane.xlu0 %4729 }
 0x5c1   : > { %v4980_v43 = vsub.f32 1.5, %v4979_v36  ;;  %v4919_v19 = vmul.f32 0.5, %v4918_v62  ;;  %v12187_v36 = vadd.f32 1e-06, %v4870_v15 }
 0x5c2   : > { %v4910_v21 = vsub.f32 1.5, %v4909_v22 }
 0x5c3   : > { %v4981_v53 = vmul.f32 %v8164_v33, %v4980_v43  ;;  %v4920_v43 = vsub.f32 1.5, %v4919_v19 }
 0x5c5   : > { %v4985_v13 = vsel %vm4984_vm12, %v8164_v33, %v4981_v53  ;;  %v14117_v33 = vld [vmem:[#allocation94_spill] sm:$0xff]  ;;  %v4911_v53 = vmul.f32 %v8166_v32, %v4910_v21  ;;  %vm659_vm12 = vcmp.lt.s32.totalorder %v14099_v48, %v12096_v17 }
 0x5c6   : > { %v5113_v16 = vmul.f32 %v4985_v13, %v12025_v8  ;;  %v4871_v8 = vmul.f32 %v12090_v44, %v14093_v28  ;;  %v4419_v56 = vunpack.c.l.bf16 %v14117_v33  ;;  %v4921_v13 = vmul.f32 %v8168_v51, %v4920_v43  ;;  %vm679_vm15 = vmand %vm636_vm9, %vm659_vm12 }
 0x5c8   : > { %v5134_v10 = vmul.f32 %v12104_v9, %v5113_v16  ;;  %v12185_v49 = vadd.f32 1e-06, %v4871_v8  ;;  %v4459_v0 = vmul.f32 %v7852_v25, %v4419_v56  ;;  %v4925_v37 = vsel %vm4924_vm13, %v8168_v51, %v4921_v13 }
 0x5c9   : > { %vm4952_vm13 = vweird.f32 %v12187_v36 }
 0x5ca   : > { %v5155_v52 = vadd.f32 %v12118_v2, %v5134_v10  ;;  %8169 = vrsqrt.f32 %v12185_v49  ;;  %v4479_v44 = vpack.c.bf16 %v4459_v0, %v4459_v0  ;;  %vm4962_vm1 = vweird.f32 %v12185_v49 }
 0x5cb   : > { %8171 = vrsqrt.f32 %v12187_v36 }
 0x5cc   : > { %v5215_v35 = vsel %vm686_vm6, %v5155_v52, 0.0  ;;  %v4661_v7 = vpop.f32.mrf.mxu3  ;;  %v4499_v5 = vunpack.c.l.bf16 %v4479_v44  ;;  %v7853_v52 = vunpack.c.h.bf16 %v7873_v58  ;;  %v4874_v58 = vmul.f32 %v4832_v45, %v14093_v28  ;;  %v14122_v44 = vld [vmem:[#allocation63_spill] sm:$0xff] }
 0x5cd   : > { %v5235_v59 = vpack.c.bf16 %v5215_v35, %v5215_v35  ;;  %v4915_v35 = vsel %vm12202_vm7, %v8166_v32, %v4911_v53  ;;  %v5107_v32 = vmul.f32 %v4925_v37, %v11832_v40  ;;  %v4760_v40 = vmul.f32 %v4730_v6, %v14093_v28 }
 0x5ce   : > { %v12197_v16 = vadd.f32 %v4661_v7, %v4499_v5  ;;  %v12223_v33 = vadd.f32 1e-06, %v4874_v58  ;;  %vm637_vm11 = vcmp.ge.s32.totalorder %v14122_v44, %v12094_v11  ;;  %vm660_vm14 = vcmp.lt.s32.totalorder %v14122_v44, %v12096_v17 }
 0x5cf   : > { %v5278_v14 = vunpack.c.l.b16 %v5235_v59  ;;  %v4799_v59 = vmul.f32 %v12195_v30, %v12195_v30  ;;  %vm680_vm6 = vmand %vm637_vm11, %vm660_vm14  ;;  %v12246_v10 = vsub.f32 %v12053_v50, %v4760_v40 }
 0x5d0   : > { %v12192_v55 = vpop.eup %8169  ;;  %v4740_v25 = vsel %vm747_vm2, %v12197_v16, 0.0  ;;  %8173 = vrsqrt.f32 %v12223_v33  ;;  %vm4992_vm12 = vweird.f32 %v12223_v33 }
 0x5d1   : > { %v12183_v29 = vpack.c.b16 %v5278_v14, %v5277_v46  ;;  %v12200_v38 = vpop.eup %8171  ;;  %v4957_v39 = vmul.f32 %v12192_v55, %v12185_v49  ;;  %4741 = vadd.xlane.f32.xlu2 %v4740_v25  ;;  %v4845_v8 = vsel %vm747_vm2, %v4799_v59, 0.0  ;;  %v4460_v46 = vmul.f32 %v7853_v52, %v4420_v4  ;;  %14123 = vst [vmem:[#allocation71_spill] sm:$0xff] %v12246_v10 }
 0x5d2   : > { %v4947_v3 = vmul.f32 %v12200_v38, %v12187_v36  ;;  %v5106_v14 = vmul.f32 %v4915_v35, %v11631_v57  ;;  %4846 = vadd.xlane.f32.xlu1 %v4845_v8  ;;  %v5128_v57 = vmul.f32 %v12104_v9, %v5107_v32  ;;  %vm4963_vm4 = vweird.f32 %v12192_v55 }
 0x5d3   : > { %v4958_v51 = vmul.f32 %v12192_v55, %v4957_v39  ;;  %v4480_v15 = vpack.c.bf16 %v4460_v46, %v4460_v46  ;;  %v4800_v25 = vmul.f32 %v12246_v10, %v12246_v10  ;;  %vm4953_vm5 = vweird.f32 %v12200_v38  ;;  %vm12261_vm7 = vmor %vm4962_vm1, %vm4963_vm4 }
 0x5d4   : > { %v4948_v56 = vmul.f32 %v12200_v38, %v4947_v3  ;;  %v5127_v22 = vmul.f32 %v12104_v9, %v5106_v14  ;;  %v4663_v43 = vpop.f32.mrf.mxu3  ;;  %v5149_v48 = vadd.f32 %v12118_v2, %v5128_v57  ;;  %v4733_v3 = vpop.xlane.xlu1 %4732  ;;  %vm4954_vm9 = vmor %vm4952_vm13, %vm4953_vm5 }
 0x5d5   : > { %v4959_v19 = vmul.f32 0.5, %v4958_v51  ;;  %v4500_v31 = vunpack.c.l.bf16 %v4480_v15  ;;  %v4761_v46 = vmul.f32 %v4733_v3, %v14093_v28  ;;  %v4848_v51 = vsel %vm747_vm2, %v4800_v25, 0.0  ;;  %v14131_v25 = vld [vmem:[#allocation73_spill] sm:$0xff] }
 0x5d6   : > { %v4949_v21 = vmul.f32 0.5, %v4948_v56  ;;  %v8174_v7 = vpop.eup %8173  ;;  %v5148_v5 = vadd.f32 %v12118_v2, %v5127_v22  ;;  %v5209_v35 = vsel %vm680_vm6, %v5149_v48, 0.0 }
 0x5d7   : > { %v4960_v53 = vsub.f32 1.5, %v4959_v19  ;;  %v4987_v13 = vmul.f32 %v8174_v7, %v12223_v33  ;;  %v12248_v52 = vadd.f32 %v4663_v43, %v4500_v31  ;;  %v5229_v14 = vpack.c.bf16 %v5209_v35, %v5209_v35  ;;  %v5248_v35 = vld [vmem:[#allocation8] sm:$0x3] }
 0x5d8   : > { %v4950_v41 = vsub.f32 1.5, %v4949_v21  ;;  %v5208_v39 = vsel %vm679_vm15, %v5148_v5, 0.0  ;;  %vm4993_vm8 = vweird.f32 %v8174_v7 }
 0x5d9   : > { %v4988_v4 = vmul.f32 %v8174_v7, %v4987_v13  ;;  %v4961_v37 = vmul.f32 %v12192_v55, %v4960_v53  ;;  %v4743_v50 = vsel %vm747_vm2, %v12248_v52, 0.0  ;;  %v5228_v15 = vpack.c.bf16 %v5208_v39, %v5208_v39  ;;  %vm4994_vm11 = vmor %vm4992_vm12, %vm4993_vm8  ;;  %v14130_v39 = vld [vmem:[#allocation74_spill] sm:$0xff] }
 0x5da   : > { %v4835_v62 = vpop.xlane.xlu2 %4834  ;;  %v4951_v58 = vmul.f32 %v12200_v38, %v4950_v41  ;;  %4744 = vadd.xlane.f32.xlu0 %v4743_v50  ;;  %4849 = vadd.xlane.f32.xlu1 %v4848_v51  ;;  %v14129_v41 = vld [vmem:[#allocation78_spill] sm:$0xff]  ;;  %vm641_vm13 = vcmp.ge.s32.totalorder %v14130_v39, %v12094_v11  ;;  %vm640_vm12 = vcmp.ge.s32.totalorder %v14131_v25, %v12094_v11 }
 0x5db   : > { %v4875_v0 = vmul.f32 %v4835_v62, %v14093_v28  ;;  %v4989_v59 = vmul.f32 0.5, %v4988_v4  ;;  %v4965_v56 = vsel %vm12261_vm7, %v12192_v55, %v4961_v37  ;;  %v12271_v62 = vsub.f32 %v12068_v47, %v4761_v46 }
 0x5dc   : > { %v4955_v22 = vsel %vm4954_vm9, %v12200_v38, %v4951_v58  ;;  %v5272_v55 = vunpack.c.l.b16 %v5229_v14  ;;  %v5111_v19 = vmul.f32 %v4965_v56, %v11963_v12  ;;  %v5271_v43 = vunpack.c.l.b16 %v5228_v15  ;;  %v14127_v38 = vld [vmem:[#allocation56_spill] sm:$0xff] }
 0x5dd   : > { %v12235_v24 = vadd.f32 1e-06, %v4875_v0  ;;  %v4990_v32 = vsub.f32 1.5, %v4989_v59  ;;  %14126 = vst [vmem:[#allocation68_spill] sm:$0xff] %v12271_v62  ;;  %v4801_v57 = vmul.f32 %v12271_v62, %v12271_v62  ;;  %v5110_v33 = vmul.f32 %v4955_v22, %v11939_v54 }
 0x5de   : > { %vm644_vm15 = vcmp.ge.s32.totalorder %v14127_v38, %v12094_v11  ;;  %vm667_vm6 = vcmp.lt.s32.totalorder %v14127_v38, %v12096_v17  ;;  %v5291_v5 = vpack.c.b16 %v5272_v55, %v5271_v43  ;;  %v5132_v48 = vmul.f32 %v12104_v9, %v5111_v19 }
 0x5df   : > { %8175 = vrsqrt.f32 %v12235_v24  ;;  %v4991_v0 = vmul.f32 %v8174_v7, %v4990_v32  ;;  %v4851_v21 = vsel %vm747_vm2, %v4801_v57, 0.0  ;;  %vm5002_vm4 = vweird.f32 %v12235_v24  ;;  %vm687_vm5 = vmand %vm644_vm15, %vm667_vm6 }
 0x5e0   : > { %4852 = vadd.xlane.f32.xlu2 %v4851_v21  ;;  %vm645_vm7 = vcmp.ge.s32.totalorder %v14129_v41, %v12094_v11  ;;  %vm668_vm8 = vcmp.lt.s32.totalorder %v14129_v41, %v12096_v17  ;;  %v5131_v4 = vmul.f32 %v12104_v9, %v5110_v33  ;;  %vm664_vm9 = vcmp.lt.s32.totalorder %v14130_v39, %v12096_v17 }
 0x5e1   : > { %v4995_v40 = vsel %vm4994_vm11, %v8174_v7, %v4991_v0  ;;  %v5302_v37 = vshrl.u32 %v5291_v5, 16  ;;  %vm663_vm11 = vcmp.lt.s32.totalorder %v14131_v25, %v12096_v17  ;;  %vm684_vm15 = vmand %vm641_vm13, %vm664_vm9  ;;  %v5496_v58 = vshrl.u32 %v5248_v35, 16 }
 0x5e2   : > { %v5114_v47 = vmul.f32 %v4995_v40, %v12051_v60  ;;  %vm683_vm6 = vmand %vm640_vm12, %vm663_vm11  ;;  %v5305_v56 = vshll.u32 %v5291_v5, 16  ;;  %v5412_v19 = vpack.i.b16 %v5248_v35, %v5248_v35 }
 0x5e3   : > { %v5304_v14 = vrot.slane %v5302_v37, 7 }
 0x5e4   : > { %v5135_v12 = vmul.f32 %v12104_v9, %v5114_v47  ;;  %v5677_v33 = vperm.slane %v5412_v19, 1 }
 0x5e5   : > { %v8176_v45 = vpop.eup %8175  ;;  %v5401_v21 = vsel %vm9780_vm0, %v5304_v14, 0 }
 0x5e6   : > { %v4997_v8 = vmul.f32 %v8176_v45, %v12235_v24  ;;  %vm5003_vm14 = vweird.f32 %v8176_v45  ;;  %v5156_v54 = vadd.f32 %v12118_v2, %v5135_v12 }
 0x5e7   : > { %vm5004_vm1 = vmor %vm5002_vm4, %vm5003_vm14 }
 0x5e8   : > { %v4998_v6 = vmul.f32 %v8176_v45, %v4997_v8  ;;  %vm688_vm14 = vmand %vm645_vm7, %vm668_vm8  ;;  %v5152_v8 = vadd.f32 %v12118_v2, %v5131_v4 }
 0x5ea   : > { %v4999_v36 = vmul.f32 0.5, %v4998_v6  ;;  %v5497_v6 = vpack.i.b16 %v5496_v58, %v5496_v58  ;;  %v5212_v15 = vsel %vm683_vm6, %v5152_v8, 0.0 }
 0x5eb   : > { %v5232_v40 = vpack.c.bf16 %v5212_v15, %v5212_v15  ;;  %v5249_v15 = vld [vmem:[#allocation8 + $0x2] sm:$0x3] }
 0x5ec   : > { %v5000_v44 = vsub.f32 1.5, %v4999_v36  ;;  %v5307_v36 = vor.u32 %v5305_v56, %v5304_v14  ;;  %v5499_v47 = vperm.slane %v5497_v6, 0  ;;  %v7764_v6 = vld [vmem:[#allocation10] sm:$0xff] }
 0x5ed   : > { %v5275_v38 = vunpack.c.l.b16 %v5232_v40  ;;  %7433 = vmatpush.bf16.msra.mxu2 %v7764_v6 }
 0x5ee   : > { %v5001_v7 = vmul.f32 %v8176_v45, %v5000_v44  ;;  %v5391_v44 = vsel %vm9780_vm0, 0, %v5307_v36  ;;  %v5848_v36 = vpack.i.b16 %v5249_v15, %v5249_v15 }
 0x5ef   : > { %v5416_v12 = vunpack.c.l.bf16 %v5391_v44 }
 0x5f0   : > { %v5005_v53 = vsel %vm5004_vm1, %v8176_v45, %v5001_v7  ;;  %v5216_v45 = vsel %vm687_vm5, %v5156_v54, 0.0  ;;  %v5501_v7 = vunpack.c.l.bf16 %v5401_v21  ;;  %v5309_v54 = vshrl.u32 %v12139_v42, 16 }
 0x5f1   : > { %v5115_v24 = vmul.f32 %v5005_v53, %v12066_v61  ;;  %v5153_v61 = vadd.f32 %v12118_v2, %v5132_v48  ;;  %v5236_v46 = vpack.c.bf16 %v5216_v45, %v5216_v45  ;;  %v12324_v48 = vunpack.c.l.bf16 %v5677_v33 }
 0x5f3   : > { %v4736_v31 = vpop.xlane.xlu1 %4735  ;;  %v5136_v59 = vmul.f32 %v12104_v9, %v5115_v24  ;;  %v5213_v32 = vsel %vm684_vm15, %v5153_v61, 0.0  ;;  %v5279_v0 = vunpack.c.l.b16 %v5236_v46  ;;  %v5681_v39 = vmul.f32 %v12324_v48, %v5501_v7 }
 0x5f4   : > { %v4762_v60 = vmul.f32 %v4736_v31, %v14093_v28  ;;  %v5233_v57 = vpack.c.bf16 %v5213_v32, %v5213_v32  ;;  %v12322_v31 = vunpack.c.l.bf16 %v5499_v47  ;;  %v5679_v61 = vmul.f32 %v12324_v48, %v5416_v12 }
 0x5f5   : > { %v5157_v50 = vadd.f32 %v12118_v2, %v5136_v59  ;;  %v5312_v59 = vshll.u32 %v12139_v42, 16 }
 0x5f6   : > { %v12293_v13 = vsub.f32 %v12075_v18, %v4762_v60  ;;  %v5276_v43 = vunpack.c.l.b16 %v5233_v57  ;;  %v5417_v60 = vunpack.c.h.bf16 %v5391_v44  ;;  %v5509_v53 = vmul.f32 %v12322_v31, %v5416_v12 }
 0x5f7   : > { %v5217_v49 = vsel %vm688_vm14, %v5157_v50, 0.0  ;;  %v5511_v41 = vmul.f32 %v5501_v7, %v12322_v31  ;;  %v5705_v50 = vpack.c.bf16 %v5681_v39, %v5681_v39  ;;  %v5918_v57 = vshrl.u32 %v5249_v15, 16 }
 0x5f8   : > { %14128 = vst [vmem:[#allocation54_spill] sm:$0xff] %v12293_v13  ;;  %v4802_v18 = vmul.f32 %v12293_v13, %v12293_v13  ;;  %v5237_v51 = vpack.c.bf16 %v5217_v49, %v5217_v49  ;;  %v5293_v5 = vpack.c.b16 %v5276_v43, %v5275_v38  ;;  %v5510_v24 = vmul.f32 %v12322_v31, %v5417_v60 }
 0x5f9   : > { %v5533_v35 = vpack.c.bf16 %v5509_v53, %v5509_v53  ;;  %v5535_v37 = vpack.c.bf16 %v5511_v41, %v5511_v41  ;;  %v12337_v42 = vunpack.c.l.bf16 %v5705_v50  ;;  %v5919_v38 = vpack.i.b16 %v5918_v57, %v5918_v57 }
 0x5fa   : > { %v4854_v3 = vsel %vm747_vm2, %v4802_v18, 0.0  ;;  %v5280_v22 = vunpack.c.l.b16 %v5237_v51  ;;  %v5316_v4 = vshrl.u32 %v5293_v5, 16  ;;  %v5311_v18 = vrot.slane %v5309_v54, 7 }
 0x5fb   : > { %4855 = vadd.xlane.f32.xlu0 %v4854_v3  ;;  %v5534_v45 = vpack.c.bf16 %v5510_v24, %v5510_v24  ;;  %v5680_v3 = vmul.f32 %v12324_v48, %v5417_v60  ;;  %v5319_v8 = vshll.u32 %v5293_v5, 16  ;;  %v5557_v46 = vunpack.c.l.bf16 %v5533_v35 }
 0x5fc   : > { %v12316_v55 = vpack.c.b16 %v5280_v22, %v5279_v0  ;;  %v12332_v25 = vrot.slane %v5316_v4, 7  ;;  %v5314_v58 = vor.u32 %v5312_v59, %v5311_v18  ;;  %v5559_v14 = vunpack.c.l.bf16 %v5535_v37 }
 0x5fd   : > { %v5558_v49 = vunpack.c.l.bf16 %v5534_v45  ;;  %v5703_v51 = vpack.c.bf16 %v5679_v61, %v5679_v61  ;;  %v5704_v56 = vpack.c.bf16 %v5680_v3, %v5680_v3  ;;  %v5414_v0 = vperm.slane %v5412_v19, 0 }
 0x5fe   : > { %v5321_v32 = vor.u32 %v5319_v8, %v12332_v25  ;;  %v5392_v22 = vsel %vm9780_vm0, 0, %v5314_v58  ;;  %v5605_v40 = vrot.slane %v5557_v46, 1  ;;  %v5608_v47 = vrot.slane %v5559_v14, 1 }
 0x5ff   : > { %v5402_v44 = vsel %vm9780_vm0, %v5311_v18, 0  ;;  %v12343_v21 = vunpack.c.l.bf16 %v5414_v0  ;;  %v5606_v43 = vrot.slane %v5558_v49, 1  ;;  %v5850_v19 = vperm.slane %v5848_v36, 0 }
 0x600   : > { %v5393_v33 = vsel %vm9780_vm0, 0, %v5321_v32  ;;  %v12347_v7 = vunpack.c.l.bf16 %v5392_v22  ;;  %v12349_v5 = vunpack.c.h.bf16 %v5392_v22  ;;  %v6092_v53 = vperm.slane %v5848_v36, 1 }
 0x601   : > { %v5432_v54 = vmul.f32 %v5416_v12, %v12343_v21  ;;  %v5778_v41 = vrot.slane %v12337_v42, 2  ;;  %v12353_v24 = vunpack.c.l.bf16 %v5402_v44  ;;  %v5403_v4 = vsel %vm9780_vm0, %v12332_v25, 0  ;;  %v5250_v12 = vld [vmem:[#allocation8 + $0x4] sm:$0x3] }
 0x602   : > { %v5433_v39 = vmul.f32 %v5417_v60, %v12343_v21  ;;  %v12359_v18 = vunpack.c.l.bf16 %v5393_v33  ;;  %v5727_v35 = vunpack.c.l.bf16 %v5703_v51  ;;  %v12361_v37 = vunpack.c.l.bf16 %v5850_v19 }
 0x603   : > { %v5921_v45 = vperm.slane %v5919_v38, 0  ;;  %v12363_v59 = vunpack.c.h.bf16 %v5393_v33  ;;  %v5607_v61 = vsel %vm3025_vm10, %v5605_v40, %v5606_v43  ;;  %v5728_v3 = vunpack.c.l.bf16 %v5704_v56 }
 0x604   : > { %v12366_v50 = vunpack.c.l.bf16 %v6092_v53  ;;  %v5448_v58 = vpack.c.bf16 %v5432_v54, %v5432_v54  ;;  %v5854_v25 = vmul.f32 %v12361_v37, %v12347_v7  ;;  %v5855_v60 = vmul.f32 %v12361_v37, %v12349_v5 }
 0x605   : > { %v6263_v8 = vpack.i.b16 %v5250_v12, %v5250_v12  ;;  %v5449_v46 = vpack.c.bf16 %v5433_v39, %v5433_v39  ;;  %v5609_v14 = vsel %vm3025_vm10, %v5606_v43, %v5608_v47  ;;  %v12373_v49 = vunpack.c.l.bf16 %v5921_v45 }
 0x606   : > { %v6094_v32 = vmul.f32 %v12366_v50, %v12347_v7  ;;  %v5775_v51 = vrot.slane %v5727_v35, 2  ;;  %v6095_v56 = vmul.f32 %v12366_v50, %v12349_v5  ;;  %v6333_v15 = vshrl.u32 %v5250_v12, 16 }
 0x607   : > { %v6265_v6 = vperm.slane %v6263_v8, 0  ;;  %v5924_v0 = vmul.f32 %v12373_v49, %v12347_v7  ;;  %v5925_v42 = vmul.f32 %v12373_v49, %v12349_v5  ;;  %v5926_v22 = vmul.f32 %v12373_v49, %v12353_v24 }
 0x608   : > { %v6096_v36 = vmul.f32 %v12366_v50, %v12353_v24  ;;  %v5464_v57 = vunpack.c.l.bf16 %v5448_v58  ;;  %v5776_v40 = vrot.slane %v5728_v3, 2  ;;  %v5870_v47 = vpack.c.bf16 %v5854_v25, %v5854_v25 }
 0x609   : > { %v5871_v44 = vpack.c.bf16 %v5855_v60, %v5855_v60  ;;  %v5465_v43 = vunpack.c.l.bf16 %v5449_v46  ;;  %v5948_v33 = vpack.c.bf16 %v5924_v0, %v5924_v0  ;;  %v5949_v19 = vpack.c.bf16 %v5925_v42, %v5925_v42 }
 0x60a   : > { %v6118_v38 = vpack.c.bf16 %v6094_v32, %v6094_v32  ;;  %v5661_v54 = vadd.f32 %v5607_v61, %v5464_v57  ;;  %v5950_v53 = vpack.c.bf16 %v5926_v22, %v5926_v22  ;;  %v6119_v39 = vpack.c.bf16 %v6095_v56, %v6095_v56 }
 0x60b   : > { %v12387_v35 = vunpack.c.l.bf16 %v6265_v6  ;;  %v5662_v45 = vadd.f32 %v5609_v14, %v5465_v43  ;;  %v5972_v12 = vunpack.c.l.bf16 %v5948_v33  ;;  %v5973_v13 = vunpack.c.l.bf16 %v5949_v19 }
 0x60c   : > { %v6120_v62 = vpack.c.bf16 %v6096_v36, %v6096_v36  ;;  %v5777_v10 = vsel %vm3238_vm3, %v5775_v51, %v5776_v40  ;;  %v5886_v30 = vunpack.c.l.bf16 %v5870_v47  ;;  %v5887_v58 = vunpack.c.l.bf16 %v5871_v44 }
 0x60d   : > { %v5974_v3 = vunpack.c.l.bf16 %v5950_v53  ;;  %v6020_v25 = vrot.slane %v5972_v12, 1  ;;  %v6021_v60 = vrot.slane %v5973_v13, 1  ;;  %v6142_v46 = vunpack.c.l.bf16 %v6118_v38 }
 0x60e   : > { %v6143_v0 = vunpack.c.l.bf16 %v6119_v39  ;;  %v5779_v32 = vsel %vm3238_vm3, %v5776_v40, %v5778_v41  ;;  %v5831_v61 = vadd.f32 %v5777_v10, %v5661_v54  ;;  %v6334_v42 = vpack.i.b16 %v6333_v15, %v6333_v15 }
 0x60f   : > { %v6507_v56 = vperm.slane %v6263_v8, 1  ;;  %v5832_v6 = vadd.f32 %v5779_v32, %v5662_v45  ;;  %v6144_v22 = vunpack.c.l.bf16 %v6120_v62  ;;  %v6269_v14 = vmul.f32 %v12387_v35, %v12359_v18 }
 0x610   : > { %v6270_v51 = vmul.f32 %v12387_v35, %v12363_v59  ;;  %v12395_v36 = vunpack.c.l.bf16 %v5403_v4  ;;  %v5902_v57 = vadd.f32 %v5886_v30, %v5831_v61  ;;  %v6023_v47 = vrot.slane %v5974_v3, 1 }
 0x611   : > { %v5903_v13 = vadd.f32 %v5887_v58, %v5832_v6  ;;  %v6022_v44 = vsel %vm3025_vm10, %v6020_v25, %v6021_v60  ;;  %v6190_v43 = vrot.slane %v6142_v46, 2  ;;  %v6191_v41 = vrot.slane %v6143_v0, 2 }
 0x612   : > { %v6024_v10 = vsel %vm3025_vm10, %v6021_v60, %v6023_v47  ;;  %v6336_v8 = vperm.slane %v6334_v42, 0  ;;  %v12399_v15 = vunpack.c.l.bf16 %v6507_v56  ;;  %v6193_v62 = vrot.slane %v6144_v22, 2 }
 0x613   : > { %v6285_v40 = vpack.c.bf16 %v6269_v14, %v6269_v14  ;;  %v6286_v33 = vpack.c.bf16 %v6270_v51, %v6270_v51  ;;  %v6076_v19 = vadd.f32 %v6022_v44, %v5902_v57  ;;  %v6077_v54 = vadd.f32 %v6024_v10, %v5903_v13 }
 0x614   : > { %v12401_v38 = vunpack.c.l.bf16 %v6336_v8  ;;  %v6509_v30 = vmul.f32 %v12399_v15, %v12359_v18  ;;  %v6510_v4 = vmul.f32 %v12399_v15, %v12363_v59  ;;  %v6192_v53 = vsel %vm3238_vm3, %v6190_v43, %v6191_v41 }
 0x615   : > { %v6194_v39 = vsel %vm3238_vm3, %v6191_v41, %v6193_v62  ;;  %v6511_v45 = vmul.f32 %v12399_v15, %v12395_v36  ;;  %v6301_v60 = vunpack.c.l.bf16 %v6285_v40  ;;  %v6302_v46 = vunpack.c.l.bf16 %v6286_v33 }
 0x616   : > { %v6339_v12 = vmul.f32 %v12401_v38, %v12359_v18  ;;  %v6340_v58 = vmul.f32 %v12401_v38, %v12363_v59  ;;  %v6341_v3 = vmul.f32 %v12401_v38, %v12395_v36  ;;  %v6533_v25 = vpack.c.bf16 %v6509_v30, %v6509_v30 }
 0x617   : > { %v6534_v0 = vpack.c.bf16 %v6510_v4, %v6510_v4  ;;  %v6535_v32 = vpack.c.bf16 %v6511_v45, %v6511_v45  ;;  %v6246_v22 = vadd.f32 %v6192_v53, %v6076_v19  ;;  %v6247_v14 = vadd.f32 %v6194_v39, %v6077_v54 }
 0x618   : > { %v6363_v61 = vpack.c.bf16 %v6339_v12, %v6339_v12  ;;  %v6364_v42 = vpack.c.bf16 %v6340_v58, %v6340_v58  ;;  %v6365_v56 = vpack.c.bf16 %v6341_v3, %v6341_v3  ;;  %v6557_v6 = vunpack.c.l.bf16 %v6533_v25 }
 0x619   : > { %v6558_v51 = vunpack.c.l.bf16 %v6534_v0  ;;  %v6559_v44 = vunpack.c.l.bf16 %v6535_v32  ;;  %v6317_v43 = vadd.f32 %v6301_v60, %v6246_v22  ;;  %v6318_v41 = vadd.f32 %v6302_v46, %v6247_v14 }
 0x61a   : > { %v6387_v57 = vunpack.c.l.bf16 %v6363_v61  ;;  %v6388_v47 = vunpack.c.l.bf16 %v6364_v42  ;;  %v6389_v13 = vunpack.c.l.bf16 %v6365_v56  ;;  %v6605_v10 = vrot.slane %v6557_v6, 2 }
 0x61b   : > { %v6606_v33 = vrot.slane %v6558_v51, 2  ;;  %v6608_v45 = vrot.slane %v6559_v44, 2  ;;  %v12420_v54 = vperm.slane %v12101_v34, 4 }
 0x61c   : > { %v6435_v8 = vrot.slane %v6387_v57, 1  ;;  %v6436_v62 = vrot.slane %v6388_v47, 1  ;;  %v6438_v40 = vrot.slane %v6389_v13, 1  ;;  %v12438_v13 = vpop.xlane.xlu2 %4837 }
 0x61d   : > { %v6607_v53 = vsel %vm3238_vm3, %v6605_v10, %v6606_v33  ;;  %v6609_v39 = vsel %vm3238_vm3, %v6606_v33, %v6608_v45 }
 0x61e   : > { %v6437_v30 = vsel %vm3025_vm10, %v6435_v8, %v6436_v62  ;;  %v6439_v4 = vsel %vm3025_vm10, %v6436_v62, %v6438_v40 }
 0x61f   : > { %v6491_v12 = vadd.f32 %v6437_v30, %v6317_v43  ;;  %v6492_v19 = vadd.f32 %v6439_v4, %v6318_v41 }
 0x621   : > { %v6661_v58 = vadd.f32 %v6607_v53, %v6491_v12  ;;  %v6662_v3 = vadd.f32 %v6609_v39, %v6492_v19 }
 0x623   : > { %v12425_v25 = vadd.f32 %v12420_v54, %v6661_v58  ;;  %v12428_v60 = vadd.f32 %v12420_v54, %v6662_v3 }
 0x625   : > { %v12431_v46 = vmul.f32 0.70710677, %v12425_v25  ;;  %v12434_v0 = vmul.f32 0.70710677, %v12428_v60 }
 0x627   : > { %v6758_v34 = vand.u32 2147483647, %v12431_v46  ;;  %v6759_v32 = vand.u32 2147483647, %v12434_v0  ;;  %vm6726_vm11 = vcmp.ge.f32.partialorder %v12431_v46, 0.0  ;;  %vm6727_vm14 = vcmp.ge.f32.partialorder %v12434_v0, 0.0 }
 0x628   : > { %v6742_v46 = vsel %vm6726_vm11, 1.0, %v13950_v27  ;;  %v6743_v0 = vsel %vm6727_vm14, 1.0, %v13950_v27 }
 0x629   : > { %v6774_v61 = vmul.f32 0.3275911, %v6758_v34  ;;  %v6775_v42 = vmul.f32 0.3275911, %v6759_v32  ;;  %v7190_v39 = vsub.f32 0.0, %v6758_v34 }
 0x62b   : > { %v6790_v56 = vadd.f32 1.0, %v6774_v61  ;;  %v6791_v6 = vadd.f32 1.0, %v6775_v42  ;;  %v7191_v61 = vsub.f32 0.0, %v6759_v32 }
 0x62d   : > { %8177 = vrcp.f32 %v6790_v56  ;;  %v6817_v44 = vand.u32 2147483648, %v6790_v56  ;;  %v6815_v10 = vand.u32 2147483647, %v6790_v56  ;;  %v6832_v8 = vand.u32 2147483648, %v6791_v6 }
 0x62e   : > { %8179 = vrcp.f32 %v6791_v6  ;;  %v6830_v40 = vand.u32 2147483647, %v6791_v6  ;;  %vm6811_vm5 = vweird.f32 %v6790_v56  ;;  %vm6826_vm8 = vweird.f32 %v6791_v6 }
 0x62f   : > { %v6818_v30 = vor.u32 1.1754944e-38, %v6817_v44  ;;  %vm6816_vm13 = vcmp.eq.f32.partialorder %v6815_v10, 8.507059e+37  ;;  %v6833_v12 = vor.u32 1.1754944e-38, %v6832_v8  ;;  %v7207_v44 = vmul.f32 %v7191_v61, %v6759_v32 }
 0x630   : > { %vm6831_vm12 = vcmp.eq.f32.partialorder %v6830_v40, 8.507059e+37 }
 0x633   : > { %v8178_v22 = vpop.eup %8177 }
 0x634   : > { %v8180_v14 = vpop.eup %8179  ;;  %v6807_v51 = vmul.f32 %v8178_v22, %v6790_v56  ;;  %vm6812_vm4 = vweird.f32 %v8178_v22  ;;  %v4739_v56 = vpop.xlane.xlu2 %4738 }
 0x635   : > { %v6822_v57 = vmul.f32 %v8180_v14, %v6791_v6  ;;  %vm6827_vm1 = vweird.f32 %v8180_v14  ;;  %vm6813_vm7 = vmor %vm6811_vm5, %vm6812_vm4 }
 0x636   : > { %v6808_v47 = vsub.f32 1.0, %v6807_v51  ;;  %vm6828_vm9 = vmor %vm6826_vm8, %vm6827_vm1 }
 0x637   : > { %v6823_v43 = vsub.f32 1.0, %v6822_v57 }
 0x638   : > { %v6809_v41 = vmul.f32 %v8178_v22, %v6808_v47  ;;  %v7206_v47 = vmul.f32 %v7190_v39, %v6758_v34 }
 0x639   : > { %v6824_v62 = vmul.f32 %v8180_v14, %v6823_v43 }
 0x63a   : > { %v6810_v33 = vadd.f32 %v8178_v22, %v6809_v41  ;;  %v7222_v8 = vmul.f32 1.442695, %v7206_v47 }
 0x63b   : > { %v6825_v4 = vadd.f32 %v8180_v14, %v6824_v62 }
 0x63c   : > { %v6814_v45 = vsel %vm6813_vm7, %v8178_v22, %v6810_v33  ;;  %v4763_v22 = vmul.f32 %v4739_v56, %v14093_v28  ;;  %8181 = vpow2.f32 %v7222_v8  ;;  %v5434_v8 = vmul.f32 %v12347_v7, %v12343_v21 }
 0x63d   : > { %v6819_v19 = vsel %vm6816_vm13, %v6818_v30, %v6814_v45  ;;  %v6829_v53 = vsel %vm6828_vm9, %v8180_v14, %v6825_v4  ;;  %v7224_v14 = vmul.f32 1.442695, %v7207_v44  ;;  %v5514_v4 = vmul.f32 %v12353_v24, %v12322_v31 }
 0x63e   : > { %v6834_v58 = vsel %vm6831_vm12, %v6833_v12, %v6829_v53  ;;  %v7046_v3 = vmul.f32 1.0614054, %v6819_v19  ;;  %v12442_v30 = vsub.f32 %v12137_v26, %v4763_v22 }
 0x63f   : > { %v7047_v42 = vmul.f32 1.0614054, %v6834_v58  ;;  %8183 = vpow2.f32 %v7224_v14  ;;  %v5538_v39 = vpack.c.bf16 %v5514_v4, %v5514_v4  ;;  %v5683_v4 = vmul.f32 %v12324_v48, %v12349_v5 }
 0x640   : > { %v7062_v51 = vadd.f32 -1.4531521, %v7046_v3  ;;  %v4803_v53 = vmul.f32 %v12442_v30, %v12442_v30 }
 0x641   : > { %v7063_v57 = vadd.f32 -1.4531521, %v7047_v42  ;;  %v5562_v44 = vunpack.c.l.bf16 %v5538_v39  ;;  %v6695_v39 = vmul.f32 0.5, %v12428_v60 }
 0x642   : > { %v7078_v43 = vmul.f32 %v7062_v51, %v6819_v19  ;;  %v4857_v42 = vsel %vm747_vm2, %v4803_v53, 0.0  ;;  %v8182_v51 = vpop.eup %8181  ;;  %v6694_v53 = vmul.f32 0.5, %v12425_v25 }
 0x643   : > { %v7079_v41 = vmul.f32 %v7063_v57, %v6834_v58  ;;  %4858 = vadd.xlane.f32.xlu1 %v4857_v42  ;;  %v5512_v57 = vmul.f32 %v12322_v31, %v12347_v7  ;;  %v5613_v25 = vrot.slane %v5562_v44, 1  ;;  %v5927_v44 = vmul.f32 %v12373_v49, %v12359_v18 }
 0x644   : > { %v7094_v6 = vadd.f32 1.4214138, %v7078_v43  ;;  %v5513_v43 = vmul.f32 %v12322_v31, %v12349_v5 }
 0x645   : > { %v7095_v10 = vadd.f32 1.4214138, %v7079_v41  ;;  %v8184_v47 = vpop.eup %8183  ;;  %v5323_v41 = vshrl.u32 %v12183_v29, 16  ;;  %v5536_v22 = vpack.c.bf16 %v5512_v57, %v5512_v57  ;;  %v5707_v57 = vpack.c.bf16 %v5683_v4, %v5683_v4 }
 0x646   : > { %v7110_v62 = vmul.f32 %v7094_v6, %v6819_v19  ;;  %v5537_v14 = vpack.c.bf16 %v5513_v43, %v5513_v43  ;;  %v5928_v4 = vmul.f32 %v12373_v49, %v12363_v59 }
 0x647   : > { %v7111_v40 = vmul.f32 %v7095_v10, %v6834_v58 }
 0x648   : > { %v7126_v33 = vadd.f32 -0.28449672, %v7110_v62  ;;  %v5435_v62 = vmul.f32 %v12349_v5, %v12343_v21 }
 0x649   : > { %v7127_v34 = vadd.f32 -0.28449672, %v7111_v40 }
 0x64a   : > { %v7142_v45 = vmul.f32 %v7126_v33, %v6819_v19  ;;  %v5560_v33 = vunpack.c.l.bf16 %v5536_v22 }
 0x64b   : > { %v7143_v32 = vmul.f32 %v7127_v34, %v6834_v58  ;;  %v12468_v34 = vrot.slane %v5323_v41, 7 }
 0x64c   : > { %v7158_v12 = vadd.f32 0.2548296, %v7142_v45  ;;  %v5326_v45 = vshll.u32 %v12183_v29, 16 }
 0x64d   : > { %v7159_v3 = vadd.f32 0.2548296, %v7143_v32 }
 0x64e   : > { %v7174_v61 = vmul.f32 %v7158_v12, %v6819_v19  ;;  %v5684_v19 = vmul.f32 %v12324_v48, %v12353_v24  ;;  %v5682_v24 = vmul.f32 %v12324_v48, %v12347_v7  ;;  %v5561_v12 = vunpack.c.l.bf16 %v5537_v14 }
 0x64f   : > { %v7175_v26 = vmul.f32 %v7159_v3, %v6834_v58  ;;  %v5328_v41 = vor.u32 %v5326_v45, %v12468_v34 }
 0x650   : > { %v7254_v56 = vmul.f32 %v8182_v51, %v7174_v61  ;;  %v5706_v61 = vpack.c.bf16 %v5682_v24, %v5682_v24  ;;  %v5450_v51 = vpack.c.bf16 %v5434_v8, %v5434_v8  ;;  %v5708_v5 = vpack.c.bf16 %v5684_v19, %v5684_v19 }
 0x651   : > { %v7255_v6 = vmul.f32 %v8184_v47, %v7175_v26  ;;  %v5451_v26 = vpack.c.bf16 %v5435_v62, %v5435_v62  ;;  %v5610_v47 = vrot.slane %v5560_v33, 1  ;;  %v5856_v19 = vmul.f32 %v12361_v37, %v12359_v18 }
 0x652   : > { %v7270_v58 = vsub.f32 1.0, %v7254_v56  ;;  %v5611_v56 = vrot.slane %v5561_v12, 1  ;;  %v5732_v8 = vunpack.c.l.bf16 %v5708_v5  ;;  %v6097_v5 = vmul.f32 %v12366_v50, %v12359_v18 }
 0x653   : > { %v7271_v10 = vsub.f32 1.0, %v7255_v6  ;;  %v5730_v6 = vunpack.c.l.bf16 %v5706_v61  ;;  %v5467_v22 = vunpack.c.l.bf16 %v5451_v26  ;;  %v5929_v61 = vmul.f32 %v12373_v49, %v12395_v36 }
 0x654   : > { %v7286_v40 = vmul.f32 %v7270_v58, %v6742_v46  ;;  %v5731_v58 = vunpack.c.l.bf16 %v5707_v57  ;;  %v5614_v14 = vsel %vm3025_vm10, %v5611_v56, %v5613_v25  ;;  %v5952_v57 = vpack.c.bf16 %v5928_v4, %v5928_v4 }
 0x655   : > { %v7287_v32 = vmul.f32 %v7271_v10, %v6743_v0  ;;  %v5466_v0 = vunpack.c.l.bf16 %v5450_v51  ;;  %v5612_v10 = vsel %vm3025_vm10, %v5610_v47, %v5611_v56  ;;  %v5780_v33 = vrot.slane %v5730_v6, 2 }
 0x656   : > { %v7302_v3 = vadd.f32 1.0, %v7286_v40  ;;  %v5857_v40 = vmul.f32 %v12361_v37, %v12363_v59  ;;  %v5781_v24 = vrot.slane %v5731_v58, 2  ;;  %v5664_v12 = vadd.f32 %v5614_v14, %v5467_v22 }
 0x657   : > { %v7303_v42 = vadd.f32 1.0, %v7287_v32  ;;  %v5663_v32 = vadd.f32 %v5612_v10, %v5466_v0  ;;  %v5394_v51 = vsel %vm9780_vm0, 0, %v5328_v41  ;;  %v5953_v56 = vpack.c.bf16 %v5929_v61, %v5929_v61 }
 0x658   : > { %v7318_v7 = vmul.f32 %v7302_v3, %v6694_v53  ;;  %v5872_v53 = vpack.c.bf16 %v5856_v19, %v5856_v19  ;;  %v5873_v3 = vpack.c.bf16 %v5857_v40, %v5857_v40  ;;  %v5782_v26 = vsel %vm3238_vm3, %v5780_v33, %v5781_v24 }
 0x659   : > { %v7319_v43 = vmul.f32 %v7303_v42, %v6695_v39  ;;  %v5783_v39 = vrot.slane %v5732_v8, 2  ;;  %v5951_v42 = vpack.c.bf16 %v5927_v44, %v5927_v44  ;;  %v5976_v6 = vunpack.c.l.bf16 %v5952_v57 }
 0x65a   : > { %v7334_v29 = vpack.c.bf16 %v7318_v7, %v7318_v7  ;;  %v5888_v47 = vunpack.c.l.bf16 %v5872_v53  ;;  %v12495_v0 = vunpack.c.l.bf16 %v5394_v51  ;;  %v5833_v25 = vadd.f32 %v5782_v26, %v5663_v32 }
 0x65b   : > { %v7335_v46 = vpack.c.bf16 %v7319_v43, %v7319_v43  ;;  %v5784_v7 = vsel %vm3238_vm3, %v5781_v24, %v5783_v39  ;;  %v5889_v43 = vunpack.c.l.bf16 %v5873_v3  ;;  %v5977_v58 = vunpack.c.l.bf16 %v5953_v56 }
 0x65c   : > { %v7372_v60 = vunpack.c.l.b16 %v7334_v29  ;;  %v5975_v29 = vunpack.c.l.bf16 %v5951_v42  ;;  %v5834_v41 = vadd.f32 %v5784_v7, %v5664_v12  ;;  %v6026_v22 = vrot.slane %v5976_v6, 1 }
 0x65d   : > { %v7373_v62 = vunpack.c.l.b16 %v7335_v46  ;;  %v6098_v46 = vmul.f32 %v12366_v50, %v12363_v59  ;;  %v6099_v10 = vmul.f32 %v12366_v50, %v12395_v36  ;;  %v5404_v8 = vsel %vm9780_vm0, %v12468_v34, 0 }
 0x65e   : > { %v5904_v19 = vadd.f32 %v5888_v47, %v5833_v25  ;;  %v5905_v40 = vadd.f32 %v5889_v43, %v5834_v41  ;;  %v6028_v33 = vrot.slane %v5977_v58, 1  ;;  %v12502_v44 = vunpack.c.h.bf16 %v5394_v51 }
 0x65f   : > { %v7388_v45 = vpack.c.b16 %v7373_v62, %v7372_v60  ;;  %v6025_v60 = vrot.slane %v5975_v29, 1  ;;  %v6121_v62 = vpack.c.bf16 %v6097_v5, %v6097_v5  ;;  %v6122_v14 = vpack.c.bf16 %v6098_v46, %v6098_v46 }
 0x660   : > { %v6123_v24 = vpack.c.bf16 %v6099_v10, %v6099_v10  ;;  %v12507_v32 = vunpack.c.l.bf16 %v5404_v8  ;;  %v6029_v12 = vsel %vm3025_vm10, %v6026_v22, %v6028_v33  ;;  %v6272_v51 = vmul.f32 %v12387_v35, %v12502_v44 }
 0x661   : > { %7737 = vmatmul.msk.bf16.vlgmr.msra.gmra.mxu2 %vm747_vm2, %v7388_v45  ;;  %v6027_v4 = vsel %vm3025_vm10, %v6025_v60, %v6026_v22  ;;  %v6271_v45 = vmul.f32 %v12387_v35, %v12495_v0  ;;  %v6145_v53 = vunpack.c.l.bf16 %v6121_v62  ;;  %v6146_v39 = vunpack.c.l.bf16 %v6122_v14 }
 0x662   : > { %v6147_v34 = vunpack.c.l.bf16 %v6123_v24  ;;  %v6078_v3 = vadd.f32 %v6027_v4, %v5904_v19  ;;  %v6079_v61 = vadd.f32 %v6029_v12, %v5905_v40  ;;  %v6342_v47 = vmul.f32 %v12401_v38, %v12495_v0 }
 0x663   : > { %v6195_v42 = vrot.slane %v6145_v53, 2  ;;  %v6196_v26 = vrot.slane %v6146_v39, 2  ;;  %v6287_v7 = vpack.c.bf16 %v6271_v45, %v6271_v45  ;;  %v6343_v56 = vmul.f32 %v12401_v38, %v12502_v44 }
 0x664   : > { %v6198_v57 = vrot.slane %v6147_v34, 2  ;;  %v6344_v5 = vmul.f32 %v12401_v38, %v12507_v32  ;;  %v6512_v43 = vmul.f32 %v12399_v15, %v12495_v0  ;;  %v6288_v6 = vpack.c.bf16 %v6272_v51, %v6272_v51 }
 0x665   : > { %v6197_v29 = vsel %vm3238_vm3, %v6195_v42, %v6196_v26  ;;  %v6303_v46 = vunpack.c.l.bf16 %v6287_v7  ;;  %v6366_v58 = vpack.c.bf16 %v6342_v47, %v6342_v47  ;;  %v6367_v60 = vpack.c.bf16 %v6343_v56, %v6343_v56 }
 0x666   : > { %v6199_v25 = vsel %vm3238_vm3, %v6196_v26, %v6198_v57  ;;  %v6248_v41 = vadd.f32 %v6197_v29, %v6078_v3  ;;  %v6304_v22 = vunpack.c.l.bf16 %v6288_v6  ;;  %v6368_v10 = vpack.c.bf16 %v6344_v5, %v6344_v5 }
 0x667   : > { %v6513_v8 = vmul.f32 %v12399_v15, %v12502_v44  ;;  %v6514_v62 = vmul.f32 %v12399_v15, %v12507_v32  ;;  %v6249_v14 = vadd.f32 %v6199_v25, %v6079_v61  ;;  %v6390_v19 = vunpack.c.l.bf16 %v6366_v58 }
 0x668   : > { %v6391_v40 = vunpack.c.l.bf16 %v6367_v60  ;;  %v6536_v33 = vpack.c.bf16 %v6512_v43, %v6512_v43  ;;  %v6319_v24 = vadd.f32 %v6303_v46, %v6248_v41  ;;  %v6392_v4 = vunpack.c.l.bf16 %v6368_v10 }
 0x669   : > { %v6537_v45 = vpack.c.bf16 %v6513_v8, %v6513_v8  ;;  %v6538_v12 = vpack.c.bf16 %v6514_v62, %v6514_v62  ;;  %v6320_v53 = vadd.f32 %v6304_v22, %v6249_v14  ;;  %v6440_v39 = vrot.slane %v6390_v19, 1 }
 0x66a   : > { %v6441_v34 = vrot.slane %v6391_v40, 1  ;;  %v6560_v3 = vunpack.c.l.bf16 %v6536_v33  ;;  %v6443_v42 = vrot.slane %v6392_v4, 1 }
 0x66b   : > { %v6561_v26 = vunpack.c.l.bf16 %v6537_v45  ;;  %v6562_v57 = vunpack.c.l.bf16 %v6538_v12 }
 0x66c   : > { %v6442_v51 = vsel %vm3025_vm10, %v6440_v39, %v6441_v34  ;;  %v6610_v7 = vrot.slane %v6560_v3, 2  ;;  %v6444_v47 = vsel %vm3025_vm10, %v6441_v34, %v6443_v42 }
 0x66d   : > { %v6493_v61 = vadd.f32 %v6442_v51, %v6319_v24  ;;  %v6611_v56 = vrot.slane %v6561_v26, 2  ;;  %v6613_v5 = vrot.slane %v6562_v57, 2  ;;  %v6494_v43 = vadd.f32 %v6444_v47, %v6320_v53 }
 0x66f   : > { %v6612_v29 = vsel %vm3238_vm3, %v6610_v7, %v6611_v56  ;;  %v6614_v6 = vsel %vm3238_vm3, %v6611_v56, %v6613_v5 }
 0x670   : > { %v6663_v46 = vadd.f32 %v6612_v29, %v6493_v61  ;;  %v6664_v25 = vadd.f32 %v6614_v6, %v6494_v43 }
 0x672   : > { %v12531_v41 = vadd.f32 %v12420_v54, %v6663_v46  ;;  %v12534_v58 = vadd.f32 %v12420_v54, %v6664_v25 }
 0x674   : > { %v12537_v60 = vmul.f32 0.70710677, %v12531_v41  ;;  %v12540_v22 = vmul.f32 0.70710677, %v12534_v58 }
 0x676   : > { %v6760_v10 = vand.u32 2147483647, %v12537_v60  ;;  %v6761_v8 = vand.u32 2147483647, %v12540_v22  ;;  %vm6728_vm9 = vcmp.ge.f32.partialorder %v12537_v60, 0.0  ;;  %vm6729_vm12 = vcmp.ge.f32.partialorder %v12540_v22, 0.0 }
 0x678   : > { %v6776_v62 = vmul.f32 0.3275911, %v6760_v10  ;;  %v6777_v14 = vmul.f32 0.3275911, %v6761_v8  ;;  %v7192_v29 = vsub.f32 0.0, %v6760_v10  ;;  %v7193_v25 = vsub.f32 0.0, %v6761_v8 }
 0x67a   : > { %v6792_v19 = vadd.f32 1.0, %v6776_v62  ;;  %v6793_v40 = vadd.f32 1.0, %v6777_v14 }
 0x67c   : > { %8185 = vrcp.f32 %v6792_v19  ;;  %v6847_v53 = vand.u32 2147483648, %v6792_v19  ;;  %v6845_v3 = vand.u32 2147483647, %v6792_v19  ;;  %v6862_v42 = vand.u32 2147483648, %v6793_v40 }
 0x67d   : > { %8187 = vrcp.f32 %v6793_v40  ;;  %v6860_v57 = vand.u32 2147483647, %v6793_v40  ;;  %vm6841_vm4 = vweird.f32 %v6792_v19  ;;  %vm6856_vm5 = vweird.f32 %v6793_v40 }
 0x67e   : > { %v6848_v7 = vor.u32 1.1754944e-38, %v6847_v53  ;;  %vm6846_vm7 = vcmp.eq.f32.partialorder %v6845_v3, 8.507059e+37  ;;  %v6863_v56 = vor.u32 1.1754944e-38, %v6862_v42 }
 0x67f   : > { %vm6861_vm13 = vcmp.eq.f32.partialorder %v6860_v57, 8.507059e+37 }
 0x682   : > { %v8186_v33 = vpop.eup %8185 }
 0x683   : > { %v8188_v24 = vpop.eup %8187  ;;  %v6837_v4 = vmul.f32 %v8186_v33, %v6792_v19  ;;  %vm6842_vm15 = vweird.f32 %v8186_v33 }
 0x684   : > { %v6852_v45 = vmul.f32 %v8188_v24, %v6793_v40  ;;  %vm6857_vm6 = vweird.f32 %v8188_v24  ;;  %vm6843_vm1 = vmor %vm6841_vm4, %vm6842_vm15 }
 0x685   : > { %v6838_v12 = vsub.f32 1.0, %v6837_v4  ;;  %vm6858_vm8 = vmor %vm6856_vm5, %vm6857_vm6 }
 0x686   : > { %v6853_v39 = vsub.f32 1.0, %v6852_v45  ;;  %v7208_v45 = vmul.f32 %v7192_v29, %v6760_v10 }
 0x687   : > { %v6839_v34 = vmul.f32 %v8186_v33, %v6838_v12  ;;  %v7209_v12 = vmul.f32 %v7193_v25, %v6761_v8  ;;  %v5515_v8 = vmul.f32 %v12322_v31, %v12359_v18 }
 0x688   : > { %v6854_v26 = vmul.f32 %v8188_v24, %v6853_v39 }
 0x689   : > { %v6840_v51 = vadd.f32 %v8186_v33, %v6839_v34  ;;  %v7228_v3 = vmul.f32 1.442695, %v7209_v12  ;;  %v5539_v12 = vpack.c.bf16 %v5515_v8, %v5515_v8 }
 0x68a   : > { %v6855_v47 = vadd.f32 %v8188_v24, %v6854_v26 }
 0x68b   : > { %v6844_v61 = vsel %vm6843_vm1, %v8186_v33, %v6840_v51  ;;  %v7226_v33 = vmul.f32 1.442695, %v7208_v45  ;;  %v5330_v45 = vshrl.u32 %v12316_v55, 16 }
 0x68c   : > { %v6849_v5 = vsel %vm6846_vm7, %v6848_v7, %v6844_v61  ;;  %v6859_v43 = vsel %vm6858_vm8, %v8188_v24, %v6855_v47  ;;  %v4841_v61 = vpop.xlane.xlu0 %4840 }
 0x68d   : > { %v6864_v6 = vsel %vm6861_vm13, %v6863_v56, %v6859_v43  ;;  %v7048_v46 = vmul.f32 1.0614054, %v6849_v5  ;;  %8189 = vpow2.f32 %v7226_v33 }
 0x68e   : > { %v7049_v62 = vmul.f32 1.0614054, %v6864_v6  ;;  %8191 = vpow2.f32 %v7228_v3  ;;  %v5686_v3 = vmul.f32 %v12324_v48, %v12363_v59 }
 0x68f   : > { %v7064_v14 = vadd.f32 -1.4531521, %v7048_v46  ;;  %v4876_v46 = vmul.f32 %v12438_v13, %v14093_v28 }
 0x690   : > { %v7065_v4 = vadd.f32 -1.4531521, %v7049_v62  ;;  %v4877_v62 = vmul.f32 %v4841_v61, %v14093_v28 }
 0x691   : > { %v7080_v19 = vmul.f32 %v7064_v14, %v6849_v5  ;;  %v12557_v60 = vadd.f32 1e-06, %v4876_v46 }
 0x692   : > { %v7081_v53 = vmul.f32 %v7065_v4, %v6864_v6 }
 0x693   : > { %v7096_v39 = vadd.f32 1.4214138, %v7080_v19  ;;  %v8190_v10 = vpop.eup %8189  ;;  %v6744_v19 = vsel %vm6728_vm9, 1.0, %v13950_v27  ;;  %8193 = vrsqrt.f32 %v12557_v60  ;;  %vm5012_vm15 = vweird.f32 %v12557_v60 }
 0x694   : > { %v7097_v40 = vadd.f32 1.4214138, %v7081_v53  ;;  %v8192_v29 = vpop.eup %8191  ;;  %v6745_v53 = vsel %vm6729_vm12, 1.0, %v13950_v27 }
 0x695   : > { %v7112_v34 = vmul.f32 %v7096_v39, %v6849_v5 }
 0x696   : > { %v7113_v42 = vmul.f32 %v7097_v40, %v6864_v6  ;;  %v12560_v40 = vadd.f32 1e-06, %v4877_v62 }
 0x697   : > { %v7128_v26 = vadd.f32 -0.28449672, %v7112_v34  ;;  %v5685_v34 = vmul.f32 %v12324_v48, %v12359_v18 }
 0x698   : > { %v7129_v24 = vadd.f32 -0.28449672, %v7113_v42  ;;  %v6696_v42 = vmul.f32 0.5, %v12531_v41  ;;  %8195 = vrsqrt.f32 %v12560_v40  ;;  %vm5022_vm4 = vweird.f32 %v12560_v40 }
 0x699   : > { %v7144_v57 = vmul.f32 %v7128_v26, %v6849_v5  ;;  %v6697_v26 = vmul.f32 0.5, %v12534_v58  ;;  %v5709_v8 = vpack.c.bf16 %v5685_v34, %v5685_v34  ;;  %v5710_v58 = vpack.c.bf16 %v5686_v3, %v5686_v3 }
 0x69a   : > { %v7145_v51 = vmul.f32 %v7129_v24, %v6864_v6 }
 0x69b   : > { %v7160_v7 = vadd.f32 0.2548296, %v7144_v57 }
 0x69c   : > { %v7161_v47 = vadd.f32 0.2548296, %v7145_v51 }
 0x69d   : > { %v7176_v56 = vmul.f32 %v7160_v7, %v6849_v5  ;;  %v5516_v5 = vmul.f32 %v12322_v31, %v12363_v59  ;;  %v5436_v7 = vmul.f32 %v12359_v18, %v12343_v21 }
 0x69e   : > { %v7177_v43 = vmul.f32 %v7161_v47, %v6864_v6  ;;  %v5517_v6 = vmul.f32 %v12395_v36, %v12322_v31  ;;  %v5563_v47 = vunpack.c.l.bf16 %v5539_v12  ;;  %v5734_v12 = vunpack.c.l.bf16 %v5710_v58 }
 0x69f   : > { %v7256_v25 = vmul.f32 %v8190_v10, %v7176_v56  ;;  %v5540_v22 = vpack.c.bf16 %v5516_v5, %v5516_v5  ;;  %v5437_v10 = vmul.f32 %v12363_v59, %v12343_v21  ;;  %v5452_v62 = vpack.c.bf16 %v5436_v7, %v5436_v7 }
 0x6a0   : > { %v7257_v14 = vmul.f32 %v8192_v29, %v7177_v43  ;;  %v5541_v57 = vpack.c.bf16 %v5517_v6, %v5517_v6  ;;  %v5687_v43 = vmul.f32 %v12324_v48, %v12395_v36  ;;  %v12575_v29 = vrot.slane %v5330_v45, 7 }
 0x6a1   : > { %v7272_v4 = vsub.f32 1.0, %v7256_v25  ;;  %v5564_v61 = vunpack.c.l.bf16 %v5540_v22  ;;  %v5333_v59 = vshll.u32 %v12316_v55, 16  ;;  %v5453_v6 = vpack.c.bf16 %v5437_v10, %v5437_v10 }
 0x6a2   : > { %v7273_v13 = vsub.f32 1.0, %v7257_v14  ;;  %v5565_v18 = vunpack.c.l.bf16 %v5541_v57  ;;  %v5615_v14 = vrot.slane %v5563_v47, 1  ;;  %v5711_v36 = vpack.c.bf16 %v5687_v43, %v5687_v43 }
 0x6a3   : > { %v7288_v39 = vmul.f32 %v7272_v4, %v6744_v19  ;;  %v5616_v5 = vrot.slane %v5564_v61, 1  ;;  %v5858_v45 = vmul.f32 %v12361_v37, %v12495_v0  ;;  %v5859_v22 = vmul.f32 %v12361_v37, %v12502_v44 }
 0x6a4   : > { %v7289_v33 = vmul.f32 %v7273_v13, %v6745_v53  ;;  %v5733_v13 = vunpack.c.l.bf16 %v5709_v8  ;;  %v5335_v53 = vor.u32 %v5333_v59, %v12575_v29  ;;  %v5468_v3 = vunpack.c.l.bf16 %v5452_v62 }
 0x6a5   : > { %v7304_v24 = vadd.f32 1.0, %v7288_v39  ;;  %v5618_v39 = vrot.slane %v5565_v18, 1  ;;  %v5617_v55 = vsel %vm3025_vm10, %v5615_v14, %v5616_v5  ;;  %v5930_v7 = vmul.f32 %v12373_v49, %v12495_v0 }
 0x6a6   : > { %v7305_v51 = vadd.f32 1.0, %v7289_v33  ;;  %v12584_v33 = vpop.eup %8193  ;;  %v5785_v47 = vrot.slane %v5733_v13, 2  ;;  %v5786_v61 = vrot.slane %v5734_v12, 2  ;;  %v5931_v10 = vmul.f32 %v12373_v49, %v12502_v44 }
 0x6a7   : > { %v7320_v56 = vmul.f32 %v7304_v24, %v6696_v42  ;;  %v5735_v42 = vunpack.c.l.bf16 %v5711_v36  ;;  %v5469_v24 = vunpack.c.l.bf16 %v5453_v6  ;;  %v5619_v57 = vsel %vm3025_vm10, %v5616_v5, %v5618_v39 }
 0x6a8   : > { %v7321_v41 = vmul.f32 %v7305_v51, %v6697_v26  ;;  %v12587_v26 = vpop.eup %8195  ;;  %v5874_v51 = vpack.c.bf16 %v5858_v45, %v5858_v45  ;;  %v5395_v43 = vsel %vm9780_vm0, 0, %v5335_v53  ;;  %v5665_v8 = vadd.f32 %v5617_v55, %v5468_v3 }
 0x6a9   : > { %v7336_v46 = vpack.c.bf16 %v7320_v56, %v7320_v56  ;;  %v5875_v56 = vpack.c.bf16 %v5859_v22, %v5859_v22  ;;  %v5007_v58 = vmul.f32 %v12584_v33, %v12557_v60  ;;  %v5788_v18 = vrot.slane %v5735_v42, 2 }
 0x6aa   : > { %v7337_v25 = vpack.c.bf16 %v7321_v41, %v7321_v41  ;;  %v5405_v41 = vsel %vm9780_vm0, %v12575_v29, 0  ;;  %v5017_v62 = vmul.f32 %v12587_v26, %v12560_v40  ;;  %v5890_v14 = vunpack.c.l.bf16 %v5874_v51  ;;  %v4844_v51 = vpop.xlane.xlu0 %4843 }
 0x6ab   : > { %v7374_v4 = vunpack.c.l.b16 %v7336_v46  ;;  %v5666_v46 = vadd.f32 %v5619_v57, %v5469_v24  ;;  %v5954_v5 = vpack.c.bf16 %v5930_v7, %v5930_v7  ;;  %v5955_v59 = vpack.c.bf16 %v5931_v10, %v5931_v10 }
 0x6ac   : > { %v7375_v19 = vunpack.c.l.b16 %v7337_v25  ;;  %v5932_v25 = vmul.f32 %v12373_v49, %v12507_v32  ;;  %v5789_v6 = vsel %vm3238_vm3, %v5786_v61, %v5788_v18  ;;  %v5891_v29 = vunpack.c.l.bf16 %v5875_v56 }
 0x6ad   : > { %v5978_v13 = vunpack.c.l.bf16 %v5954_v5  ;;  %v5979_v12 = vunpack.c.l.bf16 %v5955_v59  ;;  %v6100_v45 = vmul.f32 %v12366_v50, %v12495_v0  ;;  %v5836_v53 = vadd.f32 %v5789_v6, %v5666_v46 }
 0x6ae   : > { %v7389_v34 = vpack.c.b16 %v7375_v19, %v7374_v4  ;;  %v5787_v4 = vsel %vm3238_vm3, %v5785_v47, %v5786_v61  ;;  %v5956_v36 = vpack.c.bf16 %v5932_v25, %v5932_v25  ;;  %v6101_v22 = vmul.f32 %v12366_v50, %v12502_v44 }
 0x6af   : > { %v5835_v19 = vadd.f32 %v5787_v4, %v5665_v8  ;;  %v6030_v55 = vrot.slane %v5978_v13, 1  ;;  %v6031_v42 = vrot.slane %v5979_v12, 1  ;;  %v6124_v24 = vpack.c.bf16 %v6100_v45, %v6100_v45 }
 0x6b0   : > { %7738 = vmatmul.msk.bf16.gmra.mxu2 %vm747_vm2, %v7389_v34  ;;  %v5980_v39 = vunpack.c.l.bf16 %v5956_v36  ;;  %v6102_v34 = vmul.f32 %v12366_v50, %v12507_v32  ;;  %v12614_v57 = vunpack.c.l.bf16 %v5395_v43  ;;  %v5907_v7 = vadd.f32 %v5891_v29, %v5836_v53 }
 0x6b1   : > { %v5906_v3 = vadd.f32 %v5890_v14, %v5835_v19  ;;  %v6125_v61 = vpack.c.bf16 %v6101_v22, %v6101_v22  ;;  %v12616_v56 = vunpack.c.h.bf16 %v5395_v43  ;;  %v6032_v10 = vsel %vm3025_vm10, %v6030_v55, %v6031_v42 }
 0x6b2   : > { %v6033_v47 = vrot.slane %v5980_v39, 1  ;;  %v6126_v8 = vpack.c.bf16 %v6102_v34, %v6102_v34  ;;  %v12619_v46 = vunpack.c.l.bf16 %v5405_v41  ;;  %v5008_v18 = vmul.f32 %v12584_v33, %v5007_v58 }
 0x6b3   : > { %v5018_v14 = vmul.f32 %v12587_v26, %v5017_v62  ;;  %v4878_v5 = vmul.f32 %v4844_v51, %v14093_v28  ;;  %v6080_v59 = vadd.f32 %v6032_v10, %v5906_v3  ;;  %v6148_v4 = vunpack.c.l.bf16 %v6124_v24 }
 0x6b4   : > { %v6034_v25 = vsel %vm3025_vm10, %v6031_v42, %v6033_v47  ;;  %v6149_v29 = vunpack.c.l.bf16 %v6125_v61  ;;  %v6150_v36 = vunpack.c.l.bf16 %v6126_v8  ;;  %v6273_v43 = vmul.f32 %v12387_v35, %v12614_v57 }
 0x6b5   : > { %v6081_v6 = vadd.f32 %v6034_v25, %v5907_v7  ;;  %v6200_v19 = vrot.slane %v6148_v4, 2  ;;  %v6274_v41 = vmul.f32 %v12387_v35, %v12616_v56  ;;  %v6345_v58 = vmul.f32 %v12401_v38, %v12614_v57 }
 0x6b6   : > { %v6346_v62 = vmul.f32 %v12401_v38, %v12616_v56  ;;  %v6201_v13 = vrot.slane %v6149_v29, 2  ;;  %v6203_v12 = vrot.slane %v6150_v36, 2  ;;  %v6289_v45 = vpack.c.bf16 %v6273_v43, %v6273_v43 }
 0x6b7   : > { %v6347_v53 = vmul.f32 %v12401_v38, %v12619_v46  ;;  %v6290_v39 = vpack.c.bf16 %v6274_v41, %v6274_v41  ;;  %v6369_v22 = vpack.c.bf16 %v6345_v58, %v6345_v58  ;;  %v6515_v3 = vmul.f32 %v12399_v15, %v12614_v57 }
 0x6b8   : > { %v6370_v34 = vpack.c.bf16 %v6346_v62, %v6346_v62  ;;  %v6202_v55 = vsel %vm3238_vm3, %v6200_v19, %v6201_v13  ;;  %v6204_v42 = vsel %vm3238_vm3, %v6201_v13, %v6203_v12  ;;  %v6305_v24 = vunpack.c.l.bf16 %v6289_v45 }
 0x6b9   : > { %v6371_v51 = vpack.c.bf16 %v6347_v53, %v6347_v53  ;;  %v6250_v7 = vadd.f32 %v6202_v55, %v6080_v59  ;;  %v6251_v47 = vadd.f32 %v6204_v42, %v6081_v6  ;;  %v6306_v61 = vunpack.c.l.bf16 %v6290_v39 }
 0x6ba   : > { %v6393_v10 = vunpack.c.l.bf16 %v6369_v22  ;;  %v6394_v8 = vunpack.c.l.bf16 %v6370_v34  ;;  %v6516_v4 = vmul.f32 %v12399_v15, %v12616_v56  ;;  %v6517_v29 = vmul.f32 %v12399_v15, %v12619_v46 }
 0x6bb   : > { %v6395_v25 = vunpack.c.l.bf16 %v6371_v51  ;;  %v6321_v36 = vadd.f32 %v6305_v24, %v6250_v7  ;;  %v6322_v43 = vadd.f32 %v6306_v61, %v6251_v47  ;;  %v6539_v19 = vpack.c.bf16 %v6515_v3, %v6515_v3 }
 0x6bc   : > { %v6445_v41 = vrot.slane %v6393_v10, 1  ;;  %v6446_v58 = vrot.slane %v6394_v8, 1  ;;  %v6540_v13 = vpack.c.bf16 %v6516_v4, %v6516_v4  ;;  %v6541_v12 = vpack.c.bf16 %v6517_v29, %v6517_v29 }
 0x6bd   : > { %v6448_v62 = vrot.slane %v6395_v25, 1  ;;  %v5009_v59 = vmul.f32 0.5, %v5008_v18  ;;  %v5019_v6 = vmul.f32 0.5, %v5018_v14  ;;  %v6563_v45 = vunpack.c.l.bf16 %v6539_v19 }
 0x6be   : > { %v6447_v53 = vsel %vm3025_vm10, %v6445_v41, %v6446_v58  ;;  %v6564_v22 = vunpack.c.l.bf16 %v6540_v13  ;;  %v6565_v34 = vunpack.c.l.bf16 %v6541_v12  ;;  %v12645_v55 = vadd.f32 1e-06, %v4878_v5 }
 0x6bf   : > { %v6449_v39 = vsel %vm3025_vm10, %v6446_v58, %v6448_v62  ;;  %v6495_v42 = vadd.f32 %v6447_v53, %v6321_v36  ;;  %v6615_v51 = vrot.slane %v6563_v45, 2  ;;  %v5010_v47 = vsub.f32 1.5, %v5009_v59  ;;  %v4847_v58 = vpop.xlane.xlu1 %4846 }
 0x6c0   : > { %v6496_v24 = vadd.f32 %v6449_v39, %v6322_v43  ;;  %v6616_v7 = vrot.slane %v6564_v22, 2  ;;  %v6618_v3 = vrot.slane %v6565_v34, 2  ;;  %v5020_v61 = vsub.f32 1.5, %v5019_v6 }
 0x6c1   : > { %8197 = vrsqrt.f32 %v12645_v55  ;;  %v5011_v25 = vmul.f32 %v12584_v33, %v5010_v47  ;;  %vm5013_vm11 = vweird.f32 %v12584_v33  ;;  %vm5023_vm14 = vweird.f32 %v12587_v26 }
 0x6c2   : > { %v6617_v10 = vsel %vm3238_vm3, %v6615_v51, %v6616_v7  ;;  %v6619_v18 = vsel %vm3238_vm3, %v6616_v7, %v6618_v3  ;;  %v5021_v29 = vmul.f32 %v12587_v26, %v5020_v61  ;;  %vm5014_vm6 = vmor %vm5012_vm15, %vm5013_vm11  ;;  %v4742_v61 = vpop.xlane.xlu2 %4741  ;;  %vm5032_vm11 = vweird.f32 %v12645_v55 }
 0x6c3   : > { %v6665_v14 = vadd.f32 %v6617_v10, %v6495_v42  ;;  %v6666_v8 = vadd.f32 %v6619_v18, %v6496_v24  ;;  %v5015_v19 = vsel %vm5014_vm6, %v12584_v33, %v5011_v25  ;;  %vm5024_vm1 = vmor %vm5022_vm4, %vm5023_vm14  ;;  %v4879_v33 = vmul.f32 %v4847_v58, %v14093_v28 }
 0x6c4   : > { %v5025_v13 = vsel %vm5024_vm1, %v12587_v26, %v5021_v29  ;;  %v5116_v40 = vmul.f32 %v5015_v19, %v12122_v63  ;;  %v14132_v63 = vld [vmem:[#allocation97_spill] sm:$0xff]  ;;  %v4764_v19 = vmul.f32 %v4742_v61, %v14093_v28 }
 0x6c5   : > { %v12653_v5 = vadd.f32 %v12420_v54, %v6665_v14  ;;  %v12656_v4 = vadd.f32 %v12420_v54, %v6666_v8  ;;  %v5117_v45 = vmul.f32 %v5025_v13, %v12132_v1  ;;  %v12687_v34 = vadd.f32 1e-06, %v4879_v33  ;;  %v14133_v1 = vld [vmem:[#allocation83_spill] sm:$0xff] }
 0x6c6   : > { %v5137_v22 = vmul.f32 %v12104_v9, %v5116_v40  ;;  %vm646_vm5 = vcmp.ge.s32.totalorder %v14132_v63, %v12094_v11  ;;  %vm669_vm7 = vcmp.lt.s32.totalorder %v14132_v63, %v12096_v17  ;;  %vm647_vm8 = vcmp.ge.s32.totalorder %v14133_v1, %v12094_v11 }
 0x6c7   : > { %v12662_v36 = vmul.f32 0.70710677, %v12653_v5  ;;  %v12665_v43 = vmul.f32 0.70710677, %v12656_v4  ;;  %v12668_v41 = vpop.eup %8197  ;;  %v5138_v42 = vmul.f32 %v12104_v9, %v5117_v45  ;;  %vm670_vm13 = vcmp.lt.s32.totalorder %v14133_v1, %v12096_v17  ;;  %vm689_vm9 = vmand %vm646_vm5, %vm669_vm7 }
 0x6c8   : > { %v5027_v6 = vmul.f32 %v12668_v41, %v12645_v55  ;;  %v5158_v24 = vadd.f32 %v12118_v2, %v5137_v22  ;;  %vm690_vm12 = vmand %vm647_vm8, %vm670_vm13  ;;  %vm5033_vm15 = vweird.f32 %v12668_v41  ;;  %v4745_v55 = vpop.xlane.xlu0 %4744 }
 0x6c9   : > { %v12672_v62 = vand.u32 2147483647, %v12662_v36  ;;  %v12675_v60 = vand.u32 2147483647, %v12665_v43  ;;  %v5159_v3 = vadd.f32 %v12118_v2, %v5138_v42 }
 0x6ca   : > { %v5028_v26 = vmul.f32 %v12668_v41, %v5027_v6  ;;  %v5218_v14 = vsel %vm689_vm9, %v5158_v24, 0.0  ;;  %vm5034_vm9 = vmor %vm5032_vm11, %vm5033_vm15 }
 0x6cb   : > { %v6778_v12 = vmul.f32 0.3275911, %v12672_v62  ;;  %v6779_v59 = vmul.f32 0.3275911, %v12675_v60  ;;  %v5219_v29 = vsel %vm690_vm12, %v5159_v3, 0.0 }
 0x6cc   : > { %v5029_v51 = vmul.f32 0.5, %v5028_v26  ;;  %v5239_v22 = vpack.c.bf16 %v5219_v29, %v5219_v29 }
 0x6cd   : > { %v6794_v53 = vadd.f32 1.0, %v6778_v12  ;;  %v6795_v39 = vadd.f32 1.0, %v6779_v59 }
 0x6ce   : > { %v5030_v8 = vsub.f32 1.5, %v5029_v51  ;;  %v12710_v51 = vsub.f32 %v12197_v16, %v4764_v19  ;;  %v4850_v19 = vpop.xlane.xlu1 %4849 }
 0x6cf   : > { %8199 = vrcp.f32 %v6794_v53  ;;  %v6877_v58 = vand.u32 2147483648, %v6794_v53  ;;  %v6875_v40 = vand.u32 2147483647, %v6794_v53  ;;  %v6892_v6 = vand.u32 2147483648, %v6795_v39 }
 0x6d0   : > { %8201 = vrcp.f32 %v6795_v39  ;;  %v6890_v45 = vand.u32 2147483647, %v6795_v39  ;;  %v5031_v26 = vmul.f32 %v12668_v41, %v5030_v8  ;;  %vm6871_vm4 = vweird.f32 %v6794_v53  ;;  %14134 = vst [vmem:[#allocation55_spill] sm:$0xff] %v12710_v51 }
 0x6d1   : > { %8203 = vrsqrt.f32 %v12687_v34  ;;  %v6878_v1 = vor.u32 1.1754944e-38, %v6877_v58  ;;  %vm6886_vm5 = vweird.f32 %v6795_v39  ;;  %vm6876_vm7 = vcmp.eq.f32.partialorder %v6875_v40, 8.507059e+37 }
 0x6d2   : > { %v6893_v61 = vor.u32 1.1754944e-38, %v6892_v6  ;;  %vm6891_vm13 = vcmp.eq.f32.partialorder %v6890_v45, 8.507059e+37  ;;  %v5238_v8 = vpack.c.bf16 %v5218_v14, %v5218_v14  ;;  %v5282_v14 = vunpack.c.l.b16 %v5239_v22 }
 0x6d3   : > { %v4804_v40 = vmul.f32 %v12710_v51, %v12710_v51  ;;  %v5692_v51 = vmul.f32 %v12324_v48, %v12616_v56 }
 0x6d4   : > { %v5281_v6 = vunpack.c.l.b16 %v5238_v8 }
 0x6d5   : > { %v8200_v7 = vpop.eup %8199 }
 0x6d6   : > { %v8202_v47 = vpop.eup %8201  ;;  %v6867_v10 = vmul.f32 %v8200_v7, %v6794_v53  ;;  %vm6872_vm14 = vweird.f32 %v8200_v7  ;;  %v7194_v53 = vsub.f32 0.0, %v12672_v62 }
 0x6d7   : > { %v6882_v18 = vmul.f32 %v8202_v47, %v6795_v39  ;;  %v12703_v12 = vpop.eup %8203  ;;  %vm6887_vm6 = vweird.f32 %v8202_v47  ;;  %vm6873_vm1 = vmor %vm6871_vm4, %vm6872_vm14 }
 0x6d8   : > { %v6868_v25 = vsub.f32 1.0, %v6867_v10  ;;  %v5037_v63 = vmul.f32 %v12703_v12, %v12687_v34  ;;  %vm6888_vm8 = vmor %vm6886_vm5, %vm6887_vm6  ;;  %vm5043_vm14 = vweird.f32 %v12703_v12  ;;  %vm5042_vm6 = vweird.f32 %v12687_v34 }
 0x6d9   : > { %v6883_v13 = vsub.f32 1.0, %v6882_v18  ;;  %vm12766_vm4 = vmor %vm5042_vm6, %vm5043_vm14  ;;  %vm6731_vm5 = vcmp.ge.f32.partialorder %v12665_v43, 0.0 }
 0x6da   : > { %v6869_v59 = vmul.f32 %v8200_v7, %v6868_v25  ;;  %v5035_v25 = vsel %vm5034_vm9, %v12668_v41, %v5031_v26  ;;  %v5038_v29 = vmul.f32 %v12703_v12, %v5037_v63  ;;  %v4853_v26 = vpop.xlane.xlu2 %4852  ;;  %v4880_v63 = vmul.f32 %v4850_v19, %v14093_v28 }
 0x6db   : > { %v6884_v33 = vmul.f32 %v8202_v47, %v6883_v13 }
 0x6dc   : > { %v6870_v42 = vadd.f32 %v8200_v7, %v6869_v59  ;;  %v7210_v59 = vmul.f32 %v7194_v53, %v12672_v62 }
 0x6dd   : > { %v6885_v24 = vadd.f32 %v8202_v47, %v6884_v33  ;;  %v5118_v33 = vmul.f32 %v5035_v25, %v12147_v20  ;;  %v4881_v20 = vmul.f32 %v4853_v26, %v14093_v28 }
 0x6de   : > { %v6874_v3 = vsel %vm6873_vm1, %v8200_v7, %v6870_v42  ;;  %v7195_v7 = vsub.f32 0.0, %v12675_v60  ;;  %v5039_v42 = vmul.f32 0.5, %v5038_v29  ;;  %v14135_v29 = vld [vmem:[#allocation85_spill] sm:$0xff]  ;;  %vm6730_vm1 = vcmp.ge.f32.partialorder %v12662_v36, 0.0 }
 0x6df   : > { %v12712_v10 = vsel %vm6876_vm7, %v6878_v1, %v6874_v3  ;;  %v6889_v18 = vsel %vm6888_vm8, %v8202_v47, %v6885_v24  ;;  %v4860_v1 = vsel %vm747_vm2, %v4804_v40, 0.0  ;;  %v4765_v24 = vmul.f32 %v4745_v55, %v14093_v28  ;;  %v14139_v36 = vld [vmem:[#allocation69_spill] sm:$0xff] }
 0x6e0   : > { %v12719_v39 = vsel %vm6891_vm13, %v6893_v61, %v6889_v18  ;;  %v7050_v16 = vmul.f32 1.0614054, %v12712_v10  ;;  %v7211_v41 = vmul.f32 %v7195_v7, %v12675_v60  ;;  %4861 = vadd.xlane.f32.xlu2 %v4860_v1  ;;  %v5296_v3 = vpack.c.b16 %v5282_v14, %v5281_v6 }
 0x6e1   : > { %v7051_v47 = vmul.f32 1.0614054, %v12719_v39  ;;  %v7230_v18 = vmul.f32 1.442695, %v7210_v59  ;;  %v5139_v53 = vmul.f32 %v12104_v9, %v5118_v33  ;;  %v12739_v7 = vadd.f32 1e-06, %v4880_v63 }
 0x6e2   : > { %v7066_v58 = vadd.f32 -1.4531521, %v7050_v16  ;;  %v7232_v8 = vmul.f32 1.442695, %v7211_v41  ;;  %v5040_v16 = vsub.f32 1.5, %v5039_v42  ;;  %vm648_vm12 = vcmp.ge.s32.totalorder %v14135_v29, %v12094_v11 }
 0x6e3   : > { %v7067_v13 = vadd.f32 -1.4531521, %v7051_v47  ;;  %vm671_vm11 = vcmp.lt.s32.totalorder %v14135_v29, %v12096_v17  ;;  %v12747_v19 = vsub.f32 %v12248_v52, %v4765_v24  ;;  %8205 = vpow2.f32 %v7230_v18 }
 0x6e4   : > { %v7082_v45 = vmul.f32 %v7066_v58, %v12712_v10  ;;  %v5337_v58 = vshrl.u32 %v5296_v3, 16  ;;  %v5160_v59 = vadd.f32 %v12118_v2, %v5139_v53  ;;  %8207 = vpow2.f32 %v7232_v8  ;;  %vm691_vm15 = vmand %vm648_vm12, %vm671_vm11 }
 0x6e5   : > { %v7083_v22 = vmul.f32 %v7067_v13, %v12719_v39  ;;  %14136 = vst [vmem:[#allocation57_spill] sm:$0xff] %v12747_v19  ;;  %v12749_v13 = vadd.f32 1e-06, %v4881_v20  ;;  %v5041_v40 = vmul.f32 %v12703_v12, %v5040_v16  ;;  %8209 = vrsqrt.f32 %v12739_v7 }
 0x6e6   : > { %v7098_v62 = vadd.f32 1.4214138, %v7082_v45  ;;  %v4805_v33 = vmul.f32 %v12747_v19, %v12747_v19  ;;  %v12762_v45 = vrot.slane %v5337_v58, 7  ;;  %v5340_v26 = vshll.u32 %v5296_v3, 16 }
 0x6e7   : > { %v7099_v61 = vadd.f32 1.4214138, %v7083_v22  ;;  %8211 = vrsqrt.f32 %v12749_v13  ;;  %v5045_v24 = vsel %vm12766_vm4, %v12703_v12, %v5041_v40  ;;  %v5518_v3 = vmul.f32 %v12322_v31, %v12495_v0 }
 0x6e8   : > { %v7114_v60 = vmul.f32 %v7098_v62, %v12712_v10  ;;  %v4863_v22 = vsel %vm747_vm2, %v4805_v33, 0.0  ;;  %v12772_v62 = vsel %vm691_vm15, %v5160_v59, 0.0  ;;  %v12786_v53 = vor.u32 %v5340_v26, %v12762_v45 }
 0x6e9   : > { %v7115_v25 = vmul.f32 %v7099_v61, %v12719_v39  ;;  %v8206_v1 = vpop.eup %8205  ;;  %4864 = vadd.xlane.f32.xlu0 %v4863_v22  ;;  %v5406_v12 = vsel %vm9780_vm0, %v12762_v45, 0  ;;  %v5119_v8 = vmul.f32 %v5045_v24, %v14139_v36  ;;  %v6747_v40 = vsel %vm6731_vm5, 1.0, %v13950_v27 }
 0x6ea   : > { %v7130_v47 = vadd.f32 -0.28449672, %v7114_v60  ;;  %v8208_v61 = vpop.eup %8207  ;;  %v5240_v60 = vpack.c.bf16 %v12772_v62, %v12772_v62  ;;  %v6698_v33 = vmul.f32 0.5, %v12653_v5  ;;  %v5689_v42 = vmul.f32 %v12324_v48, %v12502_v44 }
 0x6eb   : > { %v7131_v14 = vadd.f32 -0.28449672, %v7115_v25  ;;  %v12783_v20 = vpop.eup %8209  ;;  %v5520_v25 = vmul.f32 %v12507_v32, %v12322_v31  ;;  %v5690_v5 = vmul.f32 %v12324_v48, %v12507_v32  ;;  %vm5052_vm11 = vweird.f32 %v12739_v7 }
 0x6ec   : > { %v7146_v55 = vmul.f32 %v7130_v47, %v12712_v10  ;;  %v6746_v47 = vsel %vm6730_vm1, 1.0, %v13950_v27  ;;  %v5047_v43 = vmul.f32 %v12783_v20, %v12739_v7  ;;  %vm5053_vm9 = vweird.f32 %v12783_v20 }
 0x6ed   : > { %v7147_v6 = vmul.f32 %v7131_v14, %v12719_v39  ;;  %v12797_v29 = vpop.eup %8211  ;;  %v5542_v14 = vpack.c.bf16 %v5518_v3, %v5518_v3  ;;  %v5544_v26 = vpack.c.bf16 %v5520_v25, %v5520_v25  ;;  %v5439_v25 = vmul.f32 %v12502_v44, %v12343_v21  ;;  %vm5054_vm15 = vmor %vm5052_vm11, %vm5053_vm9 }
 0x6ee   : > { %v7162_v52 = vadd.f32 0.2548296, %v7146_v55  ;;  %v14140_v55 = vld [vmem:[#allocation84_spill] sm:$0xff]  ;;  %v5057_v22 = vmul.f32 %v12797_v29, %v12749_v13  ;;  %vm5063_vm12 = vweird.f32 %v12797_v29  ;;  %vm5062_vm14 = vweird.f32 %v12749_v13 }
 0x6ef   : > { %v7163_v41 = vadd.f32 0.2548296, %v7147_v6  ;;  %vm649_vm7 = vcmp.ge.s32.totalorder %v14140_v55, %v12094_v11  ;;  %vm672_vm8 = vcmp.lt.s32.totalorder %v14140_v55, %v12096_v17  ;;  %vm5064_vm6 = vmor %vm5062_vm14, %vm5063_vm12 }
 0x6f0   : > { %v7178_v63 = vmul.f32 %v7162_v52, %v12712_v10  ;;  %v5519_v10 = vmul.f32 %v12322_v31, %v12502_v44  ;;  %v5688_v52 = vmul.f32 %v12324_v48, %v12495_v0  ;;  %vm12838_vm13 = vmand %vm649_vm7, %vm672_vm8 }
 0x6f1   : > { %v7179_v34 = vmul.f32 %v7163_v41, %v12719_v39 }
 0x6f2   : > { %v7258_v18 = vmul.f32 %v8206_v1, %v7178_v63  ;;  %v5543_v59 = vpack.c.bf16 %v5519_v10, %v5519_v10  ;;  %v5566_v1 = vunpack.c.l.bf16 %v5542_v14  ;;  %v5048_v10 = vmul.f32 %v12783_v20, %v5047_v43 }
 0x6f3   : > { %v7259_v39 = vmul.f32 %v8208_v61, %v7179_v34  ;;  %v6699_v34 = vmul.f32 0.5, %v12656_v4  ;;  %v5438_v61 = vmul.f32 %v12495_v0, %v12343_v21  ;;  %v5712_v36 = vpack.c.bf16 %v5688_v52, %v5688_v52 }
 0x6f4   : > { %v7274_v16 = vsub.f32 1.0, %v7258_v18  ;;  %v5567_v24 = vunpack.c.l.bf16 %v5543_v59  ;;  %v5140_v18 = vmul.f32 %v12104_v9, %v5119_v8  ;;  %v5058_v14 = vmul.f32 %v12797_v29, %v5057_v22 }
 0x6f5   : > { %v7275_v58 = vsub.f32 1.0, %v7259_v39  ;;  %v5620_v59 = vrot.slane %v5566_v1, 1  ;;  %v5454_v8 = vpack.c.bf16 %v5438_v61, %v5438_v61  ;;  %v5860_v1 = vmul.f32 %v12361_v37, %v12614_v57  ;;  %v4856_v61 = vpop.xlane.xlu0 %4855 }
 0x6f6   : > { %v7290_v6 = vmul.f32 %v7274_v16, %v6746_v47  ;;  %v5568_v47 = vunpack.c.l.bf16 %v5544_v26  ;;  %v5621_v0 = vrot.slane %v5567_v24, 1  ;;  %v5161_v43 = vadd.f32 %v12118_v2, %v5140_v18 }
 0x6f7   : > { %v7291_v41 = vmul.f32 %v7275_v58, %v6747_v40  ;;  %v5713_v58 = vpack.c.bf16 %v5689_v42, %v5689_v42  ;;  %v5714_v40 = vpack.c.bf16 %v5690_v5, %v5690_v5  ;;  %v5861_v24 = vmul.f32 %v12361_v37, %v12616_v56 }
 0x6f8   : > { %v7306_v63 = vadd.f32 1.0, %v7290_v6  ;;  %v12825_v6 = vmul.f32 0.5, %v5048_v10  ;;  %v5623_v26 = vrot.slane %v5568_v47, 1  ;;  %v5622_v22 = vsel %vm3025_vm10, %v5620_v59, %v5621_v0 }
 0x6f9   : > { %v7307_v3 = vadd.f32 1.0, %v7291_v41  ;;  %v5455_v41 = vpack.c.bf16 %v5439_v25, %v5439_v25  ;;  %v5737_v42 = vunpack.c.l.bf16 %v5713_v58  ;;  %v5470_v5 = vunpack.c.l.bf16 %v5454_v8 }
 0x6fa   : > { %v7322_v39 = vmul.f32 %v7306_v63, %v6698_v33  ;;  %v5736_v33 = vunpack.c.l.bf16 %v5712_v36  ;;  %v5059_v63 = vmul.f32 0.5, %v5058_v14  ;;  %v5624_v18 = vsel %vm3025_vm10, %v5621_v0, %v5623_v26 }
 0x6fb   : > { %v7323_v16 = vmul.f32 %v7307_v3, %v6699_v34  ;;  %v5738_v10 = vunpack.c.l.bf16 %v5714_v40  ;;  %v5791_v36 = vrot.slane %v5737_v42, 2  ;;  %v5933_v25 = vmul.f32 %v12373_v49, %v12614_v57 }
 0x6fc   : > { %v7338_v4 = vpack.c.bf16 %v7322_v39, %v7322_v39  ;;  %v5790_v39 = vrot.slane %v5736_v33, 2  ;;  %v5471_v47 = vunpack.c.l.bf16 %v5455_v41  ;;  %v5667_v55 = vadd.f32 %v5622_v22, %v5470_v5 }
 0x6fd   : > { %v7339_v32 = vpack.c.bf16 %v7323_v16, %v7323_v16  ;;  %v5876_v16 = vpack.c.bf16 %v5860_v1, %v5860_v1  ;;  %v5877_v58 = vpack.c.bf16 %v5861_v24, %v5861_v24  ;;  %v5396_v14 = vsel %vm9780_vm0, 0, %v12786_v53 }
 0x6fe   : > { %v7376_v52 = vunpack.c.l.b16 %v7338_v4  ;;  %v5934_v4 = vmul.f32 %v12373_v49, %v12616_v56  ;;  %v12853_v59 = vsel %vm12838_vm13, %v5161_v43, 0.0  ;;  %v5050_v0 = vsub.f32 1.5, %v12825_v6 }
 0x6ff   : > { %v7377_v44 = vunpack.c.l.b16 %v7339_v32  ;;  %v4882_v32 = vmul.f32 %v4856_v61, %v14093_v28  ;;  %v5668_v8 = vadd.f32 %v5624_v18, %v5471_v47  ;;  %v5793_v40 = vrot.slane %v5738_v10, 2 }
 0x700   : > { %v5935_v33 = vmul.f32 %v12373_v49, %v12619_v46  ;;  %v5957_v41 = vpack.c.bf16 %v5933_v25, %v5933_v25  ;;  %v5958_v26 = vpack.c.bf16 %v5934_v4, %v5934_v4  ;;  %v6103_v53 = vmul.f32 %v12366_v50, %v12614_v57 }
 0x701   : > { %v7390_v3 = vpack.c.b16 %v7377_v44, %v7376_v52  ;;  %v5892_v52 = vunpack.c.l.bf16 %v5876_v16  ;;  %v5792_v44 = vsel %vm3238_vm3, %v5790_v39, %v5791_v36  ;;  %v5060_v42 = vsub.f32 1.5, %v5059_v63 }
 0x702   : > { %v5794_v43 = vsel %vm3238_vm3, %v5791_v36, %v5793_v40  ;;  %v5837_v22 = vadd.f32 %v5792_v44, %v5667_v55  ;;  %v5893_v6 = vunpack.c.l.bf16 %v5877_v58  ;;  %v5959_v1 = vpack.c.bf16 %v5935_v33, %v5935_v33 }
 0x703   : > { %7739 = vmatmul.msk.bf16.gmra.mxu2 %vm747_vm2, %v7390_v3  ;;  %v5981_v24 = vunpack.c.l.bf16 %v5957_v41  ;;  %v5982_v34 = vunpack.c.l.bf16 %v5958_v26  ;;  %v6104_v3 = vmul.f32 %v12366_v50, %v12616_v56  ;;  %v5838_v61 = vadd.f32 %v5794_v43, %v5668_v8 }
 0x704   : > { %v5908_v5 = vadd.f32 %v5892_v52, %v5837_v22  ;;  %v6105_v18 = vmul.f32 %v12366_v50, %v12619_v46  ;;  %v6127_v10 = vpack.c.bf16 %v6103_v53, %v6103_v53  ;;  %v5983_v39 = vunpack.c.l.bf16 %v5959_v1 }
 0x705   : > { %v6035_v16 = vrot.slane %v5981_v24, 1  ;;  %v6036_v25 = vrot.slane %v5982_v34, 1  ;;  %v6128_v63 = vpack.c.bf16 %v6104_v3, %v6104_v3  ;;  %v12867_v47 = vunpack.c.l.bf16 %v5396_v14 }
 0x706   : > { %v12873_v36 = vunpack.c.l.bf16 %v5406_v12  ;;  %v5909_v55 = vadd.f32 %v5893_v6, %v5838_v61  ;;  %v6129_v58 = vpack.c.bf16 %v6105_v18, %v6105_v18  ;;  %v12875_v4 = vunpack.c.h.bf16 %v5396_v14 }
 0x707   : > { %v12880_v8 = vunpack.c.l.b16 %v5240_v60  ;;  %v6037_v40 = vsel %vm3025_vm10, %v6035_v16, %v6036_v25  ;;  %v6038_v52 = vrot.slane %v5983_v39, 1  ;;  %v5241_v33 = vpack.c.bf16 %v12853_v59, %v12853_v59 }
 0x708   : > { %v12886_v44 = vmul.f32 %v12783_v20, %v5050_v0  ;;  %v6151_v45 = vunpack.c.l.bf16 %v6127_v10  ;;  %v6152_v12 = vunpack.c.l.bf16 %v6128_v63  ;;  %v12890_v14 = vmul.f32 %v12797_v29, %v5060_v42 }
 0x709   : > { %v12892_v41 = vadd.f32 1e-06, %v4882_v32  ;;  %v6039_v62 = vsel %vm3025_vm10, %v6036_v25, %v6038_v52  ;;  %v6082_v60 = vadd.f32 %v6037_v40, %v5908_v5  ;;  %v6153_v53 = vunpack.c.l.bf16 %v6129_v58 }
 0x70a   : > { %v6083_v26 = vadd.f32 %v6039_v62, %v5909_v55  ;;  %v6205_v59 = vrot.slane %v6151_v45, 2  ;;  %v6206_v43 = vrot.slane %v6152_v12, 2  ;;  %v6275_v0 = vmul.f32 %v12387_v35, %v12867_v47 }
 0x70b   : > { %v6276_v42 = vmul.f32 %v12387_v35, %v12875_v4  ;;  %v6348_v32 = vmul.f32 %v12401_v38, %v12867_v47  ;;  %v6349_v22 = vmul.f32 %v12401_v38, %v12875_v4  ;;  %v6208_v1 = vrot.slane %v6153_v53, 2 }
 0x70c   : > { %v6207_v6 = vsel %vm3238_vm3, %v6205_v59, %v6206_v43  ;;  %v6350_v24 = vmul.f32 %v12401_v38, %v12873_v36  ;;  %v6518_v34 = vmul.f32 %v12399_v15, %v12867_v47  ;;  %v6291_v61 = vpack.c.bf16 %v6275_v0, %v6275_v0 }
 0x70d   : > { %v6252_v3 = vadd.f32 %v6207_v6, %v6082_v60  ;;  %v6292_v5 = vpack.c.bf16 %v6276_v42, %v6276_v42  ;;  %v6372_v18 = vpack.c.bf16 %v6348_v32, %v6348_v32  ;;  %v6209_v10 = vsel %vm3238_vm3, %v6206_v43, %v6208_v1 }
 0x70e   : > { %v6373_v39 = vpack.c.bf16 %v6349_v22, %v6349_v22  ;;  %v6374_v16 = vpack.c.bf16 %v6350_v24, %v6350_v24  ;;  %v6519_v25 = vmul.f32 %v12399_v15, %v12875_v4  ;;  %v6253_v63 = vadd.f32 %v6209_v10, %v6083_v26 }
 0x70f   : > { %v6307_v55 = vunpack.c.l.bf16 %v6291_v61  ;;  %v6308_v58 = vunpack.c.l.bf16 %v6292_v5  ;;  %v6396_v40 = vunpack.c.l.bf16 %v6372_v18  ;;  %v6520_v12 = vmul.f32 %v12399_v15, %v12873_v36 }
 0x710   : > { %v6397_v52 = vunpack.c.l.bf16 %v6373_v39  ;;  %v6398_v45 = vunpack.c.l.bf16 %v6374_v16  ;;  %v6542_v62 = vpack.c.bf16 %v6518_v34, %v6518_v34  ;;  %v6543_v0 = vpack.c.bf16 %v6519_v25, %v6519_v25  ;;  %v14143_v16 = vld [vmem:[#allocation71_spill] sm:$0xff] }
 0x711   : > { %v6323_v60 = vadd.f32 %v6307_v55, %v6252_v3  ;;  %v6324_v53 = vadd.f32 %v6308_v58, %v6253_v63  ;;  %v6450_v59 = vrot.slane %v6396_v40, 1  ;;  %v6544_v32 = vpack.c.bf16 %v6520_v12, %v6520_v12 }
 0x712   : > { %v6451_v43 = vrot.slane %v6397_v52, 1  ;;  %v6453_v42 = vrot.slane %v6398_v45, 1  ;;  %v6566_v22 = vunpack.c.l.bf16 %v6542_v62  ;;  %v5284_v6 = vunpack.c.l.b16 %v5241_v33 }
 0x713   : > { %8213 = vrsqrt.f32 %v12892_v41  ;;  %v6567_v26 = vunpack.c.l.bf16 %v6543_v0  ;;  %v6568_v34 = vunpack.c.l.bf16 %v6544_v32  ;;  %v5055_v61 = vsel %vm5054_vm15, %v12783_v20, %v12886_v44  ;;  %v14144_v44 = vld [vmem:[#allocation68_spill] sm:$0xff] }
 0x714   : > { %v6452_v1 = vsel %vm3025_vm10, %v6450_v59, %v6451_v43  ;;  %v6454_v24 = vsel %vm3025_vm10, %v6451_v43, %v6453_v42  ;;  %v6620_v3 = vrot.slane %v6566_v22, 2  ;;  %v5065_v18 = vsel %vm5064_vm6, %v12797_v29, %v12890_v14  ;;  %v14146_v43 = vld [vmem:[#allocation79_spill] sm:$0xff] }
 0x715   : > { %v6497_v13 = vadd.f32 %v6452_v1, %v6323_v60  ;;  %v6498_v33 = vadd.f32 %v6454_v24, %v6324_v53  ;;  %v6621_v5 = vrot.slane %v6567_v26, 2  ;;  %v6623_v7 = vrot.slane %v6568_v34, 2  ;;  %v14145_v53 = vld [vmem:[#allocation61_spill] sm:$0xff] }
 0x716   : > { %v5297_v10 = vpack.c.b16 %v5284_v6, %v12880_v8  ;;  %v5120_v25 = vmul.f32 %v5055_v61, %v14143_v16  ;;  %v5121_v58 = vmul.f32 %v5065_v18, %v14144_v44  ;;  %vm650_vm4 = vcmp.ge.s32.totalorder %v14145_v53, %v12094_v11 }
 0x717   : > { %v6622_v39 = vsel %vm3238_vm3, %v6620_v3, %v6621_v5  ;;  %v6624_v63 = vsel %vm3238_vm3, %v6621_v5, %v6623_v7  ;;  %vm673_vm1 = vcmp.lt.s32.totalorder %v14145_v53, %v12096_v17  ;;  %vm651_vm5 = vcmp.ge.s32.totalorder %v14146_v43, %v12094_v11 }
 0x718   : > { %v6667_v55 = vadd.f32 %v6622_v39, %v6497_v13  ;;  %v6668_v40 = vadd.f32 %v6624_v63, %v6498_v33  ;;  %v5344_v45 = vshrl.u32 %v5297_v10, 16  ;;  %v5141_v8 = vmul.f32 %v12104_v9, %v5120_v25  ;;  %vm693_vm8 = vmand %vm650_vm4, %vm673_vm1 }
 0x719   : > { %v12933_v20 = vpop.eup %8213  ;;  %v5142_v62 = vmul.f32 %v12104_v9, %v5121_v58  ;;  %vm674_vm7 = vcmp.lt.s32.totalorder %v14146_v43, %v12096_v17  ;;  %v5347_v26 = vshll.u32 %v5297_v10, 16  ;;  %v5521_v16 = vmul.f32 %v12322_v31, %v12614_v57 }
 0x71a   : > { %v12937_v52 = vadd.f32 %v12420_v54, %v6667_v55  ;;  %v12940_v29 = vadd.f32 %v12420_v54, %v6668_v40  ;;  %v5067_v14 = vmul.f32 %v12933_v20, %v12892_v41  ;;  %v12959_v0 = vrot.slane %v5344_v45, 7  ;;  %vm694_vm13 = vmand %vm651_vm5, %vm674_vm7 }
 0x71b   : > { %v5162_v32 = vadd.f32 %v12118_v2, %v5141_v8  ;;  %v5163_v1 = vadd.f32 %v12118_v2, %v5142_v62  ;;  %vm5073_vm9 = vweird.f32 %v12933_v20  ;;  %v5522_v53 = vmul.f32 %v12322_v31, %v12616_v56 }
 0x71c   : > { %v12946_v12 = vmul.f32 0.70710677, %v12937_v52  ;;  %v12950_v60 = vmul.f32 0.70710677, %v12940_v29  ;;  %v5068_v22 = vmul.f32 %v12933_v20, %v5067_v14  ;;  %v5349_v3 = vor.u32 %v5347_v26, %v12959_v0 }
 0x71d   : > { %v5222_v13 = vsel %vm693_vm8, %v5162_v32, 0.0  ;;  %v5223_v5 = vsel %vm694_vm13, %v5163_v1, 0.0  ;;  %vm5072_vm12 = vweird.f32 %v12892_v41  ;;  %v5440_v32 = vmul.f32 %v12614_v57, %v12343_v21 }
 0x71e   : > { %v12957_v59 = vand.u32 2147483647, %v12946_v12  ;;  %v12966_v42 = vand.u32 2147483647, %v12950_v60  ;;  %v5069_v33 = vmul.f32 0.5, %v5068_v22  ;;  %v5397_v18 = vsel %vm9780_vm0, 0, %v5349_v3  ;;  %vm13019_vm8 = vmor %vm5072_vm12, %vm5073_vm9 }
 0x71f   : > { %v5242_v7 = vpack.c.bf16 %v5222_v13, %v5222_v13  ;;  %v5243_v10 = vpack.c.bf16 %v5223_v5, %v5223_v5  ;;  %v12981_v55 = vunpack.c.l.bf16 %v5397_v18  ;;  %v12983_v58 = vunpack.c.h.bf16 %v5397_v18 }
 0x720   : > { %v6780_v6 = vmul.f32 0.3275911, %v12957_v59  ;;  %v6781_v24 = vmul.f32 0.3275911, %v12966_v42  ;;  %v5070_v39 = vsub.f32 1.5, %v5069_v33  ;;  %v5523_v22 = vmul.f32 %v12619_v46, %v12322_v31 }
 0x721   : > { %v12985_v40 = vunpack.c.l.b16 %v5242_v7  ;;  %v12988_v8 = vunpack.c.l.b16 %v5243_v10  ;;  %v5691_v3 = vmul.f32 %v12324_v48, %v12614_v57  ;;  %v5546_v10 = vpack.c.bf16 %v5522_v53, %v5522_v53 }
 0x722   : > { %v6796_v34 = vadd.f32 1.0, %v6780_v6  ;;  %v6797_v61 = vadd.f32 1.0, %v6781_v24  ;;  %v12991_v14 = vmul.f32 %v12933_v20, %v5070_v39  ;;  %v5545_v6 = vpack.c.bf16 %v5521_v16, %v5521_v16 }
 0x723   : > { %v5441_v24 = vmul.f32 %v12616_v56, %v12343_v21  ;;  %v5570_v56 = vunpack.c.l.bf16 %v5546_v10  ;;  %v4859_v10 = vpop.xlane.xlu1 %4858  ;;  %vm6732_vm13 = vcmp.ge.f32.partialorder %v12946_v12, 0.0  ;;  %vm6733_vm9 = vcmp.ge.f32.partialorder %v12950_v60, 0.0  ;;  %v13061_v12 = vld [vmem:[%s13737_s9] ss:$0 sm:$0xff] }
 0x724   : > { %8215 = vrcp.f32 %v6796_v34  ;;  %v6907_v26 = vand.u32 2147483648, %v6796_v34  ;;  %v6905_v33 = vand.u32 2147483647, %v6796_v34  ;;  %v6922_v5 = vand.u32 2147483648, %v6797_v61 }
 0x725   : > { %8217 = vrcp.f32 %v6797_v61  ;;  %v6920_v7 = vand.u32 2147483647, %v6797_v61  ;;  %vm6901_vm15 = vweird.f32 %v6796_v34  ;;  %v5569_v16 = vunpack.c.l.bf16 %v5545_v6 }
 0x726   : > { %vm6916_vm4 = vweird.f32 %v6797_v61  ;;  %vm6906_vm1 = vcmp.eq.f32.partialorder %v6905_v33, 8.507059e+37  ;;  %v7197_v6 = vsub.f32 0.0, %v12966_v42  ;;  %v6748_v60 = vsel %vm6732_vm13, 1.0, %v13950_v27 }
 0x727   : > { %vm6921_vm7 = vcmp.eq.f32.partialorder %v6920_v7, 8.507059e+37 }
 0x72a   : > { %v8216_v25 = vpop.eup %8215 }
 0x72b   : > { %v8218_v44 = vpop.eup %8217  ;;  %v6897_v45 = vmul.f32 %v8216_v25, %v6796_v34  ;;  %vm6902_vm11 = vweird.f32 %v8216_v25  ;;  %v7196_v34 = vsub.f32 0.0, %v12957_v59 }
 0x72c   : > { %v6912_v62 = vmul.f32 %v8218_v44, %v6797_v61  ;;  %vm6917_vm14 = vweird.f32 %v8218_v44  ;;  %vm6903_vm6 = vmor %vm6901_vm15, %vm6902_vm11 }
 0x72d   : > { %v6898_v43 = vsub.f32 1.0, %v6897_v45  ;;  %v5547_v45 = vpack.c.bf16 %v5523_v22, %v5523_v22  ;;  %vm6918_vm5 = vmor %vm6916_vm4, %vm6917_vm14  ;;  %v7212_v41 = vmul.f32 %v7196_v34, %v12957_v59 }
 0x72e   : > { %v6913_v1 = vsub.f32 1.0, %v6912_v62  ;;  %v6908_v62 = vor.u32 1.1754944e-38, %v6907_v26  ;;  %v5716_v26 = vpack.c.bf16 %v5692_v51, %v5692_v51  ;;  %v4883_v51 = vmul.f32 %v4859_v10, %v14093_v28 }
 0x72f   : > { %v6899_v13 = vmul.f32 %v8216_v25, %v6898_v43  ;;  %v6923_v43 = vor.u32 1.1754944e-38, %v6922_v5  ;;  %v5457_v5 = vpack.c.bf16 %v5441_v24, %v5441_v24 }
 0x730   : > { %v6914_v18 = vmul.f32 %v8218_v44, %v6913_v1  ;;  %v5693_v1 = vmul.f32 %v12324_v48, %v12619_v46 }
 0x731   : > { %v6900_v39 = vadd.f32 %v8216_v25, %v6899_v13 }
 0x732   : > { %v6915_v63 = vadd.f32 %v8218_v44, %v6914_v18  ;;  %v5571_v18 = vunpack.c.l.bf16 %v5547_v45  ;;  %v13033_v45 = vadd.f32 1e-06, %v4883_v51 }
 0x733   : > { %v6904_v57 = vsel %vm6903_vm6, %v8216_v25, %v6900_v39  ;;  %v5625_v39 = vrot.slane %v5569_v16, 1 }
 0x734   : > { %v13008_v19 = vsel %vm6906_vm1, %v6908_v62, %v6904_v57  ;;  %v6919_v53 = vsel %vm6918_vm5, %v8218_v44, %v6915_v63  ;;  %v5456_v63 = vpack.c.bf16 %v5440_v32, %v5440_v32  ;;  %v5715_v44 = vpack.c.bf16 %v5691_v3, %v5691_v3 }
 0x735   : > { %v13011_v22 = vsel %vm6921_vm7, %v6923_v43, %v6919_v53  ;;  %v7052_v61 = vmul.f32 1.0614054, %v13008_v19  ;;  %v5717_v62 = vpack.c.bf16 %v5693_v1, %v5693_v1  ;;  %v7213_v32 = vmul.f32 %v7197_v6, %v12966_v42 }
 0x736   : > { %v7053_v46 = vmul.f32 1.0614054, %v13011_v22  ;;  %v5626_v3 = vrot.slane %v5570_v56, 1  ;;  %v5472_v53 = vunpack.c.l.bf16 %v5456_v63  ;;  %v5739_v13 = vunpack.c.l.bf16 %v5715_v44 }
 0x737   : > { %v7068_v33 = vadd.f32 -1.4531521, %v7052_v61  ;;  %v5740_v61 = vunpack.c.l.bf16 %v5716_v26  ;;  %v5628_v59 = vrot.slane %v5571_v18, 1  ;;  %v7234_v1 = vmul.f32 1.442695, %v7212_v41 }
 0x738   : > { %v7069_v7 = vadd.f32 -1.4531521, %v7053_v46  ;;  %v5473_v46 = vunpack.c.l.bf16 %v5457_v5  ;;  %v5741_v34 = vunpack.c.l.bf16 %v5717_v62  ;;  %v7236_v6 = vmul.f32 1.442695, %v7213_v32 }
 0x739   : > { %v7084_v57 = vmul.f32 %v7068_v33, %v13008_v19  ;;  %8219 = vrsqrt.f32 %v13033_v45  ;;  %v5627_v56 = vsel %vm3025_vm10, %v5625_v39, %v5626_v3  ;;  %v5795_v44 = vrot.slane %v5739_v13, 2 }
 0x73a   : > { %v7085_v43 = vmul.f32 %v7069_v7, %v13011_v22  ;;  %v5796_v26 = vrot.slane %v5740_v61, 2  ;;  %v13042_v33 = vmul.f32 0.5, %v12937_v52  ;;  %v13045_v5 = vmul.f32 0.5, %v12940_v29 }
 0x73b   : > { %v7100_v24 = vadd.f32 1.4214138, %v7084_v57  ;;  %v5629_v7 = vsel %vm3025_vm10, %v5626_v3, %v5628_v59  ;;  %8221 = vpow2.f32 %v7234_v1  ;;  %v5669_v10 = vadd.f32 %v5627_v56, %v5472_v53 }
 0x73c   : > { %v7101_v16 = vadd.f32 1.4214138, %v7085_v43  ;;  %v5798_v62 = vrot.slane %v5741_v34, 2  ;;  %v6749_v13 = vsel %vm6733_vm9, 1.0, %v13950_v27  ;;  %8223 = vpow2.f32 %v7236_v6  ;;  %v7435_v43 = vpop.f32.mrf.mxu2 }
 0x73d   : > { %v7116_v42 = vmul.f32 %v7100_v24, %v13008_v19  ;;  %v5670_v29 = vadd.f32 %v5629_v7, %v5473_v46  ;;  %v5797_v57 = vsel %vm3238_vm3, %v5795_v44, %v5796_v26  ;;  %v5862_v53 = vmul.f32 %v12361_v37, %v12867_v47 }
 0x73e   : > { %v7117_v63 = vmul.f32 %v7101_v16, %v13011_v22  ;;  %v5799_v32 = vsel %vm3238_vm3, %v5796_v26, %v5798_v62  ;;  %v5863_v61 = vmul.f32 %v12361_v37, %v12875_v4  ;;  %v5936_v24 = vmul.f32 %v12373_v49, %v12867_v47 }
 0x73f   : > { %v7132_v18 = vadd.f32 -0.28449672, %v7116_v42  ;;  %v13056_v51 = vpop.eup %8219  ;;  %v5839_v16 = vadd.f32 %v5797_v57, %v5669_v10  ;;  %v5937_v1 = vmul.f32 %v12373_v49, %v12875_v4  ;;  %v7436_v42 = vadd.f32 %v13061_v12, %v7435_v43 }
 0x740   : > { %v7133_v41 = vadd.f32 -0.28449672, %v7117_v63  ;;  %v5077_v59 = vmul.f32 %v13056_v51, %v13033_v45  ;;  %v5878_v6 = vpack.c.bf16 %v5862_v53, %v5862_v53  ;;  %v5879_v56 = vpack.c.bf16 %v5863_v61, %v5863_v61 }
 0x741   : > { %v7148_v39 = vmul.f32 %v7132_v18, %v13008_v19  ;;  %v8222_v63 = vpop.eup %8221  ;;  %v5938_v18 = vmul.f32 %v12373_v49, %v12873_v36  ;;  %v5960_v7 = vpack.c.bf16 %v5936_v24, %v5936_v24  ;;  %vm5083_vm12 = vweird.f32 %v13056_v51  ;;  %7475 = vst.msk [vmem:[%s8900_s29] sm:$0xff] %vm747_vm2, %v7436_v42 }
 0x742   : > { %v7149_v52 = vmul.f32 %v7133_v41, %v13011_v22  ;;  %v5078_v26 = vmul.f32 %v13056_v51, %v5077_v59  ;;  %v8224_v41 = vpop.eup %8223  ;;  %v5961_v62 = vpack.c.bf16 %v5937_v1, %v5937_v1  ;;  %v5895_v53 = vunpack.c.l.bf16 %v5879_v56 }
 0x743   : > { %v7164_v3 = vadd.f32 0.2548296, %v7148_v39  ;;  %v5962_v57 = vpack.c.bf16 %v5938_v18, %v5938_v18  ;;  %vm5082_vm11 = vweird.f32 %v13033_v45 }
 0x744   : > { %v7165_v46 = vadd.f32 0.2548296, %v7149_v52  ;;  %v5079_v52 = vmul.f32 0.5, %v5078_v26  ;;  %v5985_v61 = vunpack.c.l.bf16 %v5961_v62  ;;  %vm13091_vm14 = vmor %vm5082_vm11, %vm5083_vm12  ;;  %v6108_v26 = vmul.f32 %v12366_v50, %v12873_v36 }
 0x745   : > { %v7180_v34 = vmul.f32 %v7164_v3, %v13008_v19  ;;  %v5840_v19 = vadd.f32 %v5799_v32, %v5670_v29  ;;  %v5984_v3 = vunpack.c.l.bf16 %v5960_v7  ;;  %v5986_v28 = vunpack.c.l.bf16 %v5962_v57 }
 0x746   : > { %v7181_v44 = vmul.f32 %v7165_v46, %v13011_v22  ;;  %v5894_v22 = vunpack.c.l.bf16 %v5878_v6  ;;  %v5080_v59 = vsub.f32 1.5, %v5079_v52  ;;  %v6106_v29 = vmul.f32 %v12366_v50, %v12867_v47 }
 0x747   : > { %v7260_v10 = vmul.f32 %v8222_v63, %v7180_v34  ;;  %v6040_v24 = vrot.slane %v5984_v3, 1  ;;  %v7437_v34 = vpop.f32.mrf.mxu2  ;;  %v6041_v63 = vrot.slane %v5985_v61, 1  ;;  %v6107_v32 = vmul.f32 %v12366_v50, %v12875_v4 }
 0x748   : > { %v7261_v39 = vmul.f32 %v8224_v41, %v7181_v44  ;;  %v5081_v42 = vmul.f32 %v13056_v51, %v5080_v59  ;;  %v7438_v6 = vadd.f32 %v13061_v12, %v7437_v34  ;;  %v6043_v44 = vrot.slane %v5986_v28, 1 }
 0x749   : > { %v7276_v43 = vsub.f32 1.0, %v7260_v10  ;;  %v6130_v18 = vpack.c.bf16 %v6106_v29, %v6106_v29  ;;  %v5910_v45 = vadd.f32 %v5894_v22, %v5839_v16  ;;  %v6042_v10 = vsel %vm3025_vm10, %v6040_v24, %v6041_v63 }
 0x74a   : > { %v7277_v46 = vsub.f32 1.0, %v7261_v39  ;;  %7476 = vst.msk [vmem:[%s8900_s29 + $0x8] sm:$0xff] %vm747_vm2, %v7438_v6  ;;  %v6044_v62 = vsel %vm3025_vm10, %v6041_v63, %v6043_v44  ;;  %v6131_v28 = vpack.c.bf16 %v6107_v32, %v6107_v32  ;;  %v6132_v52 = vpack.c.bf16 %v6108_v26, %v6108_v26 }
 0x74b   : > { %v7292_v27 = vmul.f32 %v7276_v43, %v6748_v60  ;;  %v6154_v57 = vunpack.c.l.bf16 %v6130_v18  ;;  %v6277_v3 = vmul.f32 %v12387_v35, %v12981_v55  ;;  %v6278_v16 = vmul.f32 %v12387_v35, %v12983_v58 }
 0x74c   : > { %v7293_v1 = vmul.f32 %v7277_v46, %v6749_v13  ;;  %v5085_v13 = vsel %vm13091_vm14, %v13056_v51, %v5081_v42  ;;  %v6155_v61 = vunpack.c.l.bf16 %v6131_v28  ;;  %v6084_v29 = vadd.f32 %v6042_v10, %v5910_v45 }
 0x74d   : > { %v7308_v56 = vadd.f32 1.0, %v7292_v27  ;;  %v5911_v27 = vadd.f32 %v5895_v53, %v5840_v19  ;;  %v5123_v51 = vmul.f32 %v5085_v13, %v12442_v30  ;;  %v6156_v19 = vunpack.c.l.bf16 %v6132_v52 }
 0x74e   : > { %v7309_v7 = vadd.f32 1.0, %v7293_v1  ;;  %v6210_v22 = vrot.slane %v6154_v57, 2  ;;  %v6293_v53 = vpack.c.bf16 %v6277_v3, %v6277_v3  ;;  %v6211_v24 = vrot.slane %v6155_v61, 2  ;;  %v14152_v1 = vld [vmem:[#allocation54_spill] sm:$0xff] }
 0x74f   : > { %v7324_v41 = vmul.f32 %v7308_v56, %v13042_v33  ;;  %v6294_v34 = vpack.c.bf16 %v6278_v16, %v6278_v16  ;;  %v13119_v30 = vpack.c.b16 %v12988_v8, %v12985_v40  ;;  %v6351_v32 = vmul.f32 %v12401_v38, %v12981_v55 }
 0x750   : > { %v7325_v39 = vmul.f32 %v7309_v7, %v13045_v5  ;;  %v14151_v5 = vsel %vm9780_vm0, %v12959_v0, 0  ;;  %v14153_v0 = vsel %vm13019_vm8, %v12933_v20, %v12991_v14  ;;  %v5144_v6 = vmul.f32 %v12104_v9, %v5123_v51 }
 0x751   : > { %v7340_v43 = vpack.c.bf16 %v7324_v41, %v7324_v41  ;;  %v13115_v46 = vunpack.c.l.bf16 %v14151_v5  ;;  %v5122_v42 = vmul.f32 %v14153_v0, %v14152_v1  ;;  %v6085_v56 = vadd.f32 %v6044_v62, %v5911_v27  ;;  %v14155_v1 = vld [vmem:[#allocation49_spill] sm:$0xff] }
 0x752   : > { %v7341_v33 = vpack.c.bf16 %v7325_v39, %v7325_v39  ;;  %v6352_v60 = vmul.f32 %v12401_v38, %v12983_v58  ;;  %v6212_v8 = vsel %vm3238_vm3, %v6210_v22, %v6211_v24  ;;  %v6213_v44 = vrot.slane %v6156_v19, 2 }
 0x753   : > { %v7378_v59 = vunpack.c.l.b16 %v7340_v43  ;;  %v6309_v26 = vunpack.c.l.bf16 %v6293_v53  ;;  %v6310_v18 = vunpack.c.l.bf16 %v6294_v34  ;;  %v6353_v7 = vmul.f32 %v12401_v38, %v13115_v46  ;;  %v14154_v43 = vld [vmem:[#allocation50_spill] sm:$0xff] }
 0x754   : > { %v7379_v63 = vunpack.c.l.b16 %v7341_v33  ;;  %v6375_v25 = vpack.c.bf16 %v6351_v32, %v6351_v32  ;;  %v6376_v13 = vpack.c.bf16 %v6352_v60, %v6352_v60  ;;  %v6214_v20 = vsel %vm3238_vm3, %v6211_v24, %v6213_v44 }
 0x755   : > { %v6254_v14 = vadd.f32 %v6212_v8, %v6084_v29  ;;  %v6521_v45 = vmul.f32 %v12399_v15, %v12981_v55  ;;  %v6522_v27 = vmul.f32 %v12399_v15, %v12983_v58  ;;  %v6255_v41 = vadd.f32 %v6214_v20, %v6085_v56 }
 0x756   : > { %v7391_v40 = vpack.c.b16 %v7379_v63, %v7378_v59  ;;  %v6377_v10 = vpack.c.bf16 %v6353_v7, %v6353_v7  ;;  %v6399_v62 = vunpack.c.l.bf16 %v6375_v25  ;;  %v6400_v28 = vunpack.c.l.bf16 %v6376_v13 }
 0x757   : > { %v6325_v39 = vadd.f32 %v6309_v26, %v6254_v14  ;;  %v6523_v52 = vmul.f32 %v12399_v15, %v13115_v46  ;;  %v6545_v57 = vpack.c.bf16 %v6521_v45, %v6521_v45  ;;  %v6546_v3 = vpack.c.bf16 %v6522_v27, %v6522_v27 }
 0x758   : > { %7740 = vmatmul.msk.bf16.gmra.mxu2 %vm747_vm2, %v7391_v40  ;;  %vm653_vm15 = vcmp.ge.s32.totalorder %v14154_v43, %v12094_v11  ;;  %v6401_v51 = vunpack.c.l.bf16 %v6377_v10  ;;  %v6455_v61 = vrot.slane %v6399_v62, 1  ;;  %v6456_v16 = vrot.slane %v6400_v28, 1 }
 0x759   : > { %vm676_vm6 = vcmp.lt.s32.totalorder %v14154_v43, %v12096_v17  ;;  %v6326_v33 = vadd.f32 %v6310_v18, %v6255_v41  ;;  %v6547_v19 = vpack.c.bf16 %v6523_v52, %v6523_v52  ;;  %v6569_v22 = vunpack.c.l.bf16 %v6545_v57 }
 0x75a   : > { %v5143_v53 = vmul.f32 %v12104_v9, %v5122_v42  ;;  %v6457_v5 = vsel %vm3025_vm10, %v6455_v61, %v6456_v16  ;;  %v6458_v59 = vrot.slane %v6401_v51, 1  ;;  %v6570_v24 = vunpack.c.l.bf16 %v6546_v3  ;;  %vm696_vm5 = vmand %vm653_vm15, %vm676_vm6 }
 0x75b   : > { %v5165_v34 = vadd.f32 %v12118_v2, %v5144_v6  ;;  %v6499_v63 = vadd.f32 %v6457_v5, %v6325_v39  ;;  %v6571_v29 = vunpack.c.l.bf16 %v6547_v19  ;;  %v6625_v32 = vrot.slane %v6569_v22, 2 }
 0x75c   : > { %vm652_vm4 = vcmp.ge.s32.totalorder %v14155_v1, %v12094_v11  ;;  %vm675_vm1 = vcmp.lt.s32.totalorder %v14155_v1, %v12096_v17  ;;  %v6459_v0 = vsel %vm3025_vm10, %v6456_v16, %v6458_v59  ;;  %v6626_v42 = vrot.slane %v6570_v24, 2 }
 0x75d   : > { %v5351_v56 = vshrl.u32 %v13119_v30, 16  ;;  %v6500_v60 = vadd.f32 %v6459_v0, %v6326_v33  ;;  %v6628_v6 = vrot.slane %v6571_v29, 2  ;;  %v5164_v40 = vadd.f32 %v12118_v2, %v5143_v53  ;;  %vm695_vm7 = vmand %vm652_vm4, %vm675_vm1 }
 0x75e   : > { %v6627_v8 = vsel %vm3238_vm3, %v6625_v32, %v6626_v42  ;;  %v5225_v44 = vsel %vm696_vm5, %v5165_v34, 0.0  ;;  %v5524_v7 = vmul.f32 %v12322_v31, %v12867_v47  ;;  %v5525_v13 = vmul.f32 %v12322_v31, %v12875_v4 }
 0x75f   : > { %v6629_v26 = vsel %vm3238_vm3, %v6626_v42, %v6628_v6  ;;  %v6669_v18 = vadd.f32 %v6627_v8, %v6499_v63  ;;  %v5353_v20 = vrot.slane %v5351_v56, 7  ;;  %v5526_v45 = vmul.f32 %v12873_v36, %v12322_v31 }
 0x760   : > { %v6670_v25 = vadd.f32 %v6629_v26, %v6500_v60  ;;  %v5548_v27 = vpack.c.bf16 %v5524_v7, %v5524_v7  ;;  %v5224_v41 = vsel %vm695_vm7, %v5164_v40, 0.0  ;;  %v5245_v10 = vpack.c.bf16 %v5225_v44, %v5225_v44 }
 0x761   : > { %v13167_v14 = vadd.f32 %v12420_v54, %v6669_v18  ;;  %v5549_v28 = vpack.c.bf16 %v5525_v13, %v5525_v13  ;;  %v5354_v39 = vshll.u32 %v13119_v30, 16  ;;  %v5550_v57 = vpack.c.bf16 %v5526_v45, %v5526_v45 }
 0x762   : > { %v13172_v62 = vadd.f32 %v12420_v54, %v6670_v25  ;;  %v5572_v43 = vunpack.c.l.bf16 %v5548_v27  ;;  %v5694_v61 = vmul.f32 %v12324_v48, %v12867_v47  ;;  %v5244_v16 = vpack.c.bf16 %v5224_v41, %v5224_v41 }
 0x763   : > { %v13176_v52 = vmul.f32 0.70710677, %v13167_v14  ;;  %v5573_v51 = vunpack.c.l.bf16 %v5549_v28  ;;  %v5442_v19 = vmul.f32 %v12867_v47, %v12343_v21  ;;  %v5356_v30 = vor.u32 %v5354_v39, %v5353_v20 }
 0x764   : > { %v13179_v3 = vmul.f32 0.70710677, %v13172_v62  ;;  %v5288_v22 = vunpack.c.l.b16 %v5245_v10  ;;  %v5443_v5 = vmul.f32 %v12875_v4, %v12343_v21  ;;  %v5574_v24 = vunpack.c.l.bf16 %v5550_v57 }
 0x765   : > { %v13184_v33 = vand.u32 2147483647, %v13176_v52  ;;  %v5695_v34 = vmul.f32 %v12324_v48, %v12875_v4  ;;  %v5696_v63 = vmul.f32 %v12324_v48, %v12873_v36  ;;  %v5630_v47 = vrot.slane %v5572_v43, 1 }
 0x766   : > { %v13189_v53 = vand.u32 2147483647, %v13179_v3  ;;  %v5631_v32 = vrot.slane %v5573_v51, 1  ;;  %v5718_v1 = vpack.c.bf16 %v5694_v61, %v5694_v61  ;;  %v5287_v0 = vunpack.c.l.b16 %v5244_v16 }
 0x767   : > { %v6782_v59 = vmul.f32 0.3275911, %v13184_v33  ;;  %v5458_v56 = vpack.c.bf16 %v5442_v19, %v5442_v19  ;;  %v5398_v60 = vsel %vm9780_vm0, 0, %v5356_v30  ;;  %v5408_v6 = vsel %vm9780_vm0, %v5353_v20, 0 }
 0x768   : > { %v6783_v29 = vmul.f32 0.3275911, %v13189_v53  ;;  %v5459_v4 = vpack.c.bf16 %v5443_v5, %v5443_v5  ;;  %v13207_v8 = vpack.c.b16 %v5288_v22, %v5287_v0  ;;  %v5633_v36 = vrot.slane %v5574_v24, 1 }
 0x769   : > { %v13199_v42 = vadd.f32 1.0, %v6782_v59  ;;  %v5719_v44 = vpack.c.bf16 %v5695_v34, %v5695_v34  ;;  %v5632_v26 = vsel %vm3025_vm10, %v5630_v47, %v5631_v32  ;;  %v5720_v18 = vpack.c.bf16 %v5696_v63, %v5696_v63 }
 0x76a   : > { %v13205_v40 = vadd.f32 1.0, %v6783_v29  ;;  %v5742_v7 = vunpack.c.l.bf16 %v5718_v1  ;;  %v13212_v25 = vunpack.c.l.bf16 %v5408_v6  ;;  %v5474_v13 = vunpack.c.l.bf16 %v5458_v56 }
 0x76b   : > { %8225 = vrcp.f32 %v13199_v42  ;;  %v5634_v20 = vsel %vm3025_vm10, %v5631_v32, %v5633_v36  ;;  %v13215_v45 = vunpack.c.l.bf16 %v5398_v60  ;;  %v6935_v27 = vand.u32 2147483647, %v13199_v42 }
 0x76c   : > { %8227 = vrcp.f32 %v13205_v40  ;;  %v6937_v41 = vand.u32 2147483648, %v13199_v42  ;;  %v5475_v10 = vunpack.c.l.bf16 %v5459_v4  ;;  %v13219_v28 = vunpack.c.h.bf16 %v5398_v60 }
 0x76d   : > { %v13222_v57 = vadd.f32 %v5632_v26, %v5474_v13  ;;  %v5743_v43 = vunpack.c.l.bf16 %v5719_v44  ;;  %v6950_v51 = vand.u32 2147483647, %v13205_v40  ;;  %v5744_v16 = vunpack.c.l.bf16 %v5720_v18 }
 0x76e   : > { %v13225_v61 = vadd.f32 %v5634_v20, %v5475_v10  ;;  %v5800_v19 = vrot.slane %v5742_v7, 2  ;;  %vm6931_vm8 = vweird.f32 %v13199_v42  ;;  %v6952_v22 = vand.u32 2147483648, %v13205_v40 }
 0x76f   : > { %v5939_v5 = vmul.f32 %v12373_v49, %v12981_v55  ;;  %v5940_v59 = vmul.f32 %v12373_v49, %v12983_v58  ;;  %vm13234_vm13 = vcmp.eq.f32.partialorder %v6935_v27, 8.507059e+37  ;;  %v6938_v29 = vor.u32 1.1754944e-38, %v6937_v41 }
 0x770   : > { %vm6946_vm9 = vweird.f32 %v13205_v40  ;;  %v7198_v32 = vsub.f32 0.0, %v13184_v33  ;;  %v7199_v1 = vsub.f32 0.0, %v13189_v53  ;;  %v5864_v0 = vmul.f32 %v12361_v37, %v12981_v55 }
 0x771   : > { %v8226_v30 = vpop.eup %8225  ;;  %vm13244_vm12 = vcmp.eq.f32.partialorder %v6950_v51, 8.507059e+37  ;;  %v5865_v6 = vmul.f32 %v12361_v37, %v12983_v58  ;;  %v5941_v4 = vmul.f32 %v12373_v49, %v13115_v46  ;;  %v6953_v44 = vor.u32 1.1754944e-38, %v6952_v22 }
 0x772   : > { %v8228_v24 = vpop.eup %8227  ;;  %v6927_v34 = vmul.f32 %v8226_v30, %v13199_v42  ;;  %v5963_v26 = vpack.c.bf16 %v5939_v5, %v5939_v5  ;;  %v5964_v18 = vpack.c.bf16 %v5940_v59, %v5940_v59  ;;  %vm6932_vm11 = vweird.f32 %v8226_v30 }
 0x773   : > { %v6942_v47 = vmul.f32 %v8228_v24, %v13205_v40  ;;  %v5801_v13 = vrot.slane %v5743_v43, 2  ;;  %v5803_v20 = vrot.slane %v5744_v16, 2  ;;  %vm6947_vm14 = vweird.f32 %v8228_v24  ;;  %vm6933_vm15 = vmor %vm6931_vm8, %vm6932_vm11 }
 0x774   : > { %v6928_v56 = vsub.f32 1.0, %v6927_v34  ;;  %v7214_v41 = vmul.f32 %v7198_v32, %v13184_v33  ;;  %v5880_v10 = vpack.c.bf16 %v5864_v0, %v5864_v0  ;;  %v7215_v34 = vmul.f32 %v7199_v1, %v13189_v53  ;;  %vm6948_vm6 = vmor %vm6946_vm9, %vm6947_vm14 }
 0x775   : > { %v6943_v36 = vsub.f32 1.0, %v6942_v47  ;;  %v5881_v39 = vpack.c.bf16 %v5865_v6, %v5865_v6  ;;  %v5965_v2 = vpack.c.bf16 %v5941_v4, %v5941_v4  ;;  %v5987_v5 = vunpack.c.l.bf16 %v5963_v26 }
 0x776   : > { %v6929_v7 = vmul.f32 %v8226_v30, %v6928_v56  ;;  %v5988_v59 = vunpack.c.l.bf16 %v5964_v18  ;;  %v6109_v43 = vmul.f32 %v12366_v50, %v12981_v55  ;;  %v5802_v33 = vsel %vm3238_vm3, %v5800_v19, %v5801_v13 }
 0x777   : > { %v6944_v27 = vmul.f32 %v8228_v24, %v6943_v36  ;;  %v6110_v53 = vmul.f32 %v12366_v50, %v12983_v58  ;;  %v6111_v47 = vmul.f32 %v12366_v50, %v13115_v46  ;;  %v5804_v1 = vsel %vm3238_vm3, %v5801_v13, %v5803_v20 }
 0x778   : > { %v6930_v51 = vadd.f32 %v8226_v30, %v6929_v7  ;;  %v5896_v0 = vunpack.c.l.bf16 %v5880_v10  ;;  %v5989_v56 = vunpack.c.l.bf16 %v5965_v2  ;;  %v6045_v4 = vrot.slane %v5987_v5, 1 }
 0x779   : > { %v6945_v22 = vadd.f32 %v8228_v24, %v6944_v27  ;;  %v6046_v36 = vrot.slane %v5988_v59, 1  ;;  %v6133_v26 = vpack.c.bf16 %v6109_v43, %v6109_v43  ;;  %v6135_v18 = vpack.c.bf16 %v6111_v47, %v6111_v47 }
 0x77a   : > { %v6934_v16 = vsel %vm6933_vm15, %v8226_v30, %v6930_v51  ;;  %v5897_v30 = vunpack.c.l.bf16 %v5881_v39  ;;  %v7238_v13 = vmul.f32 1.442695, %v7214_v41  ;;  %v7240_v60 = vmul.f32 1.442695, %v7215_v34 }
 0x77b   : > { %v13267_v42 = vsel %vm13234_vm13, %v6938_v29, %v6934_v16  ;;  %v6949_v32 = vsel %vm6948_vm6, %v8228_v24, %v6945_v22  ;;  %v5841_v29 = vadd.f32 %v5802_v33, %v13222_v57  ;;  %v6134_v24 = vpack.c.bf16 %v6110_v53, %v6110_v53 }
 0x77c   : > { %v13272_v40 = vsel %vm13244_vm12, %v6953_v44, %v6949_v32  ;;  %v7054_v19 = vmul.f32 1.0614054, %v13267_v42  ;;  %v7440_v44 = vpop.f32.mrf.mxu2  ;;  %v5842_v20 = vadd.f32 %v5804_v1, %v13225_v61  ;;  %v6048_v10 = vrot.slane %v5989_v56, 1 }
 0x77d   : > { %v7055_v6 = vmul.f32 1.0614054, %v13272_v40  ;;  %v7441_v2 = vadd.f32 %v13061_v12, %v7440_v44  ;;  %v5912_v27 = vadd.f32 %v5896_v0, %v5841_v29  ;;  %v6047_v57 = vsel %vm3025_vm10, %v6045_v4, %v6046_v36 }
 0x77e   : > { %v7070_v63 = vadd.f32 -1.4531521, %v7054_v19  ;;  %v5913_v22 = vadd.f32 %v5897_v30, %v5842_v20  ;;  %v6157_v5 = vunpack.c.l.bf16 %v6133_v26  ;;  %v6049_v41 = vsel %vm3025_vm10, %v6046_v36, %v6048_v10 }
 0x77f   : > { %v7071_v7 = vadd.f32 -1.4531521, %v7055_v6  ;;  %7477 = vst.msk [vmem:[%s8900_s29 + $0x10] sm:$0xff] %vm747_vm2, %v7441_v2  ;;  %v6158_v34 = vunpack.c.l.bf16 %v6134_v24  ;;  %v6159_v43 = vunpack.c.l.bf16 %v6135_v18  ;;  %8229 = vpow2.f32 %v7238_v13 }
 0x780   : > { %v7086_v39 = vmul.f32 %v7070_v63, %v13267_v42  ;;  %v6279_v16 = vmul.f32 %v12387_v35, %v13215_v45  ;;  %v6354_v33 = vmul.f32 %v12401_v38, %v13215_v45  ;;  %vm6734_vm4 = vcmp.ge.f32.partialorder %v13176_v52, 0.0 }
 0x781   : > { %v7087_v51 = vmul.f32 %v7071_v7, %v13272_v40  ;;  %8231 = vpow2.f32 %v7240_v60  ;;  %v6280_v47 = vmul.f32 %v12387_v35, %v13219_v28  ;;  %v6086_v1 = vadd.f32 %v6047_v57, %v5912_v27 }
 0x782   : > { %v7102_v59 = vadd.f32 1.4214138, %v7086_v39  ;;  %v6087_v0 = vadd.f32 %v6049_v41, %v5913_v22  ;;  %v6215_v19 = vrot.slane %v6157_v5, 2  ;;  %v6216_v56 = vrot.slane %v6158_v34, 2 }
 0x783   : > { %v7103_v61 = vadd.f32 1.4214138, %v7087_v51  ;;  %v6218_v6 = vrot.slane %v6159_v43, 2  ;;  %v6355_v4 = vmul.f32 %v12401_v38, %v13219_v28  ;;  %vm6735_vm1 = vcmp.ge.f32.partialorder %v13179_v3, 0.0 }
 0x784   : > { %v7118_v53 = vmul.f32 %v7102_v59, %v13267_v42  ;;  %v7442_v26 = vpop.f32.mrf.mxu2  ;;  %v6295_v63 = vpack.c.bf16 %v6279_v16, %v6279_v16  ;;  %v6356_v29 = vmul.f32 %v12401_v38, %v13212_v25  ;;  %v6378_v24 = vpack.c.bf16 %v6354_v33, %v6354_v33 }
 0x785   : > { %v7119_v32 = vmul.f32 %v7103_v61, %v13272_v40  ;;  %v7443_v7 = vadd.f32 %v13061_v12, %v7442_v26  ;;  %v6296_v13 = vpack.c.bf16 %v6280_v47, %v6280_v47  ;;  %v6524_v60 = vmul.f32 %v12399_v15, %v13215_v45  ;;  %v8230_v44 = vpop.eup %8229  ;;  %v4865_v26 = vpop.xlane.xlu0 %4864 }
 0x786   : > { %v7134_v30 = vadd.f32 -0.28449672, %v7118_v53  ;;  %v6379_v39 = vpack.c.bf16 %v6355_v4, %v6355_v4  ;;  %v6380_v2 = vpack.c.bf16 %v6356_v29, %v6356_v29  ;;  %v6402_v27 = vunpack.c.l.bf16 %v6378_v24 }
 0x787   : > { %v7135_v36 = vadd.f32 -0.28449672, %v7119_v32  ;;  %v8232_v10 = vpop.eup %8231  ;;  %7478 = vst.msk [vmem:[%s8900_s29 + $0x18] sm:$0xff] %vm747_vm2, %v7443_v7  ;;  %v6217_v22 = vsel %vm3238_vm3, %v6215_v19, %v6216_v56  ;;  %v6219_v57 = vsel %vm3238_vm3, %v6216_v56, %v6218_v6  ;;  %v6525_v5 = vmul.f32 %v12399_v15, %v13219_v28  ;;  %v4862_v32 = vpop.xlane.xlu2 %4861 }
 0x788   : > { %v7150_v18 = vmul.f32 %v7134_v30, %v13267_v42  ;;  %v6311_v41 = vunpack.c.l.bf16 %v6295_v63  ;;  %v6403_v34 = vunpack.c.l.bf16 %v6379_v39  ;;  %v6526_v43 = vmul.f32 %v12399_v15, %v13212_v25 }
 0x789   : > { %v7151_v20 = vmul.f32 %v7135_v36, %v13272_v40  ;;  %v6256_v16 = vadd.f32 %v6217_v22, %v6086_v1  ;;  %v6312_v33 = vunpack.c.l.bf16 %v6296_v13  ;;  %v6404_v53 = vunpack.c.l.bf16 %v6380_v2  ;;  %v14161_v13 = vld [vmem:[#allocation46_spill] sm:$0xff] }
 0x78a   : > { %v7166_v51 = vadd.f32 0.2548296, %v7150_v18  ;;  %v6460_v19 = vrot.slane %v6402_v27, 1  ;;  %v6461_v30 = vrot.slane %v6403_v34, 1  ;;  %v6548_v56 = vpack.c.bf16 %v6524_v60, %v6524_v60 }
 0x78b   : > { %v7167_v59 = vadd.f32 0.2548296, %v7151_v20  ;;  %v14160_v6 = vmov -1.0   ;;  %v6257_v63 = vadd.f32 %v6219_v57, %v6087_v0  ;;  %v6549_v29 = vpack.c.bf16 %v6525_v5, %v6525_v5 }
 0x78c   : > { %v7182_v61 = vmul.f32 %v7166_v51, %v13267_v42  ;;  %v6750_v4 = vsel %vm6734_vm4, 1.0, %v14160_v6  ;;  %v6327_v18 = vadd.f32 %v6311_v41, %v6256_v16  ;;  %v6463_v42 = vrot.slane %v6404_v53, 1 }
 0x78d   : > { %v7183_v47 = vmul.f32 %v7167_v59, %v13272_v40  ;;  %v6550_v1 = vpack.c.bf16 %v6526_v43, %v6526_v43  ;;  %v4884_v20 = vmul.f32 %v4862_v32, %v14161_v13  ;;  %v6328_v40 = vadd.f32 %v6312_v33, %v6257_v63 }
 0x78e   : > { %v7262_v36 = vmul.f32 %v8230_v44, %v7182_v61  ;;  %v6462_v39 = vsel %vm3025_vm10, %v6460_v19, %v6461_v30  ;;  %v4885_v60 = vmul.f32 %v4865_v26, %v14161_v13  ;;  %v6464_v52 = vsel %vm3025_vm10, %v6461_v30, %v6463_v42 }
 0x78f   : > { %v7263_v24 = vmul.f32 %v8232_v10, %v7183_v47  ;;  %v6572_v27 = vunpack.c.l.bf16 %v6548_v56  ;;  %v6751_v0 = vsel %vm6735_vm1, 1.0, %v14160_v6  ;;  %v6573_v10 = vunpack.c.l.bf16 %v6549_v29 }
 0x790   : > { %v7278_v7 = vsub.f32 1.0, %v7262_v36  ;;  %v6574_v51 = vunpack.c.l.bf16 %v6550_v1  ;;  %v6702_v22 = vmul.f32 0.5, %v13167_v14  ;;  %v6501_v5 = vadd.f32 %v6462_v39, %v6327_v18 }
 0x791   : > { %v7279_v2 = vsub.f32 1.0, %v7263_v24  ;;  %v6630_v59 = vrot.slane %v6572_v27, 2  ;;  %v13325_v34 = vadd.f32 1e-06, %v4884_v20  ;;  %v6502_v43 = vadd.f32 %v6464_v52, %v6328_v40 }
 0x792   : > { %v7294_v44 = vmul.f32 %v7278_v7, %v6750_v4  ;;  %v6631_v61 = vrot.slane %v6573_v10, 2  ;;  %v6703_v16 = vmul.f32 0.5, %v13172_v62  ;;  %v13328_v53 = vadd.f32 1e-06, %v4885_v60 }
 0x793   : > { %v7295_v57 = vmul.f32 %v7279_v2, %v6751_v0  ;;  %v6633_v3 = vrot.slane %v6574_v51, 2  ;;  %v14162_v19 = vshrl.u32 %v13207_v8, 16  ;;  %8233 = vrsqrt.f32 %v13325_v34 }
 0x794   : > { %v7310_v41 = vadd.f32 1.0, %v7294_v44  ;;  %v6632_v32 = vsel %vm3238_vm3, %v6630_v59, %v6631_v61  ;;  %v5361_v62 = vshll.u32 %v13207_v8, 16  ;;  %8235 = vrsqrt.f32 %v13328_v53 }
 0x795   : > { %v7311_v33 = vadd.f32 1.0, %v7295_v57  ;;  %v5360_v14 = vrot.slane %v14162_v19, 7  ;;  %v6634_v56 = vsel %vm3238_vm3, %v6631_v61, %v6633_v3  ;;  %v6671_v4 = vadd.f32 %v6632_v32, %v6501_v5 }
 0x796   : > { %v7326_v47 = vmul.f32 %v7310_v41, %v6702_v22  ;;  %v6672_v26 = vadd.f32 %v6634_v56, %v6502_v43  ;;  %v5527_v40 = vmul.f32 %v12322_v31, %v12981_v55  ;;  %v5444_v44 = vmul.f32 %v12981_v55, %v12343_v21 }
 0x797   : > { %v7327_v30 = vmul.f32 %v7311_v33, %v6703_v16  ;;  %v13338_v29 = vadd.f32 %v12420_v54, %v6671_v4  ;;  %v5363_v42 = vor.u32 %v5361_v62, %v5360_v14  ;;  %v5409_v1 = vsel %vm9780_vm0, %v5360_v14, 0 }
 0x798   : > { %v7342_v36 = vpack.c.bf16 %v7326_v47, %v7326_v47  ;;  %v13341_v18 = vadd.f32 %v12420_v54, %v6672_v26  ;;  %v13355_v2 = vunpack.c.l.bf16 %v5409_v1  ;;  %v5528_v10 = vmul.f32 %v12322_v31, %v12983_v58 }
 0x799   : > { %v7343_v63 = vpack.c.bf16 %v7327_v30, %v7327_v30  ;;  %v13346_v13 = vmul.f32 0.70710677, %v13338_v29  ;;  %v13353_v39 = vpop.eup %8233  ;;  %v5399_v27 = vsel %vm9780_vm0, 0, %v5363_v42  ;;  %v5445_v57 = vmul.f32 %v12983_v58, %v12343_v21 }
 0x79a   : > { %v7380_v24 = vunpack.c.l.b16 %v7342_v36  ;;  %v13349_v8 = vmul.f32 0.70710677, %v13341_v18  ;;  %v13358_v52 = vpop.eup %8235  ;;  %v5529_v5 = vmul.f32 %v13115_v46, %v12322_v31  ;;  %v5551_v43 = vpack.c.bf16 %v5527_v40, %v5527_v40 }
 0x79b   : > { %v7381_v7 = vunpack.c.l.b16 %v7343_v63  ;;  %v6768_v60 = vand.u32 2147483647, %v13346_v13  ;;  %v5552_v61 = vpack.c.bf16 %v5528_v10, %v5528_v10  ;;  %v5087_v16 = vmul.f32 %v13353_v39, %v13325_v34 }
 0x79c   : > { %v6769_v0 = vand.u32 2147483647, %v13349_v8  ;;  %v5097_v33 = vmul.f32 %v13358_v52, %v13328_v53  ;;  %v5460_v14 = vpack.c.bf16 %v5444_v44, %v5444_v44  ;;  %v5553_v30 = vpack.c.bf16 %v5529_v5, %v5529_v5 }
 0x79d   : > { %v7392_v20 = vpack.c.b16 %v7381_v7, %v7380_v24  ;;  %v6784_v51 = vmul.f32 0.3275911, %v6768_v60  ;;  %v7200_v22 = vsub.f32 0.0, %v6768_v60  ;;  %v13380_v56 = vunpack.c.l.bf16 %v5399_v27 }
 0x79e   : > { %v6785_v59 = vmul.f32 0.3275911, %v6769_v0  ;;  %v7201_v41 = vsub.f32 0.0, %v6769_v0  ;;  %v13382_v4 = vunpack.c.h.bf16 %v5399_v27  ;;  %v5461_v36 = vpack.c.bf16 %v5445_v57, %v5445_v57 }
 0x79f   : > { %7741 = vmatmul.msk.bf16.gmra.mxu2 %vm747_vm2, %v7392_v20  ;;  %v13376_v3 = vadd.f32 1.0, %v6784_v51  ;;  %v7216_v47 = vmul.f32 %v7200_v22, %v6768_v60  ;;  %v5575_v62 = vunpack.c.l.bf16 %v5551_v43  ;;  %v5576_v63 = vunpack.c.l.bf16 %v5552_v61 }
 0x7a0   : > { %v13378_v32 = vadd.f32 1.0, %v6785_v59  ;;  %v7217_v19 = vmul.f32 %v7201_v41, %v6769_v0  ;;  %v13388_v24 = vmul.f32 %v13353_v39, %v5087_v16  ;;  %v13391_v42 = vmul.f32 %v13358_v52, %v5097_v33 }
 0x7a1   : > { %8237 = vrcp.f32 %v13376_v3  ;;  %v6967_v26 = vand.u32 2147483648, %v13376_v3  ;;  %v7242_v7 = vmul.f32 1.442695, %v7216_v47  ;;  %v6965_v20 = vand.u32 2147483647, %v13376_v3 }
 0x7a2   : > { %8239 = vrcp.f32 %v13378_v32  ;;  %v6982_v1 = vand.u32 2147483648, %v13378_v32  ;;  %v7244_v40 = vmul.f32 1.442695, %v7217_v19  ;;  %v5476_v60 = vunpack.c.l.bf16 %v5460_v14 }
 0x7a3   : > { %v5577_v27 = vunpack.c.l.bf16 %v5553_v30  ;;  %v6968_v0 = vor.u32 1.1754944e-38, %v6967_v26  ;;  %v6980_v44 = vand.u32 2147483647, %v13378_v32  ;;  %v5477_v51 = vunpack.c.l.bf16 %v5461_v36 }
 0x7a4   : > { %v6983_v10 = vor.u32 1.1754944e-38, %v6982_v1  ;;  %vm6961_vm5 = vweird.f32 %v13376_v3  ;;  %8241 = vpow2.f32 %v7242_v7  ;;  %v5635_v22 = vrot.slane %v5575_v62, 1 }
 0x7a5   : > { %v5636_v57 = vrot.slane %v5576_v63, 1  ;;  %v5638_v5 = vrot.slane %v5577_v27, 1  ;;  %vm6976_vm7 = vweird.f32 %v13378_v32  ;;  %8243 = vpow2.f32 %v7244_v40 }
 0x7a6   : > { %v5697_v41 = vmul.f32 %v12324_v48, %v12981_v55  ;;  %v5698_v43 = vmul.f32 %v12324_v48, %v12983_v58  ;;  %v5699_v61 = vmul.f32 %v12324_v48, %v13115_v46  ;;  %vm13405_vm13 = vcmp.eq.f32.partialorder %v6965_v20, 8.507059e+37  ;;  %v7445_v58 = vpop.f32.mrf.mxu2 }
 0x7a7   : > { %v8238_v59 = vpop.eup %8237  ;;  %v5637_v19 = vsel %vm3025_vm10, %v5635_v22, %v5636_v57  ;;  %v5639_v14 = vsel %vm3025_vm10, %v5636_v57, %v5638_v5  ;;  %vm13412_vm12 = vcmp.eq.f32.partialorder %v6980_v44, 8.507059e+37  ;;  %v5866_v7 = vmul.f32 %v12361_v37, %v13215_v45 }
 0x7a8   : > { %v8240_v16 = vpop.eup %8239  ;;  %v6957_v33 = vmul.f32 %v8238_v59, %v13376_v3  ;;  %vm6962_vm8 = vweird.f32 %v8238_v59  ;;  %v5673_v46 = vadd.f32 %v5637_v19, %v5476_v60  ;;  %v5674_v30 = vadd.f32 %v5639_v14, %v5477_v51 }
 0x7a9   : > { %v6972_v55 = vmul.f32 %v8240_v16, %v13378_v32  ;;  %vm6977_vm9 = vweird.f32 %v8240_v16  ;;  %v5721_v26 = vpack.c.bf16 %v5697_v41, %v5697_v41  ;;  %v5722_v62 = vpack.c.bf16 %v5698_v43, %v5698_v43  ;;  %vm6963_vm11 = vmor %vm6961_vm5, %vm6962_vm8 }
 0x7aa   : > { %v6958_v36 = vsub.f32 1.0, %v6957_v33  ;;  %v5723_v63 = vpack.c.bf16 %v5699_v61, %v5699_v61  ;;  %v5867_v20 = vmul.f32 %v12361_v37, %v13219_v28  ;;  %v5942_v40 = vmul.f32 %v12373_v49, %v13215_v45  ;;  %v13422_v27 = vpop.eup %8241  ;;  %vm6978_vm14 = vmor %vm6976_vm7, %vm6977_vm9 }
 0x7ab   : > { %v6973_v1 = vsub.f32 1.0, %v6972_v55  ;;  %v5745_v22 = vunpack.c.l.bf16 %v5721_v26  ;;  %v5746_v60 = vunpack.c.l.bf16 %v5722_v62  ;;  %v13424_v57 = vpop.eup %8243  ;;  %v5882_v41 = vpack.c.bf16 %v5866_v7, %v5866_v7 }
 0x7ac   : > { %v6959_v44 = vmul.f32 %v8238_v59, %v6958_v36  ;;  %v5747_v51 = vunpack.c.l.bf16 %v5723_v63  ;;  %v5883_v43 = vpack.c.bf16 %v5867_v20, %v5867_v20  ;;  %v5943_v61 = vmul.f32 %v12373_v49, %v13219_v28 }
 0x7ad   : > { %v6974_v5 = vmul.f32 %v8240_v16, %v6973_v1  ;;  %v5805_v19 = vrot.slane %v5745_v22, 2  ;;  %v5806_v14 = vrot.slane %v5746_v60, 2  ;;  %v5898_v26 = vunpack.c.l.bf16 %v5882_v41 }
 0x7ae   : > { %v6960_v33 = vadd.f32 %v8238_v59, %v6959_v44  ;;  %v5808_v55 = vrot.slane %v5747_v51, 2  ;;  %v5899_v62 = vunpack.c.l.bf16 %v5883_v43  ;;  %v5944_v63 = vmul.f32 %v12373_v49, %v13212_v25 }
 0x7af   : > { %v6975_v36 = vadd.f32 %v8240_v16, %v6974_v5  ;;  %v5807_v7 = vsel %vm3238_vm3, %v5805_v19, %v5806_v14  ;;  %v5966_v44 = vpack.c.bf16 %v5942_v40, %v5942_v40  ;;  %v5967_v32 = vpack.c.bf16 %v5943_v61, %v5943_v61 }
 0x7b0   : > { %v6964_v1 = vsel %vm6963_vm11, %v8238_v59, %v6960_v33  ;;  %v5809_v20 = vsel %vm3238_vm3, %v5806_v14, %v5808_v55  ;;  %v5843_v60 = vadd.f32 %v5807_v7, %v5673_v46  ;;  %v5968_v41 = vpack.c.bf16 %v5944_v63, %v5944_v63 }
 0x7b1   : > { %v13440_v3 = vsel %vm13405_vm13, %v6968_v0, %v6964_v1  ;;  %v6979_v22 = vsel %vm6978_vm14, %v8240_v16, %v6975_v36  ;;  %v5844_v51 = vadd.f32 %v5809_v20, %v5674_v30  ;;  %v5990_v40 = vunpack.c.l.bf16 %v5966_v44 }
 0x7b2   : > { %v13444_v5 = vsel %vm13412_vm12, %v6983_v10, %v6979_v22  ;;  %v7056_v59 = vmul.f32 1.0614054, %v13440_v3  ;;  %v5914_v33 = vadd.f32 %v5898_v26, %v5843_v60  ;;  %v5991_v47 = vunpack.c.l.bf16 %v5967_v32 }
 0x7b3   : > { %v7057_v43 = vmul.f32 1.0614054, %v13444_v5  ;;  %v5915_v19 = vadd.f32 %v5899_v62, %v5844_v51  ;;  %v5992_v0 = vunpack.c.l.bf16 %v5968_v41  ;;  %v6112_v16 = vmul.f32 %v12366_v50, %v13215_v45 }
 0x7b4   : > { %v7072_v14 = vadd.f32 -1.4531521, %v7056_v59  ;;  %v6050_v10 = vrot.slane %v5990_v40, 1  ;;  %v6113_v30 = vmul.f32 %v12366_v50, %v13219_v28  ;;  %v6114_v61 = vmul.f32 %v12366_v50, %v13212_v25 }
 0x7b5   : > { %v7073_v46 = vadd.f32 -1.4531521, %v7057_v43  ;;  %v7446_v36 = vadd.f32 %v13061_v12, %v7445_v58  ;;  %v6051_v26 = vrot.slane %v5991_v47, 1  ;;  %v6053_v62 = vrot.slane %v5992_v0, 1 }
 0x7b6   : > { %v7088_v55 = vmul.f32 %v7072_v14, %v13440_v3  ;;  %v6136_v1 = vpack.c.bf16 %v6112_v16, %v6112_v16  ;;  %v6137_v7 = vpack.c.bf16 %v6113_v30, %v6113_v30  ;;  %v6138_v20 = vpack.c.bf16 %v6114_v61, %v6114_v61 }
 0x7b7   : > { %v7089_v63 = vmul.f32 %v7073_v46, %v13444_v5  ;;  %7479 = vst.msk [vmem:[%s8900_s29 + $0x20] sm:$0xff] %vm747_vm2, %v7446_v36  ;;  %v6052_v22 = vsel %vm3025_vm10, %v6050_v10, %v6051_v26  ;;  %v6054_v60 = vsel %vm3025_vm10, %v6051_v26, %v6053_v62  ;;  %v6281_v51 = vmul.f32 %v12387_v35, %v13380_v56 }
 0x7b8   : > { %v7104_v44 = vadd.f32 1.4214138, %v7088_v55  ;;  %v6088_v32 = vadd.f32 %v6052_v22, %v5914_v33  ;;  %v6089_v12 = vadd.f32 %v6054_v60, %v5915_v19  ;;  %v6160_v41 = vunpack.c.l.bf16 %v6136_v1  ;;  %v7447_v55 = vpop.f32.mrf.mxu2  ;;  %v13479_v1 = vld [vmem:[%s13737_s9] ss:$0 sm:$0xff] }
 0x7b9   : > { %v7105_v59 = vadd.f32 1.4214138, %v7089_v63  ;;  %v6161_v40 = vunpack.c.l.bf16 %v6137_v7  ;;  %v6162_v14 = vunpack.c.l.bf16 %v6138_v20  ;;  %v6282_v47 = vmul.f32 %v12387_v35, %v13382_v4 }
 0x7ba   : > { %v7120_v43 = vmul.f32 %v7104_v44, %v13440_v3  ;;  %v6220_v16 = vrot.slane %v6160_v41, 2  ;;  %v6297_v46 = vpack.c.bf16 %v6281_v51, %v6281_v51  ;;  %v6357_v58 = vmul.f32 %v12401_v38, %v13380_v56 }
 0x7bb   : > { %v7121_v0 = vmul.f32 %v7105_v59, %v13444_v5  ;;  %vm6736_vm15 = vcmp.ge.f32.partialorder %v13346_v13, 0.0  ;;  %vm6737_vm6 = vcmp.ge.f32.partialorder %v13349_v8, 0.0  ;;  %v6221_v19 = vrot.slane %v6161_v40, 2 }
 0x7bc   : > { %v7136_v33 = vadd.f32 -0.28449672, %v7120_v43  ;;  %v6223_v10 = vrot.slane %v6162_v14, 2  ;;  %v6298_v30 = vpack.c.bf16 %v6282_v47, %v6282_v47  ;;  %v6313_v36 = vunpack.c.l.bf16 %v6297_v46 }
 0x7bd   : > { %v7137_v61 = vadd.f32 -0.28449672, %v7121_v0  ;;  %v6358_v26 = vmul.f32 %v12401_v38, %v13382_v4  ;;  %v6359_v62 = vmul.f32 %v12401_v38, %v13355_v2  ;;  %v7448_v7 = vadd.f32 %v13479_v1, %v7447_v55 }
 0x7be   : > { %v7152_v63 = vmul.f32 %v7136_v33, %v13440_v3  ;;  %v6222_v20 = vsel %vm3238_vm3, %v6220_v16, %v6221_v19  ;;  %v6224_v44 = vsel %vm3238_vm3, %v6221_v19, %v6223_v10  ;;  %v6314_v59 = vunpack.c.l.bf16 %v6298_v30 }
 0x7bf   : > { %v7153_v22 = vmul.f32 %v7137_v61, %v13444_v5  ;;  %v6258_v60 = vadd.f32 %v6222_v20, %v6088_v32  ;;  %v6259_v51 = vadd.f32 %v6224_v44, %v6089_v12  ;;  %7480 = vst.msk [vmem:[%s8900_s29 + $0x28] sm:$0xff] %vm747_vm2, %v7448_v7  ;;  %v6381_v43 = vpack.c.bf16 %v6357_v58, %v6357_v58 }
 0x7c0   : > { %v7168_v41 = vadd.f32 0.2548296, %v7152_v63  ;;  %v6382_v40 = vpack.c.bf16 %v6358_v26, %v6358_v26  ;;  %v6383_v14 = vpack.c.bf16 %v6359_v62, %v6359_v62  ;;  %v6527_v33 = vmul.f32 %v12399_v15, %v13380_v56 }
 0x7c1   : > { %v7169_v47 = vadd.f32 0.2548296, %v7153_v22  ;;  %v6329_v0 = vadd.f32 %v6313_v36, %v6258_v60  ;;  %v6330_v46 = vadd.f32 %v6314_v59, %v6259_v51  ;;  %v6405_v19 = vunpack.c.l.bf16 %v6381_v43 }
 0x7c2   : > { %v7184_v16 = vmul.f32 %v7168_v41, %v13440_v3  ;;  %v6406_v10 = vunpack.c.l.bf16 %v6382_v40  ;;  %v6407_v61 = vunpack.c.l.bf16 %v6383_v14  ;;  %v6528_v12 = vmul.f32 %v12399_v15, %v13382_v4 }
 0x7c3   : > { %v7185_v32 = vmul.f32 %v7169_v47, %v13444_v5  ;;  %v6529_v58 = vmul.f32 %v12399_v15, %v13355_v2  ;;  %v6551_v30 = vpack.c.bf16 %v6527_v33, %v6527_v33  ;;  %v6465_v36 = vrot.slane %v6405_v19, 1 }
 0x7c4   : > { %v7264_v55 = vmul.f32 %v13422_v27, %v7184_v16  ;;  %v6466_v26 = vrot.slane %v6406_v10, 1  ;;  %v6468_v62 = vrot.slane %v6407_v61, 1  ;;  %v6552_v3 = vpack.c.bf16 %v6528_v12, %v6528_v12 }
 0x7c5   : > { %v7265_v63 = vmul.f32 %v13424_v57, %v7185_v32  ;;  %v6553_v7 = vpack.c.bf16 %v6529_v58, %v6529_v58  ;;  %v6575_v20 = vunpack.c.l.bf16 %v6551_v30  ;;  %v5099_v44 = vmul.f32 0.5, %v13391_v42 }
 0x7c6   : > { %v7280_v5 = vsub.f32 1.0, %v7264_v55  ;;  %v6467_v22 = vsel %vm3025_vm10, %v6465_v36, %v6466_v26  ;;  %v6469_v60 = vsel %vm3025_vm10, %v6466_v26, %v6468_v62  ;;  %v6752_v51 = vsel %vm6736_vm15, 1.0, %v14160_v6 }
 0x7c7   : > { %v6753_v27 = vsel %vm6737_vm6, 1.0, %v14160_v6  ;;  %v7281_v59 = vsub.f32 1.0, %v7265_v63  ;;  %v6576_v57 = vunpack.c.l.bf16 %v6552_v3  ;;  %v6503_v43 = vadd.f32 %v6467_v22, %v6329_v0 }
 0x7c8   : > { %v7296_v41 = vmul.f32 %v7280_v5, %v6752_v51  ;;  %v6577_v40 = vunpack.c.l.bf16 %v6553_v7  ;;  %v6635_v14 = vrot.slane %v6575_v20, 2  ;;  %v5089_v42 = vmul.f32 0.5, %v13388_v24 }
 0x7c9   : > { %v7297_v47 = vmul.f32 %v7281_v59, %v6753_v27  ;;  %v6504_v33 = vadd.f32 %v6469_v60, %v6330_v46  ;;  %v6636_v16 = vrot.slane %v6576_v57, 2  ;;  %v6704_v19 = vmul.f32 0.5, %v13338_v29  ;;  %v14167_v57 = vld [vmem:[#allocation57_spill] sm:$0xff] }
 0x7ca   : > { %v7312_v10 = vadd.f32 1.0, %v7296_v41  ;;  %v6638_v13 = vrot.slane %v6577_v40, 2  ;;  %v5100_v61 = vsub.f32 1.5, %v5099_v44  ;;  %v6705_v32 = vmul.f32 0.5, %v13341_v18 }
 0x7cb   : > { %v7313_v8 = vadd.f32 1.0, %v7297_v47  ;;  %v6637_v12 = vsel %vm3238_vm3, %v6635_v14, %v6636_v16  ;;  %v5090_v55 = vsub.f32 1.5, %v5089_v42  ;;  %vm5103_vm4 = vweird.f32 %v13358_v52  ;;  %v14169_v47 = vld [vmem:[#allocation52_spill] sm:$0xff] }
 0x7cc   : > { %v7328_v58 = vmul.f32 %v7312_v10, %v6704_v19  ;;  %v6639_v0 = vsel %vm3238_vm3, %v6636_v16, %v6638_v13  ;;  %v6673_v30 = vadd.f32 %v6637_v12, %v6503_v43  ;;  %v5101_v29 = vmul.f32 %v13358_v52, %v5100_v61  ;;  %v14171_v16 = vld [vmem:[#allocation48_spill] sm:$0xff] }
 0x7cd   : > { %v7329_v36 = vmul.f32 %v7313_v8, %v6705_v32  ;;  %v6674_v24 = vadd.f32 %v6639_v0, %v6504_v33  ;;  %vm5102_vm1 = vweird.f32 %v13328_v53  ;;  %v5091_v7 = vmul.f32 %v13353_v39, %v5090_v55  ;;  %v14170_v33 = vld [vmem:[#allocation75_spill] sm:$0xff] }
 0x7ce   : > { %v7344_v26 = vpack.c.bf16 %v7328_v58, %v7328_v58  ;;  %v13512_v46 = vadd.f32 %v12420_v54, %v6673_v30  ;;  %vm5093_vm5 = vweird.f32 %v13353_v39  ;;  %vm5104_vm7 = vmor %vm5102_vm1, %vm5103_vm4  ;;  %vm5092_vm8 = vweird.f32 %v13325_v34  ;;  %v14168_v34 = vld [vmem:[#allocation55_spill] sm:$0xff] }
 0x7cf   : > { %v7345_v62 = vpack.c.bf16 %v7329_v36, %v7329_v36  ;;  %v13517_v18 = vadd.f32 %v12420_v54, %v6674_v24  ;;  %v5105_v53 = vsel %vm5104_vm7, %v13358_v52, %v5101_v29  ;;  %vm5094_vm13 = vmor %vm5092_vm8, %vm5093_vm5  ;;  %vm655_vm9 = vcmp.ge.s32.totalorder %v14169_v47, %v12094_v11 }
 0x7d0   : > { %v7382_v63 = vunpack.c.l.b16 %v7344_v26  ;;  %v13521_v3 = vmul.f32 0.70710677, %v13512_v46  ;;  %v5095_v27 = vsel %vm5094_vm13, %v13353_v39, %v5091_v7  ;;  %v5125_v41 = vmul.f32 %v5105_v53, %v14167_v57 }
 0x7d1   : > { %v7383_v20 = vunpack.c.l.b16 %v7345_v62  ;;  %v13526_v44 = vmul.f32 0.70710677, %v13517_v18  ;;  %v5124_v14 = vmul.f32 %v5095_v27, %v14168_v34  ;;  %vm678_vm12 = vcmp.lt.s32.totalorder %v14169_v47, %v12096_v17 }
 0x7d2   : > { %v13529_v5 = vand.u32 2147483647, %v13521_v3  ;;  %v5146_v52 = vmul.f32 %v12104_v9, %v5125_v41  ;;  %vm654_vm11 = vcmp.ge.s32.totalorder %v14170_v33, %v12094_v11  ;;  %vm677_vm14 = vcmp.lt.s32.totalorder %v14170_v33, %v12096_v17  ;;  %vm698_vm15 = vmand %vm655_vm9, %vm678_vm12 }
 0x7d3   : > { %v7393_v22 = vpack.c.b16 %v7383_v20, %v7382_v63  ;;  %v13534_v60 = vand.u32 2147483647, %v13526_v44  ;;  %v5145_v42 = vmul.f32 %v12104_v9, %v5124_v14  ;;  %vm697_vm6 = vmand %vm654_vm11, %vm677_vm14  ;;  %v5531_v34 = vmul.f32 %v12322_v31, %v13219_v28 }
 0x7d4   : > { %v6786_v51 = vmul.f32 0.3275911, %v13529_v5  ;;  %v5167_v19 = vadd.f32 %v14171_v16, %v5146_v52  ;;  %vm6738_vm11 = vcmp.ge.f32.partialorder %v13521_v3, 0.0  ;;  %vm6739_vm14 = vcmp.ge.f32.partialorder %v13526_v44, 0.0 }
 0x7d5   : > { %7742 = vmatmul.msk.bf16.gmra.mxu2 %vm747_vm2, %v7393_v22  ;;  %v6787_v59 = vmul.f32 0.3275911, %v13534_v60  ;;  %v5166_v9 = vadd.f32 %v14171_v16, %v5145_v42  ;;  %v7203_v41 = vsub.f32 0.0, %v13534_v60  ;;  %v5532_v42 = vmul.f32 %v13212_v25, %v12322_v31 }
 0x7d6   : > { %v6802_v43 = vadd.f32 1.0, %v6786_v51  ;;  %v5227_v8 = vsel %vm698_vm15, %v5167_v19, 0.0  ;;  %v7202_v51 = vsub.f32 0.0, %v13529_v5  ;;  %v6755_v3 = vsel %vm6739_vm14, 1.0, %v14160_v6 }
 0x7d7   : > { %v6803_v40 = vadd.f32 1.0, %v6787_v59  ;;  %v5226_v55 = vsel %vm697_vm6, %v5166_v9, 0.0  ;;  %v5247_v24 = vpack.c.bf16 %v5227_v8, %v5227_v8 }
 0x7d8   : > { %8245 = vrcp.f32 %v6802_v43  ;;  %v6997_v12 = vand.u32 2147483648, %v6802_v43  ;;  %v6995_v30 = vand.u32 2147483647, %v6802_v43  ;;  %vm6991_vm5 = vweird.f32 %v6802_v43 }
 0x7d9   : > { %8247 = vrcp.f32 %v6803_v40  ;;  %v7012_v11 = vand.u32 2147483648, %v6803_v40  ;;  %v7010_v17 = vand.u32 2147483647, %v6803_v40  ;;  %vm7006_vm8 = vweird.f32 %v6803_v40 }
 0x7da   : > { %v6998_v29 = vor.u32 1.1754944e-38, %v6997_v12  ;;  %v5246_v63 = vpack.c.bf16 %v5226_v55, %v5226_v55  ;;  %vm6996_vm13 = vcmp.eq.f32.partialorder %v6995_v30, 8.507059e+37  ;;  %v5290_v27 = vunpack.c.l.b16 %v5247_v24 }
 0x7db   : > { %v7013_v20 = vor.u32 1.1754944e-38, %v7012_v11  ;;  %vm7011_vm12 = vcmp.eq.f32.partialorder %v7010_v17, 8.507059e+37  ;;  %v7450_v33 = vpop.f32.mrf.mxu2  ;;  %v5556_v12 = vpack.c.bf16 %v5532_v42, %v5532_v42  ;;  %v5702_v24 = vmul.f32 %v12324_v48, %v13212_v25 }
 0x7dc   : > { %v5289_v14 = vunpack.c.l.b16 %v5246_v63 }
 0x7dd   : > { %v5580_v63 = vunpack.c.l.bf16 %v5556_v12 }
 0x7de   : > { %v8246_v39 = vpop.eup %8245  ;;  %v5300_v16 = vpack.c.b16 %v5290_v27, %v5289_v14 }
 0x7df   : > { %v8248_v10 = vpop.eup %8247  ;;  %v6987_v13 = vmul.f32 %v8246_v39, %v6802_v43  ;;  %vm6992_vm4 = vweird.f32 %v8246_v39 }
 0x7e0   : > { %v7002_v61 = vmul.f32 %v8248_v10, %v6803_v40  ;;  %vm7007_vm1 = vweird.f32 %v8248_v10  ;;  %vm6993_vm7 = vmor %vm6991_vm5, %vm6992_vm4  ;;  %v5530_v40 = vmul.f32 %v12322_v31, %v13215_v45  ;;  %v5365_v30 = vshrl.u32 %v5300_v16, 16 }
 0x7e1   : > { %v6988_v32 = vsub.f32 1.0, %v6987_v13  ;;  %vm7008_vm9 = vmor %vm7006_vm8, %vm7007_vm1  ;;  %v7451_v13 = vadd.f32 %v13479_v1, %v7450_v33 }
 0x7e2   : > { %v7003_v58 = vsub.f32 1.0, %v7002_v61  ;;  %v5554_v61 = vpack.c.bf16 %v5530_v40, %v5530_v40  ;;  %v13582_v27 = vrot.slane %v5365_v30, 7  ;;  %v5368_v40 = vshll.u32 %v5300_v16, 16 }
 0x7e3   : > { %v6989_v0 = vmul.f32 %v8246_v39, %v6988_v32  ;;  %v5555_v32 = vpack.c.bf16 %v5531_v34, %v5531_v34  ;;  %7481 = vst.msk [vmem:[%s8900_s29 + $0x30] sm:$0xff] %vm747_vm2, %v7451_v13 }
 0x7e4   : > { %v7004_v36 = vmul.f32 %v8248_v10, %v7003_v58 }
 0x7e5   : > { %v6990_v26 = vadd.f32 %v8246_v39, %v6989_v0  ;;  %v5701_v0 = vmul.f32 %v12324_v48, %v13219_v28  ;;  %v5579_v17 = vunpack.c.l.bf16 %v5555_v32 }
 0x7e6   : > { %v7005_v62 = vadd.f32 %v8248_v10, %v7004_v36  ;;  %v5578_v36 = vunpack.c.l.bf16 %v5554_v61 }
 0x7e7   : > { %v6994_v7 = vsel %vm6993_vm7, %v8246_v39, %v6990_v26  ;;  %v7218_v39 = vmul.f32 %v7202_v51, %v13529_v5  ;;  %v5700_v5 = vmul.f32 %v12324_v48, %v13215_v45  ;;  %v5725_v51 = vpack.c.bf16 %v5701_v0, %v5701_v0 }
 0x7e8   : > { %v13554_v53 = vsel %vm6996_vm13, %v6998_v29, %v6994_v7  ;;  %v7009_v22 = vsel %vm7008_vm9, %v8248_v10, %v7005_v62  ;;  %v7219_v10 = vmul.f32 %v7203_v41, %v13534_v60  ;;  %v5446_v29 = vmul.f32 %v13215_v45, %v12343_v21 }
 0x7e9   : > { %v7014_v59 = vsel %vm7011_vm12, %v7013_v20, %v7009_v22  ;;  %v7058_v57 = vmul.f32 1.0614054, %v13554_v53  ;;  %v7246_v31 = vmul.f32 1.442695, %v7218_v39  ;;  %v5447_v62 = vmul.f32 %v13219_v28, %v12343_v21  ;;  %v7452_v20 = vpop.f32.mrf.mxu2 }
 0x7ea   : > { %v7059_v43 = vmul.f32 1.0614054, %v7014_v59  ;;  %v7248_v11 = vmul.f32 1.442695, %v7219_v10  ;;  %v5724_v22 = vpack.c.bf16 %v5700_v5, %v5700_v5  ;;  %v7453_v48 = vadd.f32 %v13479_v1, %v7452_v20 }
 0x7eb   : > { %v7074_v52 = vadd.f32 -1.4531521, %v7058_v57  ;;  %8249 = vpow2.f32 %v7246_v31  ;;  %v5640_v41 = vrot.slane %v5578_v36, 1  ;;  %v5641_v45 = vrot.slane %v5579_v17, 1 }
 0x7ec   : > { %v7075_v47 = vadd.f32 -1.4531521, %v7059_v43  ;;  %8251 = vpow2.f32 %v7248_v11  ;;  %v5726_v43 = vpack.c.bf16 %v5702_v24, %v5702_v24  ;;  %7482 = vst.msk [vmem:[%s8900_s29 + $0x38] sm:$0xff] %vm747_vm2, %v7453_v48  ;;  %v5462_v28 = vpack.c.bf16 %v5446_v29, %v5446_v29 }
 0x7ed   : > { %v7090_v19 = vmul.f32 %v7074_v52, %v13554_v53  ;;  %v5463_v34 = vpack.c.bf16 %v5447_v62, %v5447_v62  ;;  %v5643_v52 = vrot.slane %v5580_v63, 1  ;;  %v5748_v42 = vunpack.c.l.bf16 %v5724_v22 }
 0x7ee   : > { %v7091_v9 = vmul.f32 %v7075_v47, %v7014_v59  ;;  %v5749_v47 = vunpack.c.l.bf16 %v5725_v51  ;;  %v5370_v39 = vor.u32 %v5368_v40, %v13582_v27  ;;  %v5642_v13 = vsel %vm3025_vm10, %v5640_v41, %v5641_v45 }
 0x7ef   : > { %v7106_v8 = vadd.f32 1.4214138, %v7090_v19  ;;  %v5750_v16 = vunpack.c.l.bf16 %v5726_v43  ;;  %v5479_v12 = vunpack.c.l.bf16 %v5463_v34  ;;  %v5810_v31 = vrot.slane %v5748_v42, 2 }
 0x7f0   : > { %v7107_v58 = vadd.f32 1.4214138, %v7091_v9  ;;  %v5644_v9 = vsel %vm3025_vm10, %v5641_v45, %v5643_v52  ;;  %v5811_v5 = vrot.slane %v5749_v47, 2  ;;  %v6706_v17 = vmul.f32 0.5, %v13512_v46 }
 0x7f1   : > { %v7122_v60 = vmul.f32 %v7106_v8, %v13554_v53  ;;  %v8250_v19 = vpop.eup %8249  ;;  %v5478_v8 = vunpack.c.l.bf16 %v5462_v28  ;;  %v5676_v30 = vadd.f32 %v5644_v9, %v5479_v12  ;;  %v5813_v11 = vrot.slane %v5750_v16, 2 }
 0x7f2   : > { %v7123_v55 = vmul.f32 %v7107_v58, %v7014_v59  ;;  %v8252_v61 = vpop.eup %8251  ;;  %v5812_v44 = vsel %vm3238_vm3, %v5810_v31, %v5811_v5  ;;  %v6707_v29 = vmul.f32 0.5, %v13517_v18  ;;  %v5410_v22 = vsel %vm9780_vm0, %v13582_v27, 0 }
 0x7f3   : > { %v7138_v26 = vadd.f32 -0.28449672, %v7122_v60  ;;  %v5868_v51 = vmul.f32 %v13380_v56, %v12361_v37  ;;  %v5869_v46 = vmul.f32 %v13382_v4, %v12361_v37  ;;  %v5945_v48 = vmul.f32 %v12373_v49, %v13380_v56 }
 0x7f4   : > { %v7139_v7 = vadd.f32 -0.28449672, %v7123_v55  ;;  %v5400_v55 = vsel %vm9780_vm0, 0, %v5370_v39  ;;  %v5946_v18 = vmul.f32 %v12373_v49, %v13382_v4  ;;  %v6115_v27 = vmul.f32 %v12366_v50, %v13380_v56 }
 0x7f5   : > { %v7154_v57 = vmul.f32 %v7138_v26, %v13554_v53  ;;  %v5814_v26 = vsel %vm3238_vm3, %v5811_v5, %v5813_v11  ;;  %v5884_v45 = vpack.c.bf16 %v5868_v51, %v5868_v51  ;;  %v5885_v23 = vpack.c.bf16 %v5869_v46, %v5869_v46 }
 0x7f6   : > { %v7155_v25 = vmul.f32 %v7139_v7, %v7014_v59  ;;  %v5846_v7 = vadd.f32 %v5814_v26, %v5676_v30  ;;  %v5969_v40 = vpack.c.bf16 %v5945_v48, %v5945_v48  ;;  %v6116_v52 = vmul.f32 %v12366_v50, %v13382_v4 }
 0x7f7   : > { %v7170_v21 = vadd.f32 0.2548296, %v7154_v57  ;;  %v5900_v34 = vunpack.c.l.bf16 %v5884_v45  ;;  %v6117_v56 = vmul.f32 %v12366_v50, %v13355_v2 }
 0x7f8   : > { %v7171_v14 = vadd.f32 0.2548296, %v7155_v25  ;;  %v5947_v25 = vmul.f32 %v13355_v2, %v12373_v49  ;;  %v5993_v47 = vunpack.c.l.bf16 %v5969_v40 }
 0x7f9   : > { %v7186_v33 = vmul.f32 %v7170_v21, %v13554_v53  ;;  %v5675_v53 = vadd.f32 %v5642_v13, %v5478_v8  ;;  %v5970_v21 = vpack.c.bf16 %v5946_v18, %v5946_v18  ;;  %v6140_v8 = vpack.c.bf16 %v6116_v52, %v6116_v52 }
 0x7fa   : > { %v7187_v10 = vmul.f32 %v7171_v14, %v7014_v59  ;;  %v6754_v59 = vsel %vm6738_vm11, 1.0, %v14160_v6  ;;  %v5971_v37 = vpack.c.bf16 %v5947_v25, %v5947_v25  ;;  %v5901_v14 = vunpack.c.l.bf16 %v5885_v23 }
 0x7fb   : > { %v7266_v32 = vmul.f32 %v8250_v19, %v7186_v33  ;;  %v5845_v63 = vadd.f32 %v5812_v44, %v5675_v53  ;;  %v5994_v39 = vunpack.c.l.bf16 %v5970_v21  ;;  %v6055_v13 = vrot.slane %v5993_v47, 1 }
 0x7fc   : > { %v7267_v58 = vmul.f32 %v8252_v61, %v7187_v10  ;;  %v5995_v49 = vunpack.c.l.bf16 %v5971_v37  ;;  %v5917_v10 = vadd.f32 %v5901_v14, %v5846_v7  ;;  %v6139_v61 = vpack.c.bf16 %v6115_v27, %v6115_v27 }
 0x7fd   : > { %v7282_v0 = vsub.f32 1.0, %v7266_v32  ;;  %v5916_v19 = vadd.f32 %v5900_v34, %v5845_v63  ;;  %v6056_v9 = vrot.slane %v5994_v39, 1  ;;  %v6141_v12 = vpack.c.bf16 %v6117_v56, %v6117_v56 }
 0x7fe   : > { %v7283_v60 = vsub.f32 1.0, %v7267_v58  ;;  %v6058_v16 = vrot.slane %v5995_v49, 1  ;;  %v6267_v58 = vunpack.c.l.bf16 %v5400_v55  ;;  %v6163_v5 = vunpack.c.l.bf16 %v6139_v61 }
 0x7ff   : > { %v7298_v36 = vmul.f32 %v7282_v0, %v6754_v59  ;;  %v6057_v4 = vsel %vm3025_vm10, %v6055_v13, %v6056_v9  ;;  %v6268_v0 = vunpack.c.h.bf16 %v5400_v55  ;;  %v6164_v59 = vunpack.c.l.bf16 %v6140_v8 }
 0x800   : > { %v7299_v24 = vmul.f32 %v7283_v60, %v6755_v3  ;;  %v6059_v31 = vsel %vm3025_vm10, %v6056_v9, %v6058_v16  ;;  %v6090_v53 = vadd.f32 %v6057_v4, %v5916_v19  ;;  %v6165_v50 = vunpack.c.l.bf16 %v6141_v12 }
 0x801   : > { %v7314_v62 = vadd.f32 1.0, %v7298_v36  ;;  %v6091_v30 = vadd.f32 %v6059_v31, %v5917_v10  ;;  %v6225_v2 = vrot.slane %v6163_v5, 2  ;;  %v6283_v60 = vmul.f32 %v6267_v58, %v12387_v35 }
 0x802   : > { %v7315_v20 = vadd.f32 1.0, %v7299_v24  ;;  %v6284_v11 = vmul.f32 %v6268_v0, %v12387_v35  ;;  %v6338_v3 = vunpack.c.l.bf16 %v5410_v22  ;;  %v6226_v36 = vrot.slane %v6164_v59, 2 }
 0x803   : > { %v7330_v57 = vmul.f32 %v7314_v62, %v6706_v17  ;;  %v6228_v17 = vrot.slane %v6165_v50, 2  ;;  %v6360_v24 = vmul.f32 %v12401_v38, %v6267_v58  ;;  %v6361_v44 = vmul.f32 %v12401_v38, %v6268_v0 }
 0x804   : > { %v7331_v41 = vmul.f32 %v7315_v20, %v6707_v29  ;;  %v6299_v26 = vpack.c.bf16 %v6283_v60, %v6283_v60  ;;  %v6300_v55 = vpack.c.bf16 %v6284_v11, %v6284_v11  ;;  %v6362_v29 = vmul.f32 %v6338_v3, %v12401_v38 }
 0x805   : > { %v7346_v43 = vpack.c.bf16 %v7330_v57, %v7330_v57  ;;  %v6530_v62 = vmul.f32 %v12399_v15, %v6267_v58  ;;  %v6227_v63 = vsel %vm3238_vm3, %v6225_v2, %v6226_v36  ;;  %v6384_v7 = vpack.c.bf16 %v6360_v24, %v6360_v24 }
 0x806   : > { %v7347_v28 = vpack.c.bf16 %v7331_v41, %v7331_v41  ;;  %v6385_v20 = vpack.c.bf16 %v6361_v44, %v6361_v44  ;;  %v6229_v51 = vsel %vm3238_vm3, %v6226_v36, %v6228_v17  ;;  %v6260_v35 = vadd.f32 %v6227_v63, %v6090_v53 }
 0x807   : > { %v7384_v42 = vunpack.c.l.b16 %v7346_v43  ;;  %v6315_v22 = vunpack.c.l.bf16 %v6299_v26  ;;  %v6316_v46 = vunpack.c.l.bf16 %v6300_v55  ;;  %v6386_v57 = vpack.c.bf16 %v6362_v29, %v6362_v29 }
 0x808   : > { %v7385_v33 = vunpack.c.l.b16 %v7347_v28  ;;  %v6408_v48 = vunpack.c.l.bf16 %v6384_v7  ;;  %v6409_v18 = vunpack.c.l.bf16 %v6385_v20  ;;  %v6531_v25 = vmul.f32 %v12399_v15, %v6268_v0 }
 0x809   : > { %v6261_v41 = vadd.f32 %v6229_v51, %v6091_v30  ;;  %v6331_v45 = vadd.f32 %v6315_v22, %v6260_v35  ;;  %v6532_v38 = vmul.f32 %v12399_v15, %v6338_v3  ;;  %v6554_v23 = vpack.c.bf16 %v6530_v62, %v6530_v62 }
 0x80a   : > { %v7394_v32 = vpack.c.b16 %v7385_v33, %v7384_v42  ;;  %v6410_v27 = vunpack.c.l.bf16 %v6386_v57  ;;  %v6470_v43 = vrot.slane %v6408_v48, 1  ;;  %v6471_v40 = vrot.slane %v6409_v18, 1 }
 0x80b   : > { %v6555_v21 = vpack.c.bf16 %v6531_v25, %v6531_v25  ;;  %v6332_v37 = vadd.f32 %v6316_v46, %v6261_v41  ;;  %v6556_v28 = vpack.c.bf16 %v6532_v38, %v6532_v38  ;;  %v6578_v34 = vunpack.c.l.bf16 %v6554_v23 }
 0x80c   : > { %7743 = vmatmul.msk.bf16.gmra.mxu2 %vm747_vm2, %v7394_v32  ;;  %v6472_v14 = vsel %vm3025_vm10, %v6470_v43, %v6471_v40  ;;  %v6473_v52 = vrot.slane %v6410_v27, 1 }
 0x80d   : > { %v6579_v42 = vunpack.c.l.bf16 %v6555_v21  ;;  %v6505_v47 = vadd.f32 %v6472_v14, %v6331_v45  ;;  %v6580_v39 = vunpack.c.l.bf16 %v6556_v28  ;;  %v6640_v49 = vrot.slane %v6578_v34, 2 }
 0x80e   : > { %v6474_v33 = vsel %vm3025_vm10, %v6471_v40, %v6473_v52 }
 0x80f   : > { %v6641_v19 = vrot.slane %v6579_v42, 2  ;;  %v6506_v15 = vadd.f32 %v6474_v33, %v6332_v37  ;;  %v6643_v10 = vrot.slane %v6580_v39, 2 }
 0x811   : > { %v6642_v56 = vsel %vm3238_vm3, %v6640_v49, %v6641_v19  ;;  %v6644_v13 = vsel %vm3238_vm3, %v6641_v19, %v6643_v10 }
 0x812   : > { %v6675_v9 = vadd.f32 %v6642_v56, %v6505_v47  ;;  %v6676_v16 = vadd.f32 %v6644_v13, %v6506_v15 }
 0x814   : > { %v13639_v61 = vadd.f32 %v12420_v54, %v6675_v9  ;;  %v13642_v32 = vadd.f32 %v12420_v54, %v6676_v16 }
 0x816   : > { %v13645_v12 = vmul.f32 0.70710677, %v13639_v61  ;;  %v13649_v4 = vmul.f32 0.70710677, %v13642_v32 }
 0x818   : > { %v6772_v31 = vand.u32 2147483647, %v13645_v12  ;;  %v6773_v5 = vand.u32 2147483647, %v13649_v4  ;;  %vm6740_vm7 = vcmp.ge.f32.partialorder %v13645_v12, 0.0  ;;  %vm6741_vm8 = vcmp.ge.f32.partialorder %v13649_v4, 0.0 }
 0x81a   : > { %v6788_v0 = vmul.f32 0.3275911, %v6772_v31  ;;  %v6789_v53 = vmul.f32 0.3275911, %v6773_v5  ;;  %v7204_v22 = vsub.f32 0.0, %v6772_v31  ;;  %v7205_v48 = vsub.f32 0.0, %v6773_v5 }
 0x81c   : > { %v6804_v30 = vadd.f32 1.0, %v6788_v0  ;;  %v6805_v54 = vadd.f32 1.0, %v6789_v53  ;;  %v7220_v45 = vmul.f32 %v7204_v22, %v6772_v31  ;;  %v7221_v27 = vmul.f32 %v7205_v48, %v6773_v5 }
 0x81d   : > { %v6757_v5 = vsel %vm6741_vm8, 1.0, %v14160_v6 }
 0x81e   : > { %8253 = vrcp.f32 %v6804_v30  ;;  %v7027_v3 = vand.u32 2147483648, %v6804_v30  ;;  %v7025_v24 = vand.u32 2147483647, %v6804_v30  ;;  %v7042_v44 = vand.u32 2147483648, %v6805_v54 }
 0x81f   : > { %8255 = vrcp.f32 %v6805_v54  ;;  %v7040_v55 = vand.u32 2147483647, %v6805_v54  ;;  %vm7021_vm3 = vweird.f32 %v6804_v30  ;;  %vm7036_vm6 = vweird.f32 %v6805_v54 }
 0x820   : > { %v7028_v62 = vor.u32 1.1754944e-38, %v7027_v3  ;;  %vm7026_vm4 = vcmp.eq.f32.partialorder %v7025_v24, 8.507059e+37  ;;  %v7043_v20 = vor.u32 1.1754944e-38, %v7042_v44  ;;  %v7250_v28 = vmul.f32 1.442695, %v7220_v45 }
 0x821   : > { %vm7041_vm5 = vcmp.eq.f32.partialorder %v7040_v55, 8.507059e+37  ;;  %v7252_v14 = vmul.f32 1.442695, %v7221_v27 }
 0x822   : > { %v7455_v8 = vpop.f32.mrf.mxu2  ;;  %8257 = vpow2.f32 %v7250_v28 }
 0x823   : > { %v7456_v58 = vadd.f32 %v13479_v1, %v7455_v8  ;;  %8259 = vpow2.f32 %v7252_v14 }
 0x824   : > { %v8254_v59 = vpop.eup %8253 }
 0x825   : > { %7483 = vst.msk [vmem:[%s8900_s29 + $0x40] sm:$0xff] %vm747_vm2, %v7456_v58  ;;  %v8256_v50 = vpop.eup %8255  ;;  %v7017_v2 = vmul.f32 %v8254_v59, %v6804_v30  ;;  %vm7022_vm0 = vweird.f32 %v8254_v59  ;;  %v6756_v58 = vsel %vm6740_vm7, 1.0, %v14160_v6  ;;  %v6708_v30 = vmul.f32 0.5, %v13639_v61 }
 0x826   : > { %v7032_v60 = vmul.f32 %v8256_v50, %v6805_v54  ;;  %vm7037_vm10 = vweird.f32 %v8256_v50  ;;  %vm7023_vm15 = vmor %vm7021_vm3, %vm7022_vm0 }
 0x827   : > { %v7018_v11 = vsub.f32 1.0, %v7017_v2  ;;  %vm7038_vm1 = vmor %vm7036_vm6, %vm7037_vm10 }
 0x828   : > { %v7033_v36 = vsub.f32 1.0, %v7032_v60  ;;  %v8258_v10 = vpop.eup %8257 }
 0x829   : > { %v7019_v17 = vmul.f32 %v8254_v59, %v7018_v11  ;;  %v8260_v13 = vpop.eup %8259 }
 0x82a   : > { %v7034_v26 = vmul.f32 %v8256_v50, %v7033_v36  ;;  %v7457_v38 = vpop.f32.mrf.mxu2 }
 0x82b   : > { %v7020_v29 = vadd.f32 %v8254_v59, %v7019_v17  ;;  %v7458_v43 = vadd.f32 %v13479_v1, %v7457_v38 }
 0x82c   : > { %v7035_v63 = vadd.f32 %v8256_v50, %v7034_v26 }
 0x82d   : > { %v7024_v7 = vsel %vm7023_vm15, %v8254_v59, %v7020_v29  ;;  %7484 = vst.msk [vmem:[%s8900_s29 + $0x48] sm:$0xff] %vm747_vm2, %v7458_v43  ;;  %v6709_v59 = vmul.f32 0.5, %v13642_v32 }
 0x82e   : > { %v7029_v51 = vsel %vm7026_vm4, %v7028_v62, %v7024_v7  ;;  %v7039_v35 = vsel %vm7038_vm1, %v8256_v50, %v7035_v63 }
 0x82f   : > { %v7044_v46 = vsel %vm7041_vm5, %v7043_v20, %v7039_v35  ;;  %v7060_v57 = vmul.f32 1.0614054, %v7029_v51 }
 0x830   : > { %v7061_v18 = vmul.f32 1.0614054, %v7044_v46 }
 0x831   : > { %v7076_v25 = vadd.f32 -1.4531521, %v7060_v57 }
 0x832   : > { %v7077_v41 = vadd.f32 -1.4531521, %v7061_v18 }
 0x833   : > { %v7092_v23 = vmul.f32 %v7076_v25, %v7029_v51 }
 0x834   : > { %v7093_v40 = vmul.f32 %v7077_v41, %v7044_v46 }
 0x835   : > { %v7108_v21 = vadd.f32 1.4214138, %v7092_v23 }
 0x836   : > { %v7109_v37 = vadd.f32 1.4214138, %v7093_v40 }
 0x837   : > { %v7124_v34 = vmul.f32 %v7108_v21, %v7029_v51 }
 0x838   : > { %v7125_v52 = vmul.f32 %v7109_v37, %v7044_v46 }
 0x839   : > { %v7140_v42 = vadd.f32 -0.28449672, %v7124_v34 }
 0x83a   : > { %v7141_v47 = vadd.f32 -0.28449672, %v7125_v52 }
 0x83b   : > { %v7156_v39 = vmul.f32 %v7140_v42, %v7029_v51 }
 0x83c   : > { %v7157_v49 = vmul.f32 %v7141_v47, %v7044_v46 }
 0x83d   : > { %v7172_v33 = vadd.f32 0.2548296, %v7156_v39 }
 0x83e   : > { %v7173_v19 = vadd.f32 0.2548296, %v7157_v49 }
 0x83f   : > { %v7188_v15 = vmul.f32 %v7172_v33, %v7029_v51 }
 0x840   : > { %v7189_v56 = vmul.f32 %v7173_v19, %v7044_v46 }
 0x841   : > { %v7268_v9 = vmul.f32 %v8258_v10, %v7188_v15 }
 0x842   : > { %v7269_v16 = vmul.f32 %v8260_v13, %v7189_v56 }
 0x843   : > { %v7284_v8 = vsub.f32 1.0, %v7268_v9 }
 0x844   : > { %v7285_v31 = vsub.f32 1.0, %v7269_v16 }
 0x845   : > { %v7300_v0 = vmul.f32 %v7284_v8, %v6756_v58 }
 0x846   : > { %v7301_v53 = vmul.f32 %v7285_v31, %v6757_v5 }
 0x847   : > { %v7316_v54 = vadd.f32 1.0, %v7300_v0 }
 0x848   : > { %v7317_v12 = vadd.f32 1.0, %v7301_v53 }
 0x849   : > { %v7332_v50 = vmul.f32 %v7316_v54, %v6708_v30 }
 0x84a   : > { %v7333_v4 = vmul.f32 %v7317_v12, %v6709_v59 }
 0x84b   : > { %v7348_v2 = vpack.c.bf16 %v7332_v50, %v7332_v50 }
 0x84c   : > { %v7349_v60 = vpack.c.bf16 %v7333_v4, %v7333_v4 }
 0x84d   : > { %v7386_v11 = vunpack.c.l.b16 %v7348_v2 }
 0x84e   : > { %v7387_v3 = vunpack.c.l.b16 %v7349_v60 }
 0x850   : > { %v7395_v36 = vpack.c.b16 %v7387_v3, %v7386_v11 }
 0x852   : > { %7744 = vmatmul.msk.bf16.gmra.mxu2 %vm747_vm2, %v7395_v36 }
 0x858   : > { %v7460_v6 = vpop.f32.mrf.mxu2 }
 0x859   : > { %v7461_v17 = vadd.f32 %v13479_v1, %v7460_v6 }
 0x85b   : > { %7485 = vst.msk [vmem:[%s8900_s29 + $0x50] sm:$0xff] %vm747_vm2, %v7461_v17 }
 0x860   : > { %v7462_v61 = vpop.f32.mrf.mxu2 }
 0x861   : > { %v7463_v32 = vadd.f32 %v13479_v1, %v7462_v61 }
 0x863   : > { %7486 = vst.msk [vmem:[%s8900_s29 + $0x58] sm:$0xff] %vm747_vm2, %v7463_v32 }
 0x88f   : > { %v7465_v24 = vpop.f32.mrf.mxu2 }
 0x890   : > { %v7466_v44 = vadd.f32 %v13479_v1, %v7465_v24 }
 0x892   : > { %7487 = vst.msk [vmem:[%s8900_s29 + $0x60] sm:$0xff] %vm747_vm2, %v7466_v44 }
 0x897   : > { %v7467_v26 = vpop.f32.mrf.mxu2 }
 0x898   : > { %v7468_v55 = vadd.f32 %v13479_v1, %v7467_v26 }
 0x89a   : > { %7488 = vst.msk [vmem:[%s8900_s29 + $0x68] sm:$0xff] %vm747_vm2, %v7468_v55 }
 0x8d5   : > { %v7470_v29 = vpop.f32.mrf.mxu2 }
 0x8d6   : > { %v7471_v62 = vadd.f32 %v13479_v1, %v7470_v29 }
 0x8d8   : > { %7489 = vst.msk [vmem:[%s8900_s29 + $0x70] sm:$0xff] %vm747_vm2, %v7471_v62 }
 0x8dd   : > { %v7472_v63 = vpop.f32.mrf.mxu2 }
 0x8de   : > { %v7473_v7 = vadd.f32 %v13479_v1, %v7472_v63 }
 0x8e0   : > { %7490 = vst.msk [vmem:[%s8900_s29 + $0x78] sm:$0xff] %vm747_vm2, %v7473_v7 }
 0x8e1   : > { %8541 = shalt.err (!%p8538_p4)
}
 0x8e2   : > { %s8655_s29 = smov 128   ;;  %s8656_s25 = smov 8  }
 0x8e3   : > { %7900 = dma.vmem_to_hbm [thread:$0]  (%p8764_p3), %s7508_s21, 2048, %s7510_s24, %s7492_s17, %s8655_s29, %s8655_s29, %s8656_s25  }
 0x8e4 PF: > { %s14176_s15 = sld [smem:[#allocation40_spill]] }
 0x8e5   : > { %s14177_s27 = sld [smem:[#allocation35_spill]] }
 0x8ea   : > { %p7926_p6 = scmp.ge.s32.totalorder %s14176_s15, 2 }
 0x8eb   : > { %s7524_s18 = sand.u32 1, %s14177_s27  }
 0x8ec   : > { %p7913_p7 = pnand %p7926_p6, %p8773_p8  ;;  %s7525_s20 = scalar_lea.sflag [#allocation7], %s7524_s18 }
 0x8ee   : > { %p7914_p9 = pneg %p7913_p7 }
 0x8f0   : > { %8603 = dma.done.wait (%p7914_p9), %s7525_s20, 2048  }
 0x8f1   : > { %8605 = vsyncadd (%p7914_p9), %s7525_s20, 4294965248  ;;  %s25_s20 = sadd.s32 1, %s14176_s15   ;;  %s14179_s13 = sld [smem:[#allocation36_spill]] }
 0x8f2   : > { %p22_p10 = scmp.ge.s32.totalorder %s25_s20, 6   ;;  %s14180_s14 = sld [smem:[#allocation37_spill]] }
 0x8f3   : > { %s14181_s15 = sld [smem:[#allocation45_spill]] }
 0x8f4   : > { %s14182_s16 = sld [smem:[#allocation38_spill]]  ;;  %24 = sbr.rel (!%p22_p10) target bundleno = 12 (0xc), region = 172 }
 0x8f5   : > { %s14183_s17 = sld [smem:[#allocation39_spill]] }
 0x8f6   : > { %s14184_s18 = sld [smem:[#allocation41_spill]] }
 0x8f7   : > { %s14185_s19 = sld [smem:[#allocation43_spill]] }
 0x8f9   :  { %7531 = vsyncpa [#allocation6], 1 }
 0x8fa   :  { %7533 = vsyncpa [#allocation6 + $0x1], 1 }
 0x8fb   :  { %7534 = vsyncpa [#allocation9], 1 }
 0x8fc   :  { %7535 = vsyncpa [#allocation7], 1 }
 0x8fd   :  { %7537 = vsyncpa [#allocation7 + $0x1], 1 }
 0x8fe   :  { %7538 = vsyncmov [#allocation4] }
 0x901   :  { %s7539_s26 = vpop.sfrf %7538 }
 0x902   :  { %p7752_p3 = scmp.ne.s32.totalorder %s7539_s26, 0 }
 0x904   :  { %7543 = shalt.err (%p7752_p3)  }
 0x905   :  { %7545 = vsyncmov [#allocation4 + $0x1] }
 0x908   :  { %s7546_s7 = vpop.sfrf %7545 }
 0x909   :  { %p7753_p8 = scmp.ne.s32.totalorder %s7546_s7, 0 }
 0x90b   :  { %7550 = shalt.err (%p7753_p8)  }
 0x90c   :  { %7552 = vsyncmov [#allocation4 + $0x2] }
 0x90f   :  { %s7553_s12 = vpop.sfrf %7552 }
 0x910   :  { %p7754_p11 = scmp.ne.s32.totalorder %s7553_s12, 0 }
 0x912   :  { %7557 = shalt.err (%p7754_p11)  }
 0x913   :  { %7559 = vsyncmov [#allocation4 + $0x3] }
 0x916   :  { %s7560_s21 = vpop.sfrf %7559 }
 0x917   :  { %p7755_p13 = scmp.ne.s32.totalorder %s7560_s21, 0 }
 0x919   :  { %7564 = shalt.err (%p7755_p13)  }
 0x91a   :  { %7566 = vsyncmov [#allocation4 + $0x4] }
 0x91d   :  { %s7567_s0 = vpop.sfrf %7566 }
 0x91e   :  { %p7756_p5 = scmp.ne.s32.totalorder %s7567_s0, 0 }
 0x920   :  { %7571 = shalt.err (%p7756_p5)  }
 0x921   :  { %7573 = vsyncmov [#allocation4 + $0x5] }
 0x924   :  { %s7574_s1 = vpop.sfrf %7573 }
 0x925   :  { %p7757_p12 = scmp.ne.s32.totalorder %s7574_s1, 0 }
 0x927   :  { %7578 = shalt.err (%p7757_p12)  }

</bundles_post_ra>
